<compile_context>
chip_gen: v7x
topology: tpu7x:2x2x1
jax: 0.10.0
libtpu: 0.0.40
codegen_flags: <defaults>
</compile_context>

<pallas_src>
import jax
import jax.numpy as jnp
from jax.experimental import pallas as pl
from jax.experimental.pallas import tpu as pltpu

# ---------------- hyperparameters (consistent with the PyTorch module, small) -----------
N_NODES = 8                  # nodes per graph
N_EDGES = 16                 # edges per graph
NODE_INPUT_DIM = 4           # element one-hot size (node_input_irreps.dim)
ELEM_PAD = 8                 # element features zero-padded to 8 (sublane-friendly weight slot)
HIDDEN_SCALARS = 8           # hidden_irreps[0].mul
HIDDEN_DIM = 32              # hidden_irreps.dim
OFFSITE_DIM = 16             # offsite_irreps.dim (== onsite_irreps.dim)
EDGE_SIZE_DIM = 8            # gaussian radial basis size (edge_size_irreps.dim)
NODE_EMB_HIDDEN = 16
NODE_EMB_LAYERS = 2
CONV_LAYERS = 2
WEIGHT_HIDDEN = 16           # radial weight-net hidden units
ADDL_MSG_DIM = 1             # additional_message_features: scalar edge distance
NEIGHBOUR_CUTOFF = 8.0
GAUSS_WIDTH = 250.0

# batching: many graphs per pallas_call, GRAPHS_PER_BLOCK graphs per grid step
GRAPHS_PER_BLOCK = 8
NODES_PER_BLOCK = GRAPHS_PER_BLOCK * N_NODES     # 64
EDGES_PER_BLOCK = GRAPHS_PER_BLOCK * N_EDGES     # 128 (lane-friendly)

# radial weight-nets: (edge_update_1, edge_update_2) per conv layer, then edge_final
WN_OUT_SIZES = [HIDDEN_DIM] * (2 * CONV_LAYERS) + [OFFSITE_DIM]      # [32,32,32,32,16]
N_WN = len(WN_OUT_SIZES)
WN_LANE_PAD = 128            # each weight-net output chunk starts at a 128-lane tile boundary


# ---------------- static slab layouts (row offsets are multiples of 8) ------------------
def _p32_layout():
    off, r = {}, 0
    off["edge_emb"] = r; r += 2 * HIDDEN_DIM                  # [Wsrc; Wdst]
    for l in range(CONV_LAYERS):
        off[f"msg1_{l}"] = r; r += 3 * HIDDEN_DIM             # [Wi; Wj; We] (Wa -> bias slab)
        off[f"msg2_{l}"] = r; r += HIDDEN_DIM
        off[f"upd1_{l}"] = r; r += 2 * HIDDEN_DIM             # [Wx; Wm]
        off[f"upd2_{l}"] = r; r += HIDDEN_DIM
        off[f"edge1_{l}"] = r; r += 2 * HIDDEN_DIM            # [Wi; Wj]
        off[f"edge2_{l}"] = r; r += HIDDEN_DIM
    off["node_emb_out"] = r; r += NODE_EMB_HIDDEN             # (16,8) zero-padded to 32 cols
    return off, r


P32_OFF, P32_ROWS = _p32_layout()


def _p16_layout():
    off, r = {}, 0
    off["node_emb0"] = r; r += ELEM_PAD                       # (4,16) in an 8-row slot
    for j in range(NODE_EMB_LAYERS - 1):
        off[f"node_emb_h{j}"] = r; r += NODE_EMB_HIDDEN
    off["edge_final"] = r; r += HIDDEN_DIM
    off["node_final2"] = r; r += HIDDEN_DIM
    return off, r


P16_OFF, P16_ROWS = _p16_layout()


def _bias_layout():
    names = ["ne0"] + [f"ne_h{j}" for j in range(NODE_EMB_LAYERS - 1)] + ["ne_out", "ee", "wn_b1"]
    for l in range(CONV_LAYERS):
        names += [f"{n}_{l}" for n in
                  ["msg1_wa", "msg1_b", "msg2_b", "upd1_b", "upd2_b", "edge1_b", "edge2_b"]]
    names += [f"wn_b2_{i}" for i in range(N_WN)] + ["edge_final_b"]
    return {n: i for i, n in enumerate(names)}, len(names)


BIAS_OFF, BIAS_ROWS = _bias_layout()


# ---------------- the fused kernel -------------------------------------------------------
def _swish(v):
    # exp + reciprocal both land on the EUP slot -> off the VALU / serial-matmul path.
    return v * pl.reciprocal(1.0 + jnp.exp(-v), approx=True)


def _fused_segnn_kernel(element_ref, dist_ref, ij_ref, dst_row_ref, se_ref,
                        p32_ref, p16_ref, wn1_ref, wn2_ref, pbias_ref, out_ref):
    f32 = jnp.float32
    E = EDGES_PER_BLOCK
    N = NODES_PER_BLOCK

    def dot(a, b):
        return jnp.dot(a, b, preferred_element_type=f32)

    def w32(off, rows):
        return p32_ref[off:off + rows, :]

    def w16(off, rows):
        return p16_ref[off:off + rows, :]

    def bias(name, width):
        r = BIAS_OFF[name]
        return pbias_ref[r:r + 1, :width]

    element = element_ref[...]                       # (N, ELEM_PAD)
    dist = dist_ref[...]                             # (E, 1)
    se = se_ref[...]                                 # (E, 1)

    # gather one-hot: rows [:E] select x[dst] (PyG x_i), rows [E:] select x[src] (x_j)
    iota_g = jax.lax.broadcasted_iota(jnp.int32, (2 * E, N), 1)
    G = jnp.where(iota_g == ij_ref[...], 1.0, 0.0).astype(f32)
    # scatter-add one-hot (PyG aggr='add')
    iota_s = jax.lax.broadcasted_iota(jnp.int32, (N, E), 0)
    s_dst = jnp.where(iota_s == dst_row_ref[...], 1.0, 0.0).astype(f32)

    def gather(v):                                   # one MXU matmul -> both x_i and x_j
        g = dot(G, v)
        return g[:E], g[E:]

    # ---- node embedding MLP; final layer is zero-padded to 32 cols so x[:, 8:] == 0 ----
    h = jnp.maximum(dot(element, w16(P16_OFF["node_emb0"], ELEM_PAD))
                    + bias("ne0", NODE_EMB_HIDDEN), 0.0)
    for j in range(NODE_EMB_LAYERS - 1):
        h = jnp.maximum(dot(h, w16(P16_OFF[f"node_emb_h{j}"], NODE_EMB_HIDDEN))
                        + bias(f"ne_h{j}", NODE_EMB_HIDDEN), 0.0)
    x = dot(h, w32(P32_OFF["node_emb_out"], NODE_EMB_HIDDEN)) + bias("ne_out", HIDDEN_DIM)

    # ---- gaussian radial basis + all radial weight-nets (lane-tile-aligned outputs) ----
    mu = (jax.lax.broadcasted_iota(jnp.int32, (E, EDGE_SIZE_DIM), 1).astype(f32)
          * (NEIGHBOUR_CUTOFF / (EDGE_SIZE_DIM - 1)))
    gauss = jnp.exp(-GAUSS_WIDTH * (dist - mu) ** 2)
    h_wn = _swish(dot(gauss, wn1_ref[...]) + bias("wn_b1", N_WN * WEIGHT_HIDDEN))
    w_all = dot(h_wn, wn2_ref[...])                  # (E, N_WN*128): chunk i starts at lane 128*i

    def wn_out(i):
        width = WN_OUT_SIZES[i]
        return w_all[:, WN_LANE_PAD * i:WN_LANE_PAD * i + width] + bias(f"wn_b2_{i}", width)

    # ---- edge embedding: Linear(cat(x[src], x[dst])) as row-split matmuls ----------------
    x_i, x_j = gather(x)
    o = P32_OFF["edge_emb"]
    edge = (dot(x_j, w32(o, HIDDEN_DIM)) + dot(x_i, w32(o + HIDDEN_DIM, HIDDEN_DIM))
            + bias("ee", HIDDEN_DIM))

    # ---- SEGNN conv layers ----------------------------------------------------------------
    for l in range(CONV_LAYERS):
        x_i, x_j = gather(x)
        o = P32_OFF[f"msg1_{l}"]
        # message(): Linear(cat(dist, x_i, x_j, edge)); the concat is a sum of matmuls
        m = (dot(x_i, w32(o, HIDDEN_DIM))
             + dot(x_j, w32(o + HIDDEN_DIM, HIDDEN_DIM))
             + dot(edge, w32(o + 2 * HIDDEN_DIM, HIDDEN_DIM))
             + dist * bias(f"msg1_wa_{l}", HIDDEN_DIM)
             + bias(f"msg1_b_{l}", HIDDEN_DIM))
        m = _swish(m)
        m = _swish(dot(m, w32(P32_OFF[f"msg2_{l}"], HIDDEN_DIM)) + bias(f"msg2_b_{l}", HIDDEN_DIM))
        agg = dot(s_dst, m)                          # aggregate (aggr='add') on the MXU
        o = P32_OFF[f"upd1_{l}"]
        u = (dot(x, w32(o, HIDDEN_DIM)) + dot(agg, w32(o + HIDDEN_DIM, HIDDEN_DIM))
             + bias(f"upd1_b_{l}", HIDDEN_DIM))
        u = dot(u, w32(P32_OFF[f"upd2_{l}"], HIDDEN_DIM)) + bias(f"upd2_b_{l}", HIDDEN_DIM)
        x = x + u                                    # resnet_node
        # edge_update(): radial weight modulates the linear term, then bias + swish
        x_i, x_j = gather(x)
        o = P32_OFF[f"edge1_{l}"]
        e = ((dot(x_i, w32(o, HIDDEN_DIM)) + dot(x_j, w32(o + HIDDEN_DIM, HIDDEN_DIM)))
             * wn_out(2 * l) + bias(f"edge1_b_{l}", HIDDEN_DIM))
        e = _swish(e)
        e = _swish(dot(e, w32(P32_OFF[f"edge2_{l}"], HIDDEN_DIM)) * wn_out(2 * l + 1)
                   + bias(f"edge2_b_{l}", HIDDEN_DIM))
        edge = edge + e                              # resnet_edge

    # ---- final projections ------------------------------------------------------------------
    edge = (dot(edge, w16(P16_OFF["edge_final"], HIDDEN_DIM)) * wn_out(2 * CONV_LAYERS)
            + bias("edge_final_b", OFFSITE_DIM))
    x_out = dot(x, w16(P16_OFF["node_final2"], HIDDEN_DIM))   # no bias
    x_out_src = dot(G[E:], x_out)                             # x_out[src]
    # self-energy edges are replaced by the source node's onsite prediction (arithmetic blend)
    out_ref[...] = se * x_out_src + (1.0 - se) * edge


# ---------------- wrapper: one pallas_call over graph blocks ----------------------------
def edge_segnn_forward(packed_params, element, edge_index, selfenergy, rotD,
                       additional_message_features):
    """element: (G*N_NODES, NODE_INPUT_DIM) one-hot; edge_index: (2, G*N_EDGES) global node
    ids in standard PyG-Batch layout (graphs packed contiguously, so edges never cross a
    graph-block boundary)."""
    del rotD  # TODO(synk): Wigner-D 'in'/'out' rotations and irreps-aware gating need the
    # e3nn irreps decomposition (not in the provided code); all-scalar hidden irreps assumed.
    f32 = jnp.float32
    total_nodes = element.shape[0]
    total_edges = edge_index.shape[1]
    num_blocks = total_nodes // NODES_PER_BLOCK
    assert total_nodes == num_blocks * NODES_PER_BLOCK
    assert total_edges == num_blocks * EDGES_PER_BLOCK

    elem = jnp.zeros((total_nodes, ELEM_PAD), f32).at[:, :NODE_INPUT_DIM].set(element.astype(f32))
    src = edge_index[0].astype(jnp.int32) % NODES_PER_BLOCK   # block-local node ids
    dst = edge_index[1].astype(jnp.int32) % NODES_PER_BLOCK
    # per block: rows [0:E] = dst (gathers x_i), rows [E:2E] = src (gathers x_j)
    ij = jnp.concatenate(
        [dst.reshape(num_blocks, EDGES_PER_BLOCK), src.reshape(num_blocks, EDGES_PER_BLOCK)],
        axis=1).reshape(num_blocks * 2 * EDGES_PER_BLOCK, 1)
    dst_row = dst.reshape(1, total_edges)
    se = selfenergy.astype(f32).reshape(total_edges, 1)
    dist = additional_message_features.astype(f32)

    p32, p16, wn1, wn2, pbias = packed_params
    resident = lambda i: (0, 0)   # constant index_map -> params DMA'd once, stay VMEM-resident

    return pl.pallas_call(
        _fused_segnn_kernel,
        out_shape=jax.ShapeDtypeStruct((total_edges, OFFSITE_DIM), jnp.float32),
        grid=(num_blocks,),
        in_specs=[
            pl.BlockSpec((NODES_PER_BLOCK, ELEM_PAD), lambda i: (i, 0)),      # element
            pl.BlockSpec((EDGES_PER_BLOCK, 1), lambda i: (i, 0)),             # dist
            pl.BlockSpec((2 * EDGES_PER_BLOCK, 1), lambda i: (i, 0)),         # stacked [dst;src]
            pl.BlockSpec((1, EDGES_PER_BLOCK), lambda i: (0, i)),             # dst row (scatter)
            pl.BlockSpec((EDGES_PER_BLOCK, 1), lambda i: (i, 0)),             # self-energy mask
            pl.BlockSpec(p32.shape, resident),
            pl.BlockSpec(p16.shape, resident),
            pl.BlockSpec(wn1.shape, resident),
            pl.BlockSpec(wn2.shape, resident),
            pl.BlockSpec(pbias.shape, resident),
        ],
        out_specs=pl.BlockSpec((EDGES_PER_BLOCK, OFFSITE_DIM), lambda i: (i, 0)),
        compiler_params=pltpu.CompilerParams(
            dimension_semantics=("parallel",),   # graph blocks are independent (2 TCs on v7x)
        ),
    )(elem, dist, ij, dst_row, se, p32, p16, wn1, wn2, pbias)


# ---------------- parameter init (torch-shaped) + packing into lane-dense slabs ----------
def dense_init(key, fan_in, fan_out, bias=True):
    kw, kb = jax.random.split(key)
    lim = 1.0 / (fan_in ** 0.5)
    layer = {"W": jax.random.uniform(kw, (fan_in, fan_out), jnp.float32, -lim, lim)}
    if bias:
        layer["b"] = jax.random.uniform(kb, (fan_out,), jnp.float32, -lim, lim)
    return layer


def init_params(key):
    keys = iter(jax.random.split(key, 64))
    params = {}
    emb = [dense_init(next(keys), NODE_INPUT_DIM, NODE_EMB_HIDDEN)]
    for _ in range(NODE_EMB_LAYERS - 1):
        emb.append(dense_init(next(keys), NODE_EMB_HIDDEN, NODE_EMB_HIDDEN))
    emb.append(dense_init(next(keys), NODE_EMB_HIDDEN, HIDDEN_SCALARS))
    params["node_embedding"] = emb
    params["edge_embedding"] = dense_init(next(keys), 2 * HIDDEN_DIM, HIDDEN_DIM)
    params["layers"] = [{
        "msg1": dense_init(next(keys), ADDL_MSG_DIM + 3 * HIDDEN_DIM, HIDDEN_DIM),
        "msg2": dense_init(next(keys), HIDDEN_DIM, HIDDEN_DIM),
        "upd1": dense_init(next(keys), 2 * HIDDEN_DIM, HIDDEN_DIM),
        "upd2": dense_init(next(keys), HIDDEN_DIM, HIDDEN_DIM),
        "edge1": dense_init(next(keys), 2 * HIDDEN_DIM, HIDDEN_DIM),
        "edge2": dense_init(next(keys), HIDDEN_DIM, HIDDEN_DIM),
    } for _ in range(CONV_LAYERS)]
    params["weightnets"] = [
        {"l1": dense_init(next(keys), EDGE_SIZE_DIM, WEIGHT_HIDDEN),
         "l2": dense_init(next(keys), WEIGHT_HIDDEN, out)} for out in WN_OUT_SIZES]
    params["edge_final"] = dense_init(next(keys), HIDDEN_DIM, OFFSITE_DIM)
    params["node_final2"] = dense_init(next(keys), HIDDEN_DIM, OFFSITE_DIM, bias=False)
    return params


def pack_params(params):
    """Collapse all parameters into 5 lane-dense slabs (few large DMAs instead of ~50 tiny ones)."""
    f32 = jnp.float32
    p32 = jnp.zeros((P32_ROWS, HIDDEN_DIM), f32)
    p16 = jnp.zeros((P16_ROWS, OFFSITE_DIM), f32)
    wn1 = jnp.zeros((EDGE_SIZE_DIM, N_WN * WEIGHT_HIDDEN), f32)
    wn2 = jnp.zeros((N_WN * WEIGHT_HIDDEN, N_WN * WN_LANE_PAD), f32)
    pbias = jnp.zeros((BIAS_ROWS, 128), f32)

    def set_rows(slab, off, W):
        return slab.at[off:off + W.shape[0], :W.shape[1]].set(W)

    def set_bias(slab, name, b):
        return slab.at[BIAS_OFF[name], :b.shape[0]].set(b)

    ne = params["node_embedding"]
    p16 = set_rows(p16, P16_OFF["node_emb0"], ne[0]["W"])       # rows 4:8 stay zero (elem padded)
    pbias = set_bias(pbias, "ne0", ne[0]["b"])
    for j in range(NODE_EMB_LAYERS - 1):
        p16 = set_rows(p16, P16_OFF[f"node_emb_h{j}"], ne[1 + j]["W"])
        pbias = set_bias(pbias, f"ne_h{j}", ne[1 + j]["b"])
    p32 = set_rows(p32, P32_OFF["node_emb_out"], ne[-1]["W"])   # cols 8:32 stay zero -> x[:,8:]=0
    pbias = set_bias(pbias, "ne_out", ne[-1]["b"])

    p32 = set_rows(p32, P32_OFF["edge_emb"], params["edge_embedding"]["W"])
    pbias = set_bias(pbias, "ee", params["edge_embedding"]["b"])

    for l, lp in enumerate(params["layers"]):
        Wm1 = lp["msg1"]["W"]                                   # cat order: [dist, x_i, x_j, edge]
        pbias = set_bias(pbias, f"msg1_wa_{l}", Wm1[0])         # distance row (1,32)
        p32 = set_rows(p32, P32_OFF[f"msg1_{l}"], Wm1[1:])      # [Wi; Wj; We]
        pbias = set_bias(pbias, f"msg1_b_{l}", lp["msg1"]["b"])
        p32 = set_rows(p32, P32_OFF[f"msg2_{l}"], lp["msg2"]["W"])
        pbias = set_bias(pbias, f"msg2_b_{l}", lp["msg2"]["b"])
        p32 = set_rows(p32, P32_OFF[f"upd1_{l}"], lp["upd1"]["W"])
        pbias = set_bias(pbias, f"upd1_b_{l}", lp["upd1"]["b"])
        p32 = set_rows(p32, P32_OFF[f"upd2_{l}"], lp["upd2"]["W"])
        pbias = set_bias(pbias, f"upd2_b_{l}", lp["upd2"]["b"])
        p32 = set_rows(p32, P32_OFF[f"edge1_{l}"], lp["edge1"]["W"])
        pbias = set_bias(pbias, f"edge1_b_{l}", lp["edge1"]["b"])
        p32 = set_rows(p32, P32_OFF[f"edge2_{l}"], lp["edge2"]["W"])
        pbias = set_bias(pbias, f"edge2_b_{l}", lp["edge2"]["b"])

    b1_all = []
    for i, wn in enumerate(params["weightnets"]):
        wn1 = wn1.at[:, i * WEIGHT_HIDDEN:(i + 1) * WEIGHT_HIDDEN].set(wn["l1"]["W"])
        b1_all.append(wn["l1"]["b"])
        wn2 = wn2.at[i * WEIGHT_HIDDEN:(i + 1) * WEIGHT_HIDDEN,
                     i * WN_LANE_PAD:i * WN_LANE_PAD + WN_OUT_SIZES[i]].set(wn["l2"]["W"])
        pbias = set_bias(pbias, f"wn_b2_{i}", wn["l2"]["b"])
    pbias = set_bias(pbias, "wn_b1", jnp.concatenate(b1_all))

    p16 = set_rows(p16, P16_OFF["edge_final"], params["edge_final"]["W"])
    pbias = set_bias(pbias, "edge_final_b", params["edge_final"]["b"])
    p16 = set_rows(p16, P16_OFF["node_final2"], params["node_final2"]["W"])
    return p32, p16, wn1, wn2, pbias


# ---------------- demo ---------------------------------------------------------------------
if __name__ == "__main__":
    key = jax.random.PRNGKey(0)
    kp, ke, kd, ks, kei = jax.random.split(key, 5)
    params = init_params(kp)
    packed = pack_params(params)

    num_graphs = 32                                  # 4 graph blocks of 8 graphs each
    total_nodes = num_graphs * N_NODES               # 256
    total_edges = num_graphs * N_EDGES               # 512

    element = jax.nn.one_hot(
        jax.random.randint(ke, (total_nodes,), 0, NODE_INPUT_DIM),
        NODE_INPUT_DIM, dtype=jnp.float32)
    # block-diagonal batched graph: per-graph random edges offset to global node ids
    local_edges = jax.random.randint(kei, (num_graphs, 2, N_EDGES), 0, N_NODES)
    node_offsets = (jnp.arange(num_graphs) * N_NODES)[:, None, None]
    edge_index = jnp.transpose(local_edges + node_offsets, (1, 0, 2)).reshape(2, total_edges)
    additional_message_features = jax.random.uniform(
        kd, (total_edges, ADDL_MSG_DIM), jnp.float32, 0.0, NEIGHBOUR_CUTOFF)
    selfenergy = jax.random.bernoulli(ks, 0.25, (total_edges,))
    rotD = jnp.tile(jnp.eye(HIDDEN_DIM, dtype=jnp.float32)[None], (total_edges, 1, 1))

    fwd = jax.jit(edge_segnn_forward)
    out = fwd(packed, element, edge_index, selfenergy, rotD, additional_message_features)
    out = jax.block_until_ready(out)
    assert out.shape == (total_edges, OFFSITE_DIM) and out.dtype == jnp.float32
    assert bool(jnp.all(jnp.isfinite(out)))
    print("KERNEL_OK")
</pallas_src>

<mosaic_0001>
module attributes {stable_mosaic.version = 11 : i64} {
  func.func @_fused_segnn_kernel(%arg0: i32, %arg1: memref<64x8xf32, #tpu.memory_space<vmem>>, %arg2: memref<128x1xf32, #tpu.memory_space<vmem>>, %arg3: memref<256x1xi32, #tpu.memory_space<vmem>>, %arg4: memref<1x128xi32, #tpu.memory_space<vmem>>, %arg5: memref<128x1xf32, #tpu.memory_space<vmem>>, %arg6: memref<720x32xf32, #tpu.memory_space<vmem>>, %arg7: memref<88x16xf32, #tpu.memory_space<vmem>>, %arg8: memref<8x80xf32, #tpu.memory_space<vmem>>, %arg9: memref<80x640xf32, #tpu.memory_space<vmem>>, %arg10: memref<25x128xf32, #tpu.memory_space<vmem>>, %arg11: memref<128x16xf32, #tpu.memory_space<vmem>>) attributes {dimension_semantics = [#tpu.dimension_semantics<parallel>], iteration_bounds = array<i64: 4>, scalar_prefetch = 0 : i64, scratch_operands = 0 : i64, tpu.core_type = #tpu.core_type<tc>, window_params = [{transform_indices = @transform_0, window_bounds = array<i64: 64, 8>}, {transform_indices = @transform_1, window_bounds = array<i64: 128, 1>}, {transform_indices = @transform_2, window_bounds = array<i64: 256, 1>}, {transform_indices = @transform_3, window_bounds = array<i64: 1, 128>}, {transform_indices = @transform_4, window_bounds = array<i64: 128, 1>}, {pipeline_mode = #tpu.pipeline_mode<synchronous>, transform_indices = @transform_5, window_bounds = array<i64: 720, 32>}, {pipeline_mode = #tpu.pipeline_mode<synchronous>, transform_indices = @transform_6, window_bounds = array<i64: 88, 16>}, {pipeline_mode = #tpu.pipeline_mode<synchronous>, transform_indices = @transform_7, window_bounds = array<i64: 8, 80>}, {pipeline_mode = #tpu.pipeline_mode<synchronous>, transform_indices = @transform_8, window_bounds = array<i64: 80, 640>}, {pipeline_mode = #tpu.pipeline_mode<synchronous>, transform_indices = @transform_9, window_bounds = array<i64: 25, 128>}, {transform_indices = @transform_10, window_bounds = array<i64: 128, 16>}]} {
    %c0 = arith.constant 0 : index
    %c0_0 = arith.constant 0 : index
    %0 = vector.load %arg1[%c0, %c0_0] : memref<64x8xf32, #tpu.memory_space<vmem>>, vector<64x8xf32>
    %c0_1 = arith.constant 0 : index
    %c0_2 = arith.constant 0 : index
    %1 = vector.load %arg2[%c0_1, %c0_2] : memref<128x1xf32, #tpu.memory_space<vmem>>, vector<128x1xf32>
    %c0_3 = arith.constant 0 : index
    %c0_4 = arith.constant 0 : index
    %2 = vector.load %arg5[%c0_3, %c0_4] : memref<128x1xf32, #tpu.memory_space<vmem>>, vector<128x1xf32>
    %3 = tpu.iota {dimensions = array<i32: 1>} : vector<256x64xi32>
    %c0_5 = arith.constant 0 : index
    %c0_6 = arith.constant 0 : index
    %4 = vector.load %arg3[%c0_5, %c0_6] : memref<256x1xi32, #tpu.memory_space<vmem>>, vector<256x1xi32>
    %5 = vector.broadcast %4 : vector<256x1xi32> to vector<256x64xi32>
    %6 = arith.cmpi eq, %3, %5 : vector<256x64xi32>
    %cst = arith.constant 1.000000e+00 : f32
    %cst_7 = arith.constant 0.000000e+00 : f32
    %7 = vector.broadcast %cst : f32 to vector<256x64xf32>
    %8 = vector.broadcast %cst_7 : f32 to vector<256x64xf32>
    %9 = arith.select %6, %7, %8 : vector<256x64xi1>, vector<256x64xf32>
    %10 = tpu.iota {dimensions = array<i32: 0>} : vector<64x128xi32>
    %c0_8 = arith.constant 0 : index
    %c0_9 = arith.constant 0 : index
    %11 = vector.load %arg4[%c0_8, %c0_9] : memref<1x128xi32, #tpu.memory_space<vmem>>, vector<1x128xi32>
    %12 = vector.broadcast %11 : vector<1x128xi32> to vector<64x128xi32>
    %13 = arith.cmpi eq, %10, %12 : vector<64x128xi32>
    %cst_10 = arith.constant 1.000000e+00 : f32
    %cst_11 = arith.constant 0.000000e+00 : f32
    %14 = vector.broadcast %cst_10 : f32 to vector<64x128xf32>
    %15 = vector.broadcast %cst_11 : f32 to vector<64x128xf32>
    %16 = arith.select %13, %14, %15 : vector<64x128xi1>, vector<64x128xf32>
    %c0_12 = arith.constant 0 : index
    %c0_13 = arith.constant 0 : index
    %17 = vector.load %arg7[%c0_12, %c0_13] : memref<88x16xf32, #tpu.memory_space<vmem>>, vector<8x16xf32>
    %cst_14 = arith.constant dense<0.000000e+00> : vector<64x16xf32>
    %18 = tpu.matmul %0, %17, %cst_14 {dimension_numbers = #tpu.dot_dimension_numbers<[1], [0], [0], [1], [0, 0, 1, 1], [], []>} : vector<64x8xf32>, vector<8x16xf32>, vector<64x16xf32> -> vector<64x16xf32>
    %c0_15 = arith.constant 0 : index
    %c0_16 = arith.constant 0 : index
    %19 = vector.load %arg10[%c0_15, %c0_16] : memref<25x128xf32, #tpu.memory_space<vmem>>, vector<1x16xf32>
    %20 = vector.broadcast %19 : vector<1x16xf32> to vector<64x16xf32>
    %21 = arith.addf %18, %20 : vector<64x16xf32>
    %cst_17 = arith.constant 0.000000e+00 : f32
    %22 = vector.broadcast %cst_17 : f32 to vector<64x16xf32>
    %23 = arith.maximumf %21, %22 : vector<64x16xf32>
    %c8 = arith.constant 8 : index
    %c0_18 = arith.constant 0 : index
    %24 = vector.load %arg7[%c8, %c0_18] : memref<88x16xf32, #tpu.memory_space<vmem>>, vector<16x16xf32>
    %cst_19 = arith.constant dense<0.000000e+00> : vector<64x16xf32>
    %25 = tpu.matmul %23, %24, %cst_19 {dimension_numbers = #tpu.dot_dimension_numbers<[1], [0], [0], [1], [0, 0, 1, 1], [], []>} : vector<64x16xf32>, vector<16x16xf32>, vector<64x16xf32> -> vector<64x16xf32>
    %c1 = arith.constant 1 : index
    %c0_20 = arith.constant 0 : index
    %26 = vector.load %arg10[%c1, %c0_20] : memref<25x128xf32, #tpu.memory_space<vmem>>, vector<1x16xf32>
    %27 = vector.broadcast %26 : vector<1x16xf32> to vector<64x16xf32>
    %28 = arith.addf %25, %27 : vector<64x16xf32>
    %cst_21 = arith.constant 0.000000e+00 : f32
    %29 = vector.broadcast %cst_21 : f32 to vector<64x16xf32>
    %30 = arith.maximumf %28, %29 : vector<64x16xf32>
    %c704 = arith.constant 704 : index
    %c0_22 = arith.constant 0 : index
    %31 = vector.load %arg6[%c704, %c0_22] : memref<720x32xf32, #tpu.memory_space<vmem>>, vector<16x32xf32>
    %cst_23 = arith.constant dense<0.000000e+00> : vector<64x32xf32>
    %32 = tpu.matmul %30, %31, %cst_23 {dimension_numbers = #tpu.dot_dimension_numbers<[1], [0], [0], [1], [0, 0, 1, 1], [], []>} : vector<64x16xf32>, vector<16x32xf32>, vector<64x32xf32> -> vector<64x32xf32>
    %c2 = arith.constant 2 : index
    %c0_24 = arith.constant 0 : index
    %33 = vector.load %arg10[%c2, %c0_24] : memref<25x128xf32, #tpu.memory_space<vmem>>, vector<1x32xf32>
    %34 = vector.broadcast %33 : vector<1x32xf32> to vector<64x32xf32>
    %35 = arith.addf %32, %34 : vector<64x32xf32>
    %36 = tpu.iota {dimensions = array<i32: 1>} : vector<128x8xi32>
    %37 = arith.sitofp %36 : vector<128x8xi32> to vector<128x8xf32>
    %cst_25 = arith.constant 1.14285719 : f32
    %38 = vector.broadcast %cst_25 : f32 to vector<128x8xf32>
    %39 = arith.mulf %37, %38 : vector<128x8xf32>
    %40 = vector.broadcast %1 : vector<128x1xf32> to vector<128x8xf32>
    %41 = arith.subf %40, %39 : vector<128x8xf32>
    %42 = arith.mulf %41, %41 : vector<128x8xf32>
    %cst_26 = arith.constant -2.500000e+02 : f32
    %43 = vector.broadcast %cst_26 : f32 to vector<128x8xf32>
    %44 = arith.mulf %43, %42 : vector<128x8xf32>
    %45 = math.exp %44 : vector<128x8xf32>
    %c0_27 = arith.constant 0 : index
    %c0_28 = arith.constant 0 : index
    %46 = vector.load %arg8[%c0_27, %c0_28] : memref<8x80xf32, #tpu.memory_space<vmem>>, vector<8x80xf32>
    %cst_29 = arith.constant dense<0.000000e+00> : vector<128x80xf32>
    %47 = tpu.matmul %45, %46, %cst_29 {dimension_numbers = #tpu.dot_dimension_numbers<[1], [0], [0], [1], [0, 0, 1, 1], [], []>} : vector<128x8xf32>, vector<8x80xf32>, vector<128x80xf32> -> vector<128x80xf32>
    %c4 = arith.constant 4 : index
    %c0_30 = arith.constant 0 : index
    %48 = vector.load %arg10[%c4, %c0_30] : memref<25x128xf32, #tpu.memory_space<vmem>>, vector<1x80xf32>
    %49 = vector.broadcast %48 : vector<1x80xf32> to vector<128x80xf32>
    %50 = arith.addf %47, %49 : vector<128x80xf32>
    %cst_31 = arith.constant 0.000000e+00 : f32
    %51 = vector.broadcast %cst_31 : f32 to vector<128x80xf32>
    %52 = arith.subf %51, %50 : vector<128x80xf32>
    %53 = math.exp %52 : vector<128x80xf32>
    %cst_32 = arith.constant 1.000000e+00 : f32
    %54 = vector.broadcast %cst_32 : f32 to vector<128x80xf32>
    %55 = arith.addf %54, %53 : vector<128x80xf32>
    %56 = tpu.reciprocal %55 {approx = true} : vector<128x80xf32> -> vector<128x80xf32>
    %57 = arith.mulf %50, %56 : vector<128x80xf32>
    %c0_33 = arith.constant 0 : index
    %c0_34 = arith.constant 0 : index
    %58 = vector.load %arg9[%c0_33, %c0_34] : memref<80x640xf32, #tpu.memory_space<vmem>>, vector<80x640xf32>
    %cst_35 = arith.constant dense<0.000000e+00> : vector<128x640xf32>
    %59 = tpu.matmul %57, %58, %cst_35 {dimension_numbers = #tpu.dot_dimension_numbers<[1], [0], [0], [1], [0, 0, 1, 1], [], []>} : vector<128x80xf32>, vector<80x640xf32>, vector<128x640xf32> -> vector<128x640xf32>
    %cst_36 = arith.constant dense<0.000000e+00> : vector<256x32xf32>
    %60 = tpu.matmul %9, %35, %cst_36 {dimension_numbers = #tpu.dot_dimension_numbers<[1], [0], [0], [1], [0, 0, 1, 1], [], []>} : vector<256x64xf32>, vector<64x32xf32>, vector<256x32xf32> -> vector<256x32xf32>
    %61 = vector.extract_strided_slice %60 {offsets = [0, 0], sizes = [128, 32], strides = [1, 1]} : vector<256x32xf32> to vector<128x32xf32>
    %62 = vector.extract_strided_slice %60 {offsets = [128, 0], sizes = [128, 32], strides = [1, 1]} : vector<256x32xf32> to vector<128x32xf32>
    %c0_37 = arith.constant 0 : index
    %c0_38 = arith.constant 0 : index
    %63 = vector.load %arg6[%c0_37, %c0_38] : memref<720x32xf32, #tpu.memory_space<vmem>>, vector<32x32xf32>
    %cst_39 = arith.constant dense<0.000000e+00> : vector<128x32xf32>
    %64 = tpu.matmul %62, %63, %cst_39 {dimension_numbers = #tpu.dot_dimension_numbers<[1], [0], [0], [1], [0, 0, 1, 1], [], []>} : vector<128x32xf32>, vector<32x32xf32>, vector<128x32xf32> -> vector<128x32xf32>
    %c32 = arith.constant 32 : index
    %c0_40 = arith.constant 0 : index
    %65 = vector.load %arg6[%c32, %c0_40] : memref<720x32xf32, #tpu.memory_space<vmem>>, vector<32x32xf32>
    %cst_41 = arith.constant dense<0.000000e+00> : vector<128x32xf32>
    %66 = tpu.matmul %61, %65, %cst_41 {dimension_numbers = #tpu.dot_dimension_numbers<[1], [0], [0], [1], [0, 0, 1, 1], [], []>} : vector<128x32xf32>, vector<32x32xf32>, vector<128x32xf32> -> vector<128x32xf32>
    %67 = arith.addf %64, %66 : vector<128x32xf32>
    %c3 = arith.constant 3 : index
    %c0_42 = arith.constant 0 : index
    %68 = vector.load %arg10[%c3, %c0_42] : memref<25x128xf32, #tpu.memory_space<vmem>>, vector<1x32xf32>
    %69 = vector.broadcast %68 : vector<1x32xf32> to vector<128x32xf32>
    %70 = arith.addf %67, %69 : vector<128x32xf32>
    %cst_43 = arith.constant dense<0.000000e+00> : vector<256x32xf32>
    %71 = tpu.matmul %9, %35, %cst_43 {dimension_numbers = #tpu.dot_dimension_numbers<[1], [0], [0], [1], [0, 0, 1, 1], [], []>} : vector<256x64xf32>, vector<64x32xf32>, vector<256x32xf32> -> vector<256x32xf32>
    %72 = vector.extract_strided_slice %71 {offsets = [0, 0], sizes = [128, 32], strides = [1, 1]} : vector<256x32xf32> to vector<128x32xf32>
    %73 = vector.extract_strided_slice %71 {offsets = [128, 0], sizes = [128, 32], strides = [1, 1]} : vector<256x32xf32> to vector<128x32xf32>
    %c64 = arith.constant 64 : index
    %c0_44 = arith.constant 0 : index
    %74 = vector.load %arg6[%c64, %c0_44] : memref<720x32xf32, #tpu.memory_space<vmem>>, vector<32x32xf32>
    %cst_45 = arith.constant dense<0.000000e+00> : vector<128x32xf32>
    %75 = tpu.matmul %72, %74, %cst_45 {dimension_numbers = #tpu.dot_dimension_numbers<[1], [0], [0], [1], [0, 0, 1, 1], [], []>} : vector<128x32xf32>, vector<32x32xf32>, vector<128x32xf32> -> vector<128x32xf32>
    %c96 = arith.constant 96 : index
    %c0_46 = arith.constant 0 : index
    %76 = vector.load %arg6[%c96, %c0_46] : memref<720x32xf32, #tpu.memory_space<vmem>>, vector<32x32xf32>
    %cst_47 = arith.constant dense<0.000000e+00> : vector<128x32xf32>
    %77 = tpu.matmul %73, %76, %cst_47 {dimension_numbers = #tpu.dot_dimension_numbers<[1], [0], [0], [1], [0, 0, 1, 1], [], []>} : vector<128x32xf32>, vector<32x32xf32>, vector<128x32xf32> -> vector<128x32xf32>
    %78 = arith.addf %75, %77 : vector<128x32xf32>
    %c128 = arith.constant 128 : index
    %c0_48 = arith.constant 0 : index
    %79 = vector.load %arg6[%c128, %c0_48] : memref<720x32xf32, #tpu.memory_space<vmem>>, vector<32x32xf32>
    %cst_49 = arith.constant dense<0.000000e+00> : vector<128x32xf32>
    %80 = tpu.matmul %70, %79, %cst_49 {dimension_numbers = #tpu.dot_dimension_numbers<[1], [0], [0], [1], [0, 0, 1, 1], [], []>} : vector<128x32xf32>, vector<32x32xf32>, vector<128x32xf32> -> vector<128x32xf32>
    %81 = arith.addf %78, %80 : vector<128x32xf32>
    %c5 = arith.constant 5 : index
    %c0_50 = arith.constant 0 : index
    %82 = vector.load %arg10[%c5, %c0_50] : memref<25x128xf32, #tpu.memory_space<vmem>>, vector<1x32xf32>
    %83 = vector.broadcast %1 : vector<128x1xf32> to vector<128x32xf32>
    %84 = vector.broadcast %82 : vector<1x32xf32> to vector<128x32xf32>
    %85 = arith.mulf %83, %84 : vector<128x32xf32>
    %86 = arith.addf %81, %85 : vector<128x32xf32>
    %c6 = arith.constant 6 : index
    %c0_51 = arith.constant 0 : index
    %87 = vector.load %arg10[%c6, %c0_51] : memref<25x128xf32, #tpu.memory_space<vmem>>, vector<1x32xf32>
    %88 = vector.broadcast %87 : vector<1x32xf32> to vector<128x32xf32>
    %89 = arith.addf %86, %88 : vector<128x32xf32>
    %cst_52 = arith.constant 0.000000e+00 : f32
    %90 = vector.broadcast %cst_52 : f32 to vector<128x32xf32>
    %91 = arith.subf %90, %89 : vector<128x32xf32>
    %92 = math.exp %91 : vector<128x32xf32>
    %cst_53 = arith.constant 1.000000e+00 : f32
    %93 = vector.broadcast %cst_53 : f32 to vector<128x32xf32>
    %94 = arith.addf %93, %92 : vector<128x32xf32>
    %95 = tpu.reciprocal %94 {approx = true} : vector<128x32xf32> -> vector<128x32xf32>
    %96 = arith.mulf %89, %95 : vector<128x32xf32>
    %c160 = arith.constant 160 : index
    %c0_54 = arith.constant 0 : index
    %97 = vector.load %arg6[%c160, %c0_54] : memref<720x32xf32, #tpu.memory_space<vmem>>, vector<32x32xf32>
    %cst_55 = arith.constant dense<0.000000e+00> : vector<128x32xf32>
    %98 = tpu.matmul %96, %97, %cst_55 {dimension_numbers = #tpu.dot_dimension_numbers<[1], [0], [0], [1], [0, 0, 1, 1], [], []>} : vector<128x32xf32>, vector<32x32xf32>, vector<128x32xf32> -> vector<128x32xf32>
    %c7 = arith.constant 7 : index
    %c0_56 = arith.constant 0 : index
    %99 = vector.load %arg10[%c7, %c0_56] : memref<25x128xf32, #tpu.memory_space<vmem>>, vector<1x32xf32>
    %100 = vector.broadcast %99 : vector<1x32xf32> to vector<128x32xf32>
    %101 = arith.addf %98, %100 : vector<128x32xf32>
    %cst_57 = arith.constant 0.000000e+00 : f32
    %102 = vector.broadcast %cst_57 : f32 to vector<128x32xf32>
    %103 = arith.subf %102, %101 : vector<128x32xf32>
    %104 = math.exp %103 : vector<128x32xf32>
    %cst_58 = arith.constant 1.000000e+00 : f32
    %105 = vector.broadcast %cst_58 : f32 to vector<128x32xf32>
    %106 = arith.addf %105, %104 : vector<128x32xf32>
    %107 = tpu.reciprocal %106 {approx = true} : vector<128x32xf32> -> vector<128x32xf32>
    %108 = arith.mulf %101, %107 : vector<128x32xf32>
    %cst_59 = arith.constant dense<0.000000e+00> : vector<64x32xf32>
    %109 = tpu.matmul %16, %108, %cst_59 {dimension_numbers = #tpu.dot_dimension_numbers<[1], [0], [0], [1], [0, 0, 1, 1], [], []>} : vector<64x128xf32>, vector<128x32xf32>, vector<64x32xf32> -> vector<64x32xf32>
    %c192 = arith.constant 192 : index
    %c0_60 = arith.constant 0 : index
    %110 = vector.load %arg6[%c192, %c0_60] : memref<720x32xf32, #tpu.memory_space<vmem>>, vector<32x32xf32>
    %cst_61 = arith.constant dense<0.000000e+00> : vector<64x32xf32>
    %111 = tpu.matmul %35, %110, %cst_61 {dimension_numbers = #tpu.dot_dimension_numbers<[1], [0], [0], [1], [0, 0, 1, 1], [], []>} : vector<64x32xf32>, vector<32x32xf32>, vector<64x32xf32> -> vector<64x32xf32>
    %c224 = arith.constant 224 : index
    %c0_62 = arith.constant 0 : index
    %112 = vector.load %arg6[%c224, %c0_62] : memref<720x32xf32, #tpu.memory_space<vmem>>, vector<32x32xf32>
    %cst_63 = arith.constant dense<0.000000e+00> : vector<64x32xf32>
    %113 = tpu.matmul %109, %112, %cst_63 {dimension_numbers = #tpu.dot_dimension_numbers<[1], [0], [0], [1], [0, 0, 1, 1], [], []>} : vector<64x32xf32>, vector<32x32xf32>, vector<64x32xf32> -> vector<64x32xf32>
    %114 = arith.addf %111, %113 : vector<64x32xf32>
    %c8_64 = arith.constant 8 : index
    %c0_65 = arith.constant 0 : index
    %115 = vector.load %arg10[%c8_64, %c0_65] : memref<25x128xf32, #tpu.memory_space<vmem>>, vector<1x32xf32>
    %116 = vector.broadcast %115 : vector<1x32xf32> to vector<64x32xf32>
    %117 = arith.addf %114, %116 : vector<64x32xf32>
    %c256 = arith.constant 256 : index
    %c0_66 = arith.constant 0 : index
    %118 = vector.load %arg6[%c256, %c0_66] : memref<720x32xf32, #tpu.memory_space<vmem>>, vector<32x32xf32>
    %cst_67 = arith.constant dense<0.000000e+00> : vector<64x32xf32>
    %119 = tpu.matmul %117, %118, %cst_67 {dimension_numbers = #tpu.dot_dimension_numbers<[1], [0], [0], [1], [0, 0, 1, 1], [], []>} : vector<64x32xf32>, vector<32x32xf32>, vector<64x32xf32> -> vector<64x32xf32>
    %c9 = arith.constant 9 : index
    %c0_68 = arith.constant 0 : index
    %120 = vector.load %arg10[%c9, %c0_68] : memref<25x128xf32, #tpu.memory_space<vmem>>, vector<1x32xf32>
    %121 = vector.broadcast %120 : vector<1x32xf32> to vector<64x32xf32>
    %122 = arith.addf %119, %121 : vector<64x32xf32>
    %123 = arith.addf %35, %122 : vector<64x32xf32>
    %cst_69 = arith.constant dense<0.000000e+00> : vector<256x32xf32>
    %124 = tpu.matmul %9, %123, %cst_69 {dimension_numbers = #tpu.dot_dimension_numbers<[1], [0], [0], [1], [0, 0, 1, 1], [], []>} : vector<256x64xf32>, vector<64x32xf32>, vector<256x32xf32> -> vector<256x32xf32>
    %125 = vector.extract_strided_slice %124 {offsets = [0, 0], sizes = [128, 32], strides = [1, 1]} : vector<256x32xf32> to vector<128x32xf32>
    %126 = vector.extract_strided_slice %124 {offsets = [128, 0], sizes = [128, 32], strides = [1, 1]} : vector<256x32xf32> to vector<128x32xf32>
    %c288 = arith.constant 288 : index
    %c0_70 = arith.constant 0 : index
    %127 = vector.load %arg6[%c288, %c0_70] : memref<720x32xf32, #tpu.memory_space<vmem>>, vector<32x32xf32>
    %cst_71 = arith.constant dense<0.000000e+00> : vector<128x32xf32>
    %128 = tpu.matmul %125, %127, %cst_71 {dimension_numbers = #tpu.dot_dimension_numbers<[1], [0], [0], [1], [0, 0, 1, 1], [], []>} : vector<128x32xf32>, vector<32x32xf32>, vector<128x32xf32> -> vector<128x32xf32>
    %c320 = arith.constant 320 : index
    %c0_72 = arith.constant 0 : index
    %129 = vector.load %arg6[%c320, %c0_72] : memref<720x32xf32, #tpu.memory_space<vmem>>, vector<32x32xf32>
    %cst_73 = arith.constant dense<0.000000e+00> : vector<128x32xf32>
    %130 = tpu.matmul %126, %129, %cst_73 {dimension_numbers = #tpu.dot_dimension_numbers<[1], [0], [0], [1], [0, 0, 1, 1], [], []>} : vector<128x32xf32>, vector<32x32xf32>, vector<128x32xf32> -> vector<128x32xf32>
    %131 = arith.addf %128, %130 : vector<128x32xf32>
    %132 = vector.extract_strided_slice %59 {offsets = [0, 0], sizes = [128, 32], strides = [1, 1]} : vector<128x640xf32> to vector<128x32xf32>
    %c19 = arith.constant 19 : index
    %c0_74 = arith.constant 0 : index
    %133 = vector.load %arg10[%c19, %c0_74] : memref<25x128xf32, #tpu.memory_space<vmem>>, vector<1x32xf32>
    %134 = vector.broadcast %133 : vector<1x32xf32> to vector<128x32xf32>
    %135 = arith.addf %132, %134 : vector<128x32xf32>
    %136 = arith.mulf %131, %135 : vector<128x32xf32>
    %c10 = arith.constant 10 : index
    %c0_75 = arith.constant 0 : index
    %137 = vector.load %arg10[%c10, %c0_75] : memref<25x128xf32, #tpu.memory_space<vmem>>, vector<1x32xf32>
    %138 = vector.broadcast %137 : vector<1x32xf32> to vector<128x32xf32>
    %139 = arith.addf %136, %138 : vector<128x32xf32>
    %cst_76 = arith.constant 0.000000e+00 : f32
    %140 = vector.broadcast %cst_76 : f32 to vector<128x32xf32>
    %141 = arith.subf %140, %139 : vector<128x32xf32>
    %142 = math.exp %141 : vector<128x32xf32>
    %cst_77 = arith.constant 1.000000e+00 : f32
    %143 = vector.broadcast %cst_77 : f32 to vector<128x32xf32>
    %144 = arith.addf %143, %142 : vector<128x32xf32>
    %145 = tpu.reciprocal %144 {approx = true} : vector<128x32xf32> -> vector<128x32xf32>
    %146 = arith.mulf %139, %145 : vector<128x32xf32>
    %c352 = arith.constant 352 : index
    %c0_78 = arith.constant 0 : index
    %147 = vector.load %arg6[%c352, %c0_78] : memref<720x32xf32, #tpu.memory_space<vmem>>, vector<32x32xf32>
    %cst_79 = arith.constant dense<0.000000e+00> : vector<128x32xf32>
    %148 = tpu.matmul %146, %147, %cst_79 {dimension_numbers = #tpu.dot_dimension_numbers<[1], [0], [0], [1], [0, 0, 1, 1], [], []>} : vector<128x32xf32>, vector<32x32xf32>, vector<128x32xf32> -> vector<128x32xf32>
    %149 = vector.extract_strided_slice %59 {offsets = [0, 128], sizes = [128, 32], strides = [1, 1]} : vector<128x640xf32> to vector<128x32xf32>
    %c20 = arith.constant 20 : index
    %c0_80 = arith.constant 0 : index
    %150 = vector.load %arg10[%c20, %c0_80] : memref<25x128xf32, #tpu.memory_space<vmem>>, vector<1x32xf32>
    %151 = vector.broadcast %150 : vector<1x32xf32> to vector<128x32xf32>
    %152 = arith.addf %149, %151 : vector<128x32xf32>
    %153 = arith.mulf %148, %152 : vector<128x32xf32>
    %c11 = arith.constant 11 : index
    %c0_81 = arith.constant 0 : index
    %154 = vector.load %arg10[%c11, %c0_81] : memref<25x128xf32, #tpu.memory_space<vmem>>, vector<1x32xf32>
    %155 = vector.broadcast %154 : vector<1x32xf32> to vector<128x32xf32>
    %156 = arith.addf %153, %155 : vector<128x32xf32>
    %cst_82 = arith.constant 0.000000e+00 : f32
    %157 = vector.broadcast %cst_82 : f32 to vector<128x32xf32>
    %158 = arith.subf %157, %156 : vector<128x32xf32>
    %159 = math.exp %158 : vector<128x32xf32>
    %cst_83 = arith.constant 1.000000e+00 : f32
    %160 = vector.broadcast %cst_83 : f32 to vector<128x32xf32>
    %161 = arith.addf %160, %159 : vector<128x32xf32>
    %162 = tpu.reciprocal %161 {approx = true} : vector<128x32xf32> -> vector<128x32xf32>
    %163 = arith.mulf %156, %162 : vector<128x32xf32>
    %164 = arith.addf %70, %163 : vector<128x32xf32>
    %cst_84 = arith.constant dense<0.000000e+00> : vector<256x32xf32>
    %165 = tpu.matmul %9, %123, %cst_84 {dimension_numbers = #tpu.dot_dimension_numbers<[1], [0], [0], [1], [0, 0, 1, 1], [], []>} : vector<256x64xf32>, vector<64x32xf32>, vector<256x32xf32> -> vector<256x32xf32>
    %166 = vector.extract_strided_slice %165 {offsets = [0, 0], sizes = [128, 32], strides = [1, 1]} : vector<256x32xf32> to vector<128x32xf32>
    %167 = vector.extract_strided_slice %165 {offsets = [128, 0], sizes = [128, 32], strides = [1, 1]} : vector<256x32xf32> to vector<128x32xf32>
    %c384 = arith.constant 384 : index
    %c0_85 = arith.constant 0 : index
    %168 = vector.load %arg6[%c384, %c0_85] : memref<720x32xf32, #tpu.memory_space<vmem>>, vector<32x32xf32>
    %cst_86 = arith.constant dense<0.000000e+00> : vector<128x32xf32>
    %169 = tpu.matmul %166, %168, %cst_86 {dimension_numbers = #tpu.dot_dimension_numbers<[1], [0], [0], [1], [0, 0, 1, 1], [], []>} : vector<128x32xf32>, vector<32x32xf32>, vector<128x32xf32> -> vector<128x32xf32>
    %c416 = arith.constant 416 : index
    %c0_87 = arith.constant 0 : index
    %170 = vector.load %arg6[%c416, %c0_87] : memref<720x32xf32, #tpu.memory_space<vmem>>, vector<32x32xf32>
    %cst_88 = arith.constant dense<0.000000e+00> : vector<128x32xf32>
    %171 = tpu.matmul %167, %170, %cst_88 {dimension_numbers = #tpu.dot_dimension_numbers<[1], [0], [0], [1], [0, 0, 1, 1], [], []>} : vector<128x32xf32>, vector<32x32xf32>, vector<128x32xf32> -> vector<128x32xf32>
    %172 = arith.addf %169, %171 : vector<128x32xf32>
    %c448 = arith.constant 448 : index
    %c0_89 = arith.constant 0 : index
    %173 = vector.load %arg6[%c448, %c0_89] : memref<720x32xf32, #tpu.memory_space<vmem>>, vector<32x32xf32>
    %cst_90 = arith.constant dense<0.000000e+00> : vector<128x32xf32>
    %174 = tpu.matmul %164, %173, %cst_90 {dimension_numbers = #tpu.dot_dimension_numbers<[1], [0], [0], [1], [0, 0, 1, 1], [], []>} : vector<128x32xf32>, vector<32x32xf32>, vector<128x32xf32> -> vector<128x32xf32>
    %175 = arith.addf %172, %174 : vector<128x32xf32>
    %c12 = arith.constant 12 : index
    %c0_91 = arith.constant 0 : index
    %176 = vector.load %arg10[%c12, %c0_91] : memref<25x128xf32, #tpu.memory_space<vmem>>, vector<1x32xf32>
    %177 = vector.broadcast %1 : vector<128x1xf32> to vector<128x32xf32>
    %178 = vector.broadcast %176 : vector<1x32xf32> to vector<128x32xf32>
    %179 = arith.mulf %177, %178 : vector<128x32xf32>
    %180 = arith.addf %175, %179 : vector<128x32xf32>
    %c13 = arith.constant 13 : index
    %c0_92 = arith.constant 0 : index
    %181 = vector.load %arg10[%c13, %c0_92] : memref<25x128xf32, #tpu.memory_space<vmem>>, vector<1x32xf32>
    %182 = vector.broadcast %181 : vector<1x32xf32> to vector<128x32xf32>
    %183 = arith.addf %180, %182 : vector<128x32xf32>
    %cst_93 = arith.constant 0.000000e+00 : f32
    %184 = vector.broadcast %cst_93 : f32 to vector<128x32xf32>
    %185 = arith.subf %184, %183 : vector<128x32xf32>
    %186 = math.exp %185 : vector<128x32xf32>
    %cst_94 = arith.constant 1.000000e+00 : f32
    %187 = vector.broadcast %cst_94 : f32 to vector<128x32xf32>
    %188 = arith.addf %187, %186 : vector<128x32xf32>
    %189 = tpu.reciprocal %188 {approx = true} : vector<128x32xf32> -> vector<128x32xf32>
    %190 = arith.mulf %183, %189 : vector<128x32xf32>
    %c480 = arith.constant 480 : index
    %c0_95 = arith.constant 0 : index
    %191 = vector.load %arg6[%c480, %c0_95] : memref<720x32xf32, #tpu.memory_space<vmem>>, vector<32x32xf32>
    %cst_96 = arith.constant dense<0.000000e+00> : vector<128x32xf32>
    %192 = tpu.matmul %190, %191, %cst_96 {dimension_numbers = #tpu.dot_dimension_numbers<[1], [0], [0], [1], [0, 0, 1, 1], [], []>} : vector<128x32xf32>, vector<32x32xf32>, vector<128x32xf32> -> vector<128x32xf32>
    %c14 = arith.constant 14 : index
    %c0_97 = arith.constant 0 : index
    %193 = vector.load %arg10[%c14, %c0_97] : memref<25x128xf32, #tpu.memory_space<vmem>>, vector<1x32xf32>
    %194 = vector.broadcast %193 : vector<1x32xf32> to vector<128x32xf32>
    %195 = arith.addf %192, %194 : vector<128x32xf32>
    %cst_98 = arith.constant 0.000000e+00 : f32
    %196 = vector.broadcast %cst_98 : f32 to vector<128x32xf32>
    %197 = arith.subf %196, %195 : vector<128x32xf32>
    %198 = math.exp %197 : vector<128x32xf32>
    %cst_99 = arith.constant 1.000000e+00 : f32
    %199 = vector.broadcast %cst_99 : f32 to vector<128x32xf32>
    %200 = arith.addf %199, %198 : vector<128x32xf32>
    %201 = tpu.reciprocal %200 {approx = true} : vector<128x32xf32> -> vector<128x32xf32>
    %202 = arith.mulf %195, %201 : vector<128x32xf32>
    %cst_100 = arith.constant dense<0.000000e+00> : vector<64x32xf32>
    %203 = tpu.matmul %16, %202, %cst_100 {dimension_numbers = #tpu.dot_dimension_numbers<[1], [0], [0], [1], [0, 0, 1, 1], [], []>} : vector<64x128xf32>, vector<128x32xf32>, vector<64x32xf32> -> vector<64x32xf32>
    %c512 = arith.constant 512 : index
    %c0_101 = arith.constant 0 : index
    %204 = vector.load %arg6[%c512, %c0_101] : memref<720x32xf32, #tpu.memory_space<vmem>>, vector<32x32xf32>
    %cst_102 = arith.constant dense<0.000000e+00> : vector<64x32xf32>
    %205 = tpu.matmul %123, %204, %cst_102 {dimension_numbers = #tpu.dot_dimension_numbers<[1], [0], [0], [1], [0, 0, 1, 1], [], []>} : vector<64x32xf32>, vector<32x32xf32>, vector<64x32xf32> -> vector<64x32xf32>
    %c544 = arith.constant 544 : index
    %c0_103 = arith.constant 0 : index
    %206 = vector.load %arg6[%c544, %c0_103] : memref<720x32xf32, #tpu.memory_space<vmem>>, vector<32x32xf32>
    %cst_104 = arith.constant dense<0.000000e+00> : vector<64x32xf32>
    %207 = tpu.matmul %203, %206, %cst_104 {dimension_numbers = #tpu.dot_dimension_numbers<[1], [0], [0], [1], [0, 0, 1, 1], [], []>} : vector<64x32xf32>, vector<32x32xf32>, vector<64x32xf32> -> vector<64x32xf32>
    %208 = arith.addf %205, %207 : vector<64x32xf32>
    %c15 = arith.constant 15 : index
    %c0_105 = arith.constant 0 : index
    %209 = vector.load %arg10[%c15, %c0_105] : memref<25x128xf32, #tpu.memory_space<vmem>>, vector<1x32xf32>
    %210 = vector.broadcast %209 : vector<1x32xf32> to vector<64x32xf32>
    %211 = arith.addf %208, %210 : vector<64x32xf32>
    %c576 = arith.constant 576 : index
    %c0_106 = arith.constant 0 : index
    %212 = vector.load %arg6[%c576, %c0_106] : memref<720x32xf32, #tpu.memory_space<vmem>>, vector<32x32xf32>
    %cst_107 = arith.constant dense<0.000000e+00> : vector<64x32xf32>
    %213 = tpu.matmul %211, %212, %cst_107 {dimension_numbers = #tpu.dot_dimension_numbers<[1], [0], [0], [1], [0, 0, 1, 1], [], []>} : vector<64x32xf32>, vector<32x32xf32>, vector<64x32xf32> -> vector<64x32xf32>
    %c16 = arith.constant 16 : index
    %c0_108 = arith.constant 0 : index
    %214 = vector.load %arg10[%c16, %c0_108] : memref<25x128xf32, #tpu.memory_space<vmem>>, vector<1x32xf32>
    %215 = vector.broadcast %214 : vector<1x32xf32> to vector<64x32xf32>
    %216 = arith.addf %213, %215 : vector<64x32xf32>
    %217 = arith.addf %123, %216 : vector<64x32xf32>
    %cst_109 = arith.constant dense<0.000000e+00> : vector<256x32xf32>
    %218 = tpu.matmul %9, %217, %cst_109 {dimension_numbers = #tpu.dot_dimension_numbers<[1], [0], [0], [1], [0, 0, 1, 1], [], []>} : vector<256x64xf32>, vector<64x32xf32>, vector<256x32xf32> -> vector<256x32xf32>
    %219 = vector.extract_strided_slice %218 {offsets = [0, 0], sizes = [128, 32], strides = [1, 1]} : vector<256x32xf32> to vector<128x32xf32>
    %220 = vector.extract_strided_slice %218 {offsets = [128, 0], sizes = [128, 32], strides = [1, 1]} : vector<256x32xf32> to vector<128x32xf32>
    %c608 = arith.constant 608 : index
    %c0_110 = arith.constant 0 : index
    %221 = vector.load %arg6[%c608, %c0_110] : memref<720x32xf32, #tpu.memory_space<vmem>>, vector<32x32xf32>
    %cst_111 = arith.constant dense<0.000000e+00> : vector<128x32xf32>
    %222 = tpu.matmul %219, %221, %cst_111 {dimension_numbers = #tpu.dot_dimension_numbers<[1], [0], [0], [1], [0, 0, 1, 1], [], []>} : vector<128x32xf32>, vector<32x32xf32>, vector<128x32xf32> -> vector<128x32xf32>
    %c640 = arith.constant 640 : index
    %c0_112 = arith.constant 0 : index
    %223 = vector.load %arg6[%c640, %c0_112] : memref<720x32xf32, #tpu.memory_space<vmem>>, vector<32x32xf32>
    %cst_113 = arith.constant dense<0.000000e+00> : vector<128x32xf32>
    %224 = tpu.matmul %220, %223, %cst_113 {dimension_numbers = #tpu.dot_dimension_numbers<[1], [0], [0], [1], [0, 0, 1, 1], [], []>} : vector<128x32xf32>, vector<32x32xf32>, vector<128x32xf32> -> vector<128x32xf32>
    %225 = arith.addf %222, %224 : vector<128x32xf32>
    %226 = vector.extract_strided_slice %59 {offsets = [0, 256], sizes = [128, 32], strides = [1, 1]} : vector<128x640xf32> to vector<128x32xf32>
    %c21 = arith.constant 21 : index
    %c0_114 = arith.constant 0 : index
    %227 = vector.load %arg10[%c21, %c0_114] : memref<25x128xf32, #tpu.memory_space<vmem>>, vector<1x32xf32>
    %228 = vector.broadcast %227 : vector<1x32xf32> to vector<128x32xf32>
    %229 = arith.addf %226, %228 : vector<128x32xf32>
    %230 = arith.mulf %225, %229 : vector<128x32xf32>
    %c17 = arith.constant 17 : index
    %c0_115 = arith.constant 0 : index
    %231 = vector.load %arg10[%c17, %c0_115] : memref<25x128xf32, #tpu.memory_space<vmem>>, vector<1x32xf32>
    %232 = vector.broadcast %231 : vector<1x32xf32> to vector<128x32xf32>
    %233 = arith.addf %230, %232 : vector<128x32xf32>
    %cst_116 = arith.constant 0.000000e+00 : f32
    %234 = vector.broadcast %cst_116 : f32 to vector<128x32xf32>
    %235 = arith.subf %234, %233 : vector<128x32xf32>
    %236 = math.exp %235 : vector<128x32xf32>
    %cst_117 = arith.constant 1.000000e+00 : f32
    %237 = vector.broadcast %cst_117 : f32 to vector<128x32xf32>
    %238 = arith.addf %237, %236 : vector<128x32xf32>
    %239 = tpu.reciprocal %238 {approx = true} : vector<128x32xf32> -> vector<128x32xf32>
    %240 = arith.mulf %233, %239 : vector<128x32xf32>
    %c672 = arith.constant 672 : index
    %c0_118 = arith.constant 0 : index
    %241 = vector.load %arg6[%c672, %c0_118] : memref<720x32xf32, #tpu.memory_space<vmem>>, vector<32x32xf32>
    %cst_119 = arith.constant dense<0.000000e+00> : vector<128x32xf32>
    %242 = tpu.matmul %240, %241, %cst_119 {dimension_numbers = #tpu.dot_dimension_numbers<[1], [0], [0], [1], [0, 0, 1, 1], [], []>} : vector<128x32xf32>, vector<32x32xf32>, vector<128x32xf32> -> vector<128x32xf32>
    %243 = vector.extract_strided_slice %59 {offsets = [0, 384], sizes = [128, 32], strides = [1, 1]} : vector<128x640xf32> to vector<128x32xf32>
    %c22 = arith.constant 22 : index
    %c0_120 = arith.constant 0 : index
    %244 = vector.load %arg10[%c22, %c0_120] : memref<25x128xf32, #tpu.memory_space<vmem>>, vector<1x32xf32>
    %245 = vector.broadcast %244 : vector<1x32xf32> to vector<128x32xf32>
    %246 = arith.addf %243, %245 : vector<128x32xf32>
    %247 = arith.mulf %242, %246 : vector<128x32xf32>
    %c18 = arith.constant 18 : index
    %c0_121 = arith.constant 0 : index
    %248 = vector.load %arg10[%c18, %c0_121] : memref<25x128xf32, #tpu.memory_space<vmem>>, vector<1x32xf32>
    %249 = vector.broadcast %248 : vector<1x32xf32> to vector<128x32xf32>
    %250 = arith.addf %247, %249 : vector<128x32xf32>
    %cst_122 = arith.constant 0.000000e+00 : f32
    %251 = vector.broadcast %cst_122 : f32 to vector<128x32xf32>
    %252 = arith.subf %251, %250 : vector<128x32xf32>
    %253 = math.exp %252 : vector<128x32xf32>
    %cst_123 = arith.constant 1.000000e+00 : f32
    %254 = vector.broadcast %cst_123 : f32 to vector<128x32xf32>
    %255 = arith.addf %254, %253 : vector<128x32xf32>
    %256 = tpu.reciprocal %255 {approx = true} : vector<128x32xf32> -> vector<128x32xf32>
    %257 = arith.mulf %250, %256 : vector<128x32xf32>
    %258 = arith.addf %164, %257 : vector<128x32xf32>
    %c24 = arith.constant 24 : index
    %c0_124 = arith.constant 0 : index
    %259 = vector.load %arg7[%c24, %c0_124] : memref<88x16xf32, #tpu.memory_space<vmem>>, vector<32x16xf32>
    %cst_125 = arith.constant dense<0.000000e+00> : vector<128x16xf32>
    %260 = tpu.matmul %258, %259, %cst_125 {dimension_numbers = #tpu.dot_dimension_numbers<[1], [0], [0], [1], [0, 0, 1, 1], [], []>} : vector<128x32xf32>, vector<32x16xf32>, vector<128x16xf32> -> vector<128x16xf32>
    %261 = vector.extract_strided_slice %59 {offsets = [0, 512], sizes = [128, 16], strides = [1, 1]} : vector<128x640xf32> to vector<128x16xf32>
    %c23 = arith.constant 23 : index
    %c0_126 = arith.constant 0 : index
    %262 = vector.load %arg10[%c23, %c0_126] : memref<25x128xf32, #tpu.memory_space<vmem>>, vector<1x16xf32>
    %263 = vector.broadcast %262 : vector<1x16xf32> to vector<128x16xf32>
    %264 = arith.addf %261, %263 : vector<128x16xf32>
    %265 = arith.mulf %260, %264 : vector<128x16xf32>
    %c24_127 = arith.constant 24 : index
    %c0_128 = arith.constant 0 : index
    %266 = vector.load %arg10[%c24_127, %c0_128] : memref<25x128xf32, #tpu.memory_space<vmem>>, vector<1x16xf32>
    %267 = vector.broadcast %266 : vector<1x16xf32> to vector<128x16xf32>
    %268 = arith.addf %265, %267 : vector<128x16xf32>
    %c56 = arith.constant 56 : index
    %c0_129 = arith.constant 0 : index
    %269 = vector.load %arg7[%c56, %c0_129] : memref<88x16xf32, #tpu.memory_space<vmem>>, vector<32x16xf32>
    %cst_130 = arith.constant dense<0.000000e+00> : vector<64x16xf32>
    %270 = tpu.matmul %217, %269, %cst_130 {dimension_numbers = #tpu.dot_dimension_numbers<[1], [0], [0], [1], [0, 0, 1, 1], [], []>} : vector<64x32xf32>, vector<32x16xf32>, vector<64x16xf32> -> vector<64x16xf32>
    %271 = vector.extract_strided_slice %9 {offsets = [128, 0], sizes = [128, 64], strides = [1, 1]} : vector<256x64xf32> to vector<128x64xf32>
    %cst_131 = arith.constant dense<0.000000e+00> : vector<128x16xf32>
    %272 = tpu.matmul %271, %270, %cst_131 {dimension_numbers = #tpu.dot_dimension_numbers<[1], [0], [0], [1], [0, 0, 1, 1], [], []>} : vector<128x64xf32>, vector<64x16xf32>, vector<128x16xf32> -> vector<128x16xf32>
    %273 = vector.broadcast %2 : vector<128x1xf32> to vector<128x16xf32>
    %274 = arith.mulf %273, %272 : vector<128x16xf32>
    %cst_132 = arith.constant 1.000000e+00 : f32
    %275 = vector.broadcast %cst_132 : f32 to vector<128x1xf32>
    %276 = arith.subf %275, %2 : vector<128x1xf32>
    %277 = vector.broadcast %276 : vector<128x1xf32> to vector<128x16xf32>
    %278 = arith.mulf %277, %268 : vector<128x16xf32>
    %279 = arith.addf %274, %278 : vector<128x16xf32>
    %c0_133 = arith.constant 0 : index
    %c0_134 = arith.constant 0 : index
    %280 = vector.load %arg11[%c0_133, %c0_134] : memref<128x16xf32, #tpu.memory_space<vmem>>, vector<128x16xf32>
    tpu.vector_store %arg11[%c0_133, %c0_134], %279 {strides = array<i32>} : memref<128x16xf32, #tpu.memory_space<vmem>>, vector<128x16xf32>,
    return
  }
  func.func @transform_0(%arg0: i32) -> (i32, i32) {
    %c0_i32 = arith.constant 0 : i32
    %c0_i32_0 = arith.constant 0 : i32
    return %arg0, %c0_i32 : i32, i32
  }
  func.func @transform_1(%arg0: i32) -> (i32, i32) {
    %c0_i32 = arith.constant 0 : i32
    %c0_i32_0 = arith.constant 0 : i32
    return %arg0, %c0_i32 : i32, i32
  }
  func.func @transform_2(%arg0: i32) -> (i32, i32) {
    %c0_i32 = arith.constant 0 : i32
    %c0_i32_0 = arith.constant 0 : i32
    return %arg0, %c0_i32 : i32, i32
  }
  func.func @transform_3(%arg0: i32) -> (i32, i32) {
    %c0_i32 = arith.constant 0 : i32
    %c0_i32_0 = arith.constant 0 : i32
    return %c0_i32, %arg0 : i32, i32
  }
  func.func @transform_4(%arg0: i32) -> (i32, i32) {
    %c0_i32 = arith.constant 0 : i32
    %c0_i32_0 = arith.constant 0 : i32
    return %arg0, %c0_i32 : i32, i32
  }
  func.func @transform_5(%arg0: i32) -> (i32, i32) {
    %c0_i32 = arith.constant 0 : i32
    %c0_i32_0 = arith.constant 0 : i32
    %c0_i32_1 = arith.constant 0 : i32
    return %c0_i32, %c0_i32_0 : i32, i32
  }
  func.func @transform_6(%arg0: i32) -> (i32, i32) {
    %c0_i32 = arith.constant 0 : i32
    %c0_i32_0 = arith.constant 0 : i32
    %c0_i32_1 = arith.constant 0 : i32
    return %c0_i32, %c0_i32_0 : i32, i32
  }
  func.func @transform_7(%arg0: i32) -> (i32, i32) {
    %c0_i32 = arith.constant 0 : i32
    %c0_i32_0 = arith.constant 0 : i32
    %c0_i32_1 = arith.constant 0 : i32
    return %c0_i32, %c0_i32_0 : i32, i32
  }
  func.func @transform_8(%arg0: i32) -> (i32, i32) {
    %c0_i32 = arith.constant 0 : i32
    %c0_i32_0 = arith.constant 0 : i32
    %c0_i32_1 = arith.constant 0 : i32
    return %c0_i32, %c0_i32_0 : i32, i32
  }
  func.func @transform_9(%arg0: i32) -> (i32, i32) {
    %c0_i32 = arith.constant 0 : i32
    %c0_i32_0 = arith.constant 0 : i32
    %c0_i32_1 = arith.constant 0 : i32
    return %c0_i32, %c0_i32_0 : i32, i32
  }
  func.func @transform_10(%arg0: i32) -> (i32, i32) {
    %c0_i32 = arith.constant 0 : i32
    %c0_i32_0 = arith.constant 0 : i32
    return %arg0, %c0_i32 : i32, i32
  }
}

</mosaic_0001>

<bundles_post_ra>
// kernel: edge_segnn_forward.1
= control target key start
LH: loop header
LB: loop body
LE: loop exit
PB: predicated region body
PF: predicated region fallthrough
CT: control target
= control target key end

     0   :  { %s12631_s13 = smov 0   ;;  %s16037_s0 = inlined_call_operand.vmem [shape: f32[256,8], index: 0, kind: input, shape index: {}]   ;;  %s16038_s1 = inlined_call_operand.vmem [shape: f32[512,1], index: 1, kind: input, shape index: {}]   ;;  %s16039_s2 = inlined_call_operand.vmem [shape: s32[1024,1], index: 2, kind: input, shape index: {}]   ;;  %s16040_s3 = inlined_call_operand.vmem [shape: s32[1,512], index: 3, kind: input, shape index: {}]   ;;  %s16041_s4 = inlined_call_operand.vmem [shape: f32[512,1], index: 4, kind: input, shape index: {}]   ;;  %s16042_s5 = inlined_call_operand.vmem [shape: f32[720,32], index: 5, kind: input, shape index: {}]   ;;  %s16043_s6 = inlined_call_operand.vmem [shape: f32[88,16], index: 6, kind: input, shape index: {}]   ;;  %s16044_s7 = inlined_call_operand.vmem [shape: f32[8,80], index: 7, kind: input, shape index: {}]   ;;  %s16045_s8 = inlined_call_operand.vmem [shape: f32[80,640], index: 8, kind: input, shape index: {}]   ;;  %s16046_s9 = inlined_call_operand.vmem [shape: f32[25,128], index: 9, kind: input, shape index: {}]   ;;  %s16047_s10 = inlined_call_operand.vmem [shape: f32[512,16], index: 10, kind: output, shape index: {}]  }
   0x1 LB: > { %s12637_s14 = sadd.s32 4294967295, %s12571_s13   ;;  %p9037_p0 = scmp.ge.s32.totalorder %s12571_s13, 1  ;;  %s12571_s13 = sphi %s12631_s13, %s20_s13  }
   0x2   : > { %p354_p1 = scmp.lt.s32.totalorder %s12571_s13, 5 }
   0x4   : > { %p355_p2 = pnand %p9037_p0, %p354_p1 }
   0x6   : > { %358 = sbr.rel (%p355_p2) target bundleno = 5411 (0x1523), region = 60 }
   0xd   : > { %v707_v0 = vld [vmem:[%s16043_s6] sm:$0xff]  ;;  %s9040_s17 = sshll.u32 %s12637_s14, 4  ;;  %s9038_s18 = sshll.u32 %s12637_s14, 3  ;;  %v12573_v1 = vmov 0   ;;  %vm713_vm0 = vcmask 64512   ;;  %v851_v57 = vld [vmem:[%s16043_s6 + $0x8] sm:$0xff] }
   0xe   : > { %10308 = vmatprep.subr.mxu0 %v707_v0  ;;  %11955 = vset.pattern.permute.xlu0 %v12573_v1  ;;  %p417_p3 = scmp.lt.s32.totalorder %s9040_s17, 63  ;;  %p411_p4 = scmp.lt.s32.totalorder %s9038_s18, 31  ;;  %v1294_v21 = vld [vmem:[%s16044_s7] sm:$0xff]  ;;  %v852_v58 = vld [vmem:[%s16043_s6 + $0x10] sm:$0xff]  ;;  %vm858_vm1 = vcmask 130048   ;;  %vm1639_vm2 = vcmask 654336  }
   0xf   : > { %10309 = vmatpush3.msra.mxu0 %v707_v0  ;;  %11956 = vset.pattern.permute.xlu1 %v12573_v1  ;;  %s9042_s27 = sshll.u32 %s12637_s14, 5  ;;  %v11428_v59 = vpack.c.bf16 %v852_v58, %v851_v57  ;;  %vm2155_vm4 = vcmask 523264   ;;  %p428_p6 = scmp.lt.s32.totalorder %s12637_s14, 3 }
  0x10   : > { %s16457_s17 = smov (!%p417_p3, %s9040_s17), 63  ;;  %s16459_s18 = smov (!%p411_p4, %s9038_s18), 31  ;;  %10354 = vmatprep.subr.mxu1 %v1294_v21 }
  0x11   : > { %s12646_s19 = sshll.u32 %s16457_s17, 3  ;;  %s9039_s23 = sshll.u32 %s16459_s18, 3  ;;  %10355 = vmatpush3.msra.mxu1 %v1294_v21  ;;  %11429 = vmatprep.subr.bf16.mxu0 %v11428_v59 }
  0x12   : > { %s12652_s22 = scalar_lea.vmem %s16038_s1, %s12646_s19  ;;  %s414_s26 = scalar_lea.vmem %s16037_s0, %s9039_s23 }
  0x13   : > { %v451_v2 = vld [vmem:[%s12652_s22] sm:$0xff]  ;;  %v453_v3 = vld [vmem:[%s12652_s22 + $0x10] sm:$0xff]  ;;  %v452_v4 = vld [vmem:[%s12652_s22 + $0x8] sm:$0xff]  ;;  %p423_p5 = scmp.lt.s32.totalorder %s9042_s27, 127  ;;  %s12731_s23 = scalar_lea.vmem %s16041_s4, %s12646_s19 }
  0x14   : > { %1136 = vperm.xlu0 %11955, %v451_v2   ;;  %1146 = vperm.xlu1 %11956, %v453_v3   ;;  %v443_v5 = vld [vmem:[%s414_s26] sm:$0xff]  ;;  %v444_v6 = vld [vmem:[%s414_s26 + $0x8] sm:$0xff]  ;;  %v445_v7 = vld [vmem:[%s414_s26 + $0x10] sm:$0xff]  ;;  %s16463_s14 = smov (!%p428_p6, %s12637_s14), 3  ;;  %s15963_s24 = scalar_lea.vmem %s16047_s10, %s12646_s19 }
  0x15   : > { %10310 = vmatprep.mubr.msk.f32.mxu0 %vm713_vm0, %v443_v5  ;;  %v454_v8 = vld [vmem:[%s12652_s22 + $0x18] sm:$0xff]  ;;  %v447_v10 = vld [vmem:[%s414_s26 + $0x20] sm:$0xff]  ;;  %v456_v12 = vld [vmem:[%s12652_s22 + $0x28] sm:$0xff]  ;;  %s16461_s27 = smov (!%p423_p5, %s9042_s27), 127 }
  0x16   : > { %10311 = vmatmul.mubr.msk.f32.vlgmr.msra.gmra.mrb[0].mxu0 %vm713_vm0, %v444_v6  ;;  %v446_v9 = vld [vmem:[%s414_s26 + $0x18] sm:$0xff]  ;;  %v455_v11 = vld [vmem:[%s12652_s22 + $0x20] sm:$0xff]  ;;  %v448_v13 = vld [vmem:[%s414_s26 + $0x28] sm:$0xff]  ;;  %s9043_s30 = sshll.u32 %s16461_s27, 3 }
  0x17   : > { %10313 = vmatprep.mubr.msk.f32.mxu0 %vm713_vm0, %v445_v7  ;;  %v449_v14 = vld [vmem:[%s414_s26 + $0x30] sm:$0xff]  ;;  %v458_v16 = vld [vmem:[%s12652_s22 + $0x38] sm:$0xff]  ;;  %v459_v18 = vld [vmem:[%s12652_s22 + $0x40] sm:$0xff]  ;;  %s12688_s15 = scalar_lea.vmem %s16039_s2, %s9043_s30  ;;  %11431 = vmatpush3.bf16.msra.mxu0 %v11428_v59 }
  0x18   : > { %1141 = vperm.xlu0 %11955, %v452_v4   ;;  %1151 = vperm.xlu1 %11956, %v454_v8   ;;  %v457_v15 = vld [vmem:[%s12652_s22 + $0x30] sm:$0xff]  ;;  %v450_v17 = vld [vmem:[%s414_s26 + $0x38] sm:$0xff]  ;;  %v460_v19 = vld [vmem:[%s12652_s22 + $0x48] sm:$0xff]  ;;  %v16048_v8 = vlaneseq }
  0x19   : > { %v461_v20 = vld [vmem:[%s12652_s22 + $0x50] sm:$0xff]  ;;  %v462_v22 = vld [vmem:[%s12652_s22 + $0x58] sm:$0xff]  ;;  %v463_v23 = vld [vmem:[%s12652_s22 + $0x60] sm:$0xff] }
  0x1a   : > { %10314 = vmatmul.mubr.msk.f32.gmra.mrb[2].mxu0 %vm713_vm0, %v446_v9  ;;  %v464_v24 = vld [vmem:[%s12652_s22 + $0x68] sm:$0xff]  ;;  %v465_v25 = vld [vmem:[%s12652_s22 + $0x70] sm:$0xff]  ;;  %v466_v26 = vld [vmem:[%s12652_s22 + $0x78] sm:$0xff]  ;;  %s430_s22 = scalar_lea.vmem %s16040_s3, %s16463_s14 }
  0x1b   : > { %10316 = vmatprep.mubr.msk.f32.mxu0 %vm713_vm0, %v447_v10  ;;  %v485_v27 = vld [vmem:[%s12688_s15] sm:$0xff]  ;;  %v486_v28 = vld [vmem:[%s12688_s15 + $0x8] sm:$0xff]  ;;  %v487_v29 = vld [vmem:[%s12688_s15 + $0x10] sm:$0xff] }
  0x1c   : > { %1156 = vperm.xlu0 %11955, %v455_v11   ;;  %1161 = vperm.xlu1 %11956, %v456_v12   ;;  %v488_v30 = vld [vmem:[%s12688_s15 + $0x18] sm:$0xff]  ;;  %v489_v31 = vld [vmem:[%s12688_s15 + $0x20] sm:$0xff]  ;;  %v490_v32 = vld [vmem:[%s12688_s15 + $0x28] sm:$0xff]  ;;  %v12766_v11 = vand.u32 127, %v16048_v8 }
  0x1d   : > { %v491_v33 = vld [vmem:[%s12688_s15 + $0x30] sm:$0xff]  ;;  %v492_v34 = vld [vmem:[%s12688_s15 + $0x38] sm:$0xff]  ;;  %v493_v35 = vld [vmem:[%s12688_s15 + $0x40] sm:$0xff] }
  0x1e   : > { %10317 = vmatmul.mubr.msk.f32.gmra.mrb[4].mxu0 %vm713_vm0, %v448_v13  ;;  %v494_v36 = vld [vmem:[%s12688_s15 + $0x48] sm:$0xff]  ;;  %v495_v37 = vld [vmem:[%s12688_s15 + $0x50] sm:$0xff]  ;;  %v496_v38 = vld [vmem:[%s12688_s15 + $0x58] sm:$0xff] }
  0x1f   : > { %10319 = vmatprep.mubr.msk.f32.mxu0 %vm713_vm0, %v449_v14  ;;  %v497_v39 = vld [vmem:[%s12688_s15 + $0x60] sm:$0xff]  ;;  %v498_v40 = vld [vmem:[%s12688_s15 + $0x68] sm:$0xff]  ;;  %v499_v41 = vld [vmem:[%s12688_s15 + $0x70] sm:$0xff]  ;;  %v1132_v14 = vcvt.s32.f32 %v12766_v11 }
  0x20   : > { %1166 = vperm.xlu0 %11955, %v457_v15   ;;  %1171 = vperm.xlu1 %11956, %v458_v16   ;;  %v500_v42 = vld [vmem:[%s12688_s15 + $0x78] sm:$0xff]  ;;  %v501_v43 = vld [vmem:[%s12688_s15 + $0x80] sm:$0xff]  ;;  %v502_v44 = vld [vmem:[%s12688_s15 + $0x88] sm:$0xff] }
  0x21   : > { %v503_v45 = vld [vmem:[%s12688_s15 + $0x90] sm:$0xff]  ;;  %v504_v46 = vld [vmem:[%s12688_s15 + $0x98] sm:$0xff]  ;;  %v505_v47 = vld [vmem:[%s12688_s15 + $0xa0] sm:$0xff] }
  0x22   : > { %10320 = vmatmul.mubr.msk.f32.gmra.mrb[6].mxu0 %vm713_vm0, %v450_v17  ;;  %v506_v48 = vld [vmem:[%s12688_s15 + $0xa8] sm:$0xff]  ;;  %v507_v49 = vld [vmem:[%s12688_s15 + $0xb0] sm:$0xff]  ;;  %v508_v50 = vld [vmem:[%s12688_s15 + $0xb8] sm:$0xff]  ;;  %v12785_v17 = vmul.f32 1.1428572, %v1132_v14 }
  0x23   : > { %v509_v51 = vld [vmem:[%s12688_s15 + $0xc0] sm:$0xff]  ;;  %v510_v52 = vld [vmem:[%s12688_s15 + $0xc8] sm:$0xff]  ;;  %v511_v53 = vld [vmem:[%s12688_s15 + $0xd0] sm:$0xff] }
  0x24   : > { %1176 = vperm.xlu0 %11955, %v459_v18   ;;  %1181 = vperm.xlu1 %11956, %v460_v19   ;;  %v512_v54 = vld [vmem:[%s12688_s15 + $0xd8] sm:$0xff]  ;;  %v513_v55 = vld [vmem:[%s12688_s15 + $0xe0] sm:$0xff]  ;;  %v514_v56 = vld [vmem:[%s12688_s15 + $0xe8] sm:$0xff] }
  0x25   : > { %v515_v60 = vld [vmem:[%s12688_s15 + $0xf0] sm:$0xff]  ;;  %v516_v61 = vld [vmem:[%s12688_s15 + $0xf8] sm:$0xff]  ;;  %v467_v62 = vld [vmem:[%s12731_s23] sm:$0xff] }
  0x26   : > { %v468_v63 = vld [vmem:[%s12731_s23 + $0x8] sm:$0xff]  ;;  %v469_v0 = vld [vmem:[%s12731_s23 + $0x10] sm:$0xff]  ;;  %v470_v1 = vld [vmem:[%s12731_s23 + $0x18] sm:$0xff]  ;;  %v8788_v18 = vsub.f32 1.0, %v467_v62 }
  0x27   : > { %v471_v2 = vld [vmem:[%s12731_s23 + $0x20] sm:$0xff]  ;;  %v12740_v3 = vld [vmem:[%s12731_s23 + $0x28] sm:$0xff]  ;;  %v12743_v4 = vld [vmem:[%s12731_s23 + $0x30] sm:$0xff]  ;;  %v8789_v19 = vsub.f32 1.0, %v468_v63 }
  0x28   : > { %1186 = vperm.xlu0 %11955, %v461_v20   ;;  %1191 = vperm.xlu1 %11956, %v462_v22   ;;  %v12747_v5 = vld [vmem:[%s12731_s23 + $0x38] sm:$0xff]  ;;  %v12751_v6 = vld [vmem:[%s12731_s23 + $0x40] sm:$0xff]  ;;  %v12755_v7 = vld [vmem:[%s12731_s23 + $0x48] sm:$0xff] }
  0x29   : > { %v12759_v9 = vld [vmem:[%s12731_s23 + $0x50] sm:$0xff]  ;;  %v12763_v10 = vld [vmem:[%s12731_s23 + $0x58] sm:$0xff]  ;;  %v12770_v12 = vld [vmem:[%s12731_s23 + $0x60] sm:$0xff]  ;;  %v8797_v59 = vsub.f32 1.0, %v12755_v7 }
  0x2a   : > { %v12774_v13 = vld [vmem:[%s12731_s23 + $0x68] sm:$0xff]  ;;  %v12779_v15 = vld [vmem:[%s12731_s23 + $0x70] sm:$0xff]  ;;  %v12783_v16 = vld [vmem:[%s12731_s23 + $0x78] sm:$0xff] }
  0x2c   : > { %1196 = vperm.xlu0 %11955, %v463_v23   ;;  %1201 = vperm.xlu1 %11956, %v464_v24   ;;  %v8790_v24 = vsub.f32 1.0, %v469_v0 }
  0x30   : > { %1206 = vperm.xlu0 %11955, %v465_v25   ;;  %1211 = vperm.xlu1 %11956, %v466_v26   ;;  %v8791_v25 = vsub.f32 1.0, %v470_v1 }
  0x34   : > { %518 = vperm.xlu0 %11955, %v485_v27   ;;  %521 = vperm.xlu1 %11956, %v486_v28  }
  0x38   : > { %524 = vperm.xlu0 %11955, %v487_v29   ;;  %527 = vperm.xlu1 %11956, %v488_v30  }
  0x3c   : > { %530 = vperm.xlu0 %11955, %v489_v31   ;;  %533 = vperm.xlu1 %11956, %v490_v32  }
  0x40   : > { %536 = vperm.xlu0 %11955, %v491_v33   ;;  %539 = vperm.xlu1 %11956, %v492_v34   ;;  %v8792_v33 = vsub.f32 1.0, %v471_v2 }
  0x44   : > { %542 = vperm.xlu0 %11955, %v493_v35   ;;  %545 = vperm.xlu1 %11956, %v494_v36   ;;  %v8793_v35 = vsub.f32 1.0, %v12740_v3 }
  0x48   : > { %548 = vperm.xlu0 %11955, %v495_v37   ;;  %551 = vperm.xlu1 %11956, %v496_v38  }
  0x4c   : > { %554 = vperm.xlu0 %11955, %v497_v39   ;;  %557 = vperm.xlu1 %11956, %v498_v40  }
  0x50   : > { %560 = vperm.xlu0 %11955, %v499_v41   ;;  %563 = vperm.xlu1 %11956, %v500_v42  }
  0x54   : > { %566 = vperm.xlu0 %11955, %v501_v43   ;;  %569 = vperm.xlu1 %11956, %v502_v44   ;;  %v8794_v44 = vsub.f32 1.0, %v12743_v4 }
  0x58   : > { %572 = vperm.xlu0 %11955, %v503_v45   ;;  %575 = vperm.xlu1 %11956, %v504_v46  }
  0x5c   : > { %578 = vperm.xlu0 %11955, %v505_v47   ;;  %581 = vperm.xlu1 %11956, %v506_v48   ;;  %v8795_v47 = vsub.f32 1.0, %v12747_v5 }
  0x60   : > { %584 = vperm.xlu0 %11955, %v507_v49   ;;  %587 = vperm.xlu1 %11956, %v508_v50  }
  0x64   : > { %590 = vperm.xlu0 %11955, %v509_v51   ;;  %593 = vperm.xlu1 %11956, %v510_v52  }
  0x68   : > { %596 = vperm.xlu0 %11955, %v511_v53   ;;  %599 = vperm.xlu1 %11956, %v512_v54  }
  0x6c   : > { %602 = vperm.xlu0 %11955, %v513_v55   ;;  %605 = vperm.xlu1 %11956, %v514_v56   ;;  %v8796_v56 = vsub.f32 1.0, %v12751_v6 }
  0x70   : > { %608 = vperm.xlu0 %11955, %v515_v60   ;;  %611 = vperm.xlu1 %11956, %v516_v61  }
  0x74   : > { %8694 = vperm.xlu0 %11955, %v467_v62   ;;  %8699 = vperm.xlu1 %11956, %v468_v63  }
  0x78   : > { %8704 = vperm.xlu0 %11955, %v469_v0   ;;  %8709 = vperm.xlu1 %11956, %v470_v1  }
  0x7c   : > { %8714 = vperm.xlu0 %11955, %v471_v2   ;;  %8719 = vperm.xlu1 %11956, %v12740_v3  }
  0x80   : > { %8724 = vperm.xlu0 %11955, %v12743_v4   ;;  %8729 = vperm.xlu1 %11956, %v12747_v5   ;;  %v8798_v4 = vsub.f32 1.0, %v12759_v9 }
  0x84   : > { %8734 = vperm.xlu0 %11955, %v12751_v6   ;;  %8739 = vperm.xlu1 %11956, %v12755_v7   ;;  %v8799_v7 = vsub.f32 1.0, %v12763_v10 }
  0x88   : > { %8744 = vperm.xlu0 %11955, %v12759_v9   ;;  %8749 = vperm.xlu1 %11956, %v12763_v10   ;;  %v8800_v10 = vsub.f32 1.0, %v12770_v12 }
  0x8c   : > { %8754 = vperm.xlu0 %11955, %v12770_v12   ;;  %8759 = vperm.xlu1 %11956, %v12774_v13  }
  0x90   : > { %8764 = vperm.xlu0 %11955, %v12779_v15   ;;  %8769 = vperm.xlu1 %11956, %v12783_v16  }
  0x93   : > { %v12789_v20 = vpop.permute.xlu0 %1136  ;;  %v12791_v21 = vpop.permute.xlu1 %1146 }
  0x94   : > { %16138 = vst [vmem:[#allocation2_spill] sm:$0xff] %v12789_v20  ;;  %16139 = vst [vmem:[#allocation3_spill] sm:$0xff] %v12791_v21  ;;  %v1214_v22 = vsub.f32 %v12789_v20, %v12785_v17  ;;  %v1216_v23 = vsub.f32 %v12791_v21, %v12785_v17  ;;  %8806 = vperm.xlu0 %11955, %v8788_v18   ;;  %8811 = vperm.xlu1 %11956, %v8789_v19  }
  0x96   : > { %v1230_v26 = vmul.f32 %v1214_v22, %v1214_v22  ;;  %v1232_v27 = vmul.f32 %v1216_v23, %v1216_v23 }
  0x97   : > { %v12797_v28 = vpop.permute.xlu0 %1141  ;;  %v12801_v32 = vpop.permute.xlu1 %1151 }
  0x98   : > { %16140 = vst [vmem:[#allocation4_spill] sm:$0xff] %v12797_v28  ;;  %v1246_v29 = vmul.f32 -250.0, %v1230_v26  ;;  %v1215_v30 = vsub.f32 %v12797_v28, %v12785_v17  ;;  %v1248_v31 = vmul.f32 -250.0, %v1232_v27  ;;  %16141 = vst [vmem:[#allocation5_spill] sm:$0xff] %v12801_v32  ;;  %8816 = vperm.xlu0 %11955, %v8790_v24   ;;  %v1217_v34 = vsub.f32 %v12801_v32, %v12785_v17 }
  0x99   : > { %8821 = vperm.xlu1 %11956, %v8791_v25  }
  0x9a   : > { %v1262_v36 = vmul.f32 1.442695, %v1246_v29  ;;  %v1231_v37 = vmul.f32 %v1215_v30, %v1215_v30  ;;  %v1266_v38 = vmul.f32 1.442695, %v1248_v31  ;;  %v1233_v39 = vmul.f32 %v1217_v34, %v1217_v34 }
  0x9b   : > { %v12806_v40 = vpop.permute.xlu0 %1156  ;;  %v12810_v43 = vpop.permute.xlu1 %1161  ;;  %v8801_v31 = vsub.f32 1.0, %v12774_v13 }
  0x9c   : > { %16142 = vst [vmem:[#allocation6_spill] sm:$0xff] %v12806_v40  ;;  %11957 = vpow2.f32 %v1262_v36  ;;  %v1247_v41 = vmul.f32 -250.0, %v1231_v37  ;;  %v1218_v42 = vsub.f32 %v12806_v40, %v12785_v17  ;;  %16143 = vst [vmem:[#allocation7_spill] sm:$0xff] %v12810_v43  ;;  %8826 = vperm.xlu0 %11955, %v8792_v33   ;;  %v1249_v45 = vmul.f32 -250.0, %v1233_v39 }
  0x9d   : > { %v1219_v46 = vsub.f32 %v12810_v43, %v12785_v17  ;;  %8831 = vperm.xlu1 %11956, %v8793_v35   ;;  %11959 = vpow2.f32 %v1266_v38 }
  0x9e   : > { %v1264_v48 = vmul.f32 1.442695, %v1247_v41  ;;  %v1234_v49 = vmul.f32 %v1218_v42, %v1218_v42  ;;  %v1268_v50 = vmul.f32 1.442695, %v1249_v45  ;;  %v8802_v42 = vsub.f32 1.0, %v12779_v15 }
  0x9f   : > { %v1235_v51 = vmul.f32 %v1219_v46, %v1219_v46  ;;  %v12816_v52 = vpop.permute.xlu0 %1166  ;;  %v12820_v55 = vpop.permute.xlu1 %1171  ;;  %v8803_v46 = vsub.f32 1.0, %v12783_v16 }
  0xa0   : > { %16144 = vst [vmem:[#allocation8_spill] sm:$0xff] %v12816_v52  ;;  %11961 = vpow2.f32 %v1264_v48  ;;  %v1250_v53 = vmul.f32 -250.0, %v1234_v49  ;;  %v1220_v54 = vsub.f32 %v12816_v52, %v12785_v17  ;;  %16145 = vst [vmem:[#allocation9_spill] sm:$0xff] %v12820_v55  ;;  %8836 = vperm.xlu0 %11955, %v8794_v44   ;;  %v1221_v58 = vsub.f32 %v12820_v55, %v12785_v17 }
  0xa1   : > { %v1251_v57 = vmul.f32 -250.0, %v1235_v51  ;;  %8841 = vperm.xlu1 %11956, %v8795_v47   ;;  %11963 = vpow2.f32 %v1268_v50 }
  0xa2   : > { %v1270_v60 = vmul.f32 1.442695, %v1250_v53  ;;  %v1236_v61 = vmul.f32 %v1220_v54, %v1220_v54  ;;  %v1237_v63 = vmul.f32 %v1221_v58, %v1221_v58 }
  0xa3   : > { %v1272_v62 = vmul.f32 1.442695, %v1251_v57  ;;  %v12826_v0 = vpop.permute.xlu0 %1176  ;;  %v12830_v3 = vpop.permute.xlu1 %1181 }
  0xa4   : > { %16146 = vst [vmem:[#allocation10_spill] sm:$0xff] %v12826_v0  ;;  %11965 = vpow2.f32 %v1270_v60  ;;  %v1252_v1 = vmul.f32 -250.0, %v1236_v61  ;;  %v1222_v2 = vsub.f32 %v12826_v0, %v12785_v17  ;;  %16147 = vst [vmem:[#allocation11_spill] sm:$0xff] %v12830_v3  ;;  %8846 = vperm.xlu0 %11955, %v8796_v56   ;;  %v1253_v5 = vmul.f32 -250.0, %v1237_v63 }
  0xa5   : > { %v1223_v6 = vsub.f32 %v12830_v3, %v12785_v17  ;;  %8851 = vperm.xlu1 %11956, %v8797_v59   ;;  %11967 = vpow2.f32 %v1272_v62 }
  0xa6   : > { %v11958_v14 = vpop.eup %11957  ;;  %v1274_v18 = vmul.f32 1.442695, %v1252_v1  ;;  %v1238_v19 = vmul.f32 %v1222_v2, %v1222_v2  ;;  %v1276_v22 = vmul.f32 1.442695, %v1253_v5 }
  0xa7   : > { %10356 = vmatprep.mubr.msk.f32.mxu1 %vm713_vm0, %v11958_v14  ;;  %v1239_v23 = vmul.f32 %v1223_v6, %v1223_v6  ;;  %v12837_v24 = vpop.permute.xlu0 %1186  ;;  %v12841_v26 = vpop.permute.xlu1 %1191 }
  0xa8   : > { %16148 = vst [vmem:[#allocation12_spill] sm:$0xff] %v12837_v24  ;;  %11969 = vpow2.f32 %v1274_v18  ;;  %v1254_v9 = vmul.f32 -250.0, %v1238_v19  ;;  %v1224_v25 = vsub.f32 %v12837_v24, %v12785_v17  ;;  %16149 = vst [vmem:[#allocation13_spill] sm:$0xff] %v12841_v26  ;;  %8856 = vperm.xlu0 %11955, %v8798_v4   ;;  %v11960_v27 = vpop.eup %11959  ;;  %v1225_v30 = vsub.f32 %v12841_v26, %v12785_v17 }
  0xa9   : > { %v1255_v29 = vmul.f32 -250.0, %v1239_v23  ;;  %8861 = vperm.xlu1 %11956, %v8799_v7   ;;  %11971 = vpow2.f32 %v1276_v22 }
  0xaa   : > { %v11962_v33 = vpop.eup %11961  ;;  %v1278_v34 = vmul.f32 1.442695, %v1254_v9  ;;  %v1240_v35 = vmul.f32 %v1224_v25, %v1224_v25  ;;  %v1241_v37 = vmul.f32 %v1225_v30, %v1225_v30  ;;  %v16049_v25 = vmov 0.0  }
  0xab   : > { %10357 = vmatmul.mubr.msk.f32.vlgmr.msra.gmra.mrb[0].mxu1 %vm713_vm0, %v11962_v33  ;;  %v1280_v36 = vmul.f32 1.442695, %v1255_v29  ;;  %v12848_v38 = vpop.permute.xlu0 %1196  ;;  %v11964_v12 = vpop.eup %11963 }
  0xac   : > { %16150 = vst [vmem:[#allocation14_spill] sm:$0xff] %v12848_v38  ;;  %10359 = vmatprep.mubr.msk.f32.mxu1 %vm713_vm0, %v11960_v27  ;;  %11973 = vpow2.f32 %v1278_v34  ;;  %v1256_v39 = vmul.f32 -250.0, %v1240_v35  ;;  %v1226_v41 = vsub.f32 %v12848_v38, %v12785_v17  ;;  %v12853_v13 = vpop.permute.xlu1 %1201  ;;  %8866 = vperm.xlu0 %11955, %v8800_v10   ;;  %v1257_v44 = vmul.f32 -250.0, %v1241_v37  ;;  %v9049_v10 = vld [vmem:[%s16046_s9] ss:$0 sm:$0xff] }
  0xad   : > { %16151 = vst [vmem:[#allocation15_spill] sm:$0xff] %v12853_v13  ;;  %v1227_v45 = vsub.f32 %v12853_v13, %v12785_v17  ;;  %8871 = vperm.xlu1 %11956, %v8801_v31   ;;  %11975 = vpow2.f32 %v1280_v36 }
  0xae   : > { %v11966_v47 = vpop.eup %11965  ;;  %v1282_v48 = vmul.f32 1.442695, %v1256_v39  ;;  %v1242_v49 = vmul.f32 %v1226_v41, %v1226_v41  ;;  %v1284_v50 = vmul.f32 1.442695, %v1257_v44 }
  0xaf   : > { %10360 = vmatmul.mubr.msk.f32.gmra.mrb[2].mxu1 %vm713_vm0, %v11964_v12  ;;  %v1243_v51 = vmul.f32 %v1227_v45, %v1227_v45  ;;  %v12860_v53 = vpop.permute.xlu0 %1206  ;;  %v11968_v54 = vpop.eup %11967 }
  0xb0   : > { %16152 = vst [vmem:[#allocation16_spill] sm:$0xff] %v12860_v53  ;;  %10362 = vmatprep.mubr.msk.f32.mxu1 %vm713_vm0, %v11966_v47  ;;  %11977 = vpow2.f32 %v1282_v48  ;;  %v1258_v15 = vmul.f32 -250.0, %v1242_v49  ;;  %v1228_v56 = vsub.f32 %v12860_v53, %v12785_v17  ;;  %v12865_v16 = vpop.permute.xlu1 %1211  ;;  %8876 = vperm.xlu0 %11955, %v8802_v42  }
  0xb1   : > { %16153 = vst [vmem:[#allocation17_spill] sm:$0xff] %v12865_v16  ;;  %v1259_v57 = vmul.f32 -250.0, %v1243_v51  ;;  %v1229_v58 = vsub.f32 %v12865_v16, %v12785_v17  ;;  %8881 = vperm.xlu1 %11956, %v8803_v46   ;;  %11979 = vpow2.f32 %v1284_v50 }
  0xb2   : > { %v11970_v59 = vpop.eup %11969  ;;  %v1286_v60 = vmul.f32 1.442695, %v1258_v15  ;;  %v1244_v61 = vmul.f32 %v1228_v56, %v1228_v56 }
  0xb3   : > { %10363 = vmatmul.mubr.msk.f32.gmra.mrb[4].mxu1 %vm713_vm0, %v11968_v54  ;;  %v1288_v62 = vmul.f32 1.442695, %v1259_v57  ;;  %v1245_v63 = vmul.f32 %v1229_v58, %v1229_v58  ;;  %v11972_v1 = vpop.eup %11971  ;;  %v1592_v57 = vld [vmem:[%s16045_s8 + $0x18] sm:$0xff]  ;;  %v1597_v58 = vld [vmem:[%s16045_s8 + $0x40] sm:$0xff] }
  0xb4   : > { %10365 = vmatprep.mubr.msk.f32.mxu1 %vm713_vm0, %v11970_v59  ;;  %11981 = vpow2.f32 %v1286_v60  ;;  %v1260_v2 = vmul.f32 -250.0, %v1244_v61  ;;  %v11456_v59 = vpack.c.bf16 %v1597_v58, %v1592_v57  ;;  %v1591_v60 = vld [vmem:[%s16045_s8 + $0x10] sm:$0xff]  ;;  %v1596_v61 = vld [vmem:[%s16045_s8 + $0x38] sm:$0xff] }
  0xb5   : > { %v1261_v4 = vmul.f32 -250.0, %v1245_v63  ;;  %11983 = vpow2.f32 %v1288_v62  ;;  %v11458_v62 = vpack.c.bf16 %v1596_v61, %v1591_v60  ;;  %v1602_v63 = vld [vmem:[%s16045_s8 + $0x68] sm:$0xff] }
  0xb6   : > { %v11974_v5 = vpop.eup %11973  ;;  %v1290_v6 = vmul.f32 1.442695, %v1260_v2  ;;  %11457 = vmatprep.subr.bf16.mxu1 %v11456_v59 }
  0xb7   : > { %10366 = vmatmul.mubr.msk.f32.gmra.mrb[6].mxu1 %vm713_vm0, %v11972_v1  ;;  %v1292_v17 = vmul.f32 1.442695, %v1261_v4  ;;  %v11976_v7 = vpop.eup %11975  ;;  %v1607_v1 = vld [vmem:[%s16045_s8 + $0x90] sm:$0xff]  ;;  %v1601_v4 = vld [vmem:[%s16045_s8 + $0x60] sm:$0xff] }
  0xb8   : > { %10368 = vmatprep.mubr.msk.f32.mxu1 %vm713_vm0, %v11974_v5  ;;  %11985 = vpow2.f32 %v1290_v6  ;;  %11459 = vmatpush1.bf16.msra.mxu1 %v11458_v62  ;;  %v11460_v2 = vpack.c.bf16 %v1607_v1, %v1602_v63  ;;  %v1606_v5 = vld [vmem:[%s16045_s8 + $0x88] sm:$0xff] }
  0xb9   : > { %11987 = vpow2.f32 %v1292_v17  ;;  %v11462_v6 = vpack.c.bf16 %v1606_v5, %v1601_v4  ;;  %v1612_v17 = vld [vmem:[%s16045_s8 + $0xb8] sm:$0xff] }
  0xba   : > { %v11978_v14 = vpop.eup %11977  ;;  %11461 = vmatprep.subr.bf16.mxu1 %v11460_v2 }
  0xbb   : > { %10369 = vmatmul.mubr.msk.f32.gmra.mrb[8].mxu1 %vm713_vm0, %v11976_v7  ;;  %v11980_v18 = vpop.eup %11979  ;;  %v1617_v7 = vld [vmem:[%s16045_s8 + $0xe0] sm:$0xff] }
  0xbc   : > { %10371 = vmatprep.mubr.msk.f32.mxu1 %vm713_vm0, %v11978_v14  ;;  %11463 = vmatpush1.bf16.msra.mxu1 %v11462_v6  ;;  %v11464_v14 = vpack.c.bf16 %v1617_v7, %v1612_v17 }
  0xbe   : > { %v11982_v19 = vpop.eup %11981  ;;  %11465 = vmatprep.subr.bf16.mxu1 %v11464_v14 }
  0xbf   : > { %10372 = vmatmul.mubr.msk.f32.gmra.mrb[10].mxu1 %vm713_vm0, %v11980_v18  ;;  %v11984_v22 = vpop.eup %11983  ;;  %v1611_v18 = vld [vmem:[%s16045_s8 + $0xb0] sm:$0xff] }
  0xc0   : > { %10374 = vmatprep.mubr.msk.f32.mxu1 %vm713_vm0, %v11982_v19  ;;  %v1616_v19 = vld [vmem:[%s16045_s8 + $0xd8] sm:$0xff] }
  0xc2   : > { %v11986_v23 = vpop.eup %11985 }
  0xc3   : > { %10375 = vmatmul.mubr.msk.f32.gmra.mrb[12].mxu1 %vm713_vm0, %v11984_v22  ;;  %v11988_v9 = vpop.eup %11987  ;;  %v11466_v22 = vpack.c.bf16 %v1616_v19, %v1611_v18 }
  0xc4   : > { %10377 = vmatprep.mubr.msk.f32.mxu1 %vm713_vm0, %v11986_v23  ;;  %v1622_v23 = vld [vmem:[%s16045_s8 + $0x108] sm:$0xff] }
  0xc5   : > { %11467 = vmatpush1.bf16.msra.mxu1 %v11466_v22 }
  0xc7   : > { %10378 = vmatmul.mubr.msk.f32.gmra.mrb[14].mxu1 %vm713_vm0, %v11988_v9  ;;  %v1627_v9 = vld [vmem:[%s16045_s8 + $0x130] sm:$0xff] }
  0xc8   : > { %1913 = vmatprep.mubr.f32.mxu1 %v16049_v25 }
  0xe9   : > { %v10312_v27 = vpop.f32.mrb[0].mxu0 }
  0xea   : > { %v810_v29 = vadd.f32 %v10312_v27, %v9049_v10  ;;  %v804_v30 = vpop.f32.mrb[1].mxu0  ;;  %v1621_v27 = vld [vmem:[%s16045_s8 + $0x100] sm:$0xff] }
  0xeb   : > { %v805_v31 = vadd.f32 %v9049_v10, %v804_v30 }
  0xec   : > { %v844_v35 = vmax.f32 %v810_v29, 0.0  ;;  %v1626_v29 = vld [vmem:[%s16045_s8 + $0x128] sm:$0xff] }
  0xed   : > { %v843_v33 = vmax.f32 %v805_v31, 0.0  ;;  %v10315_v34 = vpop.f32.mrb[2].mxu0  ;;  %v11470_v30 = vpack.c.bf16 %v1626_v29, %v1621_v27  ;;  %v1632_v31 = vld [vmem:[%s16045_s8 + $0x158] sm:$0xff] }
  0xee   : > { %v820_v36 = vadd.f32 %v10315_v34, %v9049_v10  ;;  %v814_v37 = vpop.f32.mrb[3].mxu0 }
  0xef   : > { %v815_v12 = vadd.f32 %v9049_v10, %v814_v37  ;;  %10326 = vmatprep.mubr.msk.f32.mxu0 %vm858_vm1, %v843_v33  ;;  %v1637_v33 = vld [vmem:[%s16045_s8 + $0x180] sm:$0xff] }
  0xf0   : > { %10327 = vmatmul.mubr.msk.f32.vlgmr.msra.gmra.mrb[8].mxu0 %vm858_vm1, %v844_v35  ;;  %v846_v42 = vmax.f32 %v820_v36, 0.0  ;;  %v11472_v34 = vpack.c.bf16 %v1637_v33, %v1632_v31  ;;  %v1631_v35 = vld [vmem:[%s16045_s8 + $0x150] sm:$0xff]  ;;  %v1636_v36 = vld [vmem:[%s16045_s8 + $0x178] sm:$0xff] }
  0xf1   : > { %v845_v39 = vmax.f32 %v815_v12, 0.0  ;;  %v10318_v41 = vpop.f32.mrb[4].mxu0  ;;  %v11474_v37 = vpack.c.bf16 %v1636_v36, %v1631_v35  ;;  %v996_v12 = vld [vmem:[%s16042_s5 + $0x2c0] sm:$0xff] }
  0xf2   : > { %v830_v44 = vadd.f32 %v10318_v41, %v9049_v10  ;;  %v824_v45 = vpop.f32.mrb[5].mxu0 }
  0xf3   : > { %v825_v46 = vadd.f32 %v9049_v10, %v824_v45  ;;  %10329 = vmatprep.mubr.msk.f32.mxu0 %vm858_vm1, %v845_v39  ;;  %v997_v39 = vld [vmem:[%s16042_s5 + $0x2c8] sm:$0xff] }
  0xf4   : > { %10330 = vmatmul.mubr.msk.f32.gmra.mrb[10].mxu0 %vm858_vm1, %v846_v42  ;;  %v848_v49 = vmax.f32 %v830_v44, 0.0  ;;  %v11432_v41 = vpack.c.bf16 %v997_v39, %v996_v12  ;;  %v1590_v42 = vld [vmem:[%s16045_s8 + $0x8] sm:$0xff]  ;;  %v1595_v44 = vld [vmem:[%s16045_s8 + $0x30] sm:$0xff] }
  0xf5   : > { %v847_v47 = vmax.f32 %v825_v46, 0.0  ;;  %v10321_v48 = vpop.f32.mrb[6].mxu0  ;;  %v11436_v45 = vpack.c.bf16 %v1595_v44, %v1590_v42  ;;  %v12967_v46 = vld [vmem:[%s16046_s9 + $0x4] ss:$0 sm:$0xff] }
  0xf6   : > { %v840_v50 = vadd.f32 %v10321_v48, %v9049_v10  ;;  %v834_v51 = vpop.f32.mrb[7].mxu0  ;;  %11433 = vmatprep.subr.bf16.mxu0 %v11432_v41 }
  0xf7   : > { %v835_v54 = vadd.f32 %v9049_v10, %v834_v51  ;;  %10332 = vmatprep.mubr.msk.f32.mxu0 %vm858_vm1, %v847_v47  ;;  %v11468_v10 = vpack.c.bf16 %v1627_v9, %v1622_v23  ;;  %11435 = vmatpush3.bf16.msra.mxu0 %v11432_v41 }
  0xf8   : > { %10333 = vmatmul.mubr.msk.f32.gmra.mrb[12].mxu0 %vm858_vm1, %v848_v49  ;;  %v850_v56 = vmax.f32 %v840_v50, 0.0  ;;  %11437 = vmatprep.subr.bf16.mxu0 %v11436_v45 }
  0xf9   : > { %v849_v15 = vmax.f32 %v835_v54, 0.0  ;;  %11469 = vmatprep.subr.bf16.mxu1 %v11468_v10 }
  0xfa   : > { %11471 = vmatpush1.bf16.msra.mxu1 %v11470_v30 }
  0xfb   : > { %10335 = vmatprep.mubr.msk.f32.mxu0 %vm858_vm1, %v849_v15  ;;  %11473 = vmatprep.subr.bf16.mxu1 %v11472_v34 }
  0xfc   : > { %10336 = vmatmul.mubr.msk.f32.gmra.mrb[14].mxu0 %vm858_vm1, %v850_v56 }
  0xfe   : > { %11475 = vmatpush1.bf16.msra.mxu1 %v11474_v37 }
 0x17e   : > { %v10358_v47 = vpop.f32.mrb[0].mxu1 }
 0x17f   : > { %v12970_v48 = vadd.f32 %v10358_v47, %v12967_v46  ;;  %v1414_v49 = vpop.f32.mrb[1].mxu1 }
 0x180   : > { %v12973_v50 = vadd.f32 %v12967_v46, %v1414_v49 }
 0x181   : > { %v1494_v51 = vsub.f32 0.0, %v12970_v48 }
 0x182   : > { %v1493_v54 = vsub.f32 0.0, %v12973_v50  ;;  %v10361_v15 = vpop.f32.mrb[2].mxu1 }
 0x183   : > { %v1511_v56 = vmul.f32 1.442695, %v1494_v51  ;;  %v12978_v57 = vadd.f32 %v10361_v15, %v12967_v46  ;;  %v1424_v58 = vpop.f32.mrb[3].mxu1 }
 0x184   : > { %v1509_v59 = vmul.f32 1.442695, %v1493_v54  ;;  %v12981_v60 = vadd.f32 %v12967_v46, %v1424_v58 }
 0x185   : > { %11989 = vpow2.f32 %v1511_v56  ;;  %v1496_v61 = vsub.f32 0.0, %v12978_v57 }
 0x186   : > { %11991 = vpow2.f32 %v1509_v59  ;;  %v1495_v62 = vsub.f32 0.0, %v12981_v60  ;;  %v10364_v63 = vpop.f32.mrb[4].mxu1 }
 0x187   : > { %v1515_v1 = vmul.f32 1.442695, %v1496_v61  ;;  %v12986_v2 = vadd.f32 %v10364_v63, %v12967_v46  ;;  %v1434_v4 = vpop.f32.mrb[5].mxu1 }
 0x188   : > { %v1513_v5 = vmul.f32 1.442695, %v1495_v62  ;;  %v12989_v6 = vadd.f32 %v12967_v46, %v1434_v4 }
 0x189   : > { %11993 = vpow2.f32 %v1515_v1  ;;  %v1498_v17 = vsub.f32 0.0, %v12986_v2 }
 0x18a   : > { %11995 = vpow2.f32 %v1513_v5  ;;  %v1497_v7 = vsub.f32 0.0, %v12989_v6  ;;  %v10367_v14 = vpop.f32.mrb[6].mxu1 }
 0x18b   : > { %v1444_v18 = vpop.f32.mrb[7].mxu1  ;;  %v1519_v23 = vmul.f32 1.442695, %v1498_v17  ;;  %v12997_v9 = vadd.f32 %v10367_v14, %v12967_v46 }
 0x18c   : > { %v1517_v19 = vmul.f32 1.442695, %v1497_v7  ;;  %v12994_v22 = vadd.f32 %v12967_v46, %v1444_v18 }
 0x18d   : > { %v1500_v35 = vsub.f32 0.0, %v12997_v9 }
 0x18e   : > { %11997 = vpow2.f32 %v1517_v19  ;;  %v1499_v10 = vsub.f32 0.0, %v12994_v22  ;;  %v10370_v27 = vpop.f32.mrb[8].mxu1 }
 0x18f   : > { %v11990_v29 = vpop.eup %11989  ;;  %v1454_v30 = vpop.f32.mrb[9].mxu1  ;;  %11999 = vpow2.f32 %v1519_v23  ;;  %v13005_v45 = vadd.f32 %v10370_v27, %v12967_v46  ;;  %v1523_v47 = vmul.f32 1.442695, %v1500_v35 }
 0x190   : > { %v11992_v31 = vpop.eup %11991  ;;  %v1542_v33 = vadd.f32 1.0, %v11990_v29  ;;  %v1521_v36 = vmul.f32 1.442695, %v1499_v10  ;;  %v13002_v37 = vadd.f32 %v12967_v46, %v1454_v30 }
 0x191   : > { %v1541_v34 = vadd.f32 1.0, %v11992_v31  ;;  %v1502_v58 = vsub.f32 0.0, %v13005_v45 }
 0x192   : > { %12001 = vrcp.f32 %v1542_v33  ;;  %v10373_v12 = vpop.f32.mrb[10].mxu1  ;;  %v1501_v49 = vsub.f32 0.0, %v13002_v37 }
 0x193   : > { %v11994_v39 = vpop.eup %11993  ;;  %12003 = vrcp.f32 %v1541_v34  ;;  %v1464_v41 = vpop.f32.mrb[11].mxu1  ;;  %v1527_v7 = vmul.f32 1.442695, %v1502_v58  ;;  %v13016_v18 = vadd.f32 %v10373_v12, %v12967_v46 }
 0x194   : > { %v11996_v42 = vpop.eup %11995  ;;  %12005 = vpow2.f32 %v1521_v36  ;;  %v1544_v54 = vadd.f32 1.0, %v11994_v39  ;;  %v1525_v59 = vmul.f32 1.442695, %v1501_v49  ;;  %v13010_v61 = vadd.f32 %v12967_v46, %v1464_v41 }
 0x195   : > { %v1543_v44 = vadd.f32 1.0, %v11996_v42 }
 0x196   : > { %v10376_v51 = vpop.f32.mrb[12].mxu1  ;;  %v1503_v19 = vsub.f32 0.0, %v13010_v61 }
 0x197   : > { %12007 = vrcp.f32 %v1543_v44  ;;  %v1474_v15 = vpop.f32.mrb[13].mxu1  ;;  %v13036_v12 = vadd.f32 %v10376_v51, %v12967_v46 }
 0x198   : > { %v11998_v56 = vpop.eup %11997  ;;  %12009 = vpow2.f32 %v1523_v47  ;;  %v1529_v30 = vmul.f32 1.442695, %v1503_v19  ;;  %v13027_v31 = vadd.f32 %v12967_v46, %v1474_v15 }
 0x199   : > { %v12000_v63 = vpop.eup %11999  ;;  %12011 = vrcp.f32 %v1544_v54  ;;  %v1545_v1 = vadd.f32 1.0, %v11998_v56  ;;  %v1506_v47 = vsub.f32 0.0, %v13036_v12 }
 0x19a   : > { %v10379_v62 = vpop.f32.mrb[14].mxu1  ;;  %12013 = vpow2.f32 %v1525_v59  ;;  %v1546_v23 = vadd.f32 1.0, %v12000_v63  ;;  %v1505_v39 = vsub.f32 0.0, %v13027_v31 }
 0x19b   : > { %v1484_v4 = vpop.f32.mrb[15].mxu1  ;;  %12015 = vrcp.f32 %v1545_v1  ;;  %v1535_v58 = vmul.f32 1.442695, %v1506_v47  ;;  %v13056_v59 = vadd.f32 %v10379_v62, %v12967_v46 }
 0x19c   : > { %v12002_v5 = vpop.eup %12001  ;;  %12017 = vpow2.f32 %v1527_v7  ;;  %v1533_v49 = vmul.f32 1.442695, %v1505_v39  ;;  %v13047_v51 = vadd.f32 %v12967_v46, %v1484_v4 }
 0x19d   : > { %v12004_v17 = vpop.eup %12003  ;;  %v13020_v27 = vmul.f32 %v12002_v5, %v12970_v48  ;;  %12019 = vrcp.f32 %v1546_v23 }
 0x19e   : > { %v13013_v14 = vmul.f32 %v12004_v17, %v12973_v50  ;;  %v12006_v10 = vpop.eup %12005  ;;  %v1504_v50 = vsub.f32 0.0, %v13016_v18  ;;  %12021 = vpow2.f32 %v1529_v30  ;;  %v1507_v63 = vsub.f32 0.0, %v13047_v51 }
 0x19f   : > { %v1547_v33 = vadd.f32 1.0, %v12006_v10  ;;  %v1508_v17 = vsub.f32 0.0, %v13056_v59 }
 0x1a0   : > { %9109 = vmatmul.mubr.msk.f32.vlgmr.msra.gmra.mrb[16].mxu1 %vm1639_vm2, %v13013_v14  ;;  %v1531_v36 = vmul.f32 1.442695, %v1504_v50  ;;  %v1537_v7 = vmul.f32 1.442695, %v1507_v63  ;;  %v1600_v63 = vld [vmem:[%s16045_s8 + $0x58] sm:$0xff] }
 0x1a1   : > { %v12008_v29 = vpop.eup %12007  ;;  %1919 = vmatprep.mubr.f32.mxu1 %v16049_v25  ;;  %12023 = vrcp.f32 %v1547_v33  ;;  %v1539_v23 = vmul.f32 1.442695, %v1508_v17 }
 0x1a2   : > { %v12010_v34 = vpop.eup %12009  ;;  %v13030_v35 = vmul.f32 %v12008_v29, %v12981_v60  ;;  %12025 = vpow2.f32 %v1531_v36 }
 0x1a3   : > { %v12012_v48 = vpop.eup %12011  ;;  %v1548_v41 = vadd.f32 1.0, %v12010_v34 }
 0x1a4   : > { %9110 = vmatmul.mubr.msk.f32.gmra.mrb[18].mxu1 %vm1639_vm2, %v13020_v27  ;;  %v12014_v42 = vpop.eup %12013  ;;  %v13040_v44 = vmul.f32 %v12012_v48, %v12978_v57 }
 0x1a5   : > { %1925 = vmatprep.mubr.f32.mxu1 %v16049_v25  ;;  %v12016_v60 = vpop.eup %12015  ;;  %12027 = vrcp.f32 %v1548_v41  ;;  %v1549_v54 = vadd.f32 1.0, %v12014_v42 }
 0x1a6   : > { %v12018_v15 = vpop.eup %12017  ;;  %v13050_v56 = vmul.f32 %v12016_v60, %v12989_v6  ;;  %12029 = vpow2.f32 %v1533_v49 }
 0x1a7   : > { %v12020_v57 = vpop.eup %12019  ;;  %v1550_v1 = vadd.f32 1.0, %v12018_v15  ;;  %12031 = vrcp.f32 %v1549_v54 }
 0x1a8   : > { %9111 = vmatmul.mubr.msk.f32.gmra.mrb[20].mxu1 %vm1639_vm2, %v13030_v35  ;;  %v12022_v4 = vpop.eup %12021  ;;  %v13060_v5 = vmul.f32 %v12020_v57, %v12986_v2  ;;  %12033 = vpow2.f32 %v1535_v58  ;;  %v1589_v57 = vld [vmem:[%s16045_s8] sm:$0xff]  ;;  %v1594_v58 = vld [vmem:[%s16045_s8 + $0x28] sm:$0xff] }
 0x1a9   : > { %1931 = vmatprep.mubr.f32.mxu1 %v16049_v25  ;;  %12035 = vrcp.f32 %v1550_v1  ;;  %v1551_v46 = vadd.f32 1.0, %v12022_v4  ;;  %v1605_v1 = vld [vmem:[%s16045_s8 + $0x80] sm:$0xff] }
 0x1aa   : > { %12037 = vpow2.f32 %v1537_v7 }
 0x1ab   : > { %v12024_v6 = vpop.eup %12023  ;;  %12039 = vrcp.f32 %v1551_v46  ;;  %v11438_v46 = vpack.c.bf16 %v1594_v58, %v1589_v57  ;;  %v1614_v57 = vld [vmem:[%s16045_s8 + $0xc8] sm:$0xff] }
 0x1ac   : > { %9112 = vmatmul.mubr.msk.f32.gmra.mrb[22].mxu1 %vm1639_vm2, %v13040_v44  ;;  %v12026_v62 = vpop.eup %12025  ;;  %v13067_v19 = vmul.f32 %v12024_v6, %v12994_v22  ;;  %12041 = vpow2.f32 %v1539_v23 }
 0x1ad   : > { %1937 = vmatprep.mubr.f32.mxu1 %v16049_v25  ;;  %v1552_v10 = vadd.f32 1.0, %v12026_v62 }
 0x1af   : > { %v12028_v2 = vpop.eup %12027  ;;  %12043 = vrcp.f32 %v1552_v10 }
 0x1b0   : > { %9113 = vmatmul.mubr.msk.f32.gmra.mrb[24].mxu1 %vm1639_vm2, %v13050_v56  ;;  %v12030_v29 = vpop.eup %12029  ;;  %v13073_v50 = vmul.f32 %v12028_v2, %v12997_v9 }
 0x1b1   : > { %1943 = vmatprep.mubr.f32.mxu1 %v16049_v25  ;;  %v12032_v30 = vpop.eup %12031  ;;  %v1553_v22 = vadd.f32 1.0, %v12030_v29  ;;  %v11440_v29 = vpack.c.bf16 %v1605_v1, %v1600_v63  ;;  %v1625_v63 = vld [vmem:[%s16045_s8 + $0x120] sm:$0xff] }
 0x1b2   : > { %v12034_v33 = vpop.eup %12033  ;;  %v13079_v34 = vmul.f32 %v12032_v30, %v13002_v37  ;;  %v13093_v37 = vld [vmem:[%s16046_s9 + $0x1] ss:$0 sm:$0xff]  ;;  %v1599_v30 = vld [vmem:[%s16045_s8 + $0x50] sm:$0xff] }
 0x1b3   : > { %v12036_v48 = vpop.eup %12035  ;;  %v1554_v9 = vadd.f32 1.0, %v12034_v33  ;;  %12045 = vrcp.f32 %v1553_v22  ;;  %v1610_v33 = vld [vmem:[%s16045_s8 + $0xa8] sm:$0xff] }
 0x1b4   : > { %9114 = vmatmul.mubr.msk.f32.gmra.mrb[26].mxu1 %vm1639_vm2, %v13060_v5  ;;  %v12038_v36 = vpop.eup %12037  ;;  %v13085_v39 = vmul.f32 %v12036_v48, %v13005_v45  ;;  %v1615_v48 = vld [vmem:[%s16045_s8 + $0xd0] sm:$0xff] }
 0x1b5   : > { %1949 = vmatprep.mubr.f32.mxu1 %v16049_v25  ;;  %v12040_v41 = vpop.eup %12039  ;;  %12047 = vrcp.f32 %v1554_v9  ;;  %v1555_v42 = vadd.f32 1.0, %v12038_v36 }
 0x1b6   : > { %v12042_v60 = vpop.eup %12041  ;;  %v13096_v47 = vmul.f32 %v12040_v41, %v13010_v61 }
 0x1b7   : > { %v1556_v4 = vadd.f32 1.0, %v12042_v60  ;;  %12049 = vrcp.f32 %v1555_v42 }
 0x1b8   : > { %9115 = vmatmul.mubr.msk.f32.gmra.mrb[28].mxu1 %vm1639_vm2, %v13067_v19 }
 0x1b9   : > { %1955 = vmatprep.mubr.f32.mxu1 %v16049_v25  ;;  %v12044_v45 = vpop.eup %12043  ;;  %12051 = vrcp.f32 %v1556_v4 }
 0x1ba   : > { %v13116_v6 = vmul.f32 %v12044_v45, %v13016_v18  ;;  %v1604_v18 = vld [vmem:[%s16045_s8 + $0x78] sm:$0xff] }
 0x1bb   : > { %v11442_v42 = vpack.c.bf16 %v1604_v18, %v1599_v30  ;;  %v1630_v18 = vld [vmem:[%s16045_s8 + $0x148] sm:$0xff] }
 0x1bc   : > { %9116 = vmatmul.mubr.msk.f32.gmra.mrb[30].mxu1 %vm1639_vm2, %v13073_v50 }
 0x1bd   : > { %1961 = vmatprep.mubr.f32.mxu1 %v16049_v25  ;;  %v12046_v62 = vpop.eup %12045 }
 0x1be   : > { %v13138_v9 = vmul.f32 %v12046_v62, %v13027_v31  ;;  %v1609_v31 = vld [vmem:[%s16045_s8 + $0xa0] sm:$0xff] }
 0x1bf   : > { %v12048_v60 = vpop.eup %12047 }
 0x1c0   : > { %9117 = vmatmul.mubr.msk.f32.gmra.mrb[32].mxu1 %vm1639_vm2, %v13079_v34  ;;  %v13160_v1 = vmul.f32 %v12048_v60, %v13036_v12  ;;  %v1619_v12 = vld [vmem:[%s16045_s8 + $0xf0] sm:$0xff]  ;;  %v1629_v60 = vld [vmem:[%s16045_s8 + $0x140] sm:$0xff] }
 0x1c1   : > { %1967 = vmatprep.mubr.f32.mxu1 %v16049_v25 }
 0x1c3   : > { %v10328_v49 = vpop.f32.mrb[8].mxu0 }
 0x1c4   : > { %9118 = vmatmul.mubr.msk.f32.gmra.mrb[34].mxu1 %vm1639_vm2, %v13085_v39  ;;  %v955_v54 = vadd.f32 %v10328_v49, %v13093_v37  ;;  %v949_v15 = vpop.f32.mrb[9].mxu0 }
 0x1c5   : > { %1973 = vmatprep.mubr.f32.mxu1 %v16049_v25  ;;  %v950_v61 = vadd.f32 %v13093_v37, %v949_v15  ;;  %v11444_v15 = vpack.c.bf16 %v1615_v48, %v1610_v33 }
 0x1c6   : > { %v989_v2 = vmax.f32 %v955_v54, 0.0 }
 0x1c7   : > { %v988_v17 = vmax.f32 %v950_v61, 0.0  ;;  %v10331_v7 = vpop.f32.mrb[10].mxu0  ;;  %v1620_v61 = vld [vmem:[%s16045_s8 + $0xf8] sm:$0xff] }
 0x1c8   : > { %9119 = vmatmul.mubr.msk.f32.gmra.mrb[36].mxu1 %vm1639_vm2, %v13096_v47  ;;  %v965_v23 = vadd.f32 %v10331_v7, %v13093_v37  ;;  %v959_v10 = vpop.f32.mrb[11].mxu0  ;;  %v11446_v7 = vpack.c.bf16 %v1614_v57, %v1609_v31 }
 0x1c9   : > { %1979 = vmatprep.mubr.f32.mxu1 %v16049_v25  ;;  %v960_v22 = vadd.f32 %v13093_v37, %v959_v10  ;;  %10342 = vmatprep.mubr.msk.f32.mxu0 %vm858_vm1, %v988_v17  ;;  %v11448_v10 = vpack.c.bf16 %v1625_v63, %v1620_v61 }
 0x1ca   : > { %10343 = vmatmul.mubr.msk.f32.vlgmr.msra.gmra.mrb[16].mxu0 %vm858_vm1, %v989_v2  ;;  %v991_v49 = vmax.f32 %v965_v23, 0.0 }
 0x1cb   : > { %v990_v36 = vmax.f32 %v960_v22, 0.0  ;;  %v10334_v41 = vpop.f32.mrb[12].mxu0  ;;  %11439 = vmatpush1.bf16.msra.mxu0 %v11438_v46  ;;  %v12050_v46 = vpop.eup %12049  ;;  %v1635_v22 = vld [vmem:[%s16045_s8 + $0x170] sm:$0xff] }
 0x1cc   : > { %9120 = vmatmul.mubr.msk.f32.gmra.mrb[38].mxu1 %vm1639_vm2, %v13116_v6  ;;  %v975_v45 = vadd.f32 %v10334_v41, %v13093_v37  ;;  %v969_v54 = vpop.f32.mrb[13].mxu0  ;;  %11441 = vmatprep.subr.bf16.mxu0 %v11440_v29  ;;  %v1624_v29 = vld [vmem:[%s16045_s8 + $0x118] sm:$0xff]  ;;  %v13182_v33 = vmul.f32 %v12050_v46, %v13047_v51  ;;  %v1634_v51 = vld [vmem:[%s16045_s8 + $0x168] sm:$0xff]  ;;  %v1623_v46 = vld [vmem:[%s16045_s8 + $0x110] sm:$0xff] }
 0x1cd   : > { %1985 = vmatprep.mubr.f32.mxu1 %v16049_v25  ;;  %v970_v58 = vadd.f32 %v13093_v37, %v969_v54  ;;  %10345 = vmatprep.mubr.msk.f32.mxu0 %vm858_vm1, %v990_v36  ;;  %v12052_v36 = vpop.eup %12051  ;;  %v519_v54 = vpop.permute.xlu0 %518  ;;  %v11454_v31 = vpack.c.bf16 %v1634_v51, %v1629_v60 }
 0x1ce   : > { %10346 = vmatmul.mubr.msk.f32.gmra.mrb[18].mxu0 %vm858_vm1, %v991_v49  ;;  %v993_v62 = vmax.f32 %v975_v45, 0.0  ;;  %v1593_v49 = vld [vmem:[%s16045_s8 + $0x20] sm:$0xff]  ;;  %v1598_v45 = vld [vmem:[%s16045_s8 + $0x48] sm:$0xff]  ;;  %vm613_vm3 = vcmp.eq.s32.totalorder %v12766_v11, %v519_v54 }
 0x1cf   : > { %v992_v4 = vmax.f32 %v970_v58, 0.0  ;;  %v10337_v17 = vpop.f32.mrb[14].mxu0  ;;  %11443 = vmatpush1.bf16.msra.mxu0 %v11442_v42  ;;  %v11452_v42 = vpack.c.bf16 %v1635_v22, %v1630_v18  ;;  %v11476_v57 = vpack.c.bf16 %v1598_v45, %v1593_v49  ;;  %v1603_v58 = vld [vmem:[%s16045_s8 + $0x70] sm:$0xff]  ;;  %v13216_v61 = vsel %vm613_vm3, 1.0, %v16049_v25  ;;  %v2481_v22 = vld [vmem:[%s16042_s5 + $0x20] sm:$0xff] }
 0x1d0   : > { %9121 = vmatmul.mubr.msk.f32.gmra.mrb[40].mxu1 %vm1639_vm2, %v13138_v9  ;;  %v985_v2 = vadd.f32 %v10337_v17, %v13093_v37  ;;  %v979_v23 = vpop.f32.mrb[15].mxu0  ;;  %11445 = vmatprep.subr.bf16.mxu0 %v11444_v15  ;;  %v13202_v15 = vmul.f32 %v12052_v36, %v13056_v59  ;;  %v1608_v59 = vld [vmem:[%s16045_s8 + $0x98] sm:$0xff]  ;;  %v1618_v17 = vld [vmem:[%s16045_s8 + $0xe8] sm:$0xff] }
 0x1d1   : > { %1991 = vmatprep.mubr.f32.mxu1 %v16049_v25  ;;  %v980_v30 = vadd.f32 %v13093_v37, %v979_v23  ;;  %10348 = vmatprep.mubr.msk.f32.mxu0 %vm858_vm1, %v992_v4  ;;  %v11450_v37 = vpack.c.bf16 %v1624_v29, %v1619_v12  ;;  %v11480_v63 = vpack.c.bf16 %v1608_v59, %v1603_v58  ;;  %v1613_v4 = vld [vmem:[%s16045_s8 + $0xc0] sm:$0xff]  ;;  %v2484_v36 = vld [vmem:[%s16042_s5 + $0x38] sm:$0xff]  ;;  %v13367_v60 = vpop.permute.xlu0 %524 }
 0x1d2   : > { %10349 = vmatmul.mubr.msk.f32.gmra.mrb[20].mxu0 %vm858_vm1, %v993_v62  ;;  %v995_v41 = vmax.f32 %v985_v2, 0.0  ;;  %v1628_v62 = vld [vmem:[%s16045_s8 + $0x138] sm:$0xff]  ;;  %v1633_v23 = vld [vmem:[%s16045_s8 + $0x160] sm:$0xff]  ;;  %vm615_vm6 = vcmp.eq.s32.totalorder %v12766_v11, %v13367_v60 }
 0x1d3   : > { %v994_v48 = vmax.f32 %v980_v30, 0.0  ;;  %11447 = vmatpush1.bf16.msra.mxu0 %v11446_v7  ;;  %v11484_v7 = vpack.c.bf16 %v1618_v17, %v1613_v4  ;;  %v11488_v2 = vpack.c.bf16 %v1628_v62, %v1623_v46  ;;  %v13349_v30 = vpop.permute.xlu1 %521  ;;  %v9067_v58 = vld [vmem:[%s16046_s9 + $0x2] ss:$0 sm:$0xff] }
 0x1d4   : > { %9122 = vmatmul.mubr.msk.f32.gmra.mrb[42].mxu1 %vm1639_vm2, %v13160_v1  ;;  %11449 = vmatprep.subr.bf16.mxu0 %v11448_v10  ;;  %v1638_v10 = vld [vmem:[%s16045_s8 + $0x188] sm:$0xff]  ;;  %vm614_vm5 = vcmp.eq.s32.totalorder %v12766_v11, %v13349_v30 }
 0x1d5   : > { %1997 = vmatprep.mubr.f32.mxu1 %v16049_v25  ;;  %10351 = vmatprep.mubr.msk.f32.mxu0 %vm858_vm1, %v994_v48  ;;  %v11492_v12 = vpack.c.bf16 %v1638_v10, %v1633_v23  ;;  %v2483_v48 = vld [vmem:[%s16042_s5 + $0x30] sm:$0xff] }
 0x1d6   : > { %10352 = vmatmul.mubr.msk.f32.gmra.mrb[22].mxu0 %vm858_vm1, %v995_v41  ;;  %v11516_v41 = vpack.c.bf16 %v2484_v36, %v2483_v48 }
 0x1d7   : > { %11451 = vmatpush1.bf16.msra.mxu0 %v11450_v37  ;;  %1752 = vmatprep.mubr.f32.mxu0 %v16049_v25  ;;  %v13371_v49 = vpop.permute.xlu1 %527 }
 0x1d8   : > { %9123 = vmatmul.mubr.msk.f32.gmra.mrb[44].mxu1 %vm1639_vm2, %v13182_v33  ;;  %11453 = vmatprep.subr.bf16.mxu0 %v11452_v42  ;;  %vm616_vm7 = vcmp.eq.s32.totalorder %v12766_v11, %v13371_v49 }
 0x1d9   : > { %2003 = vmatprep.mubr.f32.mxu1 %v16049_v25 }
 0x1db   : > { %11455 = vmatpush1.bf16.msra.mxu0 %v11454_v31 }
 0x1dc   : > { %9124 = vmatmul.mubr.msk.f32.gmra.mrb[46].mxu1 %vm1639_vm2, %v13202_v15  ;;  %11477 = vmatprep.subr.bf16.mxu0 %v11476_v57 }
 0x1dd   : > { %10440 = vmatprep.mubr.msk.f32.mxu1 %vm2155_vm4, %v13216_v61 }
 0x1de   : > { %9093 = vmatmul.mubr.msk.f32.vlgmr.msra.gmra.mrb[24].mxu0 %vm1639_vm2, %v13013_v14 }
 0x1df   : > { %1758 = vmatprep.mubr.f32.mxu0 %v16049_v25  ;;  %11479 = vmatpush3.bf16.msra.mxu0 %v11476_v57  ;;  %v13381_v57 = vpop.permute.xlu1 %533 }
 0x1e0   : > { %11481 = vmatprep.subr.bf16.mxu0 %v11480_v63  ;;  %vm618_vm9 = vcmp.eq.s32.totalorder %v12766_v11, %v13381_v57 }
 0x1e2   : > { %9094 = vmatmul.mubr.msk.f32.gmra.mrb[26].mxu0 %vm1639_vm2, %v13020_v27 }
 0x1e3   : > { %1764 = vmatprep.mubr.f32.mxu0 %v16049_v25  ;;  %11483 = vmatpush3.bf16.msra.mxu0 %v11480_v63  ;;  %v13398_v23 = vpop.permute.xlu1 %539 }
 0x1e4   : > { %11485 = vmatprep.subr.bf16.mxu0 %v11484_v7  ;;  %vm620_vm11 = vcmp.eq.s32.totalorder %v12766_v11, %v13398_v23 }
 0x1e6   : > { %9095 = vmatmul.mubr.msk.f32.gmra.mrb[28].mxu0 %vm1639_vm2, %v13030_v35 }
 0x1e7   : > { %1770 = vmatprep.mubr.f32.mxu0 %v16049_v25  ;;  %11487 = vmatpush3.bf16.msra.mxu0 %v11484_v7 }
 0x1e8   : > { %11489 = vmatprep.subr.bf16.mxu0 %v11488_v2 }
 0x1ea   : > { %9096 = vmatmul.mubr.msk.f32.gmra.mrb[30].mxu0 %vm1639_vm2, %v13040_v44 }
 0x1eb   : > { %1776 = vmatprep.mubr.f32.mxu0 %v16049_v25  ;;  %11491 = vmatpush3.bf16.msra.mxu0 %v11488_v2 }
 0x1ec   : > { %11493 = vmatprep.subr.bf16.mxu0 %v11492_v12 }
 0x1ee   : > { %9097 = vmatmul.mubr.msk.f32.gmra.mrb[32].mxu0 %vm1639_vm2, %v13050_v56 }
 0x1ef   : > { %1782 = vmatprep.mubr.f32.mxu0 %v16049_v25  ;;  %11495 = vmatpush3.bf16.msra.mxu0 %v11492_v12 }
 0x1f2   : > { %9098 = vmatmul.mubr.msk.f32.gmra.mrb[34].mxu0 %vm1639_vm2, %v13060_v5 }
 0x1f3   : > { %1788 = vmatprep.mubr.f32.mxu0 %v16049_v25 }
 0x1f6   : > { %9099 = vmatmul.mubr.msk.f32.gmra.mrb[36].mxu0 %vm1639_vm2, %v13067_v19 }
 0x1f7   : > { %1794 = vmatprep.mubr.f32.mxu0 %v16049_v25 }
 0x1fa   : > { %9100 = vmatmul.mubr.msk.f32.gmra.mrb[38].mxu0 %vm1639_vm2, %v13073_v50 }
 0x1fb   : > { %1800 = vmatprep.mubr.f32.mxu0 %v16049_v25 }
 0x1fe   : > { %9101 = vmatmul.mubr.msk.f32.gmra.mrb[40].mxu0 %vm1639_vm2, %v13079_v34 }
 0x1ff   : > { %1806 = vmatprep.mubr.f32.mxu0 %v16049_v25 }
 0x202   : > { %9102 = vmatmul.mubr.msk.f32.gmra.mrb[42].mxu0 %vm1639_vm2, %v13085_v39 }
 0x203   : > { %1812 = vmatprep.mubr.f32.mxu0 %v16049_v25 }
 0x206   : > { %9103 = vmatmul.mubr.msk.f32.gmra.mrb[44].mxu0 %vm1639_vm2, %v13096_v47 }
 0x207   : > { %1818 = vmatprep.mubr.f32.mxu0 %v16049_v25 }
 0x20a   : > { %9104 = vmatmul.mubr.msk.f32.gmra.mrb[46].mxu0 %vm1639_vm2, %v13116_v6 }
 0x20b   : > { %1824 = vmatprep.mubr.f32.mxu0 %v16049_v25 }
 0x20e   : > { %9105 = vmatmul.mubr.msk.f32.gmra.mrb[48].mxu0 %vm1639_vm2, %v13138_v9 }
 0x20f   : > { %1830 = vmatprep.mubr.f32.mxu0 %v16049_v25 }
 0x212   : > { %9106 = vmatmul.mubr.msk.f32.gmra.mrb[50].mxu0 %vm1639_vm2, %v13160_v1 }
 0x213   : > { %1836 = vmatprep.mubr.f32.mxu0 %v16049_v25 }
 0x216   : > { %9107 = vmatmul.mubr.msk.f32.gmra.mrb[52].mxu0 %vm1639_vm2, %v13182_v33 }
 0x217   : > { %1842 = vmatprep.mubr.f32.mxu0 %v16049_v25 }
 0x21a   : > { %9108 = vmatmul.mubr.msk.f32.gmra.mrb[54].mxu0 %vm1639_vm2, %v13202_v15 }
 0x21b   : > { %10400 = vmatprep.mubr.msk.f32.mxu0 %vm1639_vm2, %v13013_v14 }
 0x21e   : > { %10401 = vmatmul.mubr.msk.f32.vlgmr.msra.gmra.mrb[56].mxu0 %vm1639_vm2, %v13020_v27 }
 0x21f   : > { %10403 = vmatprep.mubr.msk.f32.mxu0 %vm1639_vm2, %v13030_v35 }
 0x222   : > { %10404 = vmatmul.mubr.msk.f32.gmra.mrb[58].mxu0 %vm1639_vm2, %v13040_v44 }
 0x223   : > { %10406 = vmatprep.mubr.msk.f32.mxu0 %vm1639_vm2, %v13050_v56 }
 0x226   : > { %10407 = vmatmul.mubr.msk.f32.gmra.mrb[60].mxu0 %vm1639_vm2, %v13060_v5 }
 0x227   : > { %10409 = vmatprep.mubr.msk.f32.mxu0 %vm1639_vm2, %v13067_v19 }
 0x22a   : > { %10410 = vmatmul.mubr.msk.f32.gmra.mrb[62].mxu0 %vm1639_vm2, %v13073_v50 }
 0x22b   : > { %10412 = vmatprep.mubr.msk.f32.mxu0 %vm1639_vm2, %v13079_v34 }
 0x22e   : > { %10413 = vmatmul.mubr.msk.f32.gmra.mrb[64].mxu0 %vm1639_vm2, %v13085_v39 }
 0x22f   : > { %10415 = vmatprep.mubr.msk.f32.mxu0 %vm1639_vm2, %v13096_v47 }
 0x232   : > { %10416 = vmatmul.mubr.msk.f32.gmra.mrb[66].mxu0 %vm1639_vm2, %v13116_v6 }
 0x233   : > { %10418 = vmatprep.mubr.msk.f32.mxu0 %vm1639_vm2, %v13138_v9 }
 0x236   : > { %10419 = vmatmul.mubr.msk.f32.gmra.mrb[68].mxu0 %vm1639_vm2, %v13160_v1 }
 0x237   : > { %10421 = vmatprep.mubr.msk.f32.mxu0 %vm1639_vm2, %v13182_v33  ;;  %v2482_v33 = vld [vmem:[%s16042_s5 + $0x28] sm:$0xff] }
 0x238   : > { %v11512_v37 = vpack.c.bf16 %v2482_v33, %v2481_v22 }
 0x23a   : > { %10422 = vmatmul.mubr.msk.f32.gmra.mrb[70].mxu0 %vm1639_vm2, %v13202_v15  ;;  %11513 = vmatprep.subr.bf16.mxu0 %v11512_v37  ;;  %v13377_v15 = vpop.permute.xlu0 %530 }
 0x23b   : > { %11515 = vmatpush3.bf16.msra.mxu0 %v11512_v37  ;;  %vm617_vm8 = vcmp.eq.s32.totalorder %v12766_v11, %v13377_v15 }
 0x23c   : > { %11517 = vmatprep.subr.bf16.mxu0 %v11516_v41 }
 0x23e   : > { %v13392_v46 = vpop.permute.xlu0 %536 }
 0x23f   : > { %11519 = vmatpush3.bf16.msra.mxu0 %v11516_v41  ;;  %vm619_vm10 = vcmp.eq.s32.totalorder %v12766_v11, %v13392_v46 }
 0x242   : > { %v543_v41 = vpop.permute.xlu0 %542 }
 0x243   : > { %vm621_vm12 = vcmp.eq.s32.totalorder %v12766_v11, %v543_v41 }
 0x273   : > { %v13319_v14 = vpop.f32.mrb[16].mxu1 }
 0x274   : > { %16154 = vst [vmem:[#allocation18_spill] sm:$0xff] %v13319_v14  ;;  %v13321_v27 = vpop.f32.mrb[17].mxu1 }
 0x275   : > { %16155 = vst [vmem:[#allocation19_spill] sm:$0xff] %v13321_v27 }
 0x277   : > { %v13323_v35 = vpop.f32.mrb[18].mxu1 }
 0x278   : > { %16156 = vst [vmem:[#allocation20_spill] sm:$0xff] %v13323_v35  ;;  %v13325_v44 = vpop.f32.mrb[19].mxu1 }
 0x279   : > { %16157 = vst [vmem:[#allocation21_spill] sm:$0xff] %v13325_v44 }
 0x27b   : > { %v13327_v56 = vpop.f32.mrb[20].mxu1 }
 0x27c   : > { %16158 = vst [vmem:[#allocation22_spill] sm:$0xff] %v13327_v56  ;;  %v13329_v5 = vpop.f32.mrb[21].mxu1 }
 0x27d   : > { %16159 = vst [vmem:[#allocation23_spill] sm:$0xff] %v13329_v5 }
 0x27f   : > { %v13331_v19 = vpop.f32.mrb[22].mxu1 }
 0x280   : > { %16160 = vst [vmem:[#allocation24_spill] sm:$0xff] %v13331_v19  ;;  %v13333_v50 = vpop.f32.mrb[23].mxu1 }
 0x281   : > { %16161 = vst [vmem:[#allocation25_spill] sm:$0xff] %v13333_v50 }
 0x283   : > { %v13335_v34 = vpop.f32.mrb[24].mxu1 }
 0x284   : > { %16162 = vst [vmem:[#allocation26_spill] sm:$0xff] %v13335_v34  ;;  %v13337_v39 = vpop.f32.mrb[25].mxu1 }
 0x285   : > { %16163 = vst [vmem:[#allocation27_spill] sm:$0xff] %v13337_v39 }
 0x287   : > { %v13339_v47 = vpop.f32.mrb[26].mxu1 }
 0x288   : > { %16164 = vst [vmem:[#allocation28_spill] sm:$0xff] %v13339_v47  ;;  %v13341_v6 = vpop.f32.mrb[27].mxu1 }
 0x289   : > { %16165 = vst [vmem:[#allocation29_spill] sm:$0xff] %v13341_v6 }
 0x28b   : > { %v13343_v9 = vpop.f32.mrb[28].mxu1 }
 0x28c   : > { %16166 = vst [vmem:[#allocation30_spill] sm:$0xff] %v13343_v9  ;;  %v13345_v1 = vpop.f32.mrb[29].mxu1 }
 0x28d   : > { %16167 = vst [vmem:[#allocation31_spill] sm:$0xff] %v13345_v1 }
 0x28f   : > { %v13347_v29 = vpop.f32.mrb[30].mxu1 }
 0x290   : > { %16168 = vst [vmem:[#allocation32_spill] sm:$0xff] %v13347_v29  ;;  %v13351_v18 = vpop.f32.mrb[31].mxu1 }
 0x291   : > { %16169 = vst [vmem:[#allocation33_spill] sm:$0xff] %v13351_v18 }
 0x293   : > { %v13365_v42 = vpop.f32.mrb[32].mxu1 }
 0x294   : > { %16170 = vst [vmem:[#allocation34_spill] sm:$0xff] %v13365_v42  ;;  %v13369_v51 = vpop.f32.mrb[33].mxu1 }
 0x295   : > { %16171 = vst [vmem:[#allocation35_spill] sm:$0xff] %v13369_v51 }
 0x297   : > { %v13373_v45 = vpop.f32.mrb[34].mxu1 }
 0x298   : > { %16172 = vst [vmem:[#allocation36_spill] sm:$0xff] %v13373_v45  ;;  %v13375_v54 = vpop.f32.mrb[35].mxu1 }
 0x299   : > { %16173 = vst [vmem:[#allocation37_spill] sm:$0xff] %v13375_v54 }
 0x29b   : > { %v13379_v31 = vpop.f32.mrb[36].mxu1 }
 0x29c   : > { %16174 = vst [vmem:[#allocation38_spill] sm:$0xff] %v13379_v31  ;;  %v13386_v59 = vpop.f32.mrb[37].mxu1 }
 0x29d   : > { %16175 = vst [vmem:[#allocation39_spill] sm:$0xff] %v13386_v59  ;;  %v10344_v63 = vpop.f32.mrb[16].mxu0 }
 0x29e   : > { %v13388_v4 = vadd.f32 %v10344_v63, %v9067_v58  ;;  %v1093_v17 = vpop.f32.mrb[17].mxu0 }
 0x29f   : > { %v13390_v7 = vpop.f32.mrb[38].mxu1  ;;  %v13394_v62 = vadd.f32 %v9067_v58, %v1093_v17 }
 0x2a0   : > { %16176 = vst [vmem:[#allocation40_spill] sm:$0xff] %v13390_v7  ;;  %v13396_v2 = vpop.f32.mrb[39].mxu1 }
 0x2a1   : > { %16177 = vst [vmem:[#allocation41_spill] sm:$0xff] %v13396_v2  ;;  %v10347_v10 = vpop.f32.mrb[18].mxu0  ;;  %v11496_v12 = vpack.c.bf16 %v13388_v4, %v13394_v62 }
 0x2a2   : > { %v13402_v22 = vadd.f32 %v10347_v10, %v9067_v58  ;;  %v1103_v33 = vpop.f32.mrb[19].mxu0 }
 0x2a3   : > { %v13404_v48 = vpop.f32.mrb[40].mxu1  ;;  %v13406_v37 = vadd.f32 %v9067_v58, %v1103_v33  ;;  %11497 = vmatprep.subr.bf16.mxu1 %v11496_v12  ;;  %v546_v33 = vpop.permute.xlu1 %545 }
 0x2a4   : > { %16178 = vst [vmem:[#allocation42_spill] sm:$0xff] %v13404_v48  ;;  %v13408_v36 = vpop.f32.mrb[41].mxu1  ;;  %11499 = vmatpush3.bf16.msra.mxu1 %v11496_v12  ;;  %vm622_vm13 = vcmp.eq.s32.totalorder %v12766_v11, %v546_v33 }
 0x2a5   : > { %16179 = vst [vmem:[#allocation43_spill] sm:$0xff] %v13408_v36  ;;  %v10350_v63 = vpop.f32.mrb[20].mxu0  ;;  %v11500_v17 = vpack.c.bf16 %v13402_v22, %v13406_v37 }
 0x2a6   : > { %v13412_v8 = vadd.f32 %v10350_v63, %v9067_v58  ;;  %v1113_v25 = vpop.f32.mrb[21].mxu0  ;;  %v549_v63 = vpop.permute.xlu0 %548 }
 0x2a7   : > { %v13414_v59 = vpop.f32.mrb[42].mxu1  ;;  %v13416_v10 = vadd.f32 %v9067_v58, %v1113_v25  ;;  %11501 = vmatprep.subr.bf16.mxu1 %v11500_v17  ;;  %vm623_vm14 = vcmp.eq.s32.totalorder %v12766_v11, %v549_v63 }
 0x2a8   : > { %16180 = vst [vmem:[#allocation44_spill] sm:$0xff] %v13414_v59  ;;  %v13418_v2 = vpop.f32.mrb[43].mxu1  ;;  %11503 = vmatpush3.bf16.msra.mxu1 %v11500_v17  ;;  %v552_v17 = vpop.permute.xlu1 %551 }
 0x2a9   : > { %16181 = vst [vmem:[#allocation45_spill] sm:$0xff] %v13418_v2  ;;  %v10353_v51 = vpop.f32.mrb[22].mxu0  ;;  %v11504_v12 = vpack.c.bf16 %v13412_v8, %v13416_v10  ;;  %vm624_vm15 = vcmp.eq.s32.totalorder %v12766_v11, %v552_v17 }
 0x2aa   : > { %v13422_v36 = vadd.f32 %v10353_v51, %v9067_v58  ;;  %v1123_v54 = vpop.f32.mrb[23].mxu0 }
 0x2ab   : > { %v13424_v1 = vpop.f32.mrb[44].mxu1  ;;  %v13426_v18 = vadd.f32 %v9067_v58, %v1123_v54  ;;  %11505 = vmatprep.subr.bf16.mxu1 %v11504_v12  ;;  %v555_v54 = vpop.permute.xlu0 %554 }
 0x2ac   : > { %16182 = vst [vmem:[#allocation46_spill] sm:$0xff] %v13424_v1  ;;  %v13428_v25 = vpop.f32.mrb[45].mxu1  ;;  %11507 = vmatpush3.bf16.msra.mxu1 %v11504_v12  ;;  %v16187_v12 = vmov 0.0   ;;  %v558_v30 = vpop.permute.xlu1 %557  ;;  %vm625_vm0 = vcmp.eq.s32.totalorder %v12766_v11, %v555_v54 }
 0x2ad   : > { %16183 = vst [vmem:[#allocation47_spill] sm:$0xff] %v13428_v25  ;;  %v11508_v2 = vpack.c.bf16 %v13422_v36, %v13426_v18  ;;  %v13443_v25 = vsel %vm614_vm5, 1.0, %v16187_v12  ;;  %v13448_v5 = vsel %vm615_vm6, 1.0, %v16187_v12  ;;  %v13466_v50 = vsel %vm617_vm8, 1.0, %v16187_v12 }
 0x2ae   : > { %v13479_v27 = vsel %vm618_vm9, 1.0, %v16187_v12  ;;  %v13484_v57 = vsel %vm619_vm10, 1.0, %v16187_v12  ;;  %v13496_v59 = vsel %vm620_vm11, 1.0, %v16187_v12  ;;  %v13501_v31 = vsel %vm621_vm12, 1.0, %v16187_v12 }
 0x2af   : > { %v13432_v39 = vpop.f32.mrb[46].mxu1  ;;  %11509 = vmatprep.subr.bf16.mxu1 %v11508_v2  ;;  %v561_v49 = vpop.permute.xlu0 %560  ;;  %16194 = vst [vmem:[#allocation57_spill] sm:$0xff] %v13496_v59  ;;  %16196 = vst [vmem:[#allocation59_spill] sm:$0xff] %v13501_v31  ;;  %v13512_v7 = vsel %vm622_vm13, 1.0, %v16187_v12  ;;  %v13517_v45 = vsel %vm623_vm14, 1.0, %v16187_v12  ;;  %v13528_v9 = vsel %vm624_vm15, 1.0, %v16187_v12  ;;  %vm626_vm2 = vcmp.eq.s32.totalorder %v12766_v11, %v558_v30 }
 0x2b0   : > { %16184 = vst [vmem:[#allocation48_spill] sm:$0xff] %v13432_v39  ;;  %v13436_v51 = vpop.f32.mrb[47].mxu1  ;;  %11511 = vmatpush3.bf16.msra.mxu1 %v11508_v2  ;;  %v13461_v2 = vsel %vm616_vm7, 1.0, %v16187_v12  ;;  %v564_v44 = vpop.permute.xlu1 %563  ;;  %16198 = vst [vmem:[#allocation61_spill] sm:$0xff] %v13512_v7  ;;  %v13533_v47 = vsel %vm625_vm0, 1.0, %v16187_v12  ;;  %vm627_vm3 = vcmp.eq.s32.totalorder %v12766_v11, %v561_v49  ;;  %v13544_v56 = vsel %vm626_vm2, 1.0, %v16187_v12 }
 0x2b1   : > { %16185 = vst [vmem:[#allocation49_spill] sm:$0xff] %v13436_v51  ;;  %v13440_v58 = vpop.f32.mrb[24].mxu0  ;;  %16200 = vst [vmem:[#allocation63_spill] sm:$0xff] %v13517_v45  ;;  %v13549_v14 = vsel %vm627_vm3, 1.0, %v16187_v12  ;;  %vm628_vm5 = vcmp.eq.s32.totalorder %v12766_v11, %v564_v44 }
 0x2b2   : > { %16186 = vst [vmem:[#allocation50_spill] sm:$0xff] %v13440_v58  ;;  %v13445_v6 = vpop.f32.mrb[25].mxu0  ;;  %16202 = vst [vmem:[#allocation65_spill] sm:$0xff] %v13528_v9  ;;  %v13560_v35 = vsel %vm628_vm5, 1.0, %v16187_v12 }
 0x2b3   : > { %16188 = vst [vmem:[#allocation51_spill] sm:$0xff] %v13445_v6  ;;  %10441 = vmatmul.mubr.msk.f32.vlgmr.msra.gmra.mrb[48].mxu1 %vm2155_vm4, %v13443_v25  ;;  %v567_v46 = vpop.permute.xlu0 %566  ;;  %16204 = vst [vmem:[#allocation67_spill] sm:$0xff] %v13533_v47 }
 0x2b4   : > { %10443 = vmatprep.mubr.msk.f32.mxu1 %vm2155_vm4, %v13448_v5  ;;  %v570_v23 = vpop.permute.xlu1 %569  ;;  %16206 = vst [vmem:[#allocation69_spill] sm:$0xff] %v13544_v56  ;;  %16208 = vst [vmem:[#allocation71_spill] sm:$0xff] %v13549_v14  ;;  %vm629_vm6 = vcmp.eq.s32.totalorder %v12766_v11, %v567_v46 }
 0x2b5   : > { %v13458_v60 = vpop.f32.mrb[26].mxu0  ;;  %16210 = vst [vmem:[#allocation73_spill] sm:$0xff] %v13560_v35  ;;  %vm630_vm7 = vcmp.eq.s32.totalorder %v12766_v11, %v570_v23 }
 0x2b6   : > { %16189 = vst [vmem:[#allocation52_spill] sm:$0xff] %v13458_v60  ;;  %v13463_v51 = vpop.f32.mrb[27].mxu0 }
 0x2b7   : > { %16190 = vst [vmem:[#allocation53_spill] sm:$0xff] %v13463_v51  ;;  %10444 = vmatmul.mubr.msk.f32.gmra.mrb[50].mxu1 %vm2155_vm4, %v13461_v2  ;;  %v573_v33 = vpop.permute.xlu0 %572 }
 0x2b8   : > { %10446 = vmatprep.mubr.msk.f32.mxu1 %vm2155_vm4, %v13466_v50  ;;  %v576_v29 = vpop.permute.xlu1 %575  ;;  %vm631_vm8 = vcmp.eq.s32.totalorder %v12766_v11, %v573_v33 }
 0x2b9   : > { %v13476_v15 = vpop.f32.mrb[28].mxu0  ;;  %vm632_vm9 = vcmp.eq.s32.totalorder %v12766_v11, %v576_v29 }
 0x2ba   : > { %16191 = vst [vmem:[#allocation54_spill] sm:$0xff] %v13476_v15  ;;  %v13481_v39 = vpop.f32.mrb[29].mxu0  ;;  %v13592_v6 = vsel %vm632_vm9, 1.0, %v16187_v12 }
 0x2bb   : > { %16192 = vst [vmem:[#allocation55_spill] sm:$0xff] %v13481_v39  ;;  %10447 = vmatmul.mubr.msk.f32.gmra.mrb[52].mxu1 %vm2155_vm4, %v13479_v27  ;;  %v579_v17 = vpop.permute.xlu0 %578  ;;  %16218 = vst [vmem:[#allocation81_spill] sm:$0xff] %v13592_v6 }
 0x2bc   : > { %10449 = vmatprep.mubr.msk.f32.mxu1 %vm2155_vm4, %v13484_v57  ;;  %v582_v30 = vpop.permute.xlu1 %581  ;;  %vm633_vm10 = vcmp.eq.s32.totalorder %v12766_v11, %v579_v17 }
 0x2bd   : > { %v13493_v1 = vpop.f32.mrb[30].mxu0  ;;  %v13597_v51 = vsel %vm633_vm10, 1.0, %v16187_v12  ;;  %vm634_vm11 = vcmp.eq.s32.totalorder %v12766_v11, %v582_v30 }
 0x2be   : > { %16193 = vst [vmem:[#allocation56_spill] sm:$0xff] %v13493_v1  ;;  %v13498_v48 = vpop.f32.mrb[31].mxu0  ;;  %16220 = vst [vmem:[#allocation83_spill] sm:$0xff] %v13597_v51 }
 0x2bf   : > { %16195 = vst [vmem:[#allocation58_spill] sm:$0xff] %v13498_v48  ;;  %10450 = vmatmul.mubr.msk.f32.gmra.mrb[54].mxu1 %vm2155_vm4, %v13496_v59  ;;  %v585_v44 = vpop.permute.xlu0 %584  ;;  %v13581_v48 = vsel %vm631_vm8, 1.0, %v16187_v12  ;;  %vm2485_vm8 = vcmask 261120  }
 0x2c0   : > { %10452 = vmatprep.mubr.msk.f32.mxu1 %vm2155_vm4, %v13501_v31  ;;  %16216 = vst [vmem:[#allocation79_spill] sm:$0xff] %v13581_v48  ;;  %vm635_vm12 = vcmp.eq.s32.totalorder %v12766_v11, %v585_v44 }
 0x2c1   : > { %v13509_v41 = vpop.f32.mrb[32].mxu0 }
 0x2c2   : > { %16197 = vst [vmem:[#allocation60_spill] sm:$0xff] %v13509_v41  ;;  %v13514_v42 = vpop.f32.mrb[33].mxu0 }
 0x2c3   : > { %16199 = vst [vmem:[#allocation62_spill] sm:$0xff] %v13514_v42  ;;  %10453 = vmatmul.mubr.msk.f32.gmra.mrb[56].mxu1 %vm2155_vm4, %v13512_v7  ;;  %v13565_v42 = vsel %vm629_vm6, 1.0, %v16187_v12  ;;  %v591_v23 = vpop.permute.xlu0 %590 }
 0x2c4   : > { %10455 = vmatprep.mubr.msk.f32.mxu1 %vm2155_vm4, %v13517_v45  ;;  %16212 = vst [vmem:[#allocation75_spill] sm:$0xff] %v13565_v42  ;;  %vm637_vm14 = vcmp.eq.s32.totalorder %v12766_v11, %v591_v23 }
 0x2c5   : > { %v13525_v63 = vpop.f32.mrb[34].mxu0 }
 0x2c6   : > { %16201 = vst [vmem:[#allocation64_spill] sm:$0xff] %v13525_v63  ;;  %v13530_v34 = vpop.f32.mrb[35].mxu0 }
 0x2c7   : > { %16203 = vst [vmem:[#allocation66_spill] sm:$0xff] %v13530_v34  ;;  %10456 = vmatmul.mubr.msk.f32.gmra.mrb[58].mxu1 %vm2155_vm4, %v13528_v9  ;;  %v13576_v34 = vsel %vm630_vm7, 1.0, %v16187_v12  ;;  %v597_v30 = vpop.permute.xlu0 %596 }
 0x2c8   : > { %10458 = vmatprep.mubr.msk.f32.mxu1 %vm2155_vm4, %v13533_v47  ;;  %16214 = vst [vmem:[#allocation77_spill] sm:$0xff] %v13576_v34  ;;  %vm639_vm0 = vcmp.eq.s32.totalorder %v12766_v11, %v597_v30 }
 0x2c9   : > { %v13541_v54 = vpop.f32.mrb[36].mxu0  ;;  %v13645_v41 = vsel %vm639_vm0, 1.0, %v16187_v12 }
 0x2ca   : > { %16205 = vst [vmem:[#allocation68_spill] sm:$0xff] %v13541_v54  ;;  %v13546_v19 = vpop.f32.mrb[37].mxu0  ;;  %16232 = vst [vmem:[#allocation95_spill] sm:$0xff] %v13645_v41 }
 0x2cb   : > { %16207 = vst [vmem:[#allocation70_spill] sm:$0xff] %v13546_v19  ;;  %10459 = vmatmul.mubr.msk.f32.gmra.mrb[60].mxu1 %vm2155_vm4, %v13544_v56 }
 0x2cc   : > { %10461 = vmatprep.mubr.msk.f32.mxu1 %vm2155_vm4, %v13549_v14 }
 0x2cd   : > { %v13557_v49 = vpop.f32.mrb[38].mxu0 }
 0x2ce   : > { %16209 = vst [vmem:[#allocation72_spill] sm:$0xff] %v13557_v49  ;;  %v13562_v19 = vpop.f32.mrb[39].mxu0  ;;  %v13629_v49 = vsel %vm637_vm14, 1.0, %v16187_v12 }
 0x2cf   : > { %16211 = vst [vmem:[#allocation74_spill] sm:$0xff] %v13562_v19  ;;  %10462 = vmatmul.mubr.msk.f32.gmra.mrb[62].mxu1 %vm2155_vm4, %v13560_v35  ;;  %v588_v19 = vpop.permute.xlu1 %587  ;;  %16228 = vst [vmem:[#allocation91_spill] sm:$0xff] %v13629_v49 }
 0x2d0   : > { %10464 = vmatprep.mubr.msk.f32.mxu1 %vm2155_vm4, %v13565_v42  ;;  %vm636_vm13 = vcmp.eq.s32.totalorder %v12766_v11, %v588_v19  ;;  %v603_v19 = vpop.permute.xlu0 %602  ;;  %v3192_v42 = vld [vmem:[%s16042_s5 + $0x88] sm:$0xff] }
 0x2d1   : > { %v13573_v46 = vpop.f32.mrb[40].mxu0  ;;  %vm641_vm3 = vcmp.eq.s32.totalorder %v12766_v11, %v603_v19 }
 0x2d2   : > { %16213 = vst [vmem:[#allocation76_spill] sm:$0xff] %v13573_v46  ;;  %v13578_v39 = vpop.f32.mrb[41].mxu0  ;;  %v13608_v46 = vsel %vm634_vm11, 1.0, %v16187_v12  ;;  %v13661_v63 = vsel %vm641_vm3, 1.0, %v16187_v12 }
 0x2d3   : > { %16215 = vst [vmem:[#allocation78_spill] sm:$0xff] %v13578_v39  ;;  %10465 = vmatmul.mubr.msk.f32.gmra.mrb[64].mxu1 %vm2155_vm4, %v13576_v34  ;;  %v594_v29 = vpop.permute.xlu1 %593  ;;  %16222 = vst [vmem:[#allocation85_spill] sm:$0xff] %v13608_v46  ;;  %v3191_v34 = vld [vmem:[%s16042_s5 + $0x80] sm:$0xff] }
 0x2d4   : > { %10467 = vmatprep.mubr.msk.f32.mxu1 %vm2155_vm4, %v13581_v48  ;;  %vm638_vm15 = vcmp.eq.s32.totalorder %v12766_v11, %v594_v29  ;;  %16236 = vst [vmem:[#allocation99_spill] sm:$0xff] %v13661_v63 }
 0x2d5   : > { %v13589_v33 = vpop.f32.mrb[42].mxu0 }
 0x2d6   : > { %16217 = vst [vmem:[#allocation80_spill] sm:$0xff] %v13589_v33  ;;  %v13594_v39 = vpop.f32.mrb[43].mxu0  ;;  %v13613_v33 = vsel %vm635_vm12, 1.0, %v16187_v12 }
 0x2d7   : > { %16219 = vst [vmem:[#allocation82_spill] sm:$0xff] %v13594_v39  ;;  %10468 = vmatmul.mubr.msk.f32.gmra.mrb[66].mxu1 %vm2155_vm4, %v13592_v6  ;;  %16224 = vst [vmem:[#allocation87_spill] sm:$0xff] %v13613_v33 }
 0x2d8   : > { %10470 = vmatprep.mubr.msk.f32.mxu1 %vm2155_vm4, %v13597_v51 }
 0x2d9   : > { %v13605_v17 = vpop.f32.mrb[44].mxu0 }
 0x2da   : > { %16221 = vst [vmem:[#allocation84_spill] sm:$0xff] %v13605_v17  ;;  %v13610_v39 = vpop.f32.mrb[45].mxu0  ;;  %v13624_v17 = vsel %vm636_vm13, 1.0, %v16187_v12 }
 0x2db   : > { %16223 = vst [vmem:[#allocation86_spill] sm:$0xff] %v13610_v39  ;;  %10471 = vmatmul.mubr.msk.f32.gmra.mrb[68].mxu1 %vm2155_vm4, %v13608_v46  ;;  %16226 = vst [vmem:[#allocation89_spill] sm:$0xff] %v13624_v17  ;;  %v600_v39 = vpop.permute.xlu1 %599  ;;  %v2896_v46 = vld [vmem:[%s16042_s5 + $0x58] sm:$0xff] }
 0x2dc   : > { %10473 = vmatprep.mubr.msk.f32.mxu1 %vm2155_vm4, %v13613_v33  ;;  %vm640_vm2 = vcmp.eq.s32.totalorder %v12766_v11, %v600_v39  ;;  %v609_v39 = vpop.permute.xlu0 %608  ;;  %v2895_v33 = vld [vmem:[%s16042_s5 + $0x50] sm:$0xff] }
 0x2dd   : > { %v13621_v44 = vpop.f32.mrb[46].mxu0  ;;  %vm643_vm6 = vcmp.eq.s32.totalorder %v12766_v11, %v609_v39  ;;  %v11540_v48 = vpack.c.bf16 %v2896_v46, %v2895_v33  ;;  %v11544_v46 = vpack.c.bf16 %v3192_v42, %v3191_v34 }
 0x2de   : > { %16225 = vst [vmem:[#allocation88_spill] sm:$0xff] %v13621_v44  ;;  %v13626_v54 = vpop.f32.mrb[47].mxu0  ;;  %v13640_v44 = vsel %vm638_vm15, 1.0, %v16187_v12  ;;  %v13677_v1 = vsel %vm643_vm6, 1.0, %v16187_v12 }
 0x2df   : > { %16227 = vst [vmem:[#allocation90_spill] sm:$0xff] %v13626_v54  ;;  %10474 = vmatmul.mubr.msk.f32.gmra.mrb[70].mxu1 %vm2155_vm4, %v13624_v17  ;;  %16230 = vst [vmem:[#allocation93_spill] sm:$0xff] %v13640_v44  ;;  %v606_v29 = vpop.permute.xlu1 %605 }
 0x2e0   : > { %10476 = vmatprep.mubr.msk.f32.mxu1 %vm2155_vm4, %v13629_v49  ;;  %vm642_vm5 = vcmp.eq.s32.totalorder %v12766_v11, %v606_v29  ;;  %16240 = vst [vmem:[#allocation103_spill] sm:$0xff] %v13677_v1 }
 0x2e1   : > { %v13637_v23 = vpop.f32.mrb[48].mxu0 }
 0x2e2   : > { %16229 = vst [vmem:[#allocation92_spill] sm:$0xff] %v13637_v23  ;;  %v13642_v54 = vpop.f32.mrb[49].mxu0  ;;  %v13656_v23 = vsel %vm640_vm2, 1.0, %v16187_v12 }
 0x2e3   : > { %16231 = vst [vmem:[#allocation94_spill] sm:$0xff] %v13642_v54  ;;  %10477 = vmatmul.mubr.msk.f32.gmra.mrb[72].mxu1 %vm2155_vm4, %v13640_v44  ;;  %16234 = vst [vmem:[#allocation97_spill] sm:$0xff] %v13656_v23 }
 0x2e4   : > { %10479 = vmatprep.mubr.msk.f32.mxu1 %vm2155_vm4, %v13645_v41 }
 0x2e5   : > { %v13653_v30 = vpop.f32.mrb[50].mxu0 }
 0x2e6   : > { %16233 = vst [vmem:[#allocation96_spill] sm:$0xff] %v13653_v30  ;;  %v13658_v54 = vpop.f32.mrb[51].mxu0  ;;  %v13672_v30 = vsel %vm642_vm5, 1.0, %v16187_v12 }
 0x2e7   : > { %16235 = vst [vmem:[#allocation98_spill] sm:$0xff] %v13658_v54  ;;  %10480 = vmatmul.mubr.msk.f32.gmra.mrb[74].mxu1 %vm2155_vm4, %v13656_v23  ;;  %16238 = vst [vmem:[#allocation101_spill] sm:$0xff] %v13672_v30  ;;  %v612_v54 = vpop.permute.xlu1 %611 }
 0x2e8   : > { %10482 = vmatprep.mubr.msk.f32.mxu1 %vm2155_vm4, %v13661_v63  ;;  %vm644_vm7 = vcmp.eq.s32.totalorder %v12766_v11, %v612_v54 }
 0x2e9   : > { %v13669_v19 = vpop.f32.mrb[52].mxu0  ;;  %v13687_v39 = vsel %vm644_vm7, 1.0, %v16187_v12 }
 0x2ea   : > { %16237 = vst [vmem:[#allocation100_spill] sm:$0xff] %v13669_v19  ;;  %v13674_v15 = vpop.f32.mrb[53].mxu0  ;;  %16242 = vst [vmem:[#allocation105_spill] sm:$0xff] %v13687_v39 }
 0x2eb   : > { %16239 = vst [vmem:[#allocation102_spill] sm:$0xff] %v13674_v15  ;;  %10483 = vmatmul.mubr.msk.f32.gmra.mrb[76].mxu1 %vm2155_vm4, %v13672_v30 }
 0x2ec   : > { %10485 = vmatprep.mubr.msk.f32.mxu1 %vm2155_vm4, %v13677_v1 }
 0x2ed   : > { %v13684_v29 = vpop.f32.mrb[54].mxu0 }
 0x2ee   : > { %16241 = vst [vmem:[#allocation104_spill] sm:$0xff] %v13684_v29  ;;  %v13689_v19 = vpop.f32.mrb[55].mxu0 }
 0x2ef   : > { %16243 = vst [vmem:[#allocation106_spill] sm:$0xff] %v13689_v19  ;;  %10486 = vmatmul.mubr.msk.f32.gmra.mrb[78].mxu1 %vm2155_vm4, %v13687_v39 }
 0x2f1   : > { %v13693_v15 = vpop.f32.mrb[56].mxu0 }
 0x2f2   : > { %16244 = vst [vmem:[#allocation107_spill] sm:$0xff] %v13693_v15  ;;  %v13695_v58 = vpop.f32.mrb[57].mxu0 }
 0x2f3   : > { %16245 = vst [vmem:[#allocation108_spill] sm:$0xff] %v13695_v58 }
 0x2f5   : > { %v13697_v11 = vpop.f32.mrb[58].mxu0 }
 0x2f6   : > { %16246 = vst [vmem:[#allocation109_spill] sm:$0xff] %v13697_v11  ;;  %v13699_v54 = vpop.f32.mrb[59].mxu0 }
 0x2f7   : > { %16247 = vst [vmem:[#allocation110_spill] sm:$0xff] %v13699_v54 }
 0x2f9   : > { %v13701_v60 = vpop.f32.mrb[60].mxu0 }
 0x2fa   : > { %16248 = vst [vmem:[#allocation111_spill] sm:$0xff] %v13701_v60  ;;  %v13703_v1 = vpop.f32.mrb[61].mxu0 }
 0x2fb   : > { %16249 = vst [vmem:[#allocation112_spill] sm:$0xff] %v13703_v1 }
 0x2fd   : > { %v13705_v29 = vpop.f32.mrb[62].mxu0 }
 0x2fe   : > { %16250 = vst [vmem:[#allocation113_spill] sm:$0xff] %v13705_v29  ;;  %v13707_v12 = vpop.f32.mrb[63].mxu0 }
 0x2ff   : > { %16251 = vst [vmem:[#allocation114_spill] sm:$0xff] %v13707_v12  ;;  %v2477_v12 = vld [vmem:[%s16042_s5] sm:$0xff] }
 0x301   : > { %v13709_v19 = vpop.f32.mrb[64].mxu0 }
 0x302   : > { %16252 = vst [vmem:[#allocation115_spill] sm:$0xff] %v13709_v19  ;;  %v13711_v30 = vpop.f32.mrb[65].mxu0 }
 0x303   : > { %16253 = vst [vmem:[#allocation116_spill] sm:$0xff] %v13711_v30  ;;  %v2478_v30 = vld [vmem:[%s16042_s5 + $0x8] sm:$0xff] }
 0x305   : > { %v13713_v39 = vpop.f32.mrb[66].mxu0 }
 0x306   : > { %16254 = vst [vmem:[#allocation117_spill] sm:$0xff] %v13713_v39  ;;  %v13715_v15 = vpop.f32.mrb[67].mxu0  ;;  %v11520_v39 = vpack.c.bf16 %v2478_v30, %v2477_v12  ;;  %v2893_v30 = vld [vmem:[%s16042_s5 + $0x40] sm:$0xff] }
 0x307   : > { %16255 = vst [vmem:[#allocation118_spill] sm:$0xff] %v13715_v15  ;;  %v2897_v15 = vld [vmem:[%s16042_s5 + $0x60] sm:$0xff] }
 0x308   : > { %11521 = vmatprep.subr.bf16.mxu0 %v11520_v39 }
 0x309   : > { %v13717_v58 = vpop.f32.mrb[68].mxu0 }
 0x30a   : > { %16256 = vst [vmem:[#allocation119_spill] sm:$0xff] %v13717_v58  ;;  %v13719_v11 = vpop.f32.mrb[69].mxu0  ;;  %v2900_v58 = vld [vmem:[%s16042_s5 + $0x78] sm:$0xff] }
 0x30b   : > { %16257 = vst [vmem:[#allocation120_spill] sm:$0xff] %v13719_v11  ;;  %v2898_v11 = vld [vmem:[%s16042_s5 + $0x68] sm:$0xff] }
 0x30d   : > { %v13721_v54 = vpop.f32.mrb[70].mxu0 }
 0x30e   : > { %16258 = vst [vmem:[#allocation121_spill] sm:$0xff] %v13721_v54  ;;  %v13723_v60 = vpop.f32.mrb[71].mxu0  ;;  %v11528_v54 = vpack.c.bf16 %v2898_v11, %v2897_v15  ;;  %v2894_v15 = vld [vmem:[%s16042_s5 + $0x48] sm:$0xff] }
 0x30f   : > { %16259 = vst [vmem:[#allocation122_spill] sm:$0xff] %v13723_v60  ;;  %v2899_v60 = vld [vmem:[%s16042_s5 + $0x70] sm:$0xff]  ;;  %v11536_v11 = vpack.c.bf16 %v2894_v15, %v2893_v30 }
 0x310   : > { %11529 = vmatprep.subr.bf16.mxu1 %v11528_v54  ;;  %v11532_v19 = vpack.c.bf16 %v2900_v58, %v2899_v60  ;;  %v2480_v58 = vld [vmem:[%s16042_s5 + $0x18] sm:$0xff] }
 0x311   : > { %11531 = vmatpush3.bf16.msra.mxu1 %v11528_v54  ;;  %v2479_v54 = vld [vmem:[%s16042_s5 + $0x10] sm:$0xff] }
 0x312   : > { %11533 = vmatprep.subr.bf16.mxu1 %v11532_v19  ;;  %v11524_v12 = vpack.c.bf16 %v2480_v58, %v2479_v54 }
 0x315   : > { %11535 = vmatpush3.bf16.msra.mxu1 %v11532_v19 }
 0x316   : > { %11537 = vmatprep.subr.bf16.mxu1 %v11536_v11 }
 0x386   : > { %v13755_v60 = vpop.f32.mrb[48].mxu1 }
 0x387   : > { %v13757_v19 = vpop.f32.mrb[49].mxu1 }
 0x388   : > { %10496 = vmatprep.mubr.msk.f32.mxu0 %vm2485_vm8, %v13757_v19 }
 0x389   : > { %10497 = vmatmul.mubr.msk.f32.vlgmr.msra.gmra.mrb[72].mxu0 %vm2485_vm8, %v13755_v60 }
 0x38a   : > { %v13763_v30 = vpop.f32.mrb[50].mxu1  ;;  %11523 = vmatpush3.bf16.msra.mxu0 %v11520_v39 }
 0x38b   : > { %v13765_v15 = vpop.f32.mrb[51].mxu1  ;;  %11525 = vmatprep.subr.bf16.mxu0 %v11524_v12 }
 0x38c   : > { %10499 = vmatprep.mubr.msk.f32.mxu0 %vm2485_vm8, %v13765_v15 }
 0x38d   : > { %10500 = vmatmul.mubr.msk.f32.gmra.mrb[74].mxu0 %vm2485_vm8, %v13763_v30 }
 0x38e   : > { %v13771_v29 = vpop.f32.mrb[52].mxu1  ;;  %11527 = vmatpush3.bf16.msra.mxu0 %v11524_v12 }
 0x38f   : > { %v13773_v54 = vpop.f32.mrb[53].mxu1 }
 0x390   : > { %10502 = vmatprep.mubr.msk.f32.mxu0 %vm2485_vm8, %v13773_v54 }
 0x391   : > { %10503 = vmatmul.mubr.msk.f32.gmra.mrb[76].mxu0 %vm2485_vm8, %v13771_v29 }
 0x392   : > { %v13779_v39 = vpop.f32.mrb[54].mxu1 }
 0x393   : > { %v13781_v58 = vpop.f32.mrb[55].mxu1 }
 0x394   : > { %10505 = vmatprep.mubr.msk.f32.mxu0 %vm2485_vm8, %v13781_v58 }
 0x395   : > { %10506 = vmatmul.mubr.msk.f32.gmra.mrb[78].mxu0 %vm2485_vm8, %v13779_v39 }
 0x396   : > { %v13787_v1 = vpop.f32.mrb[56].mxu1 }
 0x397   : > { %v13789_v12 = vpop.f32.mrb[57].mxu1 }
 0x398   : > { %10508 = vmatprep.mubr.msk.f32.mxu0 %vm2485_vm8, %v13789_v12 }
 0x399   : > { %10509 = vmatmul.mubr.msk.f32.gmra.mrb[80].mxu0 %vm2485_vm8, %v13787_v1 }
 0x39a   : > { %v13795_v63 = vpop.f32.mrb[58].mxu1 }
 0x39b   : > { %v13797_v23 = vpop.f32.mrb[59].mxu1 }
 0x39c   : > { %10511 = vmatprep.mubr.msk.f32.mxu0 %vm2485_vm8, %v13797_v23 }
 0x39d   : > { %10512 = vmatmul.mubr.msk.f32.gmra.mrb[82].mxu0 %vm2485_vm8, %v13795_v63 }
 0x39e   : > { %v13803_v41 = vpop.f32.mrb[60].mxu1 }
 0x39f   : > { %v13805_v44 = vpop.f32.mrb[61].mxu1 }
 0x3a0   : > { %10514 = vmatprep.mubr.msk.f32.mxu0 %vm2485_vm8, %v13805_v44 }
 0x3a1   : > { %10515 = vmatmul.mubr.msk.f32.gmra.mrb[84].mxu0 %vm2485_vm8, %v13803_v41 }
 0x3a2   : > { %v13811_v49 = vpop.f32.mrb[62].mxu1 }
 0x3a3   : > { %v13813_v17 = vpop.f32.mrb[63].mxu1 }
 0x3a4   : > { %10517 = vmatprep.mubr.msk.f32.mxu0 %vm2485_vm8, %v13813_v17 }
 0x3a5   : > { %10518 = vmatmul.mubr.msk.f32.gmra.mrb[86].mxu0 %vm2485_vm8, %v13811_v49 }
 0x3a6   : > { %v10466_v51 = vpop.f32.mrb[64].mxu1 }
 0x3a7   : > { %v2398_v6 = vpop.f32.mrb[65].mxu1 }
 0x3a8   : > { %10528 = vmatprep.mubr.msk.f32.mxu0 %vm2485_vm8, %v2398_v6  ;;  %10560 = vmatprep.mubr.msk.f32.mxu1 %vm2485_vm8, %v2398_v6 }
 0x3a9   : > { %10529 = vmatmul.mubr.msk.f32.vlgmr.msra.gmra.mrb[72].mxu0 %vm2485_vm8, %v10466_v51  ;;  %10561 = vmatmul.mubr.msk.f32.vlgmr.msra.gmra.mrb[80].mxu1 %vm2485_vm8, %v10466_v51 }
 0x3aa   : > { %v10469_v35 = vpop.f32.mrb[66].mxu1  ;;  %11539 = vmatpush3.bf16.msra.mxu1 %v11536_v11 }
 0x3ab   : > { %v2408_v14 = vpop.f32.mrb[67].mxu1  ;;  %11541 = vmatprep.subr.bf16.mxu1 %v11540_v48 }
 0x3ac   : > { %10531 = vmatprep.mubr.msk.f32.mxu0 %vm2485_vm8, %v2408_v14  ;;  %10563 = vmatprep.mubr.msk.f32.mxu1 %vm2485_vm8, %v2408_v14 }
 0x3ad   : > { %10532 = vmatmul.mubr.msk.f32.gmra.mrb[74].mxu0 %vm2485_vm8, %v10469_v35  ;;  %10564 = vmatmul.mubr.msk.f32.gmra.mrb[82].mxu1 %vm2485_vm8, %v10469_v35 }
 0x3ae   : > { %v10472_v6 = vpop.f32.mrb[68].mxu1  ;;  %11543 = vmatpush3.bf16.msra.mxu1 %v11540_v48 }
 0x3af   : > { %v2418_v33 = vpop.f32.mrb[69].mxu1  ;;  %11545 = vmatprep.subr.bf16.mxu1 %v11544_v46 }
 0x3b0   : > { %10534 = vmatprep.mubr.msk.f32.mxu0 %vm2485_vm8, %v2418_v33  ;;  %10566 = vmatprep.mubr.msk.f32.mxu1 %vm2485_vm8, %v2418_v33 }
 0x3b1   : > { %10535 = vmatmul.mubr.msk.f32.gmra.mrb[76].mxu0 %vm2485_vm8, %v10472_v6  ;;  %10567 = vmatmul.mubr.msk.f32.gmra.mrb[84].mxu1 %vm2485_vm8, %v10472_v6 }
 0x3b2   : > { %v10475_v34 = vpop.f32.mrb[70].mxu1 }
 0x3b3   : > { %v2428_v42 = vpop.f32.mrb[71].mxu1 }
 0x3b4   : > { %10537 = vmatprep.mubr.msk.f32.mxu0 %vm2485_vm8, %v2428_v42  ;;  %10569 = vmatprep.mubr.msk.f32.mxu1 %vm2485_vm8, %v2428_v42 }
 0x3b5   : > { %10538 = vmatmul.mubr.msk.f32.gmra.mrb[78].mxu0 %vm2485_vm8, %v10475_v34  ;;  %10570 = vmatmul.mubr.msk.f32.gmra.mrb[86].mxu1 %vm2485_vm8, %v10475_v34 }
 0x3b6   : > { %v10478_v14 = vpop.f32.mrb[72].mxu1 }
 0x3b7   : > { %v2438_v35 = vpop.f32.mrb[73].mxu1 }
 0x3b8   : > { %10540 = vmatprep.mubr.msk.f32.mxu0 %vm2485_vm8, %v2438_v35  ;;  %10572 = vmatprep.mubr.msk.f32.mxu1 %vm2485_vm8, %v2438_v35 }
 0x3b9   : > { %10541 = vmatmul.mubr.msk.f32.gmra.mrb[80].mxu0 %vm2485_vm8, %v10478_v14  ;;  %10573 = vmatmul.mubr.msk.f32.gmra.mrb[88].mxu1 %vm2485_vm8, %v10478_v14 }
 0x3ba   : > { %v10481_v48 = vpop.f32.mrb[74].mxu1 }
 0x3bb   : > { %v2448_v51 = vpop.f32.mrb[75].mxu1 }
 0x3bc   : > { %10543 = vmatprep.mubr.msk.f32.mxu0 %vm2485_vm8, %v2448_v51  ;;  %10575 = vmatprep.mubr.msk.f32.mxu1 %vm2485_vm8, %v2448_v51 }
 0x3bd   : > { %10544 = vmatmul.mubr.msk.f32.gmra.mrb[82].mxu0 %vm2485_vm8, %v10481_v48  ;;  %10576 = vmatmul.mubr.msk.f32.gmra.mrb[90].mxu1 %vm2485_vm8, %v10481_v48 }
 0x3be   : > { %v10484_v11 = vpop.f32.mrb[76].mxu1 }
 0x3bf   : > { %v2458_v6 = vpop.f32.mrb[77].mxu1 }
 0x3c0   : > { %10546 = vmatprep.mubr.msk.f32.mxu0 %vm2485_vm8, %v2458_v6  ;;  %10578 = vmatprep.mubr.msk.f32.mxu1 %vm2485_vm8, %v2458_v6 }
 0x3c1   : > { %10547 = vmatmul.mubr.msk.f32.gmra.mrb[84].mxu0 %vm2485_vm8, %v10484_v11  ;;  %10579 = vmatmul.mubr.msk.f32.gmra.mrb[92].mxu1 %vm2485_vm8, %v10484_v11 }
 0x3c2   : > { %v10487_v33 = vpop.f32.mrb[78].mxu1 }
 0x3c3   : > { %v2468_v34 = vpop.f32.mrb[79].mxu1 }
 0x3c4   : > { %10549 = vmatprep.mubr.msk.f32.mxu0 %vm2485_vm8, %v2468_v34  ;;  %10581 = vmatprep.mubr.msk.f32.mxu1 %vm2485_vm8, %v2468_v34 }
 0x3c5   : > { %10550 = vmatmul.mubr.msk.f32.gmra.mrb[86].mxu0 %vm2485_vm8, %v10487_v33  ;;  %10582 = vmatmul.mubr.msk.f32.gmra.mrb[94].mxu1 %vm2485_vm8, %v10487_v33 }
 0x3c6   : > { %10592 = vmatprep.mubr.msk.f32.mxu1 %vm2485_vm8, %v13757_v19 }
 0x3c9   : > { %10593 = vmatmul.mubr.msk.f32.vlgmr.msra.gmra.mrb[80].mxu1 %vm2485_vm8, %v13755_v60 }
 0x3ca   : > { %10595 = vmatprep.mubr.msk.f32.mxu1 %vm2485_vm8, %v13765_v15  ;;  %11547 = vmatpush3.bf16.msra.mxu1 %v11544_v46 }
 0x3cd   : > { %10596 = vmatmul.mubr.msk.f32.gmra.mrb[82].mxu1 %vm2485_vm8, %v13763_v30 }
 0x3ce   : > { %10598 = vmatprep.mubr.msk.f32.mxu1 %vm2485_vm8, %v13773_v54 }
 0x3d1   : > { %10599 = vmatmul.mubr.msk.f32.gmra.mrb[84].mxu1 %vm2485_vm8, %v13771_v29 }
 0x3d2   : > { %10601 = vmatprep.mubr.msk.f32.mxu1 %vm2485_vm8, %v13781_v58 }
 0x3d5   : > { %10602 = vmatmul.mubr.msk.f32.gmra.mrb[86].mxu1 %vm2485_vm8, %v13779_v39 }
 0x3d6   : > { %10604 = vmatprep.mubr.msk.f32.mxu1 %vm2485_vm8, %v13789_v12 }
 0x3d9   : > { %10605 = vmatmul.mubr.msk.f32.gmra.mrb[88].mxu1 %vm2485_vm8, %v13787_v1  ;;  %v3193_v1 = vld [vmem:[%s16042_s5 + $0x90] sm:$0xff] }
 0x3da   : > { %10607 = vmatprep.mubr.msk.f32.mxu1 %vm2485_vm8, %v13797_v23 }
 0x3dd   : > { %10608 = vmatmul.mubr.msk.f32.gmra.mrb[90].mxu1 %vm2485_vm8, %v13795_v63  ;;  %v3194_v63 = vld [vmem:[%s16042_s5 + $0x98] sm:$0xff] }
 0x3de   : > { %10610 = vmatprep.mubr.msk.f32.mxu1 %vm2485_vm8, %v13805_v44  ;;  %v11548_v23 = vpack.c.bf16 %v3194_v63, %v3193_v1 }
 0x3e0   : > { %11549 = vmatprep.subr.bf16.mxu1 %v11548_v23 }
 0x3e1   : > { %10611 = vmatmul.mubr.msk.f32.gmra.mrb[92].mxu1 %vm2485_vm8, %v13803_v41  ;;  %v9205_v41 = vld [vmem:[%s16046_s9 + $0x3] ss:$0 sm:$0xff] }
 0x3e2   : > { %10613 = vmatprep.mubr.msk.f32.mxu1 %vm2485_vm8, %v13813_v17  ;;  %11551 = vmatpush3.bf16.msra.mxu1 %v11548_v23 }
 0x3e5   : > { %10614 = vmatmul.mubr.msk.f32.gmra.mrb[94].mxu1 %vm2485_vm8, %v13811_v49 }
 0x47c   : > { %v10530_v44 = vpop.f32.mrb[72].mxu0 }
 0x47d   : > { %v2793_v17 = vpop.f32.mrb[73].mxu0  ;;  %v13906_v49 = vadd.f32 %v10530_v44, %v9205_v41 }
 0x47e   : > { %v13904_v29 = vadd.f32 %v9205_v41, %v2793_v17 }
 0x47f   : > { %16260 = vst [vmem:[#allocation123_spill] sm:$0xff] %v13906_v49 }
 0x480   : > { %v10533_v60 = vpop.f32.mrb[74].mxu0  ;;  %10624 = vmatprep.mubr.msk.f32.mxu1 %vm2485_vm8, %v13904_v29 }
 0x481   : > { %v2803_v19 = vpop.f32.mrb[75].mxu0  ;;  %10625 = vmatmul.mubr.msk.f32.vlgmr.msra.gmra.mrb[80].mxu1 %vm2485_vm8, %v13906_v49  ;;  %v13914_v15 = vadd.f32 %v10533_v60, %v9205_v41 }
 0x482   : > { %v13912_v30 = vadd.f32 %v9205_v41, %v2803_v19 }
 0x483   : > { %16262 = vst [vmem:[#allocation125_spill] sm:$0xff] %v13914_v15 }
 0x484   : > { %16261 = vst [vmem:[#allocation124_spill] sm:$0xff] %v13912_v30  ;;  %v10536_v54 = vpop.f32.mrb[76].mxu0  ;;  %10627 = vmatprep.mubr.msk.f32.mxu1 %vm2485_vm8, %v13912_v30 }
 0x485   : > { %v2813_v39 = vpop.f32.mrb[77].mxu0  ;;  %10628 = vmatmul.mubr.msk.f32.gmra.mrb[82].mxu1 %vm2485_vm8, %v13914_v15  ;;  %v13922_v12 = vadd.f32 %v10536_v54, %v9205_v41 }
 0x486   : > { %v13920_v58 = vadd.f32 %v9205_v41, %v2813_v39 }
 0x487   : > { %16264 = vst [vmem:[#allocation127_spill] sm:$0xff] %v13922_v12 }
 0x488   : > { %16263 = vst [vmem:[#allocation126_spill] sm:$0xff] %v13920_v58  ;;  %v10539_v46 = vpop.f32.mrb[78].mxu0  ;;  %10630 = vmatprep.mubr.msk.f32.mxu1 %vm2485_vm8, %v13920_v58 }
 0x489   : > { %v2823_v42 = vpop.f32.mrb[79].mxu0  ;;  %10631 = vmatmul.mubr.msk.f32.gmra.mrb[84].mxu1 %vm2485_vm8, %v13922_v12  ;;  %v13930_v35 = vadd.f32 %v10539_v46, %v9205_v41 }
 0x48a   : > { %v13928_v14 = vadd.f32 %v9205_v41, %v2823_v42  ;;  %v3558_v42 = vld [vmem:[%s16042_s5 + $0xa0] sm:$0xff] }
 0x48b   : > { %16266 = vst [vmem:[#allocation129_spill] sm:$0xff] %v13930_v35 }
 0x48c   : > { %16265 = vst [vmem:[#allocation128_spill] sm:$0xff] %v13928_v14  ;;  %v10542_v48 = vpop.f32.mrb[80].mxu0  ;;  %10633 = vmatprep.mubr.msk.f32.mxu1 %vm2485_vm8, %v13928_v14 }
 0x48d   : > { %v2833_v51 = vpop.f32.mrb[81].mxu0  ;;  %10634 = vmatmul.mubr.msk.f32.gmra.mrb[86].mxu1 %vm2485_vm8, %v13930_v35  ;;  %v13938_v6 = vadd.f32 %v10542_v48, %v9205_v41  ;;  %v3559_v48 = vld [vmem:[%s16042_s5 + $0xa8] sm:$0xff] }
 0x48e   : > { %v13936_v11 = vadd.f32 %v9205_v41, %v2833_v51  ;;  %v11552_v51 = vpack.c.bf16 %v3559_v48, %v3558_v42 }
 0x48f   : > { %16268 = vst [vmem:[#allocation131_spill] sm:$0xff] %v13938_v6 }
 0x490   : > { %16267 = vst [vmem:[#allocation130_spill] sm:$0xff] %v13936_v11  ;;  %v10545_v33 = vpop.f32.mrb[82].mxu0  ;;  %10636 = vmatprep.mubr.msk.f32.mxu1 %vm2485_vm8, %v13936_v11  ;;  %11553 = vmatprep.subr.bf16.mxu0 %v11552_v51 }
 0x491   : > { %v2843_v34 = vpop.f32.mrb[83].mxu0  ;;  %10637 = vmatmul.mubr.msk.f32.gmra.mrb[88].mxu1 %vm2485_vm8, %v13938_v6  ;;  %v13946_v63 = vadd.f32 %v10545_v33, %v9205_v41  ;;  %11555 = vmatpush3.bf16.msra.mxu0 %v11552_v51  ;;  %v3561_v33 = vld [vmem:[%s16042_s5 + $0xb8] sm:$0xff] }
 0x492   : > { %v13944_v1 = vadd.f32 %v9205_v41, %v2843_v34 }
 0x493   : > { %16270 = vst [vmem:[#allocation133_spill] sm:$0xff] %v13946_v63 }
 0x494   : > { %16269 = vst [vmem:[#allocation132_spill] sm:$0xff] %v13944_v1  ;;  %v10548_v23 = vpop.f32.mrb[84].mxu0  ;;  %10639 = vmatprep.mubr.msk.f32.mxu1 %vm2485_vm8, %v13944_v1 }
 0x495   : > { %v2853_v44 = vpop.f32.mrb[85].mxu0  ;;  %10640 = vmatmul.mubr.msk.f32.gmra.mrb[90].mxu1 %vm2485_vm8, %v13946_v63  ;;  %v13954_v60 = vadd.f32 %v10548_v23, %v9205_v41  ;;  %v13983_v23 = vld [vmem:[%s16046_s9 + $0x5] ss:$0 sm:$0xff] }
 0x496   : > { %v13952_v17 = vadd.f32 %v9205_v41, %v2853_v44  ;;  %v3410_v44 = vmul.f32 %v13983_v23, %v12797_v28  ;;  %v3409_v42 = vmul.f32 %v13983_v23, %v12789_v20 }
 0x497   : > { %16272 = vst [vmem:[#allocation135_spill] sm:$0xff] %v13954_v60 }
 0x498   : > { %16271 = vst [vmem:[#allocation134_spill] sm:$0xff] %v13952_v17  ;;  %v10551_v19 = vpop.f32.mrb[86].mxu0  ;;  %10642 = vmatprep.mubr.msk.f32.mxu1 %vm2485_vm8, %v13952_v17 }
 0x499   : > { %v2863_v54 = vpop.f32.mrb[87].mxu0  ;;  %10643 = vmatmul.mubr.msk.f32.gmra.mrb[92].mxu1 %vm2485_vm8, %v13954_v60  ;;  %v13962_v46 = vadd.f32 %v10551_v19, %v9205_v41 }
 0x49a   : > { %v13960_v39 = vadd.f32 %v9205_v41, %v2863_v54  ;;  %v3560_v41 = vld [vmem:[%s16042_s5 + $0xb0] sm:$0xff]  ;;  %v13990_v54 = vld [vmem:[%s16046_s9 + $0x6] ss:$0 sm:$0xff] }
 0x49b   : > { %16274 = vst [vmem:[#allocation137_spill] sm:$0xff] %v13962_v46  ;;  %v11556_v34 = vpack.c.bf16 %v3561_v33, %v3560_v41 }
 0x49c   : > { %16273 = vst [vmem:[#allocation136_spill] sm:$0xff] %v13960_v39  ;;  %10645 = vmatprep.mubr.msk.f32.mxu1 %vm2485_vm8, %v13960_v39  ;;  %v3411_v39 = vmul.f32 %v13983_v23, %v12791_v21  ;;  %v3413_v21 = vmul.f32 %v13983_v23, %v12806_v40 }
 0x49d   : > { %10646 = vmatmul.mubr.msk.f32.gmra.mrb[94].mxu1 %vm2485_vm8, %v13962_v46  ;;  %11557 = vmatprep.subr.bf16.mxu0 %v11556_v34 }
 0x49e   : > { %11559 = vmatpush3.bf16.msra.mxu0 %v11556_v34  ;;  %v3412_v34 = vmul.f32 %v13983_v23, %v12801_v32 }
 0x554   : > { %v10626_v19 = vpop.f32.mrb[80].mxu1 }
 0x555   : > { %v3426_v48 = vadd.f32 %v10626_v19, %v3410_v44  ;;  %v3309_v51 = vpop.f32.mrb[81].mxu1 }
 0x556   : > { %v3425_v41 = vadd.f32 %v3409_v42, %v3309_v51  ;;  %v3414_v51 = vmul.f32 %v13983_v23, %v12810_v43 }
 0x557   : > { %v13995_v33 = vadd.f32 %v13990_v54, %v3426_v48 }
 0x558   : > { %v14000_v28 = vadd.f32 %v13990_v54, %v3425_v41  ;;  %v10629_v46 = vpop.f32.mrb[82].mxu1 }
 0x559   : > { %v3463_v60 = vsub.f32 0.0, %v13995_v33  ;;  %v3428_v17 = vadd.f32 %v10629_v46, %v3412_v34  ;;  %v3319_v20 = vpop.f32.mrb[83].mxu1 }
 0x55a   : > { %v3462_v44 = vsub.f32 0.0, %v14000_v28  ;;  %v3427_v19 = vadd.f32 %v3411_v39, %v3319_v20 }
 0x55b   : > { %v3480_v42 = vmul.f32 1.442695, %v3463_v60  ;;  %v14007_v48 = vadd.f32 %v13990_v54, %v3428_v17 }
 0x55c   : > { %v3478_v41 = vmul.f32 1.442695, %v3462_v44  ;;  %v14012_v32 = vadd.f32 %v13990_v54, %v3427_v19  ;;  %v10632_v63 = vpop.f32.mrb[84].mxu1  ;;  %v3416_v44 = vmul.f32 %v13983_v23, %v12820_v55 }
 0x55d   : > { %12053 = vpow2.f32 %v3480_v42  ;;  %v3465_v46 = vsub.f32 0.0, %v14007_v48  ;;  %v3430_v34 = vadd.f32 %v10632_v63, %v3414_v51  ;;  %v3329_v20 = vpop.f32.mrb[85].mxu1  ;;  %v3415_v63 = vmul.f32 %v13983_v23, %v12816_v52 }
 0x55e   : > { %12055 = vpow2.f32 %v3478_v41  ;;  %v3464_v17 = vsub.f32 0.0, %v14012_v32  ;;  %v3429_v60 = vadd.f32 %v3413_v21, %v3329_v20 }
 0x55f   : > { %v3484_v39 = vmul.f32 1.442695, %v3465_v46  ;;  %v14019_v43 = vadd.f32 %v13990_v54, %v3430_v34 }
 0x560   : > { %v3482_v19 = vmul.f32 1.442695, %v3464_v17  ;;  %v14024_v1 = vadd.f32 %v13990_v54, %v3429_v60  ;;  %v10635_v42 = vpop.f32.mrb[86].mxu1  ;;  %v3418_v17 = vmul.f32 %v13983_v23, %v12830_v3 }
 0x561   : > { %12057 = vpow2.f32 %v3484_v39  ;;  %v3467_v51 = vsub.f32 0.0, %v14019_v43  ;;  %v3432_v41 = vadd.f32 %v10635_v42, %v3416_v44  ;;  %v3339_v21 = vpop.f32.mrb[87].mxu1  ;;  %v3417_v44 = vmul.f32 %v13983_v23, %v12826_v0 }
 0x562   : > { %12059 = vpow2.f32 %v3482_v19  ;;  %v3466_v46 = vsub.f32 0.0, %v14024_v1  ;;  %v3431_v34 = vadd.f32 %v3415_v63, %v3339_v21 }
 0x563   : > { %v3488_v20 = vmul.f32 1.442695, %v3467_v51  ;;  %v14031_v55 = vadd.f32 %v13990_v54, %v3432_v41 }
 0x564   : > { %v3486_v60 = vmul.f32 1.442695, %v3466_v46  ;;  %v14036_v40 = vadd.f32 %v13990_v54, %v3431_v34  ;;  %v10638_v39 = vpop.f32.mrb[88].mxu1  ;;  %v3420_v34 = vmul.f32 %v13983_v23, %v12841_v26 }
 0x565   : > { %12061 = vpow2.f32 %v3488_v20  ;;  %v3469_v19 = vsub.f32 0.0, %v14031_v55  ;;  %v3434_v42 = vadd.f32 %v10638_v39, %v3418_v17  ;;  %v3349_v63 = vpop.f32.mrb[89].mxu1 }
 0x566   : > { %12063 = vpow2.f32 %v3486_v60  ;;  %v3468_v51 = vsub.f32 0.0, %v14036_v40  ;;  %v3433_v41 = vadd.f32 %v3417_v44, %v3349_v63  ;;  %v3419_v60 = vmul.f32 %v13983_v23, %v12837_v24 }
 0x567   : > { %v12054_v21 = vpop.eup %12053  ;;  %v3492_v52 = vmul.f32 1.442695, %v3469_v19  ;;  %v14043_v46 = vadd.f32 %v13990_v54, %v3434_v42 }
 0x568   : > { %v12056_v3 = vpop.eup %12055  ;;  %v3511_v6 = vadd.f32 1.0, %v12054_v21  ;;  %v3490_v0 = vmul.f32 1.442695, %v3468_v51  ;;  %v14048_v20 = vadd.f32 %v13990_v54, %v3433_v41  ;;  %v10641_v17 = vpop.f32.mrb[90].mxu1  ;;  %v3421_v51 = vmul.f32 %v13983_v23, %v12848_v38 }
 0x569   : > { %v3510_v39 = vadd.f32 1.0, %v12056_v3  ;;  %12065 = vpow2.f32 %v3492_v52  ;;  %v3471_v44 = vsub.f32 0.0, %v14043_v46  ;;  %v3436_v19 = vadd.f32 %v10641_v17, %v3420_v34  ;;  %v3359_v42 = vpop.f32.mrb[91].mxu1 }
 0x56a   : > { %12067 = vrcp.f32 %v3511_v6  ;;  %v3470_v63 = vsub.f32 0.0, %v14048_v20  ;;  %v3435_v26 = vadd.f32 %v3419_v60, %v3359_v42  ;;  %v3422_v52 = vmul.f32 %v13983_v23, %v12853_v13 }
 0x56b   : > { %v12058_v21 = vpop.eup %12057  ;;  %12069 = vrcp.f32 %v3510_v39  ;;  %v3496_v41 = vmul.f32 1.442695, %v3471_v44  ;;  %v14057_v11 = vadd.f32 %v13990_v54, %v3436_v19  ;;  %v3423_v13 = vmul.f32 %v13983_v23, %v12860_v53 }
 0x56c   : > { %v12060_v3 = vpop.eup %12059  ;;  %v3513_v24 = vadd.f32 1.0, %v12058_v21  ;;  %12071 = vpow2.f32 %v3490_v0  ;;  %v3494_v34 = vmul.f32 1.442695, %v3470_v63  ;;  %v14062_v6 = vadd.f32 %v13990_v54, %v3435_v26  ;;  %v10644_v17 = vpop.f32.mrb[92].mxu1 }
 0x56d   : > { %v3512_v60 = vadd.f32 1.0, %v12060_v3  ;;  %12073 = vpow2.f32 %v3496_v41  ;;  %v3473_v42 = vsub.f32 0.0, %v14057_v11  ;;  %v3438_v39 = vadd.f32 %v10644_v17, %v3422_v52  ;;  %v3369_v44 = vpop.f32.mrb[93].mxu1 }
 0x56e   : > { %12075 = vrcp.f32 %v3513_v24  ;;  %v3472_v19 = vsub.f32 0.0, %v14062_v6  ;;  %v3437_v38 = vadd.f32 %v3421_v51, %v3369_v44  ;;  %v3424_v63 = vmul.f32 %v13983_v23, %v12865_v16 }
 0x56f   : > { %v12062_v21 = vpop.eup %12061  ;;  %12077 = vrcp.f32 %v3512_v60  ;;  %v3500_v0 = vmul.f32 1.442695, %v3473_v42  ;;  %v14069_v26 = vadd.f32 %v13990_v54, %v3438_v39 }
 0x570   : > { %v12064_v41 = vpop.eup %12063  ;;  %v3515_v3 = vadd.f32 1.0, %v12062_v21  ;;  %12079 = vpow2.f32 %v3494_v34  ;;  %v3498_v52 = vmul.f32 1.442695, %v3472_v19  ;;  %v14074_v24 = vadd.f32 %v13990_v54, %v3437_v38  ;;  %v10647_v51 = vpop.f32.mrb[94].mxu1 }
 0x571   : > { %v3514_v17 = vadd.f32 1.0, %v12064_v41  ;;  %12081 = vpow2.f32 %v3500_v0  ;;  %v3475_v44 = vsub.f32 0.0, %v14069_v26  ;;  %v3440_v60 = vadd.f32 %v10647_v51, %v3424_v63  ;;  %v3379_v42 = vpop.f32.mrb[95].mxu1 }
 0x572   : > { %12083 = vrcp.f32 %v3515_v3  ;;  %v3474_v39 = vsub.f32 0.0, %v14074_v24  ;;  %v3439_v53 = vadd.f32 %v3423_v13, %v3379_v42 }
 0x573   : > { %v12066_v35 = vpop.eup %12065  ;;  %12085 = vrcp.f32 %v3514_v17  ;;  %v3504_v23 = vmul.f32 1.442695, %v3475_v44  ;;  %v14079_v34 = vadd.f32 %v13990_v54, %v3440_v60 }
 0x574   : > { %v12068_v19 = vpop.eup %12067  ;;  %v3517_v38 = vadd.f32 1.0, %v12066_v35  ;;  %12087 = vpow2.f32 %v3498_v52  ;;  %v3502_v21 = vmul.f32 1.442695, %v3474_v39  ;;  %v14082_v0 = vadd.f32 %v13990_v54, %v3439_v53 }
 0x575   : > { %v12070_v41 = vpop.eup %12069  ;;  %12089 = vpow2.f32 %v3504_v23  ;;  %v3477_v63 = vsub.f32 0.0, %v14079_v34  ;;  %v3543_v44 = vmul.f32 %v12068_v19, %v13995_v33 }
 0x576   : > { %v12072_v3 = vpop.eup %12071  ;;  %v3542_v13 = vmul.f32 %v12070_v41, %v14000_v28  ;;  %v3476_v51 = vsub.f32 0.0, %v14082_v0  ;;  %12091 = vpow2.f32 %v3502_v21 }
 0x577   : > { %v12074_v17 = vpop.eup %12073  ;;  %v3516_v60 = vadd.f32 1.0, %v12072_v3  ;;  %v3508_v35 = vmul.f32 1.442695, %v3477_v63  ;;  %12093 = vrcp.f32 %v3517_v38 }
 0x578   : > { %v12076_v52 = vpop.eup %12075  ;;  %v3519_v42 = vadd.f32 1.0, %v12074_v17  ;;  %v3506_v53 = vmul.f32 1.442695, %v3476_v51  ;;  %10656 = vmatprep.mubr.msk.f32.mxu0 %vm2485_vm8, %v3542_v13 }
 0x579   : > { %v12078_v54 = vpop.eup %12077  ;;  %12095 = vrcp.f32 %v3516_v60  ;;  %10657 = vmatmul.mubr.msk.f32.vlgmr.msra.gmra.mrb[88].mxu0 %vm2485_vm8, %v3543_v44  ;;  %v3545_v33 = vmul.f32 %v12076_v52, %v14007_v48 }
 0x57a   : > { %v12080_v39 = vpop.eup %12079  ;;  %v3544_v28 = vmul.f32 %v12078_v54, %v14012_v32  ;;  %12097 = vrcp.f32 %v3519_v42 }
 0x57b   : > { %v12082_v23 = vpop.eup %12081  ;;  %v3518_v19 = vadd.f32 1.0, %v12080_v39  ;;  %12099 = vpow2.f32 %v3508_v35 }
 0x57c   : > { %v12084_v21 = vpop.eup %12083  ;;  %v3521_v41 = vadd.f32 1.0, %v12082_v23  ;;  %12101 = vpow2.f32 %v3506_v53  ;;  %10659 = vmatprep.mubr.msk.f32.mxu0 %vm2485_vm8, %v3544_v28 }
 0x57d   : > { %v12086_v38 = vpop.eup %12085  ;;  %12103 = vrcp.f32 %v3518_v19  ;;  %10660 = vmatmul.mubr.msk.f32.gmra.mrb[90].mxu0 %vm2485_vm8, %v3545_v33  ;;  %v3547_v32 = vmul.f32 %v12084_v21, %v14019_v43 }
 0x57e   : > { %v12088_v63 = vpop.eup %12087  ;;  %v3546_v3 = vmul.f32 %v12086_v38, %v14024_v1  ;;  %12105 = vrcp.f32 %v3521_v41 }
 0x57f   : > { %v12090_v13 = vpop.eup %12089  ;;  %v3520_v51 = vadd.f32 1.0, %v12088_v63 }
 0x580   : > { %v3523_v48 = vadd.f32 1.0, %v12090_v13  ;;  %10662 = vmatprep.mubr.msk.f32.mxu0 %vm2485_vm8, %v3546_v3  ;;  %v12092_v17 = vpop.eup %12091 }
 0x581   : > { %12107 = vrcp.f32 %v3520_v51  ;;  %10663 = vmatmul.mubr.msk.f32.gmra.mrb[92].mxu0 %vm2485_vm8, %v3547_v32  ;;  %v12094_v44 = vpop.eup %12093  ;;  %v3522_v60 = vadd.f32 1.0, %v12092_v17 }
 0x582   : > { %12109 = vrcp.f32 %v3523_v48  ;;  %v3549_v43 = vmul.f32 %v12094_v44, %v14031_v55 }
 0x583   : > { %v12096_v35 = vpop.eup %12095  ;;  %12111 = vrcp.f32 %v3522_v60 }
 0x584   : > { %v12098_v52 = vpop.eup %12097  ;;  %v3548_v42 = vmul.f32 %v12096_v35, %v14036_v40  ;;  %v14172_v35 = vld [vmem:[%s16046_s9 + $0x7] ss:$0 sm:$0xff] }
 0x585   : > { %v12100_v1 = vpop.eup %12099  ;;  %v3551_v33 = vmul.f32 %v12098_v52, %v14043_v46 }
 0x586   : > { %v12102_v53 = vpop.eup %12101  ;;  %v3525_v54 = vadd.f32 1.0, %v12100_v1  ;;  %10665 = vmatprep.mubr.msk.f32.mxu0 %vm2485_vm8, %v3548_v42 }
 0x587   : > { %v12104_v39 = vpop.eup %12103  ;;  %v3524_v28 = vadd.f32 1.0, %v12102_v53  ;;  %10666 = vmatmul.mubr.msk.f32.gmra.mrb[94].mxu0 %vm2485_vm8, %v3549_v43 }
 0x588   : > { %v3550_v23 = vmul.f32 %v12104_v39, %v14048_v20  ;;  %12113 = vrcp.f32 %v3525_v54  ;;  %v12106_v19 = vpop.eup %12105 }
 0x589   : > { %12115 = vrcp.f32 %v3524_v28  ;;  %v3553_v41 = vmul.f32 %v12106_v19, %v14057_v11  ;;  %v16275_v11 = vlaneseq }
 0x58a   : > { %10668 = vmatprep.mubr.msk.f32.mxu0 %vm2485_vm8, %v3550_v23 }
 0x58b   : > { %v12108_v40 = vpop.eup %12107  ;;  %10669 = vmatmul.mubr.msk.f32.gmra.mrb[96].mxu0 %vm2485_vm8, %v3551_v33 }
 0x58c   : > { %v3552_v55 = vmul.f32 %v12108_v40, %v14062_v6  ;;  %v12110_v21 = vpop.eup %12109 }
 0x58d   : > { %v12112_v38 = vpop.eup %12111  ;;  %v3555_v46 = vmul.f32 %v12110_v21, %v14069_v26  ;;  %v14126_v26 = vld [vmem:[%s430_s22] ss:$0 sm:$0xff] }
 0x58e   : > { %10671 = vmatprep.mubr.msk.f32.mxu0 %vm2485_vm8, %v3552_v55  ;;  %v3554_v20 = vmul.f32 %v12112_v38, %v14074_v24  ;;  %v14121_v24 = vshrl.u32 %v16275_v11, 7 }
 0x58f   : > { %10672 = vmatmul.mubr.msk.f32.gmra.mrb[98].mxu0 %vm2485_vm8, %v3553_v41 }
 0x590   : > { %10674 = vmatprep.mubr.msk.f32.mxu0 %vm2485_vm8, %v3554_v20  ;;  %16276 = vst [vmem:[#allocation138_spill] sm:$0xff] %v14121_v24  ;;  %v14129_v32 = vadd.s32 8, %v14121_v24  ;;  %vm691_vm9 = vcmp.eq.s32.totalorder %v14121_v24, %v14126_v26  ;;  %v14143_v51 = vadd.s32 24, %v14121_v24  ;;  %v14150_v48 = vadd.s32 32, %v14121_v24 }
 0x591   : > { %v14153_v17 = vadd.s32 40, %v14121_v24  ;;  %v14160_v44 = vadd.s32 48, %v14121_v24  ;;  %v14163_v60 = vadd.s32 56, %v14121_v24 }
 0x592   : > { %v12114_v63 = vpop.eup %12113  ;;  %vm692_vm10 = vcmp.eq.s32.totalorder %v14129_v32, %v14126_v26  ;;  %vm694_vm12 = vcmp.eq.s32.totalorder %v14143_v51, %v14126_v26  ;;  %vm695_vm13 = vcmp.eq.s32.totalorder %v14150_v48, %v14126_v26  ;;  %v6594_v32 = vld [vmem:[%s16042_s5 + $0x200] sm:$0xff] }
 0x593   : > { %v12116_v3 = vpop.eup %12115  ;;  %10675 = vmatmul.mubr.msk.f32.gmra.mrb[100].mxu0 %vm2485_vm8, %v3555_v46  ;;  %v3557_v13 = vmul.f32 %v12114_v63, %v14079_v34  ;;  %v16111_v34 = vmov 1.0   ;;  %vm696_vm14 = vcmp.eq.s32.totalorder %v14153_v17, %v14126_v26  ;;  %vm697_vm15 = vcmp.eq.s32.totalorder %v14160_v44, %v14126_v26  ;;  %v6873_v48 = vld [vmem:[%s16042_s5 + $0x240] sm:$0xff]  ;;  %v6874_v17 = vld [vmem:[%s16042_s5 + $0x248] sm:$0xff]  ;;  %v6596_v44 = vld [vmem:[%s16042_s5 + $0x210] sm:$0xff] }
 0x594   : > { %v3556_v6 = vmul.f32 %v12116_v3, %v14082_v0  ;;  %v14140_v0 = vadd.s32 16, %v14121_v24  ;;  %vm698_vm0 = vcmp.eq.s32.totalorder %v14163_v60, %v14126_v26  ;;  %v6597_v60 = vld [vmem:[%s16042_s5 + $0x218] sm:$0xff] }
 0x596   : > { %10677 = vmatprep.mubr.msk.f32.mxu0 %vm2485_vm8, %v3556_v6  ;;  %vm693_vm11 = vcmp.eq.s32.totalorder %v14140_v0, %v14126_v26  ;;  %v6595_v0 = vld [vmem:[%s16042_s5 + $0x208] sm:$0xff]  ;;  %v11736_v26 = vpack.c.bf16 %v6874_v17, %v6873_v48 }
 0x597   : > { %10678 = vmatmul.mubr.msk.f32.gmra.mrb[102].mxu0 %vm2485_vm8, %v3557_v13  ;;  %v11728_v51 = vpack.c.bf16 %v6595_v0, %v6594_v32 }
 0x598   : > { %10712 = vmatprep.mubr.msk.f32.mxu0 %vm691_vm9, %v16111_v34 }
 0x64c   : > { %v10658_v52 = vpop.f32.mrb[88].mxu0 }
 0x64d   : > { %v14175_v42 = vadd.f32 %v10658_v52, %v14172_v35  ;;  %v3681_v1 = vpop.f32.mrb[89].mxu0 }
 0x64e   : > { %v14178_v43 = vadd.f32 %v14172_v35, %v3681_v1 }
 0x64f   : > { %v3761_v53 = vsub.f32 0.0, %v14175_v42 }
 0x650   : > { %v3760_v54 = vsub.f32 0.0, %v14178_v43  ;;  %v10661_v39 = vpop.f32.mrb[90].mxu0 }
 0x651   : > { %v3778_v28 = vmul.f32 1.442695, %v3761_v53  ;;  %v14183_v23 = vadd.f32 %v10661_v39, %v14172_v35  ;;  %v3691_v33 = vpop.f32.mrb[91].mxu0 }
 0x652   : > { %v3776_v19 = vmul.f32 1.442695, %v3760_v54  ;;  %v14186_v40 = vadd.f32 %v14172_v35, %v3691_v33 }
 0x653   : > { %12117 = vpow2.f32 %v3778_v28  ;;  %v3763_v55 = vsub.f32 0.0, %v14183_v23 }
 0x654   : > { %12119 = vpow2.f32 %v3776_v19  ;;  %v3762_v21 = vsub.f32 0.0, %v14186_v40  ;;  %v10664_v41 = vpop.f32.mrb[92].mxu0 }
 0x655   : > { %v3782_v38 = vmul.f32 1.442695, %v3763_v55  ;;  %v14191_v20 = vadd.f32 %v10664_v41, %v14172_v35  ;;  %v3701_v46 = vpop.f32.mrb[93].mxu0 }
 0x656   : > { %v3780_v63 = vmul.f32 1.442695, %v3762_v21  ;;  %v14194_v3 = vadd.f32 %v14172_v35, %v3701_v46 }
 0x657   : > { %12121 = vpow2.f32 %v3782_v38  ;;  %v3765_v6 = vsub.f32 0.0, %v14191_v20 }
 0x658   : > { %12123 = vpow2.f32 %v3780_v63  ;;  %v3764_v13 = vsub.f32 0.0, %v14194_v3 }
 0x659   : > { %v3786_v11 = vmul.f32 1.442695, %v3765_v6 }
 0x65a   : > { %v3784_v52 = vmul.f32 1.442695, %v3764_v13  ;;  %v10667_v1 = vpop.f32.mrb[94].mxu0 }
 0x65b   : > { %12125 = vpow2.f32 %v3786_v11  ;;  %v14199_v53 = vadd.f32 %v10667_v1, %v14172_v35  ;;  %v3711_v54 = vpop.f32.mrb[95].mxu0 }
 0x65c   : > { %12127 = vpow2.f32 %v3784_v52  ;;  %v14202_v39 = vadd.f32 %v14172_v35, %v3711_v54 }
 0x65d   : > { %v12118_v28 = vpop.eup %12117  ;;  %v3767_v33 = vsub.f32 0.0, %v14199_v53 }
 0x65e   : > { %v12120_v19 = vpop.eup %12119  ;;  %v3809_v55 = vadd.f32 1.0, %v12118_v28  ;;  %v3766_v21 = vsub.f32 0.0, %v14202_v39  ;;  %v10670_v41 = vpop.f32.mrb[96].mxu0 }
 0x65f   : > { %v3808_v38 = vadd.f32 1.0, %v12120_v19  ;;  %v3790_v46 = vmul.f32 1.442695, %v3767_v33  ;;  %v14207_v63 = vadd.f32 %v10670_v41, %v14172_v35  ;;  %v3721_v6 = vpop.f32.mrb[97].mxu0 }
 0x660   : > { %12129 = vrcp.f32 %v3809_v55  ;;  %v3788_v13 = vmul.f32 1.442695, %v3766_v21  ;;  %v14210_v11 = vadd.f32 %v14172_v35, %v3721_v6 }
 0x661   : > { %v12122_v52 = vpop.eup %12121  ;;  %12131 = vrcp.f32 %v3808_v38  ;;  %v3769_v1 = vsub.f32 0.0, %v14207_v63 }
 0x662   : > { %v12124_v54 = vpop.eup %12123  ;;  %v3811_v28 = vadd.f32 1.0, %v12122_v52  ;;  %12133 = vpow2.f32 %v3790_v46  ;;  %v3768_v34 = vsub.f32 0.0, %v14210_v11  ;;  %v10673_v19 = vpop.f32.mrb[98].mxu0 }
 0x663   : > { %v3810_v33 = vadd.f32 1.0, %v12124_v54  ;;  %12135 = vpow2.f32 %v3788_v13  ;;  %v3794_v41 = vmul.f32 1.442695, %v3769_v1  ;;  %v14215_v24 = vadd.f32 %v10673_v19, %v14172_v35  ;;  %v3731_v55 = vpop.f32.mrb[99].mxu0 }
 0x664   : > { %12137 = vrcp.f32 %v3811_v28  ;;  %v3792_v21 = vmul.f32 1.442695, %v3768_v34  ;;  %v14218_v6 = vadd.f32 %v14172_v35, %v3731_v55 }
 0x665   : > { %v12126_v38 = vpop.eup %12125  ;;  %12139 = vrcp.f32 %v3810_v33  ;;  %v3771_v52 = vsub.f32 0.0, %v14215_v24 }
 0x666   : > { %v12128_v46 = vpop.eup %12127  ;;  %v3813_v16 = vadd.f32 1.0, %v12126_v38  ;;  %12141 = vpow2.f32 %v3794_v41  ;;  %v3770_v54 = vsub.f32 0.0, %v14218_v6  ;;  %v10676_v13 = vpop.f32.mrb[100].mxu0 }
 0x667   : > { %v3812_v1 = vadd.f32 1.0, %v12128_v46  ;;  %12143 = vpow2.f32 %v3792_v21  ;;  %v3798_v19 = vmul.f32 1.442695, %v3771_v52  ;;  %v14223_v14 = vadd.f32 %v10676_v13, %v14172_v35  ;;  %v3741_v34 = vpop.f32.mrb[101].mxu0 }
 0x668   : > { %12145 = vrcp.f32 %v3813_v16  ;;  %v3796_v28 = vmul.f32 1.442695, %v3770_v54  ;;  %v14226_v55 = vadd.f32 %v14172_v35, %v3741_v34 }
 0x669   : > { %12147 = vrcp.f32 %v3812_v1  ;;  %v3773_v33 = vsub.f32 0.0, %v14223_v14 }
 0x66a   : > { %v12130_v38 = vpop.eup %12129  ;;  %12149 = vpow2.f32 %v3798_v19  ;;  %v3772_v41 = vsub.f32 0.0, %v14226_v55  ;;  %v10679_v12 = vpop.f32.mrb[102].mxu0 }
 0x66b   : > { %v12132_v46 = vpop.eup %12131  ;;  %v3841_v21 = vmul.f32 %v12130_v38, %v14175_v42  ;;  %12151 = vpow2.f32 %v3796_v28  ;;  %v3802_v52 = vmul.f32 1.442695, %v3773_v33  ;;  %v14232_v13 = vadd.f32 %v10679_v12, %v14172_v35  ;;  %v3751_v16 = vpop.f32.mrb[103].mxu0 }
 0x66c   : > { %v12134_v54 = vpop.eup %12133  ;;  %v3840_v34 = vmul.f32 %v12132_v46, %v14178_v43  ;;  %v3800_v1 = vmul.f32 1.442695, %v3772_v41  ;;  %v14236_v58 = vadd.f32 %v14172_v35, %v3751_v16 }
 0x66d   : > { %v12136_v19 = vpop.eup %12135  ;;  %v3815_v15 = vadd.f32 1.0, %v12134_v54  ;;  %12153 = vpow2.f32 %v3802_v52  ;;  %v3775_v30 = vsub.f32 0.0, %v14232_v13 }
 0x66e   : > { %v12138_v49 = vpop.eup %12137  ;;  %v3814_v42 = vadd.f32 1.0, %v12136_v19  ;;  %12155 = vpow2.f32 %v3800_v1  ;;  %v3774_v28 = vsub.f32 0.0, %v14236_v58  ;;  %v11560_v12 = vpack.c.bf16 %v3841_v21, %v3840_v34 }
 0x66f   : > { %v12140_v33 = vpop.eup %12139  ;;  %v3843_v38 = vmul.f32 %v12138_v49, %v14183_v23  ;;  %12157 = vrcp.f32 %v3815_v15  ;;  %v3806_v43 = vmul.f32 1.442695, %v3775_v30 }
 0x670   : > { %v12142_v41 = vpop.eup %12141  ;;  %v3842_v35 = vmul.f32 %v12140_v33, %v14186_v40  ;;  %12159 = vrcp.f32 %v3814_v42  ;;  %v3804_v46 = vmul.f32 1.442695, %v3774_v28  ;;  %11561 = vmatprep.subr.bf16.mxu0 %v11560_v12 }
 0x671   : > { %v12144_v52 = vpop.eup %12143  ;;  %v3817_v16 = vadd.f32 1.0, %v12142_v41  ;;  %12161 = vpow2.f32 %v3806_v43  ;;  %11563 = vmatpush3.bf16.msra.mxu0 %v11560_v12 }
 0x672   : > { %v12146_v54 = vpop.eup %12145  ;;  %v3816_v1 = vadd.f32 1.0, %v12144_v52  ;;  %12163 = vpow2.f32 %v3804_v46  ;;  %v11564_v19 = vpack.c.bf16 %v3843_v38, %v3842_v35 }
 0x673   : > { %v12148_v21 = vpop.eup %12147  ;;  %v3845_v34 = vmul.f32 %v12146_v54, %v14191_v20  ;;  %12165 = vrcp.f32 %v3817_v16 }
 0x674   : > { %v12150_v49 = vpop.eup %12149  ;;  %v3844_v30 = vmul.f32 %v12148_v21, %v14194_v3  ;;  %12167 = vrcp.f32 %v3816_v1  ;;  %11565 = vmatprep.subr.bf16.mxu0 %v11564_v19 }
 0x675   : > { %v12152_v15 = vpop.eup %12151  ;;  %v3819_v23 = vadd.f32 1.0, %v12150_v49  ;;  %11567 = vmatpush3.bf16.msra.mxu0 %v11564_v19 }
 0x676   : > { %v3818_v40 = vadd.f32 1.0, %v12152_v15  ;;  %v11568_v42 = vpack.c.bf16 %v3845_v34, %v3844_v30 }
 0x677   : > { %v12154_v28 = vpop.eup %12153  ;;  %12169 = vrcp.f32 %v3819_v23 }
 0x678   : > { %v12156_v12 = vpop.eup %12155  ;;  %12171 = vrcp.f32 %v3818_v40  ;;  %v3821_v33 = vadd.f32 1.0, %v12154_v28  ;;  %11569 = vmatprep.subr.bf16.mxu0 %v11568_v42 }
 0x679   : > { %v12158_v38 = vpop.eup %12157  ;;  %v3820_v43 = vadd.f32 1.0, %v12156_v12  ;;  %11571 = vmatpush3.bf16.msra.mxu0 %v11568_v42 }
 0x67a   : > { %v12160_v20 = vpop.eup %12159  ;;  %v3847_v41 = vmul.f32 %v12158_v38, %v14199_v53  ;;  %12173 = vrcp.f32 %v3821_v33 }
 0x67b   : > { %v12162_v3 = vpop.eup %12161  ;;  %v3846_v35 = vmul.f32 %v12160_v20, %v14202_v39  ;;  %12175 = vrcp.f32 %v3820_v43  ;;  %v3967_v20 = vld [vmem:[%s16042_s5 + $0xf0] sm:$0xff] }
 0x67c   : > { %v12164_v46 = vpop.eup %12163  ;;  %v3823_v52 = vadd.f32 1.0, %v12162_v3  ;;  %v3961_v3 = vld [vmem:[%s16042_s5 + $0xc0] sm:$0xff] }
 0x67d   : > { %v12166_v16 = vpop.eup %12165  ;;  %v3822_v54 = vadd.f32 1.0, %v12164_v46  ;;  %v11572_v1 = vpack.c.bf16 %v3847_v41, %v3846_v35  ;;  %v16277_v41 = vmov 1.0   ;;  %v3962_v35 = vld [vmem:[%s16042_s5 + $0xc8] sm:$0xff] }
 0x67e   : > { %v12168_v19 = vpop.eup %12167  ;;  %v3849_v21 = vmul.f32 %v12166_v16, %v14207_v63  ;;  %12177 = vrcp.f32 %v3823_v52  ;;  %v11600_v46 = vpack.c.bf16 %v3962_v35, %v3961_v3  ;;  %v4240_v52 = vld [vmem:[%s16042_s5 + $0x100] sm:$0xff]  ;;  %v4241_v16 = vld [vmem:[%s16042_s5 + $0x108] sm:$0xff] }
 0x67f   : > { %v3848_v34 = vmul.f32 %v12168_v19, %v14210_v11  ;;  %12179 = vrcp.f32 %v3822_v54  ;;  %11573 = vmatprep.subr.bf16.mxu0 %v11572_v1  ;;  %v11608_v54 = vpack.c.bf16 %v4241_v16, %v4240_v52  ;;  %v3964_v19 = vld [vmem:[%s16042_s5 + $0xd8] sm:$0xff] }
 0x680   : > { %11575 = vmatpush3.bf16.msra.mxu0 %v11572_v1  ;;  %v3963_v1 = vld [vmem:[%s16042_s5 + $0xd0] sm:$0xff] }
 0x681   : > { %v12170_v53 = vpop.eup %12169  ;;  %v11576_v49 = vpack.c.bf16 %v3849_v21, %v3848_v34  ;;  %11609 = vmatprep.subr.bf16.mxu1 %v11608_v54 }
 0x682   : > { %v12172_v30 = vpop.eup %12171  ;;  %v3851_v39 = vmul.f32 %v12170_v53, %v14215_v24  ;;  %11611 = vmatpush3.bf16.msra.mxu1 %v11608_v54  ;;  %v11604_v53 = vpack.c.bf16 %v3964_v19, %v3963_v1  ;;  %v9298_v54 = vld [vmem:[%s16046_s9 + $0x9] ss:$0 sm:$0xff] }
 0x683   : > { %v3850_v15 = vmul.f32 %v12172_v30, %v14218_v6  ;;  %11577 = vmatprep.subr.bf16.mxu0 %v11576_v49  ;;  %v3965_v6 = vld [vmem:[%s16042_s5 + $0xe0] sm:$0xff] }
 0x684   : > { %v12174_v23 = vpop.eup %12173  ;;  %11579 = vmatpush3.bf16.msra.mxu0 %v11576_v49 }
 0x685   : > { %v12176_v40 = vpop.eup %12175  ;;  %v3853_v42 = vmul.f32 %v12174_v23, %v14223_v14  ;;  %v11580_v63 = vpack.c.bf16 %v3851_v39, %v3850_v15  ;;  %v3966_v14 = vld [vmem:[%s16042_s5 + $0xe8] sm:$0xff] }
 0x686   : > { %v3852_v28 = vmul.f32 %v12176_v40, %v14226_v55  ;;  %v11592_v43 = vpack.c.bf16 %v3966_v14, %v3965_v6 }
 0x687   : > { %11581 = vmatprep.subr.bf16.mxu0 %v11580_v63 }
 0x688   : > { %v12178_v11 = vpop.eup %12177  ;;  %11583 = vmatpush3.bf16.msra.mxu0 %v11580_v63  ;;  %v11584_v12 = vpack.c.bf16 %v3853_v42, %v3852_v28  ;;  %v4242_v42 = vld [vmem:[%s16042_s5 + $0x110] sm:$0xff]  ;;  %v4243_v63 = vld [vmem:[%s16042_s5 + $0x118] sm:$0xff] }
 0x689   : > { %v12180_v33 = vpop.eup %12179  ;;  %v3855_v38 = vmul.f32 %v12178_v11, %v14232_v13  ;;  %v11612_v28 = vpack.c.bf16 %v4243_v63, %v4242_v42  ;;  %v9297_v11 = vld [vmem:[%s16046_s9 + $0x8] ss:$0 sm:$0xff] }
 0x68a   : > { %v3854_v24 = vmul.f32 %v12180_v33, %v14236_v58  ;;  %11585 = vmatprep.subr.bf16.mxu0 %v11584_v12  ;;  %v3968_v58 = vld [vmem:[%s16042_s5 + $0xf8] sm:$0xff] }
 0x68b   : > { %v11596_v13 = vpack.c.bf16 %v3968_v58, %v3967_v20  ;;  %11613 = vmatprep.subr.bf16.mxu1 %v11612_v28 }
 0x68c   : > { %11587 = vmatpush3.bf16.msra.mxu0 %v11584_v12  ;;  %v11588_v55 = vpack.c.bf16 %v3855_v38, %v3854_v24  ;;  %11615 = vmatpush3.bf16.msra.mxu1 %v11612_v28 }
 0x68e   : > { %11589 = vmatprep.subr.bf16.mxu0 %v11588_v55 }
 0x690   : > { %11591 = vmatpush3.bf16.msra.mxu0 %v11588_v55 }
 0x691   : > { %11593 = vmatprep.subr.bf16.mxu0 %v11592_v43 }
 0x693   : > { %10713 = vmatmul.mubr.msk.f32.vlgmr.msra.gmra.mrb[104].mxu0 %vm692_vm10, %v16277_v41 }
 0x694   : > { %10715 = vmatprep.mubr.msk.f32.mxu0 %vm693_vm11, %v16277_v41  ;;  %11595 = vmatpush3.bf16.msra.mxu0 %v11592_v43 }
 0x695   : > { %11597 = vmatprep.subr.bf16.mxu0 %v11596_v13 }
 0x697   : > { %10716 = vmatmul.mubr.msk.f32.gmra.mrb[106].mxu0 %vm694_vm12, %v16277_v41 }
 0x698   : > { %10718 = vmatprep.mubr.msk.f32.mxu0 %vm695_vm13, %v16277_v41  ;;  %11599 = vmatpush3.bf16.msra.mxu0 %v11596_v13 }
 0x699   : > { %11601 = vmatprep.subr.bf16.mxu0 %v11600_v46 }
 0x69b   : > { %10719 = vmatmul.mubr.msk.f32.gmra.mrb[108].mxu0 %vm696_vm14, %v16277_v41 }
 0x69c   : > { %10721 = vmatprep.mubr.msk.f32.mxu0 %vm697_vm15, %v16277_v41 }
 0x69f   : > { %10722 = vmatmul.mubr.msk.f32.gmra.mrb[110].mxu0 %vm698_vm0, %v16277_v41 }
 0x766   : > { %v10714_v21 = vpop.f32.mrb[104].mxu0 }
 0x767   : > { %v3922_v34 = vpop.f32.mrb[105].mxu0 }
 0x768   : > { %10732 = vmatprep.mubr.msk.f32.mxu0 %vm2485_vm8, %v3922_v34 }
 0x769   : > { %10733 = vmatmul.mubr.msk.f32.vlgmr.msra.gmra.mrb[112].mxu0 %vm2485_vm8, %v10714_v21 }
 0x76a   : > { %v10717_v49 = vpop.f32.mrb[106].mxu0  ;;  %11603 = vmatpush3.bf16.msra.mxu0 %v11600_v46 }
 0x76b   : > { %v3932_v30 = vpop.f32.mrb[107].mxu0  ;;  %11605 = vmatprep.subr.bf16.mxu0 %v11604_v53 }
 0x76c   : > { %10735 = vmatprep.mubr.msk.f32.mxu0 %vm2485_vm8, %v3932_v30 }
 0x76d   : > { %10736 = vmatmul.mubr.msk.f32.gmra.mrb[114].mxu0 %vm2485_vm8, %v10717_v49 }
 0x76e   : > { %v10720_v39 = vpop.f32.mrb[108].mxu0  ;;  %11607 = vmatpush3.bf16.msra.mxu0 %v11604_v53 }
 0x76f   : > { %v3942_v15 = vpop.f32.mrb[109].mxu0 }
 0x770   : > { %10738 = vmatprep.mubr.msk.f32.mxu0 %vm2485_vm8, %v3942_v15 }
 0x771   : > { %10739 = vmatmul.mubr.msk.f32.gmra.mrb[116].mxu0 %vm2485_vm8, %v10720_v39 }
 0x772   : > { %v10723_v23 = vpop.f32.mrb[110].mxu0 }
 0x773   : > { %v3952_v40 = vpop.f32.mrb[111].mxu0 }
 0x774   : > { %10741 = vmatprep.mubr.msk.f32.mxu0 %vm2485_vm8, %v3952_v40 }
 0x775   : > { %10742 = vmatmul.mubr.msk.f32.gmra.mrb[118].mxu0 %vm2485_vm8, %v10723_v23 }
 0x776   : > { %10752 = vmatprep.mubr.msk.f32.mxu0 %vm2485_vm8, %v13394_v62 }
 0x779   : > { %10753 = vmatmul.mubr.msk.f32.vlgmr.msra.gmra.mrb[112].mxu0 %vm2485_vm8, %v13388_v4 }
 0x77a   : > { %10755 = vmatprep.mubr.msk.f32.mxu0 %vm2485_vm8, %v13406_v37 }
 0x77d   : > { %10756 = vmatmul.mubr.msk.f32.gmra.mrb[114].mxu0 %vm2485_vm8, %v13402_v22 }
 0x77e   : > { %10758 = vmatprep.mubr.msk.f32.mxu0 %vm2485_vm8, %v13416_v10 }
 0x781   : > { %10759 = vmatmul.mubr.msk.f32.gmra.mrb[116].mxu0 %vm2485_vm8, %v13412_v8 }
 0x782   : > { %10761 = vmatprep.mubr.msk.f32.mxu0 %vm2485_vm8, %v13426_v18 }
 0x785   : > { %10762 = vmatmul.mubr.msk.f32.gmra.mrb[118].mxu0 %vm2485_vm8, %v13422_v36 }
 0x786   : > { %10800 = vmatprep.mubr.msk.f32.mxu0 %vm2155_vm4, %v13216_v61 }
 0x84c   : > { %v10754_v12 = vpop.f32.mrb[112].mxu0 }
 0x84d   : > { %v4188_v33 = vpop.f32.mrb[113].mxu0  ;;  %v4233_v24 = vadd.f32 %v10754_v12, %v9297_v11 }
 0x84e   : > { %v4232_v38 = vadd.f32 %v9297_v11, %v4188_v33 }
 0x850   : > { %v10757_v6 = vpop.f32.mrb[114].mxu0  ;;  %10772 = vmatprep.mubr.msk.f32.mxu1 %vm2485_vm8, %v4232_v38 }
 0x851   : > { %v4198_v14 = vpop.f32.mrb[115].mxu0  ;;  %10773 = vmatmul.mubr.msk.f32.vlgmr.msra.gmra.mrb[96].mxu1 %vm2485_vm8, %v4233_v24  ;;  %v4235_v43 = vadd.f32 %v10757_v6, %v9297_v11 }
 0x852   : > { %v4234_v55 = vadd.f32 %v9297_v11, %v4198_v14 }
 0x854   : > { %v10760_v20 = vpop.f32.mrb[116].mxu0  ;;  %10775 = vmatprep.mubr.msk.f32.mxu1 %vm2485_vm8, %v4234_v55 }
 0x855   : > { %v4208_v58 = vpop.f32.mrb[117].mxu0  ;;  %10776 = vmatmul.mubr.msk.f32.gmra.mrb[98].mxu1 %vm2485_vm8, %v4235_v43  ;;  %v4237_v3 = vadd.f32 %v10760_v20, %v9297_v11  ;;  %v16281_v20 = vld [vmem:[#allocation77_spill] sm:$0xff] }
 0x856   : > { %v4236_v13 = vadd.f32 %v9297_v11, %v4208_v58  ;;  %v16282_v58 = vld [vmem:[#allocation79_spill] sm:$0xff] }
 0x858   : > { %v10763_v35 = vpop.f32.mrb[118].mxu0  ;;  %10778 = vmatprep.mubr.msk.f32.mxu1 %vm2485_vm8, %v4236_v13  ;;  %v16283_v13 = vld [vmem:[#allocation81_spill] sm:$0xff] }
 0x859   : > { %v4218_v46 = vpop.f32.mrb[119].mxu0  ;;  %10779 = vmatmul.mubr.msk.f32.gmra.mrb[100].mxu1 %vm2485_vm8, %v4237_v3  ;;  %v4239_v16 = vadd.f32 %v10763_v35, %v9297_v11  ;;  %v16284_v3 = vld [vmem:[#allocation83_spill] sm:$0xff]  ;;  %v16285_v35 = vld [vmem:[#allocation85_spill] sm:$0xff] }
 0x85a   : > { %v4238_v52 = vadd.f32 %v9297_v11, %v4218_v46  ;;  %v16286_v46 = vld [vmem:[#allocation87_spill] sm:$0xff] }
 0x85c   : > { %10781 = vmatprep.mubr.msk.f32.mxu1 %vm2485_vm8, %v4238_v52  ;;  %v16287_v52 = vld [vmem:[#allocation89_spill] sm:$0xff] }
 0x85d   : > { %10782 = vmatmul.mubr.msk.f32.gmra.mrb[102].mxu1 %vm2485_vm8, %v4239_v16  ;;  %v16288_v16 = vld [vmem:[#allocation91_spill] sm:$0xff] }
 0x924   : > { %v10774_v1 = vpop.f32.mrb[96].mxu1 }
 0x925   : > { %v4345_v19 = vadd.f32 %v10774_v1, %v9298_v54  ;;  %v4339_v21 = vpop.f32.mrb[97].mxu1  ;;  %v16290_v1 = vld [vmem:[#allocation95_spill] sm:$0xff] }
 0x926   : > { %v4340_v34 = vadd.f32 %v9298_v54, %v4339_v21  ;;  %v16292_v21 = vld [vmem:[#allocation99_spill] sm:$0xff] }
 0x927   : > { %v14359_v53 = vadd.f32 %v4345_v19, %v13388_v4  ;;  %v16291_v19 = vld [vmem:[#allocation97_spill] sm:$0xff] }
 0x928   : > { %v14362_v49 = vadd.f32 %v4340_v34, %v13394_v62  ;;  %v10777_v30 = vpop.f32.mrb[98].mxu1  ;;  %v16293_v34 = vld [vmem:[#allocation101_spill] sm:$0xff] }
 0x929   : > { %v4355_v39 = vadd.f32 %v10777_v30, %v9298_v54  ;;  %v4349_v15 = vpop.f32.mrb[99].mxu1  ;;  %v16294_v30 = vld [vmem:[#allocation103_spill] sm:$0xff] }
 0x92a   : > { %v4350_v23 = vadd.f32 %v9298_v54, %v4349_v15  ;;  %v11616_v40 = vpack.c.bf16 %v14359_v53, %v14362_v49  ;;  %v4615_v15 = vld [vmem:[%s16042_s5 + $0x140] sm:$0xff] }
 0x92b   : > { %v14367_v42 = vadd.f32 %v4355_v39, %v13402_v22  ;;  %v16295_v39 = vld [vmem:[#allocation105_spill] sm:$0xff] }
 0x92c   : > { %v14370_v63 = vadd.f32 %v4350_v23, %v13406_v37  ;;  %v10780_v28 = vpop.f32.mrb[100].mxu1  ;;  %11617 = vmatprep.subr.bf16.mxu0 %v11616_v40  ;;  %v4616_v23 = vld [vmem:[%s16042_s5 + $0x148] sm:$0xff] }
 0x92d   : > { %v4365_v4 = vadd.f32 %v10780_v28, %v9298_v54  ;;  %v4359_v11 = vpop.f32.mrb[101].mxu1  ;;  %11619 = vmatpush3.bf16.msra.mxu0 %v11616_v40  ;;  %v11632_v40 = vpack.c.bf16 %v4616_v23, %v4615_v15  ;;  %v4617_v28 = vld [vmem:[%s16042_s5 + $0x150] sm:$0xff] }
 0x92e   : > { %v4360_v62 = vadd.f32 %v9298_v54, %v4359_v11  ;;  %v11620_v12 = vpack.c.bf16 %v14367_v42, %v14370_v63 }
 0x92f   : > { %v14375_v33 = vadd.f32 %v4365_v4, %v13412_v8  ;;  %11633 = vmatprep.subr.bf16.mxu1 %v11632_v40  ;;  %v4618_v4 = vld [vmem:[%s16042_s5 + $0x158] sm:$0xff] }
 0x930   : > { %v14378_v38 = vadd.f32 %v4360_v62, %v13416_v10  ;;  %v10783_v22 = vpop.f32.mrb[102].mxu1  ;;  %11621 = vmatprep.subr.bf16.mxu0 %v11620_v12  ;;  %v16280_v10 = vld [vmem:[#allocation75_spill] sm:$0xff]  ;;  %11635 = vmatpush3.bf16.msra.mxu1 %v11632_v40  ;;  %v11636_v11 = vpack.c.bf16 %v4618_v4, %v4617_v28  ;;  %v4611_v62 = vld [vmem:[%s16042_s5 + $0x120] sm:$0xff] }
 0x931   : > { %v4375_v24 = vadd.f32 %v10783_v22, %v9298_v54  ;;  %v4369_v37 = vpop.f32.mrb[103].mxu1  ;;  %11623 = vmatpush3.bf16.msra.mxu0 %v11620_v12  ;;  %v4612_v12 = vld [vmem:[%s16042_s5 + $0x128] sm:$0xff] }
 0x932   : > { %v4370_v6 = vadd.f32 %v9298_v54, %v4369_v37  ;;  %v11624_v14 = vpack.c.bf16 %v14375_v33, %v14378_v38  ;;  %v16289_v54 = vld [vmem:[#allocation93_spill] sm:$0xff]  ;;  %11637 = vmatprep.subr.bf16.mxu1 %v11636_v11  ;;  %v11640_v22 = vpack.c.bf16 %v4612_v12, %v4611_v62 }
 0x933   : > { %v14383_v55 = vadd.f32 %v4375_v24, %v13422_v36  ;;  %v16279_v36 = vld [vmem:[#allocation73_spill] sm:$0xff] }
 0x934   : > { %v14386_v43 = vadd.f32 %v4370_v6, %v13426_v18  ;;  %11625 = vmatprep.subr.bf16.mxu0 %v11624_v14  ;;  %v16278_v18 = vld [vmem:[#allocation71_spill] sm:$0xff]  ;;  %11639 = vmatpush3.bf16.msra.mxu1 %v11636_v11 }
 0x935   : > { %11627 = vmatpush3.bf16.msra.mxu0 %v11624_v14  ;;  %11641 = vmatprep.subr.bf16.mxu1 %v11640_v22 }
 0x936   : > { %v11628_v8 = vpack.c.bf16 %v14383_v55, %v14386_v43 }
 0x938   : > { %11629 = vmatprep.subr.bf16.mxu0 %v11628_v8 }
 0x939   : > { %11631 = vmatpush3.bf16.msra.mxu0 %v11628_v8 }
 0x93c   : > { %10801 = vmatmul.mubr.msk.f32.vlgmr.msra.gmra.mrb[120].mxu0 %vm2155_vm4, %v13443_v25 }
 0x93d   : > { %10803 = vmatprep.mubr.msk.f32.mxu0 %vm2155_vm4, %v13448_v5 }
 0x940   : > { %10804 = vmatmul.mubr.msk.f32.gmra.mrb[122].mxu0 %vm2155_vm4, %v13461_v2 }
 0x941   : > { %10806 = vmatprep.mubr.msk.f32.mxu0 %vm2155_vm4, %v13466_v50 }
 0x944   : > { %10807 = vmatmul.mubr.msk.f32.gmra.mrb[124].mxu0 %vm2155_vm4, %v13479_v27 }
 0x945   : > { %10809 = vmatprep.mubr.msk.f32.mxu0 %vm2155_vm4, %v13484_v57 }
 0x948   : > { %10810 = vmatmul.mubr.msk.f32.gmra.mrb[126].mxu0 %vm2155_vm4, %v13496_v59 }
 0x949   : > { %10812 = vmatprep.mubr.msk.f32.mxu0 %vm2155_vm4, %v13501_v31  ;;  %v5527_v31 = vld [vmem:[%s16042_s5 + $0x188] sm:$0xff] }
 0x94c   : > { %10813 = vmatmul.mubr.msk.f32.gmra.mrb[128].mxu0 %vm2155_vm4, %v13512_v7  ;;  %v5526_v7 = vld [vmem:[%s16042_s5 + $0x180] sm:$0xff] }
 0x94d   : > { %10815 = vmatprep.mubr.msk.f32.mxu0 %vm2155_vm4, %v13517_v45  ;;  %v11664_v59 = vpack.c.bf16 %v5527_v31, %v5526_v7  ;;  %v5160_v31 = vld [vmem:[%s16042_s5 + $0x168] sm:$0xff]  ;;  %v5161_v7 = vld [vmem:[%s16042_s5 + $0x170] sm:$0xff] }
 0x950   : > { %10816 = vmatmul.mubr.msk.f32.gmra.mrb[130].mxu0 %vm2155_vm4, %v13528_v9  ;;  %v5533_v9 = vld [vmem:[%s16042_s5 + $0x1b8] sm:$0xff] }
 0x951   : > { %10818 = vmatprep.mubr.msk.f32.mxu0 %vm2155_vm4, %v13533_v47  ;;  %v5532_v47 = vld [vmem:[%s16042_s5 + $0x1b0] sm:$0xff] }
 0x952   : > { %v11660_v45 = vpack.c.bf16 %v5533_v9, %v5532_v47  ;;  %v5528_v47 = vld [vmem:[%s16042_s5 + $0x190] sm:$0xff]  ;;  %v5529_v9 = vld [vmem:[%s16042_s5 + $0x198] sm:$0xff] }
 0x954   : > { %10819 = vmatmul.mubr.msk.f32.gmra.mrb[132].mxu0 %vm2155_vm4, %v13544_v56 }
 0x955   : > { %10821 = vmatprep.mubr.msk.f32.mxu0 %vm2155_vm4, %v16278_v18 }
 0x958   : > { %10822 = vmatmul.mubr.msk.f32.gmra.mrb[134].mxu0 %vm2155_vm4, %v16279_v36 }
 0x959   : > { %10824 = vmatprep.mubr.msk.f32.mxu0 %vm2155_vm4, %v16280_v10 }
 0x95c   : > { %10825 = vmatmul.mubr.msk.f32.gmra.mrb[136].mxu0 %vm2155_vm4, %v16281_v20 }
 0x95d   : > { %10827 = vmatprep.mubr.msk.f32.mxu0 %vm2155_vm4, %v16282_v58 }
 0x960   : > { %10828 = vmatmul.mubr.msk.f32.gmra.mrb[138].mxu0 %vm2155_vm4, %v16283_v13 }
 0x961   : > { %10830 = vmatprep.mubr.msk.f32.mxu0 %vm2155_vm4, %v16284_v3 }
 0x964   : > { %10831 = vmatmul.mubr.msk.f32.gmra.mrb[140].mxu0 %vm2155_vm4, %v16285_v35 }
 0x965   : > { %10833 = vmatprep.mubr.msk.f32.mxu0 %vm2155_vm4, %v16286_v46  ;;  %v5531_v46 = vld [vmem:[%s16042_s5 + $0x1a8] sm:$0xff] }
 0x968   : > { %10834 = vmatmul.mubr.msk.f32.gmra.mrb[142].mxu0 %vm2155_vm4, %v16287_v52  ;;  %v5530_v52 = vld [vmem:[%s16042_s5 + $0x1a0] sm:$0xff] }
 0x969   : > { %10836 = vmatprep.mubr.msk.f32.mxu0 %vm2155_vm4, %v16288_v16 }
 0x96c   : > { %10837 = vmatmul.mubr.msk.f32.gmra.mrb[144].mxu0 %vm2155_vm4, %v16289_v54 }
 0x96d   : > { %10839 = vmatprep.mubr.msk.f32.mxu0 %vm2155_vm4, %v16290_v1 }
 0x970   : > { %10840 = vmatmul.mubr.msk.f32.gmra.mrb[146].mxu0 %vm2155_vm4, %v16291_v19  ;;  %v4614_v19 = vld [vmem:[%s16042_s5 + $0x138] sm:$0xff] }
 0x971   : > { %10842 = vmatprep.mubr.msk.f32.mxu0 %vm2155_vm4, %v16292_v21  ;;  %v4613_v21 = vld [vmem:[%s16042_s5 + $0x130] sm:$0xff] }
 0x972   : > { %v11644_v16 = vpack.c.bf16 %v4614_v19, %v4613_v21  ;;  %v11656_v19 = vpack.c.bf16 %v5531_v46, %v5530_v52 }
 0x974   : > { %10843 = vmatmul.mubr.msk.f32.gmra.mrb[148].mxu0 %vm2155_vm4, %v16293_v34 }
 0x975   : > { %10845 = vmatprep.mubr.msk.f32.mxu0 %vm2155_vm4, %v16294_v30 }
 0x978   : > { %10846 = vmatmul.mubr.msk.f32.gmra.mrb[150].mxu0 %vm2155_vm4, %v16295_v39 }
 0xa0f   : > { %v14470_v24 = vpop.f32.mrb[120].mxu0 }
 0xa10   : > { %v14472_v37 = vpop.f32.mrb[121].mxu0 }
 0xa13   : > { %v14474_v6 = vpop.f32.mrb[122].mxu0 }
 0xa14   : > { %v14476_v14 = vpop.f32.mrb[123].mxu0 }
 0xa17   : > { %v14478_v8 = vpop.f32.mrb[124].mxu0 }
 0xa18   : > { %v14480_v15 = vpop.f32.mrb[125].mxu0 }
 0xa1b   : > { %v14482_v23 = vpop.f32.mrb[126].mxu0 }
 0xa1c   : > { %v14484_v40 = vpop.f32.mrb[127].mxu0 }
 0xa1f   : > { %v14486_v28 = vpop.f32.mrb[128].mxu0 }
 0xa20   : > { %v14488_v4 = vpop.f32.mrb[129].mxu0 }
 0xa23   : > { %v14490_v11 = vpop.f32.mrb[130].mxu0 }
 0xa24   : > { %v14492_v62 = vpop.f32.mrb[131].mxu0 }
 0xa27   : > { %v14494_v12 = vpop.f32.mrb[132].mxu0 }
 0xa28   : > { %v14496_v39 = vpop.f32.mrb[133].mxu0 }
 0xa2b   : > { %v14498_v30 = vpop.f32.mrb[134].mxu0 }
 0xa2c   : > { %v14500_v34 = vpop.f32.mrb[135].mxu0 }
 0xa2f   : > { %v14508_v1 = vpop.f32.mrb[136].mxu0 }
 0xa30   : > { %v14510_v54 = vpop.f32.mrb[137].mxu0 }
 0xa31   : > { %10856 = vmatprep.mubr.msk.f32.mxu1 %vm2485_vm8, %v14510_v54 }
 0xa32   : > { %10857 = vmatmul.mubr.msk.f32.vlgmr.msra.gmra.mrb[104].mxu1 %vm2485_vm8, %v14508_v1 }
 0xa33   : > { %v14522_v35 = vpop.f32.mrb[138].mxu0  ;;  %11643 = vmatpush3.bf16.msra.mxu1 %v11640_v22 }
 0xa34   : > { %v4542_v3 = vpop.f32.mrb[139].mxu0  ;;  %11645 = vmatprep.subr.bf16.mxu1 %v11644_v16 }
 0xa35   : > { %10859 = vmatprep.mubr.msk.f32.mxu1 %vm2485_vm8, %v4542_v3 }
 0xa36   : > { %10860 = vmatmul.mubr.msk.f32.gmra.mrb[106].mxu1 %vm2485_vm8, %v14522_v35 }
 0xa37   : > { %v14527_v21 = vpop.f32.mrb[140].mxu0  ;;  %11647 = vmatpush3.bf16.msra.mxu1 %v11644_v16 }
 0xa38   : > { %v4552_v13 = vpop.f32.mrb[141].mxu0  ;;  %11657 = vmatprep.subr.bf16.mxu1 %v11656_v19 }
 0xa39   : > { %10862 = vmatprep.mubr.msk.f32.mxu1 %vm2485_vm8, %v4552_v13 }
 0xa3a   : > { %10863 = vmatmul.mubr.msk.f32.gmra.mrb[108].mxu1 %vm2485_vm8, %v14527_v21 }
 0xa3b   : > { %v10835_v58 = vpop.f32.mrb[142].mxu0 }
 0xa3c   : > { %v4562_v22 = vpop.f32.mrb[143].mxu0 }
 0xa3d   : > { %10865 = vmatprep.mubr.msk.f32.mxu1 %vm2485_vm8, %v4562_v22 }
 0xa3e   : > { %10866 = vmatmul.mubr.msk.f32.gmra.mrb[110].mxu1 %vm2485_vm8, %v10835_v58 }
 0xa3f   : > { %v10838_v46 = vpop.f32.mrb[144].mxu0 }
 0xa40   : > { %v4572_v52 = vpop.f32.mrb[145].mxu0 }
 0xa41   : > { %10868 = vmatprep.mubr.msk.f32.mxu1 %vm2485_vm8, %v4572_v52 }
 0xa42   : > { %10869 = vmatmul.mubr.msk.f32.gmra.mrb[112].mxu1 %vm2485_vm8, %v10838_v46 }
 0xa43   : > { %v10841_v16 = vpop.f32.mrb[146].mxu0 }
 0xa44   : > { %v4582_v20 = vpop.f32.mrb[147].mxu0 }
 0xa45   : > { %10871 = vmatprep.mubr.msk.f32.mxu1 %vm2485_vm8, %v4582_v20 }
 0xa46   : > { %10872 = vmatmul.mubr.msk.f32.gmra.mrb[114].mxu1 %vm2485_vm8, %v10841_v16 }
 0xa47   : > { %v10844_v10 = vpop.f32.mrb[148].mxu0 }
 0xa48   : > { %v4592_v36 = vpop.f32.mrb[149].mxu0 }
 0xa49   : > { %10874 = vmatprep.mubr.msk.f32.mxu1 %vm2485_vm8, %v4592_v36 }
 0xa4a   : > { %10875 = vmatmul.mubr.msk.f32.gmra.mrb[116].mxu1 %vm2485_vm8, %v10844_v10 }
 0xa4b   : > { %v10847_v18 = vpop.f32.mrb[150].mxu0 }
 0xa4c   : > { %v4602_v56 = vpop.f32.mrb[151].mxu0 }
 0xa4d   : > { %10877 = vmatprep.mubr.msk.f32.mxu1 %vm2485_vm8, %v4602_v56 }
 0xa4e   : > { %10878 = vmatmul.mubr.msk.f32.gmra.mrb[118].mxu1 %vm2485_vm8, %v10847_v18 }
 0xa4f   : > { %10888 = vmatprep.mubr.msk.f32.mxu1 %vm2485_vm8, %v14472_v37 }
 0xa52   : > { %10889 = vmatmul.mubr.msk.f32.vlgmr.msra.gmra.mrb[104].mxu1 %vm2485_vm8, %v14470_v24 }
 0xa53   : > { %10891 = vmatprep.mubr.msk.f32.mxu1 %vm2485_vm8, %v14476_v14  ;;  %11659 = vmatpush3.bf16.msra.mxu1 %v11656_v19 }
 0xa54   : > { %11661 = vmatprep.subr.bf16.mxu1 %v11660_v45 }
 0xa56   : > { %10892 = vmatmul.mubr.msk.f32.gmra.mrb[106].mxu1 %vm2485_vm8, %v14474_v6 }
 0xa57   : > { %10894 = vmatprep.mubr.msk.f32.mxu1 %vm2485_vm8, %v14480_v15  ;;  %11663 = vmatpush3.bf16.msra.mxu1 %v11660_v45  ;;  %v11668_v45 = vpack.c.bf16 %v5529_v9, %v5528_v47 }
 0xa58   : > { %11665 = vmatprep.subr.bf16.mxu1 %v11664_v59 }
 0xa5a   : > { %10895 = vmatmul.mubr.msk.f32.gmra.mrb[108].mxu1 %vm2485_vm8, %v14478_v8 }
 0xa5b   : > { %10897 = vmatprep.mubr.msk.f32.mxu1 %vm2485_vm8, %v14484_v40 }
 0xa5e   : > { %10898 = vmatmul.mubr.msk.f32.gmra.mrb[110].mxu1 %vm2485_vm8, %v14482_v23 }
 0xa5f   : > { %10900 = vmatprep.mubr.msk.f32.mxu1 %vm2485_vm8, %v14488_v4 }
 0xa62   : > { %10901 = vmatmul.mubr.msk.f32.gmra.mrb[112].mxu1 %vm2485_vm8, %v14486_v28 }
 0xa63   : > { %10903 = vmatprep.mubr.msk.f32.mxu1 %vm2485_vm8, %v14492_v62 }
 0xa66   : > { %10904 = vmatmul.mubr.msk.f32.gmra.mrb[114].mxu1 %vm2485_vm8, %v14490_v11 }
 0xa67   : > { %10906 = vmatprep.mubr.msk.f32.mxu1 %vm2485_vm8, %v14496_v39 }
 0xa6a   : > { %10907 = vmatmul.mubr.msk.f32.gmra.mrb[116].mxu1 %vm2485_vm8, %v14494_v12 }
 0xa6b   : > { %10909 = vmatprep.mubr.msk.f32.mxu1 %vm2485_vm8, %v14500_v34 }
 0xa6e   : > { %10910 = vmatmul.mubr.msk.f32.gmra.mrb[118].mxu1 %vm2485_vm8, %v14498_v30 }
 0xa6f   : > { %10952 = vmatprep.mubr.msk.f32.mxu1 %vm2485_vm8, %v14510_v54  ;;  %v14668_v54 = vld [vmem:[%s16046_s9 + $0xa] ss:$0 sm:$0xff] }
 0xa72   : > { %10953 = vmatmul.mubr.msk.f32.vlgmr.msra.gmra.mrb[120].mxu1 %vm2485_vm8, %v14508_v1 }
 0xa73   : > { %10955 = vmatprep.mubr.msk.f32.mxu1 %vm2485_vm8, %v4542_v3  ;;  %11667 = vmatpush3.bf16.msra.mxu1 %v11664_v59 }
 0xa74   : > { %11669 = vmatprep.subr.bf16.mxu1 %v11668_v45 }
 0xa76   : > { %10956 = vmatmul.mubr.msk.f32.gmra.mrb[122].mxu1 %vm2485_vm8, %v14522_v35 }
 0xa77   : > { %10958 = vmatprep.mubr.msk.f32.mxu1 %vm2485_vm8, %v4552_v13  ;;  %11671 = vmatpush3.bf16.msra.mxu1 %v11668_v45  ;;  %v16297_v13 = vld [vmem:[#allocation50_spill] sm:$0xff] }
 0xa7a   : > { %10959 = vmatmul.mubr.msk.f32.gmra.mrb[124].mxu1 %vm2485_vm8, %v14527_v21 }
 0xa7b   : > { %10961 = vmatprep.mubr.msk.f32.mxu1 %vm2485_vm8, %v4562_v22  ;;  %v16301_v22 = vld [vmem:[#allocation60_spill] sm:$0xff] }
 0xa7e   : > { %10962 = vmatmul.mubr.msk.f32.gmra.mrb[126].mxu1 %vm2485_vm8, %v10835_v58 }
 0xa7f   : > { %10964 = vmatprep.mubr.msk.f32.mxu1 %vm2485_vm8, %v4572_v52 }
 0xa82   : > { %10965 = vmatmul.mubr.msk.f32.gmra.mrb[128].mxu1 %vm2485_vm8, %v10838_v46 }
 0xa83   : > { %10967 = vmatprep.mubr.msk.f32.mxu1 %vm2485_vm8, %v4582_v20  ;;  %v16296_v20 = vld [vmem:[#allocation52_spill] sm:$0xff] }
 0xa86   : > { %10968 = vmatmul.mubr.msk.f32.gmra.mrb[130].mxu1 %vm2485_vm8, %v10841_v16 }
 0xa87   : > { %10970 = vmatprep.mubr.msk.f32.mxu1 %vm2485_vm8, %v4592_v36 }
 0xa8a   : > { %10971 = vmatmul.mubr.msk.f32.gmra.mrb[132].mxu1 %vm2485_vm8, %v10844_v10  ;;  %v14659_v10 = vld [vmem:[%s16046_s9 + $0x13] ss:$0 sm:$0xff] }
 0xa8b   : > { %10973 = vmatprep.mubr.msk.f32.mxu1 %vm2485_vm8, %v4602_v56  ;;  %v5159_v56 = vld [vmem:[%s16042_s5 + $0x160] sm:$0xff]  ;;  %v5011_v58 = vadd.f32 %v14659_v10, %v16296_v20  ;;  %v5010_v3 = vadd.f32 %v14659_v10, %v16297_v13  ;;  %v5014_v46 = vadd.f32 %v14659_v10, %v16301_v22 }
 0xa8c   : > { %v11648_v59 = vpack.c.bf16 %v5160_v31, %v5159_v56 }
 0xa8e   : > { %10974 = vmatmul.mubr.msk.f32.gmra.mrb[134].mxu1 %vm2485_vm8, %v10847_v18  ;;  %11649 = vmatprep.subr.bf16.mxu0 %v11648_v59  ;;  %v5162_v18 = vld [vmem:[%s16042_s5 + $0x178] sm:$0xff] }
 0xa8f   : > { %10984 = vmatprep.mubr.msk.f32.mxu1 %vm2485_vm8, %v14472_v37  ;;  %11651 = vmatpush3.bf16.msra.mxu0 %v11648_v59  ;;  %v11652_v36 = vpack.c.bf16 %v5162_v18, %v5161_v7  ;;  %v16302_v7 = vld [vmem:[#allocation72_spill] sm:$0xff] }
 0xa90   : > { %v5017_v18 = vadd.f32 %v14659_v10, %v16302_v7 }
 0xa91   : > { %11653 = vmatprep.subr.bf16.mxu0 %v11652_v36 }
 0xa92   : > { %10985 = vmatmul.mubr.msk.f32.vlgmr.msra.gmra.mrb[120].mxu1 %vm2485_vm8, %v14470_v24 }
 0xa93   : > { %10987 = vmatprep.mubr.msk.f32.mxu1 %vm2485_vm8, %v14476_v14  ;;  %11655 = vmatpush3.bf16.msra.mxu0 %v11652_v36 }
 0xa96   : > { %10988 = vmatmul.mubr.msk.f32.gmra.mrb[122].mxu1 %vm2485_vm8, %v14474_v6  ;;  %v16299_v6 = vld [vmem:[#allocation54_spill] sm:$0xff] }
 0xa97   : > { %10990 = vmatprep.mubr.msk.f32.mxu1 %vm2485_vm8, %v14480_v15  ;;  %v5012_v14 = vadd.f32 %v14659_v10, %v16299_v6 }
 0xa9a   : > { %10991 = vmatmul.mubr.msk.f32.gmra.mrb[124].mxu1 %vm2485_vm8, %v14478_v8 }
 0xa9b   : > { %10993 = vmatprep.mubr.msk.f32.mxu1 %vm2485_vm8, %v14484_v40 }
 0xa9e   : > { %10994 = vmatmul.mubr.msk.f32.gmra.mrb[126].mxu1 %vm2485_vm8, %v14482_v23 }
 0xa9f   : > { %10996 = vmatprep.mubr.msk.f32.mxu1 %vm2485_vm8, %v14488_v4 }
 0xaa2   : > { %10997 = vmatmul.mubr.msk.f32.gmra.mrb[128].mxu1 %vm2485_vm8, %v14486_v28 }
 0xaa3   : > { %10999 = vmatprep.mubr.msk.f32.mxu1 %vm2485_vm8, %v14492_v62  ;;  %v16300_v62 = vld [vmem:[#allocation64_spill] sm:$0xff] }
 0xaa6   : > { %11000 = vmatmul.mubr.msk.f32.gmra.mrb[130].mxu1 %vm2485_vm8, %v14490_v11 }
 0xaa7   : > { %11002 = vmatprep.mubr.msk.f32.mxu1 %vm2485_vm8, %v14496_v39  ;;  %v16298_v39 = vld [vmem:[#allocation56_spill] sm:$0xff] }
 0xaa8   : > { %v5013_v24 = vadd.f32 %v14659_v10, %v16298_v39 }
 0xaaa   : > { %11003 = vmatmul.mubr.msk.f32.gmra.mrb[132].mxu1 %vm2485_vm8, %v14494_v12  ;;  %v5015_v12 = vadd.f32 %v14659_v10, %v16300_v62 }
 0xaab   : > { %11005 = vmatprep.mubr.msk.f32.mxu1 %vm2485_vm8, %v14500_v34 }
 0xaae   : > { %11006 = vmatmul.mubr.msk.f32.gmra.mrb[134].mxu1 %vm2485_vm8, %v14498_v30 }
 0xb25   : > { %v10890_v35 = vpop.f32.mrb[104].mxu1 }
 0xb26   : > { %v5027_v1 = vmul.f32 %v10890_v35, %v5011_v58  ;;  %v4926_v34 = vpop.f32.mrb[105].mxu1  ;;  %v16303_v58 = vld [vmem:[#allocation68_spill] sm:$0xff] }
 0xb27   : > { %v5026_v30 = vmul.f32 %v5010_v3, %v4926_v34  ;;  %v5016_v13 = vadd.f32 %v14659_v10, %v16303_v58 }
 0xb28   : > { %v14673_v37 = vadd.f32 %v14668_v54, %v5027_v1 }
 0xb29   : > { %v14678_v8 = vadd.f32 %v14668_v54, %v5026_v30  ;;  %v10893_v15 = vpop.f32.mrb[106].mxu1 }
 0xb2a   : > { %v5064_v23 = vsub.f32 0.0, %v14673_v37  ;;  %v5029_v40 = vmul.f32 %v10893_v15, %v5013_v24  ;;  %v4936_v28 = vpop.f32.mrb[107].mxu1 }
 0xb2b   : > { %v5063_v4 = vsub.f32 0.0, %v14678_v8  ;;  %v5028_v11 = vmul.f32 %v5012_v14, %v4936_v28  ;;  %v16304_v14 = vld [vmem:[#allocation80_spill] sm:$0xff] }
 0xb2c   : > { %v5081_v19 = vmul.f32 1.442695, %v5064_v23  ;;  %v14685_v21 = vadd.f32 %v14668_v54, %v5029_v40  ;;  %v5019_v15 = vadd.f32 %v14659_v10, %v16304_v14  ;;  %v16305_v28 = vld [vmem:[#allocation76_spill] sm:$0xff] }
 0xb2d   : > { %v5079_v52 = vmul.f32 1.442695, %v5063_v4  ;;  %v14690_v16 = vadd.f32 %v14668_v54, %v5028_v11  ;;  %v10896_v47 = vpop.f32.mrb[108].mxu1  ;;  %v5018_v4 = vadd.f32 %v14659_v10, %v16305_v28 }
 0xb2e   : > { %12181 = vpow2.f32 %v5081_v19  ;;  %v5066_v9 = vsub.f32 0.0, %v14685_v21  ;;  %v5031_v45 = vmul.f32 %v10896_v47, %v5015_v12  ;;  %v4946_v56 = vpop.f32.mrb[109].mxu1 }
 0xb2f   : > { %12183 = vpow2.f32 %v5079_v52  ;;  %v5065_v31 = vsub.f32 0.0, %v14690_v16  ;;  %v5030_v59 = vmul.f32 %v5014_v46, %v4946_v56 }
 0xb30   : > { %v5085_v36 = vmul.f32 1.442695, %v5066_v9  ;;  %v14697_v20 = vadd.f32 %v14668_v54, %v5031_v45  ;;  %v16306_v45 = vld [vmem:[#allocation88_spill] sm:$0xff] }
 0xb31   : > { %v5083_v3 = vmul.f32 1.442695, %v5065_v31  ;;  %v14702_v35 = vadd.f32 %v14668_v54, %v5030_v59  ;;  %v10899_v1 = vpop.f32.mrb[110].mxu1  ;;  %v5021_v56 = vadd.f32 %v14659_v10, %v16306_v45 }
 0xb32   : > { %12185 = vpow2.f32 %v5085_v36  ;;  %v5068_v34 = vsub.f32 0.0, %v14697_v20  ;;  %v5033_v30 = vmul.f32 %v10899_v1, %v5017_v18  ;;  %v4956_v39 = vpop.f32.mrb[111].mxu1  ;;  %v16307_v18 = vld [vmem:[#allocation84_spill] sm:$0xff] }
 0xb33   : > { %12187 = vpow2.f32 %v5083_v3  ;;  %v5067_v24 = vsub.f32 0.0, %v14702_v35  ;;  %v5032_v6 = vmul.f32 %v5016_v13, %v4956_v39  ;;  %v5020_v36 = vadd.f32 %v14659_v10, %v16307_v18  ;;  %v16310_v18 = vld [vmem:[#allocation100_spill] sm:$0xff] }
 0xb34   : > { %v5089_v23 = vmul.f32 1.442695, %v5068_v34  ;;  %v14709_v40 = vadd.f32 %v14668_v54, %v5033_v30 }
 0xb35   : > { %v5087_v11 = vmul.f32 1.442695, %v5067_v24  ;;  %v14714_v62 = vadd.f32 %v14668_v54, %v5032_v6  ;;  %v10902_v12 = vpop.f32.mrb[112].mxu1  ;;  %v16308_v6 = vld [vmem:[#allocation92_spill] sm:$0xff] }
 0xb36   : > { %12189 = vpow2.f32 %v5089_v23  ;;  %v5070_v19 = vsub.f32 0.0, %v14709_v40  ;;  %v5035_v22 = vmul.f32 %v10902_v12, %v5019_v15  ;;  %v4966_v46 = vpop.f32.mrb[113].mxu1  ;;  %v5022_v14 = vadd.f32 %v14659_v10, %v16308_v6 }
 0xb37   : > { %12191 = vpow2.f32 %v5087_v11  ;;  %v5069_v52 = vsub.f32 0.0, %v14714_v62  ;;  %v5034_v47 = vmul.f32 %v5018_v4, %v4966_v46  ;;  %v16309_v4 = vld [vmem:[#allocation96_spill] sm:$0xff] }
 0xb38   : > { %v12182_v9 = vpop.eup %12181  ;;  %v5093_v31 = vmul.f32 1.442695, %v5070_v19  ;;  %v14721_v59 = vadd.f32 %v14668_v54, %v5035_v22  ;;  %v5023_v11 = vadd.f32 %v14659_v10, %v16309_v4 }
 0xb39   : > { %v12184_v7 = vpop.eup %12183  ;;  %v5112_v58 = vadd.f32 1.0, %v12182_v9  ;;  %v5091_v13 = vmul.f32 1.442695, %v5069_v52  ;;  %v14726_v3 = vadd.f32 %v14668_v54, %v5034_v47  ;;  %v10905_v1 = vpop.f32.mrb[114].mxu1 }
 0xb3a   : > { %v5111_v34 = vadd.f32 1.0, %v12184_v7  ;;  %12193 = vpow2.f32 %v5093_v31  ;;  %v5072_v30 = vsub.f32 0.0, %v14721_v59  ;;  %v5037_v39 = vmul.f32 %v10905_v1, %v5021_v56  ;;  %v4976_v24 = vpop.f32.mrb[115].mxu1 }
 0xb3b   : > { %12195 = vrcp.f32 %v5112_v58  ;;  %v5071_v15 = vsub.f32 0.0, %v14726_v3  ;;  %v5036_v23 = vmul.f32 %v5020_v36, %v4976_v24  ;;  %v5024_v36 = vadd.f32 %v14659_v10, %v16310_v18 }
 0xb3c   : > { %v12186_v28 = vpop.eup %12185  ;;  %12197 = vrcp.f32 %v5111_v34  ;;  %v5097_v12 = vmul.f32 1.442695, %v5072_v30  ;;  %v14735_v19 = vadd.f32 %v14668_v54, %v5037_v39 }
 0xb3d   : > { %v12188_v22 = vpop.eup %12187  ;;  %v5114_v46 = vadd.f32 1.0, %v12186_v28  ;;  %12199 = vpow2.f32 %v5091_v13  ;;  %v5095_v52 = vmul.f32 1.442695, %v5071_v15  ;;  %v14738_v47 = vadd.f32 %v14668_v54, %v5036_v23  ;;  %v10908_v9 = vpop.f32.mrb[116].mxu1  ;;  %v16311_v13 = vld [vmem:[#allocation104_spill] sm:$0xff] }
 0xb3e   : > { %v5113_v45 = vadd.f32 1.0, %v12188_v22  ;;  %12201 = vpow2.f32 %v5097_v12  ;;  %v5074_v56 = vsub.f32 0.0, %v14735_v19  ;;  %v5039_v31 = vmul.f32 %v10908_v9, %v5023_v11  ;;  %v4986_v7 = vpop.f32.mrb[117].mxu1 }
 0xb3f   : > { %12203 = vrcp.f32 %v5114_v46  ;;  %v5073_v58 = vsub.f32 0.0, %v14738_v47  ;;  %v5038_v1 = vmul.f32 %v5022_v14, %v4986_v7  ;;  %v5025_v30 = vadd.f32 %v14659_v10, %v16311_v13 }
 0xb40   : > { %v12190_v34 = vpop.eup %12189  ;;  %12205 = vrcp.f32 %v5113_v45  ;;  %v5101_v39 = vmul.f32 1.442695, %v5074_v56  ;;  %v14747_v24 = vadd.f32 %v14668_v54, %v5039_v31 }
 0xb41   : > { %v12192_v6 = vpop.eup %12191  ;;  %v5116_v15 = vadd.f32 1.0, %v12190_v34  ;;  %12207 = vpow2.f32 %v5095_v52  ;;  %v5099_v23 = vmul.f32 1.442695, %v5073_v58  ;;  %v14750_v28 = vadd.f32 %v14668_v54, %v5038_v1  ;;  %v10911_v4 = vpop.f32.mrb[118].mxu1 }
 0xb42   : > { %v5115_v11 = vadd.f32 1.0, %v12192_v6  ;;  %12209 = vpow2.f32 %v5101_v39  ;;  %v5076_v14 = vsub.f32 0.0, %v14747_v24  ;;  %v5041_v12 = vmul.f32 %v10911_v4, %v5025_v30  ;;  %v4996_v22 = vpop.f32.mrb[119].mxu1 }
 0xb43   : > { %12211 = vrcp.f32 %v5116_v15  ;;  %v5075_v10 = vsub.f32 0.0, %v14750_v28  ;;  %v5040_v46 = vmul.f32 %v5024_v36, %v4996_v22 }
 0xb44   : > { %v12194_v9 = vpop.eup %12193  ;;  %12213 = vrcp.f32 %v5115_v11  ;;  %v5105_v45 = vmul.f32 1.442695, %v5076_v14  ;;  %v14755_v52 = vadd.f32 %v14668_v54, %v5041_v12 }
 0xb45   : > { %v12196_v56 = vpop.eup %12195  ;;  %v5118_v31 = vadd.f32 1.0, %v12194_v9  ;;  %12215 = vpow2.f32 %v5099_v23  ;;  %v5103_v7 = vmul.f32 1.442695, %v5075_v10  ;;  %v14758_v18 = vadd.f32 %v14668_v54, %v5040_v46 }
 0xb46   : > { %v12198_v58 = vpop.eup %12197  ;;  %12217 = vpow2.f32 %v5105_v45  ;;  %v5078_v1 = vsub.f32 0.0, %v14755_v52  ;;  %v5144_v39 = vmul.f32 %v12196_v56, %v14673_v37 }
 0xb47   : > { %v12200_v34 = vpop.eup %12199  ;;  %v5143_v36 = vmul.f32 %v12198_v58, %v14678_v8  ;;  %v5077_v13 = vsub.f32 0.0, %v14758_v18  ;;  %12219 = vpow2.f32 %v5103_v7 }
 0xb48   : > { %v12202_v30 = vpop.eup %12201  ;;  %v5117_v6 = vadd.f32 1.0, %v12200_v34  ;;  %v5109_v15 = vmul.f32 1.442695, %v5078_v1  ;;  %12221 = vrcp.f32 %v5118_v31 }
 0xb49   : > { %v12204_v23 = vpop.eup %12203  ;;  %v5120_v4 = vadd.f32 1.0, %v12202_v30  ;;  %v5107_v54 = vmul.f32 1.442695, %v5077_v13  ;;  %10920 = vmatprep.mubr.msk.f32.mxu0 %vm2485_vm8, %v5143_v36 }
 0xb4a   : > { %v12206_v11 = vpop.eup %12205  ;;  %12223 = vrcp.f32 %v5117_v6  ;;  %10921 = vmatmul.mubr.msk.f32.vlgmr.msra.gmra.mrb[152].mxu0 %vm2485_vm8, %v5144_v39  ;;  %v5146_v37 = vmul.f32 %v12204_v23, %v14685_v21 }
 0xb4b   : > { %v12208_v14 = vpop.eup %12207  ;;  %v5145_v8 = vmul.f32 %v12206_v11, %v14690_v16  ;;  %12225 = vrcp.f32 %v5120_v4 }
 0xb4c   : > { %v12210_v12 = vpop.eup %12209  ;;  %v5119_v22 = vadd.f32 1.0, %v12208_v14  ;;  %12227 = vpow2.f32 %v5109_v15 }
 0xb4d   : > { %v12212_v10 = vpop.eup %12211  ;;  %v5122_v46 = vadd.f32 1.0, %v12210_v12  ;;  %12229 = vpow2.f32 %v5107_v54  ;;  %10923 = vmatprep.mubr.msk.f32.mxu0 %vm2485_vm8, %v5145_v8 }
 0xb4e   : > { %v12214_v9 = vpop.eup %12213  ;;  %12231 = vrcp.f32 %v5119_v22  ;;  %10924 = vmatmul.mubr.msk.f32.gmra.mrb[154].mxu0 %vm2485_vm8, %v5146_v37  ;;  %v5148_v16 = vmul.f32 %v12212_v10, %v14697_v20 }
 0xb4f   : > { %v12216_v45 = vpop.eup %12215  ;;  %v5147_v56 = vmul.f32 %v12214_v9, %v14702_v35  ;;  %12233 = vrcp.f32 %v5122_v46  ;;  %v14809_v9 = vld [vmem:[%s16046_s9 + $0x14] ss:$0 sm:$0xff] }
 0xb50   : > { %v12218_v31 = vpop.eup %12217  ;;  %v5121_v7 = vadd.f32 1.0, %v12216_v45  ;;  %v16312_v45 = vld [vmem:[#allocation53_spill] sm:$0xff] }
 0xb51   : > { %v5124_v21 = vadd.f32 1.0, %v12218_v31  ;;  %10926 = vmatprep.mubr.msk.f32.mxu0 %vm2485_vm8, %v5147_v56  ;;  %v12220_v58 = vpop.eup %12219  ;;  %v5362_v56 = vadd.f32 %v14809_v9, %v16312_v45  ;;  %v16313_v31 = vld [vmem:[#allocation51_spill] sm:$0xff] }
 0xb52   : > { %12235 = vrcp.f32 %v5121_v7  ;;  %10927 = vmatmul.mubr.msk.f32.gmra.mrb[156].mxu0 %vm2485_vm8, %v5148_v16  ;;  %v12222_v1 = vpop.eup %12221  ;;  %v5123_v34 = vadd.f32 1.0, %v12220_v58  ;;  %v5361_v16 = vadd.f32 %v14809_v9, %v16313_v31 }
 0xb53   : > { %12237 = vrcp.f32 %v5124_v21  ;;  %v5150_v20 = vmul.f32 %v12222_v1, %v14709_v40  ;;  %v14818_v21 = vld [vmem:[%s16046_s9 + $0xb] ss:$0 sm:$0xff] }
 0xb54   : > { %v12224_v36 = vpop.eup %12223  ;;  %12239 = vrcp.f32 %v5123_v34 }
 0xb55   : > { %v12226_v13 = vpop.eup %12225  ;;  %v5149_v30 = vmul.f32 %v12224_v36, %v14714_v62  ;;  %v16314_v36 = vld [vmem:[#allocation58_spill] sm:$0xff] }
 0xb56   : > { %v12228_v35 = vpop.eup %12227  ;;  %v5152_v54 = vmul.f32 %v12226_v13, %v14721_v59  ;;  %v5364_v13 = vadd.f32 %v14809_v9, %v16314_v36 }
 0xb57   : > { %v12230_v39 = vpop.eup %12229  ;;  %v5126_v6 = vadd.f32 1.0, %v12228_v35  ;;  %10929 = vmatprep.mubr.msk.f32.mxu0 %vm2485_vm8, %v5149_v30  ;;  %v16315_v35 = vld [vmem:[#allocation55_spill] sm:$0xff] }
 0xb58   : > { %v12232_v15 = vpop.eup %12231  ;;  %v5125_v23 = vadd.f32 1.0, %v12230_v39  ;;  %10930 = vmatmul.mubr.msk.f32.gmra.mrb[158].mxu0 %vm2485_vm8, %v5150_v20  ;;  %v5363_v20 = vadd.f32 %v14809_v9, %v16315_v35 }
 0xb59   : > { %v5151_v4 = vmul.f32 %v12232_v15, %v14726_v3  ;;  %12241 = vrcp.f32 %v5126_v6  ;;  %v12234_v11 = vpop.eup %12233 }
 0xb5a   : > { %12243 = vrcp.f32 %v5125_v23  ;;  %v5154_v8 = vmul.f32 %v12234_v11, %v14735_v19  ;;  %v5824_v19 = vld [vmem:[%s16042_s5 + $0x1c0] sm:$0xff] }
 0xb5b   : > { %10932 = vmatprep.mubr.msk.f32.mxu0 %vm2485_vm8, %v5151_v4 }
 0xb5c   : > { %v12236_v62 = vpop.eup %12235  ;;  %10933 = vmatmul.mubr.msk.f32.gmra.mrb[160].mxu0 %vm2485_vm8, %v5152_v54 }
 0xb5d   : > { %v5153_v40 = vmul.f32 %v12236_v62, %v14738_v47  ;;  %v12238_v14 = vpop.eup %12237  ;;  %v16316_v62 = vld [vmem:[#allocation66_spill] sm:$0xff] }
 0xb5e   : > { %v12240_v12 = vpop.eup %12239  ;;  %v5156_v59 = vmul.f32 %v12238_v14, %v14747_v24  ;;  %v5825_v24 = vld [vmem:[%s16042_s5 + $0x1c8] sm:$0xff] }
 0xb5f   : > { %10935 = vmatprep.mubr.msk.f32.mxu0 %vm2485_vm8, %v5153_v40  ;;  %v5155_v3 = vmul.f32 %v12240_v12, %v14750_v28  ;;  %v11672_v28 = vpack.c.bf16 %v5825_v24, %v5824_v19  ;;  %v5366_v40 = vadd.f32 %v14809_v9, %v16316_v62  ;;  %v16317_v12 = vld [vmem:[#allocation62_spill] sm:$0xff] }
 0xb60   : > { %10936 = vmatmul.mubr.msk.f32.gmra.mrb[162].mxu0 %vm2485_vm8, %v5154_v8 }
 0xb61   : > { %10938 = vmatprep.mubr.msk.f32.mxu0 %vm2485_vm8, %v5155_v3  ;;  %11673 = vmatprep.subr.bf16.mxu1 %v11672_v28  ;;  %v5365_v3 = vadd.f32 %v14809_v9, %v16317_v12 }
 0xb62   : > { %11675 = vmatpush3.bf16.msra.mxu1 %v11672_v28 }
 0xb63   : > { %v12242_v37 = vpop.eup %12241 }
 0xb64   : > { %v12244_v22 = vpop.eup %12243  ;;  %10939 = vmatmul.mubr.msk.f32.gmra.mrb[164].mxu0 %vm2485_vm8, %v5156_v59  ;;  %v5158_v10 = vmul.f32 %v12242_v37, %v14755_v52  ;;  %v5827_v52 = vld [vmem:[%s16042_s5 + $0x1d8] sm:$0xff] }
 0xb65   : > { %v5157_v47 = vmul.f32 %v12244_v22, %v14758_v18  ;;  %v5826_v18 = vld [vmem:[%s16042_s5 + $0x1d0] sm:$0xff] }
 0xb66   : > { %v11676_v46 = vpack.c.bf16 %v5827_v52, %v5826_v18 }
 0xb67   : > { %10941 = vmatprep.mubr.msk.f32.mxu0 %vm2485_vm8, %v5157_v47 }
 0xb68   : > { %10942 = vmatmul.mubr.msk.f32.gmra.mrb[166].mxu0 %vm2485_vm8, %v5158_v10  ;;  %11677 = vmatprep.subr.bf16.mxu1 %v11676_v46 }
 0xb69   : > { %11679 = vmatpush3.bf16.msra.mxu1 %v11676_v46 }
 0xb6a   : > { %11737 = vmatprep.subr.bf16.mxu1 %v11736_v26 }
 0xc1d   : > { %v10922_v7 = vpop.f32.mrb[152].mxu0 }
 0xc1e   : > { %v5378_v58 = vmul.f32 %v10922_v7, %v5362_v56  ;;  %v5277_v1 = vpop.f32.mrb[153].mxu0  ;;  %v16318_v56 = vld [vmem:[#allocation74_spill] sm:$0xff] }
 0xc1f   : > { %v5377_v34 = vmul.f32 %v5361_v16, %v5277_v1  ;;  %v5368_v31 = vadd.f32 %v14809_v9, %v16318_v56  ;;  %v16319_v7 = vld [vmem:[#allocation70_spill] sm:$0xff] }
 0xc20   : > { %v14823_v30 = vadd.f32 %v14818_v21, %v5378_v58  ;;  %v5367_v58 = vadd.f32 %v14809_v9, %v16319_v7 }
 0xc21   : > { %v14828_v39 = vadd.f32 %v14818_v21, %v5377_v34  ;;  %v10925_v6 = vpop.f32.mrb[154].mxu0 }
 0xc22   : > { %v5415_v15 = vsub.f32 0.0, %v14823_v30  ;;  %v5380_v23 = vmul.f32 %v10925_v6, %v5364_v13  ;;  %v5287_v4 = vpop.f32.mrb[155].mxu0 }
 0xc23   : > { %v5414_v54 = vsub.f32 0.0, %v14828_v39  ;;  %v5379_v11 = vmul.f32 %v5363_v20, %v5287_v4 }
 0xc24   : > { %v5432_v14 = vmul.f32 1.442695, %v5415_v15  ;;  %v14835_v8 = vadd.f32 %v14818_v21, %v5380_v23  ;;  %v16320_v15 = vld [vmem:[#allocation82_spill] sm:$0xff] }
 0xc25   : > { %v5430_v59 = vmul.f32 1.442695, %v5414_v54  ;;  %v14840_v37 = vadd.f32 %v14818_v21, %v5379_v11  ;;  %v10928_v22 = vpop.f32.mrb[156].mxu0  ;;  %v5370_v23 = vadd.f32 %v14809_v9, %v16320_v15  ;;  %v16321_v54 = vld [vmem:[#allocation78_spill] sm:$0xff] }
 0xc26   : > { %12245 = vpow2.f32 %v5432_v14  ;;  %v5417_v47 = vsub.f32 0.0, %v14835_v8  ;;  %v5382_v10 = vmul.f32 %v10928_v22, %v5366_v40  ;;  %v5297_v19 = vpop.f32.mrb[157].mxu0  ;;  %v5369_v11 = vadd.f32 %v14809_v9, %v16321_v54 }
 0xc27   : > { %12247 = vpow2.f32 %v5430_v59  ;;  %v5416_v24 = vsub.f32 0.0, %v14840_v37  ;;  %v5381_v28 = vmul.f32 %v5365_v3, %v5297_v19 }
 0xc28   : > { %v5436_v18 = vmul.f32 1.442695, %v5417_v47  ;;  %v14845_v52 = vadd.f32 %v14818_v21, %v5382_v10 }
 0xc29   : > { %v5434_v46 = vmul.f32 1.442695, %v5416_v24  ;;  %v14848_v45 = vadd.f32 %v14818_v21, %v5381_v28  ;;  %v16322_v24 = vld [vmem:[#allocation90_spill] sm:$0xff] }
 0xc2a   : > { %12249 = vpow2.f32 %v5436_v18  ;;  %v5419_v16 = vsub.f32 0.0, %v14845_v52  ;;  %v5372_v28 = vadd.f32 %v14809_v9, %v16322_v24  ;;  %v16326_v24 = vld [vmem:[#allocation106_spill] sm:$0xff] }
 0xc2b   : > { %12251 = vpow2.f32 %v5434_v46  ;;  %v5418_v1 = vsub.f32 0.0, %v14848_v45  ;;  %v10931_v34 = vpop.f32.mrb[158].mxu0 }
 0xc2c   : > { %v5440_v36 = vmul.f32 1.442695, %v5419_v16  ;;  %v5384_v13 = vmul.f32 %v10931_v34, %v5368_v31  ;;  %v5307_v35 = vpop.f32.mrb[159].mxu0  ;;  %v16323_v31 = vld [vmem:[#allocation86_spill] sm:$0xff] }
 0xc2d   : > { %v5438_v20 = vmul.f32 1.442695, %v5418_v1  ;;  %v5383_v6 = vmul.f32 %v5367_v58, %v5307_v35  ;;  %v5371_v16 = vadd.f32 %v14809_v9, %v16323_v31 }
 0xc2e   : > { %12253 = vpow2.f32 %v5440_v36  ;;  %v14859_v4 = vadd.f32 %v14818_v21, %v5384_v13  ;;  %v16324_v36 = vld [vmem:[#allocation98_spill] sm:$0xff] }
 0xc2f   : > { %12255 = vpow2.f32 %v5438_v20  ;;  %v14864_v62 = vadd.f32 %v14818_v21, %v5383_v6  ;;  %v10934_v40 = vpop.f32.mrb[160].mxu0  ;;  %v5374_v13 = vadd.f32 %v14809_v9, %v16324_v36 }
 0xc30   : > { %v12246_v14 = vpop.eup %12245  ;;  %v5421_v12 = vsub.f32 0.0, %v14859_v4  ;;  %v5386_v3 = vmul.f32 %v10934_v40, %v5370_v23  ;;  %v5317_v59 = vpop.f32.mrb[161].mxu0 }
 0xc31   : > { %v12248_v22 = vpop.eup %12247  ;;  %v5463_v47 = vadd.f32 1.0, %v12246_v14  ;;  %v5420_v10 = vsub.f32 0.0, %v14864_v62  ;;  %v5385_v19 = vmul.f32 %v5369_v11, %v5317_v59 }
 0xc32   : > { %v5462_v18 = vadd.f32 1.0, %v12248_v22  ;;  %v5444_v46 = vmul.f32 1.442695, %v5421_v12  ;;  %v14871_v56 = vadd.f32 %v14818_v21, %v5386_v3  ;;  %v16325_v3 = vld [vmem:[#allocation94_spill] sm:$0xff] }
 0xc33   : > { %12257 = vrcp.f32 %v5463_v47  ;;  %v5442_v7 = vmul.f32 1.442695, %v5420_v10  ;;  %v14876_v58 = vadd.f32 %v14818_v21, %v5385_v19  ;;  %v10937_v1 = vpop.f32.mrb[162].mxu0  ;;  %v5373_v59 = vadd.f32 %v14809_v9, %v16325_v3 }
 0xc34   : > { %v12250_v34 = vpop.eup %12249  ;;  %12259 = vrcp.f32 %v5462_v18  ;;  %v5423_v35 = vsub.f32 0.0, %v14871_v56  ;;  %v5388_v20 = vmul.f32 %v10937_v1, %v5372_v28  ;;  %v5327_v6 = vpop.f32.mrb[163].mxu0  ;;  %v5376_v28 = vadd.f32 %v14809_v9, %v16326_v24 }
 0xc35   : > { %v12252_v15 = vpop.eup %12251  ;;  %v5465_v23 = vadd.f32 1.0, %v12250_v34  ;;  %12261 = vpow2.f32 %v5444_v46  ;;  %v5422_v54 = vsub.f32 0.0, %v14876_v58  ;;  %v5387_v11 = vmul.f32 %v5371_v16, %v5327_v6  ;;  %v16327_v6 = vld [vmem:[#allocation102_spill] sm:$0xff] }
 0xc36   : > { %v5464_v40 = vadd.f32 1.0, %v12252_v15  ;;  %12263 = vpow2.f32 %v5442_v7  ;;  %v5448_v14 = vmul.f32 1.442695, %v5423_v35  ;;  %v14883_v12 = vadd.f32 %v14818_v21, %v5388_v20 }
 0xc37   : > { %12265 = vrcp.f32 %v5465_v23  ;;  %v5446_v22 = vmul.f32 1.442695, %v5422_v54  ;;  %v14888_v47 = vadd.f32 %v14818_v21, %v5387_v11  ;;  %v10940_v10 = vpop.f32.mrb[164].mxu0  ;;  %v5375_v15 = vadd.f32 %v14809_v9, %v16327_v6 }
 0xc38   : > { %v12254_v19 = vpop.eup %12253  ;;  %12267 = vrcp.f32 %v5464_v40  ;;  %v5425_v18 = vsub.f32 0.0, %v14883_v12  ;;  %v5390_v46 = vmul.f32 %v10940_v10, %v5374_v13  ;;  %v5337_v31 = vpop.f32.mrb[165].mxu0 }
 0xc39   : > { %v12256_v16 = vpop.eup %12255  ;;  %v5467_v7 = vadd.f32 1.0, %v12254_v19  ;;  %12269 = vpow2.f32 %v5448_v14  ;;  %v5424_v1 = vsub.f32 0.0, %v14888_v47  ;;  %v5389_v34 = vmul.f32 %v5373_v59, %v5337_v31 }
 0xc3a   : > { %v5466_v36 = vadd.f32 1.0, %v12256_v16  ;;  %12271 = vpow2.f32 %v5446_v22  ;;  %v5452_v35 = vmul.f32 1.442695, %v5425_v18  ;;  %v14895_v20 = vadd.f32 %v14818_v21, %v5390_v46 }
 0xc3b   : > { %12273 = vrcp.f32 %v5467_v7  ;;  %v5450_v23 = vmul.f32 1.442695, %v5424_v1  ;;  %v14900_v13 = vadd.f32 %v14818_v21, %v5389_v34  ;;  %v10943_v54 = vpop.f32.mrb[166].mxu0 }
 0xc3c   : > { %12275 = vrcp.f32 %v5466_v36  ;;  %v5427_v11 = vsub.f32 0.0, %v14895_v20  ;;  %v5392_v40 = vmul.f32 %v10943_v54, %v5376_v28  ;;  %v5347_v14 = vpop.f32.mrb[167].mxu0 }
 0xc3d   : > { %v12258_v3 = vpop.eup %12257  ;;  %12277 = vpow2.f32 %v5452_v35  ;;  %v5426_v59 = vsub.f32 0.0, %v14900_v13  ;;  %v5391_v22 = vmul.f32 %v5375_v15, %v5347_v14  ;;  %v16328_v15 = vld [vmem:[#allocation123_spill] sm:$0xff] }
 0xc3e   : > { %v12260_v10 = vpop.eup %12259  ;;  %v5495_v19 = vmul.f32 %v12258_v3, %v14823_v30  ;;  %12279 = vpow2.f32 %v5450_v23  ;;  %v5456_v9 = vmul.f32 1.442695, %v5427_v11  ;;  %v14906_v24 = vadd.f32 %v14818_v21, %v5392_v40 }
 0xc3f   : > { %v12262_v18 = vpop.eup %12261  ;;  %v5494_v46 = vmul.f32 %v12260_v10, %v14828_v39  ;;  %v5454_v31 = vmul.f32 1.442695, %v5426_v59  ;;  %v14910_v28 = vadd.f32 %v14818_v21, %v5391_v22  ;;  %v16329_v59 = vld [vmem:[#allocation124_spill] sm:$0xff] }
 0xc40   : > { %v12264_v16 = vpop.eup %12263  ;;  %v5469_v7 = vadd.f32 1.0, %v12262_v18  ;;  %12281 = vpow2.f32 %v5456_v9  ;;  %v5429_v1 = vsub.f32 0.0, %v14906_v24  ;;  %v14918_v39 = vadd.f32 %v5495_v19, %v16328_v15  ;;  %v16330_v19 = vld [vmem:[#allocation125_spill] sm:$0xff] }
 0xc41   : > { %v12266_v34 = vpop.eup %12265  ;;  %v14914_v30 = vadd.f32 %v5494_v46, %v13904_v29  ;;  %v5468_v36 = vadd.f32 1.0, %v12264_v16  ;;  %12283 = vpow2.f32 %v5454_v31  ;;  %v5428_v35 = vsub.f32 0.0, %v14910_v28 }
 0xc42   : > { %v12268_v6 = vpop.eup %12267  ;;  %v5497_v21 = vmul.f32 %v12266_v34, %v14835_v8  ;;  %12285 = vrcp.f32 %v5469_v7  ;;  %v5460_v23 = vmul.f32 1.442695, %v5429_v1  ;;  %v16331_v7 = vld [vmem:[#allocation126_spill] sm:$0xff] }
 0xc43   : > { %v12270_v54 = vpop.eup %12269  ;;  %v5496_v11 = vmul.f32 %v12268_v6, %v14840_v37  ;;  %12287 = vrcp.f32 %v5468_v36  ;;  %v5458_v40 = vmul.f32 1.442695, %v5428_v35  ;;  %11016 = vmatprep.mubr.msk.f32.mxu1 %vm2485_vm8, %v14914_v30  ;;  %v16332_v35 = vld [vmem:[#allocation127_spill] sm:$0xff] }
 0xc44   : > { %v12272_v29 = vpop.eup %12271  ;;  %v5471_v14 = vadd.f32 1.0, %v12270_v54  ;;  %12289 = vpow2.f32 %v5460_v23  ;;  %11017 = vmatmul.mubr.msk.f32.vlgmr.msra.gmra.mrb[120].mxu1 %vm2485_vm8, %v14918_v39  ;;  %v14930_v37 = vadd.f32 %v5497_v21, %v16330_v19 }
 0xc45   : > { %v12274_v3 = vpop.eup %12273  ;;  %v14927_v22 = vadd.f32 %v5496_v11, %v16329_v59  ;;  %v5470_v8 = vadd.f32 1.0, %v12272_v29  ;;  %12291 = vpow2.f32 %v5458_v40  ;;  %v16333_v59 = vld [vmem:[#allocation128_spill] sm:$0xff]  ;;  %11739 = vmatpush3.bf16.msra.mxu1 %v11736_v26 }
 0xc46   : > { %v12276_v10 = vpop.eup %12275  ;;  %v5499_v9 = vmul.f32 %v12274_v3, %v14845_v52  ;;  %12293 = vrcp.f32 %v5471_v14 }
 0xc47   : > { %v12278_v18 = vpop.eup %12277  ;;  %v5498_v46 = vmul.f32 %v12276_v10, %v14848_v45  ;;  %12295 = vrcp.f32 %v5470_v8  ;;  %11019 = vmatprep.mubr.msk.f32.mxu1 %vm2485_vm8, %v14927_v22 }
 0xc48   : > { %v12280_v31 = vpop.eup %12279  ;;  %v5473_v16 = vadd.f32 1.0, %v12278_v18  ;;  %11020 = vmatmul.mubr.msk.f32.gmra.mrb[122].mxu1 %vm2485_vm8, %v14930_v37  ;;  %v14942_v52 = vadd.f32 %v5499_v9, %v16332_v35  ;;  %v16335_v9 = vld [vmem:[#allocation129_spill] sm:$0xff] }
 0xc49   : > { %v14939_v1 = vadd.f32 %v5498_v46, %v16331_v7  ;;  %v5472_v34 = vadd.f32 1.0, %v12280_v31  ;;  %v16337_v31 = vld [vmem:[#allocation130_spill] sm:$0xff] }
 0xc4a   : > { %v12282_v36 = vpop.eup %12281  ;;  %12297 = vrcp.f32 %v5473_v16 }
 0xc4b   : > { %v12284_v6 = vpop.eup %12283  ;;  %12299 = vrcp.f32 %v5472_v34  ;;  %v5475_v45 = vadd.f32 1.0, %v12282_v36  ;;  %11022 = vmatprep.mubr.msk.f32.mxu1 %vm2485_vm8, %v14939_v1  ;;  %v16339_v34 = vld [vmem:[#allocation131_spill] sm:$0xff] }
 0xc4c   : > { %v12286_v15 = vpop.eup %12285  ;;  %v5474_v21 = vadd.f32 1.0, %v12284_v6  ;;  %11023 = vmatmul.mubr.msk.f32.gmra.mrb[124].mxu1 %vm2485_vm8, %v14942_v52 }
 0xc4d   : > { %v12288_v23 = vpop.eup %12287  ;;  %v5501_v54 = vmul.f32 %v12286_v15, %v14859_v4  ;;  %12301 = vrcp.f32 %v5475_v45  ;;  %v16341_v45 = vld [vmem:[#allocation132_spill] sm:$0xff] }
 0xc4e   : > { %v12290_v11 = vpop.eup %12289  ;;  %v5500_v40 = vmul.f32 %v12288_v23, %v14864_v62  ;;  %12303 = vrcp.f32 %v5474_v21  ;;  %v16343_v21 = vld [vmem:[#allocation133_spill] sm:$0xff] }
 0xc4f   : > { %v12292_v29 = vpop.eup %12291  ;;  %v5477_v14 = vadd.f32 1.0, %v12290_v11  ;;  %v14954_v18 = vadd.f32 %v5501_v54, %v16335_v9  ;;  %v16345_v11 = vld [vmem:[#allocation134_spill] sm:$0xff] }
 0xc50   : > { %v12294_v3 = vpop.eup %12293  ;;  %v14951_v8 = vadd.f32 %v5500_v40, %v16333_v59  ;;  %v5476_v10 = vadd.f32 1.0, %v12292_v29 }
 0xc51   : > { %v12296_v19 = vpop.eup %12295  ;;  %16336 = vst [vmem:[#allocation50_spill] sm:$0xff] %v14954_v18  ;;  %v5503_v46 = vmul.f32 %v12294_v3, %v14871_v56  ;;  %12305 = vrcp.f32 %v5477_v14  ;;  %v16347_v14 = vld [vmem:[#allocation135_spill] sm:$0xff] }
 0xc52   : > { %16334 = vst [vmem:[#allocation52_spill] sm:$0xff] %v14951_v8  ;;  %v5502_v4 = vmul.f32 %v12296_v19, %v14876_v58  ;;  %12307 = vrcp.f32 %v5476_v10  ;;  %11025 = vmatprep.mubr.msk.f32.mxu1 %vm2485_vm8, %v14951_v8  ;;  %v16351_v19 = vld [vmem:[#allocation137_spill] sm:$0xff] }
 0xc53   : > { %11026 = vmatmul.mubr.msk.f32.gmra.mrb[126].mxu1 %vm2485_vm8, %v14954_v18  ;;  %v14966_v36 = vadd.f32 %v5503_v46, %v16339_v34  ;;  %v16353_v34 = vld [vmem:[#allocation4_spill] sm:$0xff] }
 0xc54   : > { %v12298_v62 = vpop.eup %12297  ;;  %v14963_v16 = vadd.f32 %v5502_v4, %v16337_v31  ;;  %v6193_v4 = vld [vmem:[%s16042_s5 + $0x1f0] sm:$0xff] }
 0xc55   : > { %v12300_v7 = vpop.eup %12299  ;;  %16340 = vst [vmem:[#allocation54_spill] sm:$0xff] %v14966_v36  ;;  %v5505_v56 = vmul.f32 %v12298_v62, %v14883_v12  ;;  %v6194_v62 = vld [vmem:[%s16042_s5 + $0x1f8] sm:$0xff] }
 0xc56   : > { %16338 = vst [vmem:[#allocation56_spill] sm:$0xff] %v14963_v16  ;;  %v5504_v35 = vmul.f32 %v12300_v7, %v14888_v47  ;;  %11028 = vmatprep.mubr.msk.f32.mxu1 %vm2485_vm8, %v14963_v16  ;;  %v11684_v31 = vpack.c.bf16 %v6194_v62, %v6193_v4  ;;  %v15023_v7 = vld [vmem:[%s16046_s9 + $0xc] ss:$0 sm:$0xff]  ;;  %v16367_v16 = vld [vmem:[#allocation17_spill] sm:$0xff] }
 0xc57   : > { %v12302_v58 = vpop.eup %12301  ;;  %11029 = vmatmul.mubr.msk.f32.gmra.mrb[128].mxu1 %vm2485_vm8, %v14966_v36  ;;  %v14978_v23 = vadd.f32 %v5505_v56, %v16343_v21  ;;  %v6043_v56 = vmul.f32 %v15023_v7, %v16353_v34  ;;  %v16357_v34 = vld [vmem:[#allocation7_spill] sm:$0xff] }
 0xc58   : > { %v12304_v6 = vpop.eup %12303  ;;  %v14975_v15 = vadd.f32 %v5504_v35, %v16341_v45  ;;  %v5507_v54 = vmul.f32 %v12302_v58, %v14895_v20  ;;  %v15030_v58 = vld [vmem:[%s16046_s9 + $0xd] ss:$0 sm:$0xff] }
 0xc59   : > { %16344 = vst [vmem:[#allocation60_spill] sm:$0xff] %v14978_v23  ;;  %v5506_v12 = vmul.f32 %v12304_v6, %v14900_v13  ;;  %v16349_v13 = vld [vmem:[#allocation136_spill] sm:$0xff]  ;;  %v16354_v6 = vld [vmem:[#allocation2_spill] sm:$0xff] }
 0xc5a   : > { %16342 = vst [vmem:[#allocation64_spill] sm:$0xff] %v14975_v15  ;;  %11031 = vmatprep.mubr.msk.f32.mxu1 %vm2485_vm8, %v14975_v15  ;;  %v14990_v3 = vadd.f32 %v5507_v54, %v16347_v14  ;;  %v6042_v45 = vmul.f32 %v15023_v7, %v16354_v6  ;;  %v16365_v15 = vld [vmem:[#allocation15_spill] sm:$0xff] }
 0xc5b   : > { %v12306_v47 = vpop.eup %12305  ;;  %v14985_v40 = vadd.f32 %v5506_v12, %v16345_v11  ;;  %11032 = vmatmul.mubr.msk.f32.gmra.mrb[130].mxu1 %vm2485_vm8, %v14978_v23  ;;  %v16355_v11 = vld [vmem:[#allocation5_spill] sm:$0xff] }
 0xc5c   : > { %v12308_v29 = vpop.eup %12307  ;;  %16348 = vst [vmem:[#allocation68_spill] sm:$0xff] %v14990_v3  ;;  %v5509_v59 = vmul.f32 %v12306_v47, %v14906_v24  ;;  %v6191_v24 = vld [vmem:[%s16042_s5 + $0x1e0] sm:$0xff] }
 0xc5d   : > { %16346 = vst [vmem:[#allocation72_spill] sm:$0xff] %v14985_v40  ;;  %v5508_v20 = vmul.f32 %v12308_v29, %v14910_v28  ;;  %11034 = vmatprep.mubr.msk.f32.mxu1 %vm2485_vm8, %v14985_v40  ;;  %v6192_v28 = vld [vmem:[%s16042_s5 + $0x1e8] sm:$0xff]  ;;  %v6045_v29 = vmul.f32 %v15023_v7, %v16355_v11 }
 0xc5e   : > { %v15002_v9 = vadd.f32 %v5509_v59, %v16351_v19  ;;  %v11680_v46 = vpack.c.bf16 %v6192_v28, %v6191_v24 }
 0xc5f   : > { %v14997_v10 = vadd.f32 %v5508_v20, %v16349_v13  ;;  %11035 = vmatmul.mubr.msk.f32.gmra.mrb[132].mxu1 %vm2485_vm8, %v14990_v3  ;;  %v16356_v20 = vld [vmem:[#allocation3_spill] sm:$0xff] }
 0xc60   : > { %16352 = vst [vmem:[#allocation76_spill] sm:$0xff] %v15002_v9  ;;  %11681 = vmatprep.subr.bf16.mxu0 %v11680_v46  ;;  %v6044_v13 = vmul.f32 %v15023_v7, %v16356_v20 }
 0xc61   : > { %16350 = vst [vmem:[#allocation80_spill] sm:$0xff] %v14997_v10  ;;  %11037 = vmatprep.mubr.msk.f32.mxu1 %vm2485_vm8, %v14997_v10  ;;  %11683 = vmatpush3.bf16.msra.mxu0 %v11680_v46 }
 0xc62   : > { %11685 = vmatprep.subr.bf16.mxu0 %v11684_v31 }
 0xc63   : > { %11038 = vmatmul.mubr.msk.f32.gmra.mrb[134].mxu1 %vm2485_vm8, %v15002_v9  ;;  %v16362_v9 = vld [vmem:[#allocation10_spill] sm:$0xff] }
 0xc65   : > { %11687 = vmatpush3.bf16.msra.mxu0 %v11684_v31 }
 0xd17   : > { %v11018_v35 = vpop.f32.mrb[120].mxu1 }
 0xd18   : > { %v6059_v21 = vadd.f32 %v11018_v35, %v6043_v56  ;;  %v5942_v54 = vpop.f32.mrb[121].mxu1  ;;  %v6047_v56 = vmul.f32 %v15023_v7, %v16357_v34 }
 0xd19   : > { %v6058_v12 = vadd.f32 %v6042_v45, %v5942_v54 }
 0xd1a   : > { %v15035_v47 = vadd.f32 %v15030_v58, %v6059_v21  ;;  %v16358_v21 = vld [vmem:[#allocation6_spill] sm:$0xff] }
 0xd1b   : > { %v15040_v14 = vadd.f32 %v15030_v58, %v6058_v12  ;;  %v11021_v59 = vpop.f32.mrb[122].mxu1  ;;  %v6046_v54 = vmul.f32 %v15023_v7, %v16358_v21 }
 0xd1c   : > { %v6096_v19 = vsub.f32 0.0, %v15035_v47  ;;  %v6061_v24 = vadd.f32 %v11021_v59, %v6045_v29  ;;  %v5952_v28 = vpop.f32.mrb[123].mxu1 }
 0xd1d   : > { %v6095_v46 = vsub.f32 0.0, %v15040_v14  ;;  %v6060_v4 = vadd.f32 %v6044_v13, %v5952_v28 }
 0xd1e   : > { %v6113_v62 = vmul.f32 1.442695, %v6096_v19  ;;  %v15047_v31 = vadd.f32 %v15030_v58, %v6061_v24 }
 0xd1f   : > { %v6111_v35 = vmul.f32 1.442695, %v6095_v46  ;;  %v15052_v6 = vadd.f32 %v15030_v58, %v6060_v4  ;;  %v11024_v45 = vpop.f32.mrb[124].mxu1 }
 0xd20   : > { %12309 = vpow2.f32 %v6113_v62  ;;  %v6098_v12 = vsub.f32 0.0, %v15047_v31  ;;  %v6063_v11 = vadd.f32 %v11024_v45, %v6047_v56  ;;  %v5962_v29 = vpop.f32.mrb[125].mxu1  ;;  %v16359_v62 = vld [vmem:[#allocation9_spill] sm:$0xff]  ;;  %v16360_v45 = vld [vmem:[#allocation8_spill] sm:$0xff] }
 0xd21   : > { %12311 = vpow2.f32 %v6111_v35  ;;  %v6097_v59 = vsub.f32 0.0, %v15052_v6  ;;  %v6062_v20 = vadd.f32 %v6046_v54, %v5962_v29  ;;  %v6049_v34 = vmul.f32 %v15023_v7, %v16359_v62 }
 0xd22   : > { %v6117_v13 = vmul.f32 1.442695, %v6098_v12  ;;  %v15059_v19 = vadd.f32 %v15030_v58, %v6063_v11  ;;  %v6048_v21 = vmul.f32 %v15023_v7, %v16360_v45  ;;  %v6050_v45 = vmul.f32 %v15023_v7, %v16362_v9 }
 0xd23   : > { %v6115_v24 = vmul.f32 1.442695, %v6097_v59  ;;  %v15062_v28 = vadd.f32 %v15030_v58, %v6062_v20  ;;  %v16361_v20 = vld [vmem:[#allocation11_spill] sm:$0xff] }
 0xd24   : > { %12313 = vpow2.f32 %v6117_v13  ;;  %v6100_v46 = vsub.f32 0.0, %v15059_v19  ;;  %v6051_v13 = vmul.f32 %v15023_v7, %v16361_v20 }
 0xd25   : > { %12315 = vpow2.f32 %v6115_v24  ;;  %v6099_v4 = vsub.f32 0.0, %v15062_v28 }
 0xd26   : > { %v6121_v56 = vmul.f32 1.442695, %v6100_v46  ;;  %v11027_v35 = vpop.f32.mrb[126].mxu1 }
 0xd27   : > { %v6119_v54 = vmul.f32 1.442695, %v6099_v4  ;;  %v6065_v12 = vadd.f32 %v11027_v35, %v6049_v34  ;;  %v5972_v11 = vpop.f32.mrb[127].mxu1 }
 0xd28   : > { %12317 = vpow2.f32 %v6121_v56  ;;  %v6064_v29 = vadd.f32 %v6048_v21, %v5972_v11 }
 0xd29   : > { %12319 = vpow2.f32 %v6119_v54  ;;  %v15071_v59 = vadd.f32 %v15030_v58, %v6065_v12 }
 0xd2a   : > { %v12310_v24 = vpop.eup %12309  ;;  %v15076_v62 = vadd.f32 %v15030_v58, %v6064_v29  ;;  %v11030_v46 = vpop.f32.mrb[128].mxu1  ;;  %v16363_v29 = vld [vmem:[#allocation13_spill] sm:$0xff] }
 0xd2b   : > { %v12312_v4 = vpop.eup %12311  ;;  %v6144_v34 = vadd.f32 1.0, %v12310_v24  ;;  %v6102_v56 = vsub.f32 0.0, %v15071_v59  ;;  %v6067_v35 = vadd.f32 %v11030_v46, %v6051_v13  ;;  %v5982_v21 = vpop.f32.mrb[129].mxu1  ;;  %v6053_v3 = vmul.f32 %v15023_v7, %v16363_v29  ;;  %v16364_v46 = vld [vmem:[#allocation12_spill] sm:$0xff] }
 0xd2c   : > { %v6143_v54 = vadd.f32 1.0, %v12312_v4  ;;  %v6101_v12 = vsub.f32 0.0, %v15076_v62  ;;  %v6066_v11 = vadd.f32 %v6050_v45, %v5982_v21  ;;  %v6052_v4 = vmul.f32 %v15023_v7, %v16364_v46 }
 0xd2d   : > { %12321 = vrcp.f32 %v6144_v34  ;;  %v6125_v20 = vmul.f32 1.442695, %v6102_v56  ;;  %v15083_v10 = vadd.f32 %v15030_v58, %v6067_v35  ;;  %v6055_v46 = vmul.f32 %v15023_v7, %v16365_v15 }
 0xd2e   : > { %v12314_v40 = vpop.eup %12313  ;;  %12323 = vrcp.f32 %v6143_v54  ;;  %v6123_v9 = vmul.f32 1.442695, %v6101_v12  ;;  %v15088_v24 = vadd.f32 %v15030_v58, %v6066_v11  ;;  %v11033_v13 = vpop.f32.mrb[130].mxu1 }
 0xd2f   : > { %v12316_v23 = vpop.eup %12315  ;;  %v6146_v45 = vadd.f32 1.0, %v12314_v40  ;;  %12325 = vpow2.f32 %v6125_v20  ;;  %v6104_v34 = vsub.f32 0.0, %v15083_v10  ;;  %v6069_v56 = vadd.f32 %v11033_v13, %v6053_v3  ;;  %v5992_v35 = vpop.f32.mrb[131].mxu1 }
 0xd30   : > { %v6145_v21 = vadd.f32 1.0, %v12316_v23  ;;  %12327 = vpow2.f32 %v6123_v9  ;;  %v6103_v29 = vsub.f32 0.0, %v15088_v24  ;;  %v6068_v54 = vadd.f32 %v6052_v4, %v5992_v35  ;;  %v16366_v23 = vld [vmem:[#allocation14_spill] sm:$0xff] }
 0xd31   : > { %12329 = vrcp.f32 %v6146_v45  ;;  %v6129_v12 = vmul.f32 1.442695, %v6104_v34  ;;  %v15095_v11 = vadd.f32 %v15030_v58, %v6069_v56  ;;  %v6054_v9 = vmul.f32 %v15023_v7, %v16366_v23 }
 0xd32   : > { %v12318_v36 = vpop.eup %12317  ;;  %12331 = vrcp.f32 %v6145_v21  ;;  %v6127_v40 = vmul.f32 1.442695, %v6103_v29  ;;  %v15100_v20 = vadd.f32 %v15030_v58, %v6068_v54  ;;  %v11036_v3 = vpop.f32.mrb[132].mxu1  ;;  %v6057_v23 = vmul.f32 %v15023_v7, %v16367_v16 }
 0xd33   : > { %v12320_v13 = vpop.eup %12319  ;;  %v6148_v4 = vadd.f32 1.0, %v12318_v36  ;;  %12333 = vpow2.f32 %v6129_v12  ;;  %v6106_v45 = vsub.f32 0.0, %v15095_v11  ;;  %v6071_v34 = vadd.f32 %v11036_v3, %v6055_v46  ;;  %v6002_v56 = vpop.f32.mrb[133].mxu1  ;;  %v16368_v3 = vld [vmem:[#allocation16_spill] sm:$0xff] }
 0xd34   : > { %v6147_v35 = vadd.f32 1.0, %v12320_v13  ;;  %12335 = vpow2.f32 %v6127_v40  ;;  %v6105_v15 = vsub.f32 0.0, %v15100_v20  ;;  %v6070_v21 = vadd.f32 %v6054_v9, %v6002_v56 }
 0xd35   : > { %12337 = vrcp.f32 %v6148_v4  ;;  %v6133_v29 = vmul.f32 1.442695, %v6106_v45  ;;  %v15107_v54 = vadd.f32 %v15030_v58, %v6071_v34  ;;  %v6056_v40 = vmul.f32 %v15023_v7, %v16368_v3 }
 0xd36   : > { %12339 = vrcp.f32 %v6147_v35  ;;  %v6131_v36 = vmul.f32 1.442695, %v6105_v15  ;;  %v15112_v12 = vadd.f32 %v15030_v58, %v6070_v21  ;;  %v11039_v46 = vpop.f32.mrb[134].mxu1 }
 0xd37   : > { %v12322_v13 = vpop.eup %12321  ;;  %12341 = vpow2.f32 %v6133_v29  ;;  %v6108_v9 = vsub.f32 0.0, %v15107_v54  ;;  %v6073_v4 = vadd.f32 %v11039_v46, %v6057_v23  ;;  %v6012_v45 = vpop.f32.mrb[135].mxu1 }
 0xd38   : > { %v12324_v34 = vpop.eup %12323  ;;  %12343 = vpow2.f32 %v6131_v36  ;;  %v6107_v56 = vsub.f32 0.0, %v15112_v12  ;;  %v6072_v16 = vadd.f32 %v6056_v40, %v6012_v45  ;;  %v6176_v7 = vmul.f32 %v12322_v13, %v15035_v47 }
 0xd39   : > { %v12326_v35 = vpop.eup %12325  ;;  %v6175_v15 = vmul.f32 %v12324_v34, %v15040_v14  ;;  %v6137_v21 = vmul.f32 1.442695, %v6108_v9  ;;  %v15120_v18 = vadd.f32 %v15030_v58, %v6073_v4 }
 0xd3a   : > { %v12328_v8 = vpop.eup %12327  ;;  %v6150_v29 = vadd.f32 1.0, %v12326_v35  ;;  %v6135_v3 = vmul.f32 1.442695, %v6107_v56  ;;  %v15124_v23 = vadd.f32 %v15030_v58, %v6072_v16 }
 0xd3b   : > { %v12330_v46 = vpop.eup %12329  ;;  %v6149_v36 = vadd.f32 1.0, %v12328_v8  ;;  %12345 = vpow2.f32 %v6137_v21  ;;  %v6110_v40 = vsub.f32 0.0, %v15120_v18  ;;  %11048 = vmatprep.mubr.msk.f32.mxu0 %vm2485_vm8, %v6175_v15 }
 0xd3c   : > { %v12332_v14 = vpop.eup %12331  ;;  %12347 = vrcp.f32 %v6150_v29  ;;  %v6109_v9 = vsub.f32 0.0, %v15124_v23  ;;  %11049 = vmatmul.mubr.msk.f32.vlgmr.msra.gmra.mrb[168].mxu0 %vm2485_vm8, %v6176_v7  ;;  %v6178_v45 = vmul.f32 %v12330_v46, %v15047_v31 }
 0xd3d   : > { %v12334_v4 = vpop.eup %12333  ;;  %v6177_v47 = vmul.f32 %v12332_v14, %v15052_v6  ;;  %12349 = vrcp.f32 %v6149_v36  ;;  %v6141_v13 = vmul.f32 1.442695, %v6110_v40 }
 0xd3e   : > { %v12336_v58 = vpop.eup %12335  ;;  %v6152_v8 = vadd.f32 1.0, %v12334_v4  ;;  %12351 = vpow2.f32 %v6135_v3  ;;  %v6139_v34 = vmul.f32 1.442695, %v6109_v9 }
 0xd3f   : > { %v12338_v56 = vpop.eup %12337  ;;  %v6151_v16 = vadd.f32 1.0, %v12336_v58  ;;  %12353 = vpow2.f32 %v6141_v13  ;;  %11051 = vmatprep.mubr.msk.f32.mxu0 %vm2485_vm8, %v6177_v47 }
 0xd40   : > { %v12340_v35 = vpop.eup %12339  ;;  %12355 = vrcp.f32 %v6152_v8  ;;  %11052 = vmatmul.mubr.msk.f32.gmra.mrb[170].mxu0 %vm2485_vm8, %v6178_v45  ;;  %v6180_v7 = vmul.f32 %v12338_v56, %v15059_v19 }
 0xd41   : > { %v12342_v15 = vpop.eup %12341  ;;  %v6179_v6 = vmul.f32 %v12340_v35, %v15062_v28  ;;  %12357 = vrcp.f32 %v6151_v16 }
 0xd42   : > { %v12344_v21 = vpop.eup %12343  ;;  %v6154_v31 = vadd.f32 1.0, %v12342_v15  ;;  %12359 = vpow2.f32 %v6139_v34 }
 0xd43   : > { %v6153_v29 = vadd.f32 1.0, %v12344_v21  ;;  %11054 = vmatprep.mubr.msk.f32.mxu0 %vm2485_vm8, %v6179_v6 }
 0xd44   : > { %12361 = vrcp.f32 %v6154_v31  ;;  %11055 = vmatmul.mubr.msk.f32.gmra.mrb[172].mxu0 %vm2485_vm8, %v6180_v7 }
 0xd45   : > { %v12346_v3 = vpop.eup %12345  ;;  %12363 = vrcp.f32 %v6153_v29 }
 0xd46   : > { %v12348_v46 = vpop.eup %12347  ;;  %v6156_v36 = vadd.f32 1.0, %v12346_v3 }
 0xd47   : > { %v12350_v40 = vpop.eup %12349  ;;  %v6182_v4 = vmul.f32 %v12348_v46, %v15071_v59 }
 0xd48   : > { %v12352_v14 = vpop.eup %12351  ;;  %v6181_v28 = vmul.f32 %v12350_v40, %v15076_v62  ;;  %12365 = vrcp.f32 %v6156_v36 }
 0xd49   : > { %v12354_v9 = vpop.eup %12353  ;;  %v6155_v19 = vadd.f32 1.0, %v12352_v14 }
 0xd4a   : > { %v12356_v47 = vpop.eup %12355  ;;  %v6158_v13 = vadd.f32 1.0, %v12354_v9  ;;  %11057 = vmatprep.mubr.msk.f32.mxu0 %vm2485_vm8, %v6181_v28 }
 0xd4b   : > { %v12358_v58 = vpop.eup %12357  ;;  %12367 = vrcp.f32 %v6155_v19  ;;  %11058 = vmatmul.mubr.msk.f32.gmra.mrb[174].mxu0 %vm2485_vm8, %v6182_v4  ;;  %v6184_v34 = vmul.f32 %v12356_v47, %v15083_v10 }
 0xd4c   : > { %v12360_v45 = vpop.eup %12359  ;;  %v6183_v8 = vmul.f32 %v12358_v58, %v15088_v24  ;;  %12369 = vrcp.f32 %v6158_v13 }
 0xd4d   : > { %v6157_v56 = vadd.f32 1.0, %v12360_v45 }
 0xd4e   : > { %v12362_v62 = vpop.eup %12361  ;;  %11060 = vmatprep.mubr.msk.f32.mxu0 %vm2485_vm8, %v6183_v8 }
 0xd4f   : > { %v12364_v59 = vpop.eup %12363  ;;  %12371 = vrcp.f32 %v6157_v56  ;;  %11061 = vmatmul.mubr.msk.f32.gmra.mrb[176].mxu0 %vm2485_vm8, %v6184_v34  ;;  %v6186_v35 = vmul.f32 %v12362_v62, %v15095_v11 }
 0xd50   : > { %v6185_v16 = vmul.f32 %v12364_v59, %v15100_v20 }
 0xd52   : > { %11063 = vmatprep.mubr.msk.f32.mxu0 %vm2485_vm8, %v6185_v16  ;;  %v12366_v24 = vpop.eup %12365 }
 0xd53   : > { %11064 = vmatmul.mubr.msk.f32.gmra.mrb[178].mxu0 %vm2485_vm8, %v6186_v35  ;;  %v6188_v6 = vmul.f32 %v12366_v24, %v15107_v54  ;;  %v15165_v54 = vld [vmem:[%s16046_s9 + $0xe] ss:$0 sm:$0xff] }
 0xd55   : > { %v12368_v15 = vpop.eup %12367 }
 0xd56   : > { %v6187_v10 = vmul.f32 %v12368_v15, %v15112_v12  ;;  %v12370_v21 = vpop.eup %12369 }
 0xd57   : > { %v6190_v11 = vmul.f32 %v12370_v21, %v15120_v18 }
 0xd58   : > { %11066 = vmatprep.mubr.msk.f32.mxu0 %vm2485_vm8, %v6187_v10 }
 0xd59   : > { %v12372_v7 = vpop.eup %12371  ;;  %11067 = vmatmul.mubr.msk.f32.gmra.mrb[180].mxu0 %vm2485_vm8, %v6188_v6 }
 0xd5a   : > { %v6189_v20 = vmul.f32 %v12372_v7, %v15124_v23 }
 0xd5c   : > { %11069 = vmatprep.mubr.msk.f32.mxu0 %vm2485_vm8, %v6189_v20 }
 0xd5d   : > { %11070 = vmatmul.mubr.msk.f32.gmra.mrb[182].mxu0 %vm2485_vm8, %v6190_v11 }
 0xd5e   : > { %11104 = vmatprep.mubr.msk.f32.mxu0 %vm691_vm9, %v16277_v41 }
 0xe0f   : > { %v11050_v12 = vpop.f32.mrb[168].mxu0 }
 0xe10   : > { %v15168_v29 = vadd.f32 %v11050_v12, %v15165_v54  ;;  %v6314_v23 = vpop.f32.mrb[169].mxu0 }
 0xe11   : > { %v15171_v18 = vadd.f32 %v15165_v54, %v6314_v23 }
 0xe12   : > { %v6394_v3 = vsub.f32 0.0, %v15168_v29 }
 0xe13   : > { %v6393_v46 = vsub.f32 0.0, %v15171_v18  ;;  %v11053_v36 = vpop.f32.mrb[170].mxu0 }
 0xe14   : > { %v6411_v40 = vmul.f32 1.442695, %v6394_v3  ;;  %v15176_v14 = vadd.f32 %v11053_v36, %v15165_v54  ;;  %v6324_v28 = vpop.f32.mrb[171].mxu0 }
 0xe15   : > { %v6409_v9 = vmul.f32 1.442695, %v6393_v46  ;;  %v15179_v4 = vadd.f32 %v15165_v54, %v6324_v28 }
 0xe16   : > { %12373 = vpow2.f32 %v6411_v40  ;;  %v6396_v19 = vsub.f32 0.0, %v15176_v14 }
 0xe17   : > { %12375 = vpow2.f32 %v6409_v9  ;;  %v6395_v47 = vsub.f32 0.0, %v15179_v4  ;;  %v11056_v13 = vpop.f32.mrb[172].mxu0 }
 0xe18   : > { %v6415_v58 = vmul.f32 1.442695, %v6396_v19  ;;  %v15184_v45 = vadd.f32 %v11056_v13, %v15165_v54  ;;  %v6334_v8 = vpop.f32.mrb[173].mxu0 }
 0xe19   : > { %v6413_v34 = vmul.f32 1.442695, %v6395_v47  ;;  %v15187_v56 = vadd.f32 %v15165_v54, %v6334_v8 }
 0xe1a   : > { %12377 = vpow2.f32 %v6415_v58  ;;  %v6398_v62 = vsub.f32 0.0, %v15184_v45 }
 0xe1b   : > { %12379 = vpow2.f32 %v6413_v34  ;;  %v6397_v59 = vsub.f32 0.0, %v15187_v56 }
 0xe1c   : > { %v6419_v16 = vmul.f32 1.442695, %v6398_v62 }
 0xe1d   : > { %v6417_v35 = vmul.f32 1.442695, %v6397_v59 }
 0xe1e   : > { %12381 = vpow2.f32 %v6419_v16  ;;  %v11059_v24 = vpop.f32.mrb[174].mxu0 }
 0xe1f   : > { %12383 = vpow2.f32 %v6417_v35  ;;  %v15192_v15 = vadd.f32 %v11059_v24, %v15165_v54  ;;  %v6344_v10 = vpop.f32.mrb[175].mxu0 }
 0xe20   : > { %v12374_v6 = vpop.eup %12373  ;;  %v15195_v21 = vadd.f32 %v15165_v54, %v6344_v10 }
 0xe21   : > { %v12376_v7 = vpop.eup %12375  ;;  %v6442_v20 = vadd.f32 1.0, %v12374_v6  ;;  %v6400_v11 = vsub.f32 0.0, %v15192_v15 }
 0xe22   : > { %v6441_v31 = vadd.f32 1.0, %v12376_v7  ;;  %v6399_v12 = vsub.f32 0.0, %v15195_v21  ;;  %v11062_v23 = vpop.f32.mrb[176].mxu0 }
 0xe23   : > { %12385 = vrcp.f32 %v6442_v20  ;;  %v6423_v3 = vmul.f32 1.442695, %v6400_v11  ;;  %v15200_v46 = vadd.f32 %v11062_v23, %v15165_v54  ;;  %v6354_v36 = vpop.f32.mrb[177].mxu0 }
 0xe24   : > { %v12378_v40 = vpop.eup %12377  ;;  %12387 = vrcp.f32 %v6441_v31  ;;  %v6421_v28 = vmul.f32 1.442695, %v6399_v12  ;;  %v15203_v9 = vadd.f32 %v15165_v54, %v6354_v36 }
 0xe25   : > { %v12380_v19 = vpop.eup %12379  ;;  %v6444_v47 = vadd.f32 1.0, %v12378_v40  ;;  %12389 = vpow2.f32 %v6423_v3  ;;  %v6402_v13 = vsub.f32 0.0, %v15200_v46 }
 0xe26   : > { %v6443_v58 = vadd.f32 1.0, %v12380_v19  ;;  %12391 = vpow2.f32 %v6421_v28  ;;  %v6401_v8 = vsub.f32 0.0, %v15203_v9  ;;  %v11065_v34 = vpop.f32.mrb[178].mxu0 }
 0xe27   : > { %12393 = vrcp.f32 %v6444_v47  ;;  %v6427_v62 = vmul.f32 1.442695, %v6402_v13  ;;  %v15208_v59 = vadd.f32 %v11065_v34, %v15165_v54  ;;  %v6364_v16 = vpop.f32.mrb[179].mxu0 }
 0xe28   : > { %v12382_v35 = vpop.eup %12381  ;;  %12395 = vrcp.f32 %v6443_v58  ;;  %v6425_v24 = vmul.f32 1.442695, %v6401_v8  ;;  %v15211_v10 = vadd.f32 %v15165_v54, %v6364_v16 }
 0xe29   : > { %v12384_v6 = vpop.eup %12383  ;;  %v6446_v7 = vadd.f32 1.0, %v12382_v35  ;;  %12397 = vpow2.f32 %v6427_v62  ;;  %v6404_v20 = vsub.f32 0.0, %v15208_v59 }
 0xe2a   : > { %v6445_v11 = vadd.f32 1.0, %v12384_v6  ;;  %12399 = vpow2.f32 %v6425_v24  ;;  %v6403_v31 = vsub.f32 0.0, %v15211_v10 }
 0xe2b   : > { %12401 = vrcp.f32 %v6446_v7  ;;  %v6431_v12 = vmul.f32 1.442695, %v6404_v20 }
 0xe2c   : > { %12403 = vrcp.f32 %v6445_v11  ;;  %v6429_v23 = vmul.f32 1.442695, %v6403_v31  ;;  %v11068_v3 = vpop.f32.mrb[180].mxu0 }
 0xe2d   : > { %v12386_v36 = vpop.eup %12385  ;;  %12405 = vpow2.f32 %v6431_v12  ;;  %v15216_v40 = vadd.f32 %v11068_v3, %v15165_v54  ;;  %v6374_v28 = vpop.f32.mrb[181].mxu0 }
 0xe2e   : > { %v12388_v19 = vpop.eup %12387  ;;  %v6474_v47 = vmul.f32 %v12386_v36, %v15168_v29  ;;  %12407 = vpow2.f32 %v6429_v23  ;;  %v15220_v13 = vadd.f32 %v15165_v54, %v6374_v28 }
 0xe2f   : > { %v12390_v58 = vpop.eup %12389  ;;  %v6473_v8 = vmul.f32 %v12388_v19, %v15171_v18  ;;  %v6406_v34 = vsub.f32 0.0, %v15216_v40 }
 0xe30   : > { %v12392_v62 = vpop.eup %12391  ;;  %v6448_v16 = vadd.f32 1.0, %v12390_v58  ;;  %v6405_v35 = vsub.f32 0.0, %v15220_v13  ;;  %v11071_v24 = vpop.f32.mrb[182].mxu0 }
 0xe31   : > { %v12394_v6 = vpop.eup %12393  ;;  %v6447_v7 = vadd.f32 1.0, %v12392_v62  ;;  %v6435_v20 = vmul.f32 1.442695, %v6406_v34  ;;  %v15226_v11 = vadd.f32 %v11071_v24, %v15165_v54  ;;  %v6384_v29 = vpop.f32.mrb[183].mxu0  ;;  %v11688_v31 = vpack.c.bf16 %v6474_v47, %v6473_v8 }
 0xe32   : > { %v12396_v12 = vpop.eup %12395  ;;  %v6476_v23 = vmul.f32 %v12394_v6, %v15176_v14  ;;  %12409 = vrcp.f32 %v6448_v16  ;;  %v6433_v18 = vmul.f32 1.442695, %v6405_v35  ;;  %v15230_v3 = vadd.f32 %v15165_v54, %v6384_v29 }
 0xe33   : > { %v12398_v36 = vpop.eup %12397  ;;  %v6475_v28 = vmul.f32 %v12396_v12, %v15179_v4  ;;  %12411 = vrcp.f32 %v6447_v7  ;;  %v6408_v19 = vsub.f32 0.0, %v15226_v11  ;;  %11689 = vmatprep.subr.bf16.mxu0 %v11688_v31 }
 0xe34   : > { %v12400_v58 = vpop.eup %12399  ;;  %v6450_v34 = vadd.f32 1.0, %v12398_v36  ;;  %12413 = vpow2.f32 %v6435_v20  ;;  %v6407_v47 = vsub.f32 0.0, %v15230_v3  ;;  %11691 = vmatpush3.bf16.msra.mxu0 %v11688_v31 }
 0xe35   : > { %v12402_v8 = vpop.eup %12401  ;;  %v6449_v14 = vadd.f32 1.0, %v12400_v58  ;;  %12415 = vpow2.f32 %v6433_v18  ;;  %v6439_v62 = vmul.f32 1.442695, %v6408_v19  ;;  %v11692_v16 = vpack.c.bf16 %v6476_v23, %v6475_v28 }
 0xe36   : > { %v12404_v54 = vpop.eup %12403  ;;  %v6478_v35 = vmul.f32 %v12402_v8, %v15184_v45  ;;  %12417 = vrcp.f32 %v6450_v34  ;;  %v6437_v4 = vmul.f32 1.442695, %v6407_v47 }
 0xe37   : > { %v12406_v24 = vpop.eup %12405  ;;  %v6477_v6 = vmul.f32 %v12404_v54, %v15187_v56  ;;  %12419 = vrcp.f32 %v6449_v14  ;;  %11693 = vmatprep.subr.bf16.mxu0 %v11692_v16 }
 0xe38   : > { %v12408_v7 = vpop.eup %12407  ;;  %v6452_v20 = vadd.f32 1.0, %v12406_v24  ;;  %12421 = vpow2.f32 %v6439_v62  ;;  %11695 = vmatpush3.bf16.msra.mxu0 %v11692_v16 }
 0xe39   : > { %v6451_v29 = vadd.f32 1.0, %v12408_v7  ;;  %12423 = vpow2.f32 %v6437_v4  ;;  %v11696_v31 = vpack.c.bf16 %v6478_v35, %v6477_v6 }
 0xe3a   : > { %12425 = vrcp.f32 %v6452_v20 }
 0xe3b   : > { %12427 = vrcp.f32 %v6451_v29  ;;  %11697 = vmatprep.subr.bf16.mxu0 %v11696_v31 }
 0xe3c   : > { %v12410_v12 = vpop.eup %12409  ;;  %11699 = vmatpush3.bf16.msra.mxu0 %v11696_v31 }
 0xe3d   : > { %v12412_v45 = vpop.eup %12411  ;;  %v6480_v23 = vmul.f32 %v12410_v12, %v15192_v15 }
 0xe3e   : > { %v12414_v18 = vpop.eup %12413  ;;  %v6479_v56 = vmul.f32 %v12412_v45, %v15195_v21 }
 0xe3f   : > { %v12416_v36 = vpop.eup %12415  ;;  %v6454_v28 = vadd.f32 1.0, %v12414_v18 }
 0xe40   : > { %v12418_v19 = vpop.eup %12417  ;;  %v6453_v58 = vadd.f32 1.0, %v12416_v36  ;;  %v11700_v34 = vpack.c.bf16 %v6480_v23, %v6479_v56  ;;  %v6599_v23 = vld [vmem:[%s16042_s5 + $0x228] sm:$0xff] }
 0xe41   : > { %v12420_v47 = vpop.eup %12419  ;;  %v6482_v8 = vmul.f32 %v12418_v19, %v15200_v46  ;;  %12429 = vrcp.f32 %v6454_v28  ;;  %v11732_v28 = vpack.c.bf16 %v6597_v60, %v6596_v44 }
 0xe42   : > { %v12422_v14 = vpop.eup %12421  ;;  %v6481_v62 = vmul.f32 %v12420_v47, %v15203_v9  ;;  %12431 = vrcp.f32 %v6453_v58  ;;  %11701 = vmatprep.subr.bf16.mxu0 %v11700_v34 }
 0xe43   : > { %v12424_v16 = vpop.eup %12423  ;;  %v6456_v54 = vadd.f32 1.0, %v12422_v14  ;;  %11703 = vmatpush3.bf16.msra.mxu0 %v11700_v34 }
 0xe44   : > { %v12426_v15 = vpop.eup %12425  ;;  %v6455_v35 = vadd.f32 1.0, %v12424_v16  ;;  %v11704_v21 = vpack.c.bf16 %v6482_v8, %v6481_v62  ;;  %v6875_v62 = vld [vmem:[%s16042_s5 + $0x250] sm:$0xff]  ;;  %v6876_v16 = vld [vmem:[%s16042_s5 + $0x258] sm:$0xff] }
 0xe45   : > { %v12428_v4 = vpop.eup %12427  ;;  %v6484_v24 = vmul.f32 %v12426_v15, %v15208_v59  ;;  %12433 = vrcp.f32 %v6456_v54  ;;  %v11740_v54 = vpack.c.bf16 %v6876_v16, %v6875_v62  ;;  %v9482_v15 = vld [vmem:[%s16046_s9 + $0xf] ss:$0 sm:$0xff]  ;;  %v16380_v16 = vld [vmem:[#allocation77_spill] sm:$0xff] }
 0xe46   : > { %v6483_v6 = vmul.f32 %v12428_v4, %v15211_v10  ;;  %12435 = vrcp.f32 %v6455_v35  ;;  %11705 = vmatprep.subr.bf16.mxu0 %v11704_v21  ;;  %v6598_v10 = vld [vmem:[%s16042_s5 + $0x220] sm:$0xff]  ;;  %v16379_v62 = vld [vmem:[#allocation75_spill] sm:$0xff] }
 0xe47   : > { %11707 = vmatpush3.bf16.msra.mxu0 %v11704_v21  ;;  %v11720_v56 = vpack.c.bf16 %v6599_v23, %v6598_v10  ;;  %11741 = vmatprep.subr.bf16.mxu1 %v11740_v54  ;;  %v9483_v23 = vld [vmem:[%s16046_s9 + $0x10] ss:$0 sm:$0xff] }
 0xe48   : > { %v11708_v46 = vpack.c.bf16 %v6484_v24, %v6483_v6  ;;  %11743 = vmatpush3.bf16.msra.mxu1 %v11740_v54  ;;  %v16381_v54 = vld [vmem:[#allocation79_spill] sm:$0xff] }
 0xe4a   : > { %11709 = vmatprep.subr.bf16.mxu0 %v11708_v46 }
 0xe4b   : > { %v12430_v9 = vpop.eup %12429  ;;  %11711 = vmatpush3.bf16.msra.mxu0 %v11708_v46 }
 0xe4c   : > { %v12432_v7 = vpop.eup %12431  ;;  %v6486_v20 = vmul.f32 %v12430_v9, %v15216_v40 }
 0xe4d   : > { %v6485_v29 = vmul.f32 %v12432_v7, %v15220_v13  ;;  %v6600_v13 = vld [vmem:[%s16042_s5 + $0x230] sm:$0xff] }
 0xe4f   : > { %v12434_v31 = vpop.eup %12433  ;;  %v11712_v12 = vpack.c.bf16 %v6486_v20, %v6485_v29 }
 0xe50   : > { %v12436_v45 = vpop.eup %12435  ;;  %v6488_v59 = vmul.f32 %v12434_v31, %v15226_v11  ;;  %v6601_v11 = vld [vmem:[%s16042_s5 + $0x238] sm:$0xff] }
 0xe51   : > { %v6487_v18 = vmul.f32 %v12436_v45, %v15230_v3  ;;  %11713 = vmatprep.subr.bf16.mxu0 %v11712_v12  ;;  %v11724_v36 = vpack.c.bf16 %v6601_v11, %v6600_v13 }
 0xe52   : > { %11715 = vmatpush3.bf16.msra.mxu0 %v11712_v12 }
 0xe53   : > { %v11716_v40 = vpack.c.bf16 %v6488_v59, %v6487_v18 }
 0xe55   : > { %11717 = vmatprep.subr.bf16.mxu0 %v11716_v40 }
 0xe56   : > { %11719 = vmatpush3.bf16.msra.mxu0 %v11716_v40 }
 0xe57   : > { %11721 = vmatprep.subr.bf16.mxu0 %v11720_v56 }
 0xe59   : > { %11105 = vmatmul.mubr.msk.f32.vlgmr.msra.gmra.mrb[184].mxu0 %vm692_vm10, %v16277_v41 }
 0xe5a   : > { %11107 = vmatprep.mubr.msk.f32.mxu0 %vm693_vm11, %v16277_v41  ;;  %11723 = vmatpush3.bf16.msra.mxu0 %v11720_v56 }
 0xe5b   : > { %11725 = vmatprep.subr.bf16.mxu0 %v11724_v36 }
 0xe5d   : > { %11108 = vmatmul.mubr.msk.f32.gmra.mrb[186].mxu0 %vm694_vm12, %v16277_v41 }
 0xe5e   : > { %11110 = vmatprep.mubr.msk.f32.mxu0 %vm695_vm13, %v16277_v41  ;;  %11727 = vmatpush3.bf16.msra.mxu0 %v11724_v36 }
 0xe5f   : > { %11729 = vmatprep.subr.bf16.mxu0 %v11728_v51 }
 0xe61   : > { %11111 = vmatmul.mubr.msk.f32.gmra.mrb[188].mxu0 %vm696_vm14, %v16277_v41 }
 0xe62   : > { %11113 = vmatprep.mubr.msk.f32.mxu0 %vm697_vm15, %v16277_v41 }
 0xe65   : > { %11114 = vmatmul.mubr.msk.f32.gmra.mrb[190].mxu0 %vm698_vm0, %v16277_v41 }
 0xf2c   : > { %v11106_v41 = vpop.f32.mrb[184].mxu0 }
 0xf2d   : > { %v6555_v3 = vpop.f32.mrb[185].mxu0 }
 0xf2e   : > { %11124 = vmatprep.mubr.msk.f32.mxu0 %vm2485_vm8, %v6555_v3 }
 0xf2f   : > { %11125 = vmatmul.mubr.msk.f32.vlgmr.msra.gmra.mrb[192].mxu0 %vm2485_vm8, %v11106_v41 }
 0xf30   : > { %v11109_v19 = vpop.f32.mrb[186].mxu0  ;;  %11731 = vmatpush3.bf16.msra.mxu0 %v11728_v51 }
 0xf31   : > { %v6565_v58 = vpop.f32.mrb[187].mxu0  ;;  %11733 = vmatprep.subr.bf16.mxu0 %v11732_v28 }
 0xf32   : > { %11127 = vmatprep.mubr.msk.f32.mxu0 %vm2485_vm8, %v6565_v58 }
 0xf33   : > { %11128 = vmatmul.mubr.msk.f32.gmra.mrb[194].mxu0 %vm2485_vm8, %v11109_v19 }
 0xf34   : > { %v11112_v34 = vpop.f32.mrb[188].mxu0  ;;  %11735 = vmatpush3.bf16.msra.mxu0 %v11732_v28 }
 0xf35   : > { %v6575_v47 = vpop.f32.mrb[189].mxu0 }
 0xf36   : > { %11130 = vmatprep.mubr.msk.f32.mxu0 %vm2485_vm8, %v6575_v47 }
 0xf37   : > { %11131 = vmatmul.mubr.msk.f32.gmra.mrb[196].mxu0 %vm2485_vm8, %v11112_v34 }
 0xf38   : > { %v11115_v8 = vpop.f32.mrb[190].mxu0 }
 0xf39   : > { %v6585_v14 = vpop.f32.mrb[191].mxu0 }
 0xf3a   : > { %11133 = vmatprep.mubr.msk.f32.mxu0 %vm2485_vm8, %v6585_v14 }
 0xf3b   : > { %11134 = vmatmul.mubr.msk.f32.gmra.mrb[198].mxu0 %vm2485_vm8, %v11115_v8 }
 0xf3c   : > { %11144 = vmatprep.mubr.msk.f32.mxu0 %vm2485_vm8, %v14362_v49 }
 0xf3f   : > { %11145 = vmatmul.mubr.msk.f32.vlgmr.msra.gmra.mrb[192].mxu0 %vm2485_vm8, %v14359_v53 }
 0xf40   : > { %11147 = vmatprep.mubr.msk.f32.mxu0 %vm2485_vm8, %v14370_v63 }
 0xf43   : > { %11148 = vmatmul.mubr.msk.f32.gmra.mrb[194].mxu0 %vm2485_vm8, %v14367_v42 }
 0xf44   : > { %11150 = vmatprep.mubr.msk.f32.mxu0 %vm2485_vm8, %v14378_v38 }
 0xf47   : > { %11151 = vmatmul.mubr.msk.f32.gmra.mrb[196].mxu0 %vm2485_vm8, %v14375_v33 }
 0xf48   : > { %11153 = vmatprep.mubr.msk.f32.mxu0 %vm2485_vm8, %v14386_v43 }
 0xf4b   : > { %11154 = vmatmul.mubr.msk.f32.gmra.mrb[198].mxu0 %vm2485_vm8, %v14383_v55 }
 0xf4c   : > { %11192 = vmatprep.mubr.msk.f32.mxu0 %vm2155_vm4, %v13216_v61 }
0x1012   : > { %v11146_v35 = vpop.f32.mrb[192].mxu0 }
0x1013   : > { %v6821_v21 = vpop.f32.mrb[193].mxu0  ;;  %v6866_v24 = vadd.f32 %v11146_v35, %v9482_v15  ;;  %v16383_v35 = vld [vmem:[#allocation83_spill] sm:$0xff] }
0x1014   : > { %v6865_v4 = vadd.f32 %v9482_v15, %v6821_v21  ;;  %v16384_v21 = vld [vmem:[#allocation85_spill] sm:$0xff] }
0x1016   : > { %v11149_v61 = vpop.f32.mrb[194].mxu0  ;;  %11164 = vmatprep.mubr.msk.f32.mxu1 %vm2485_vm8, %v6865_v4  ;;  %v16385_v4 = vld [vmem:[#allocation87_spill] sm:$0xff] }
0x1017   : > { %v6831_v6 = vpop.f32.mrb[195].mxu0  ;;  %11165 = vmatmul.mubr.msk.f32.vlgmr.msra.gmra.mrb[136].mxu1 %vm2485_vm8, %v6866_v24  ;;  %v6868_v9 = vadd.f32 %v11149_v61, %v9482_v15  ;;  %v16386_v24 = vld [vmem:[#allocation89_spill] sm:$0xff]  ;;  %v16387_v61 = vld [vmem:[#allocation91_spill] sm:$0xff] }
0x1018   : > { %v6867_v46 = vadd.f32 %v9482_v15, %v6831_v6  ;;  %v16388_v6 = vld [vmem:[#allocation93_spill] sm:$0xff] }
0x101a   : > { %v11152_v7 = vpop.f32.mrb[196].mxu0  ;;  %11167 = vmatprep.mubr.msk.f32.mxu1 %vm2485_vm8, %v6867_v46  ;;  %v16389_v46 = vld [vmem:[#allocation95_spill] sm:$0xff] }
0x101b   : > { %v6841_v20 = vpop.f32.mrb[197].mxu0  ;;  %11168 = vmatmul.mubr.msk.f32.gmra.mrb[138].mxu1 %vm2485_vm8, %v6868_v9  ;;  %v6870_v31 = vadd.f32 %v11152_v7, %v9482_v15  ;;  %v16390_v9 = vld [vmem:[#allocation97_spill] sm:$0xff]  ;;  %v16391_v7 = vld [vmem:[#allocation99_spill] sm:$0xff] }
0x101c   : > { %v6869_v29 = vadd.f32 %v9482_v15, %v6841_v20  ;;  %v16392_v20 = vld [vmem:[#allocation101_spill] sm:$0xff] }
0x101e   : > { %v11155_v12 = vpop.f32.mrb[198].mxu0  ;;  %11170 = vmatprep.mubr.msk.f32.mxu1 %vm2485_vm8, %v6869_v29  ;;  %v16393_v29 = vld [vmem:[#allocation103_spill] sm:$0xff] }
0x101f   : > { %v6851_v45 = vpop.f32.mrb[199].mxu0  ;;  %11171 = vmatmul.mubr.msk.f32.gmra.mrb[140].mxu1 %vm2485_vm8, %v6870_v31  ;;  %v6872_v10 = vadd.f32 %v11155_v12, %v9482_v15  ;;  %v16394_v31 = vld [vmem:[#allocation105_spill] sm:$0xff]  ;;  %v7248_v12 = vld [vmem:[%s16042_s5 + $0x280] sm:$0xff] }
0x1020   : > { %v6871_v59 = vadd.f32 %v9482_v15, %v6851_v45  ;;  %v16382_v15 = vld [vmem:[#allocation81_spill] sm:$0xff]  ;;  %v7249_v45 = vld [vmem:[%s16042_s5 + $0x288] sm:$0xff] }
0x1022   : > { %11173 = vmatprep.mubr.msk.f32.mxu1 %vm2485_vm8, %v6871_v59  ;;  %v11760_v59 = vpack.c.bf16 %v7249_v45, %v7248_v12 }
0x1023   : > { %11174 = vmatmul.mubr.msk.f32.gmra.mrb[142].mxu1 %vm2485_vm8, %v6872_v10  ;;  %v7250_v10 = vld [vmem:[%s16042_s5 + $0x290] sm:$0xff] }
0x1024   : > { %11761 = vmatprep.subr.bf16.mxu1 %v11760_v59 }
0x1025   : > { %11763 = vmatpush3.bf16.msra.mxu1 %v11760_v59 }
0x10ea   : > { %v11166_v18 = vpop.f32.mrb[136].mxu1 }
0x10eb   : > { %v6978_v40 = vadd.f32 %v11166_v18, %v9483_v23  ;;  %v6972_v56 = vpop.f32.mrb[137].mxu1 }
0x10ec   : > { %v6973_v13 = vadd.f32 %v9483_v23, %v6972_v56  ;;  %v7245_v56 = vld [vmem:[%s16042_s5 + $0x268] sm:$0xff] }
0x10ed   : > { %v15352_v11 = vadd.f32 %v6978_v40, %v14359_v53  ;;  %v7244_v40 = vld [vmem:[%s16042_s5 + $0x260] sm:$0xff] }
0x10ee   : > { %v15355_v36 = vadd.f32 %v6973_v13, %v14362_v49  ;;  %v11169_v32 = vpop.f32.mrb[138].mxu1  ;;  %v11768_v13 = vpack.c.bf16 %v7245_v56, %v7244_v40 }
0x10ef   : > { %v6988_v0 = vadd.f32 %v11169_v32, %v9483_v23  ;;  %v6982_v51 = vpop.f32.mrb[139].mxu1 }
0x10f0   : > { %v6983_v48 = vadd.f32 %v9483_v23, %v6982_v51  ;;  %v11744_v17 = vpack.c.bf16 %v15352_v11, %v15355_v36 }
0x10f1   : > { %v15360_v26 = vadd.f32 %v6988_v0, %v14367_v42 }
0x10f2   : > { %v15363_v44 = vadd.f32 %v6983_v48, %v14370_v63  ;;  %v11172_v60 = vpop.f32.mrb[140].mxu1  ;;  %11745 = vmatprep.subr.bf16.mxu0 %v11744_v17 }
0x10f3   : > { %v6998_v53 = vadd.f32 %v11172_v60, %v9483_v23  ;;  %v6992_v41 = vpop.f32.mrb[141].mxu1  ;;  %11747 = vmatpush3.bf16.msra.mxu0 %v11744_v17 }
0x10f4   : > { %v6993_v49 = vadd.f32 %v9483_v23, %v6992_v41  ;;  %v11748_v3 = vpack.c.bf16 %v15360_v26, %v15363_v44 }
0x10f5   : > { %v15368_v28 = vadd.f32 %v6998_v53, %v14375_v33 }
0x10f6   : > { %v15371_v19 = vadd.f32 %v6993_v49, %v14378_v38  ;;  %v11175_v42 = vpop.f32.mrb[142].mxu1  ;;  %11749 = vmatprep.subr.bf16.mxu0 %v11748_v3  ;;  %v16370_v38 = vld [vmem:[#allocation57_spill] sm:$0xff] }
0x10f7   : > { %v7008_v58 = vadd.f32 %v11175_v42, %v9483_v23  ;;  %v7002_v63 = vpop.f32.mrb[143].mxu1  ;;  %11751 = vmatpush3.bf16.msra.mxu0 %v11748_v3 }
0x10f8   : > { %v7003_v34 = vadd.f32 %v9483_v23, %v7002_v63  ;;  %v11752_v47 = vpack.c.bf16 %v15368_v28, %v15371_v19  ;;  %v7251_v23 = vld [vmem:[%s16042_s5 + $0x298] sm:$0xff] }
0x10f9   : > { %v15376_v8 = vadd.f32 %v7008_v58, %v14383_v55  ;;  %v16371_v55 = vld [vmem:[#allocation59_spill] sm:$0xff]  ;;  %v11764_v18 = vpack.c.bf16 %v7251_v23, %v7250_v10 }
0x10fa   : > { %v15379_v14 = vadd.f32 %v7003_v34, %v14386_v43  ;;  %11753 = vmatprep.subr.bf16.mxu0 %v11752_v47  ;;  %v16378_v43 = vld [vmem:[#allocation73_spill] sm:$0xff] }
0x10fb   : > { %11755 = vmatpush3.bf16.msra.mxu0 %v11752_v47  ;;  %11765 = vmatprep.subr.bf16.mxu1 %v11764_v18 }
0x10fc   : > { %v11756_v33 = vpack.c.bf16 %v15376_v8, %v15379_v14  ;;  %11767 = vmatpush3.bf16.msra.mxu1 %v11764_v18 }
0x10fd   : > { %11769 = vmatprep.subr.bf16.mxu1 %v11768_v13 }
0x10fe   : > { %11757 = vmatprep.subr.bf16.mxu0 %v11756_v33 }
0x10ff   : > { %11759 = vmatpush3.bf16.msra.mxu0 %v11756_v33 }
0x1102   : > { %11193 = vmatmul.mubr.msk.f32.vlgmr.msra.gmra.mrb[200].mxu0 %vm2155_vm4, %v13443_v25  ;;  %v16372_v25 = vld [vmem:[#allocation61_spill] sm:$0xff] }
0x1103   : > { %11195 = vmatprep.mubr.msk.f32.mxu0 %vm2155_vm4, %v13448_v5  ;;  %v16373_v5 = vld [vmem:[#allocation63_spill] sm:$0xff] }
0x1106   : > { %11196 = vmatmul.mubr.msk.f32.gmra.mrb[202].mxu0 %vm2155_vm4, %v13461_v2  ;;  %v16374_v2 = vld [vmem:[#allocation65_spill] sm:$0xff] }
0x1107   : > { %11198 = vmatprep.mubr.msk.f32.mxu0 %vm2155_vm4, %v13466_v50  ;;  %v16375_v50 = vld [vmem:[#allocation67_spill] sm:$0xff] }
0x110a   : > { %11199 = vmatmul.mubr.msk.f32.gmra.mrb[204].mxu0 %vm2155_vm4, %v13479_v27  ;;  %v16376_v27 = vld [vmem:[#allocation69_spill] sm:$0xff] }
0x110b   : > { %11201 = vmatprep.mubr.msk.f32.mxu0 %vm2155_vm4, %v13484_v57  ;;  %v16377_v57 = vld [vmem:[#allocation71_spill] sm:$0xff] }
0x110e   : > { %11202 = vmatmul.mubr.msk.f32.gmra.mrb[206].mxu0 %vm2155_vm4, %v16370_v38  ;;  %v7246_v38 = vld [vmem:[%s16042_s5 + $0x270] sm:$0xff] }
0x110f   : > { %11204 = vmatprep.mubr.msk.f32.mxu0 %vm2155_vm4, %v16371_v55  ;;  %v7247_v55 = vld [vmem:[%s16042_s5 + $0x278] sm:$0xff] }
0x1112   : > { %11205 = vmatmul.mubr.msk.f32.gmra.mrb[208].mxu0 %vm2155_vm4, %v16372_v25 }
0x1113   : > { %11207 = vmatprep.mubr.msk.f32.mxu0 %vm2155_vm4, %v16373_v5 }
0x1116   : > { %11208 = vmatmul.mubr.msk.f32.gmra.mrb[210].mxu0 %vm2155_vm4, %v16374_v2  ;;  %v11772_v2 = vpack.c.bf16 %v7247_v55, %v7246_v38 }
0x1117   : > { %11210 = vmatprep.mubr.msk.f32.mxu0 %vm2155_vm4, %v16375_v50 }
0x111a   : > { %11211 = vmatmul.mubr.msk.f32.gmra.mrb[212].mxu0 %vm2155_vm4, %v16376_v27 }
0x111b   : > { %11213 = vmatprep.mubr.msk.f32.mxu0 %vm2155_vm4, %v16377_v57 }
0x111e   : > { %11214 = vmatmul.mubr.msk.f32.gmra.mrb[214].mxu0 %vm2155_vm4, %v16378_v43 }
0x111f   : > { %11216 = vmatprep.mubr.msk.f32.mxu0 %vm2155_vm4, %v16379_v62 }
0x1122   : > { %11217 = vmatmul.mubr.msk.f32.gmra.mrb[216].mxu0 %vm2155_vm4, %v16380_v16 }
0x1123   : > { %11219 = vmatprep.mubr.msk.f32.mxu0 %vm2155_vm4, %v16381_v54 }
0x1126   : > { %11220 = vmatmul.mubr.msk.f32.gmra.mrb[218].mxu0 %vm2155_vm4, %v16382_v15 }
0x1127   : > { %11222 = vmatprep.mubr.msk.f32.mxu0 %vm2155_vm4, %v16383_v35 }
0x112a   : > { %11223 = vmatmul.mubr.msk.f32.gmra.mrb[220].mxu0 %vm2155_vm4, %v16384_v21 }
0x112b   : > { %11225 = vmatprep.mubr.msk.f32.mxu0 %vm2155_vm4, %v16385_v4 }
0x112e   : > { %11226 = vmatmul.mubr.msk.f32.gmra.mrb[222].mxu0 %vm2155_vm4, %v16386_v24 }
0x112f   : > { %11228 = vmatprep.mubr.msk.f32.mxu0 %vm2155_vm4, %v16387_v61 }
0x1132   : > { %11229 = vmatmul.mubr.msk.f32.gmra.mrb[224].mxu0 %vm2155_vm4, %v16388_v6 }
0x1133   : > { %11231 = vmatprep.mubr.msk.f32.mxu0 %vm2155_vm4, %v16389_v46 }
0x1136   : > { %11232 = vmatmul.mubr.msk.f32.gmra.mrb[226].mxu0 %vm2155_vm4, %v16390_v9 }
0x1137   : > { %11234 = vmatprep.mubr.msk.f32.mxu0 %vm2155_vm4, %v16391_v7 }
0x113a   : > { %11235 = vmatmul.mubr.msk.f32.gmra.mrb[228].mxu0 %vm2155_vm4, %v16392_v20 }
0x113b   : > { %11237 = vmatprep.mubr.msk.f32.mxu0 %vm2155_vm4, %v16393_v29 }
0x113e   : > { %11238 = vmatmul.mubr.msk.f32.gmra.mrb[230].mxu0 %vm2155_vm4, %v16394_v31 }
0x11d5   : > { %v11194_v32 = vpop.f32.mrb[200].mxu0 }
0x11d6   : > { %v7085_v0 = vpop.f32.mrb[201].mxu0 }
0x11d9   : > { %v11197_v51 = vpop.f32.mrb[202].mxu0 }
0x11da   : > { %v7095_v48 = vpop.f32.mrb[203].mxu0 }
0x11dd   : > { %v11200_v17 = vpop.f32.mrb[204].mxu0 }
0x11de   : > { %v7105_v60 = vpop.f32.mrb[205].mxu0 }
0x11e1   : > { %v11203_v53 = vpop.f32.mrb[206].mxu0 }
0x11e2   : > { %v7115_v41 = vpop.f32.mrb[207].mxu0 }
0x11e5   : > { %v11206_v49 = vpop.f32.mrb[208].mxu0 }
0x11e6   : > { %v7125_v3 = vpop.f32.mrb[209].mxu0 }
0x11e9   : > { %v11209_v42 = vpop.f32.mrb[210].mxu0 }
0x11ea   : > { %v7135_v58 = vpop.f32.mrb[211].mxu0 }
0x11ed   : > { %v11212_v63 = vpop.f32.mrb[212].mxu0 }
0x11ee   : > { %v7145_v34 = vpop.f32.mrb[213].mxu0 }
0x11f1   : > { %v11215_v47 = vpop.f32.mrb[214].mxu0 }
0x11f2   : > { %v7155_v33 = vpop.f32.mrb[215].mxu0 }
0x11f5   : > { %v11218_v25 = vpop.f32.mrb[216].mxu0 }
0x11f6   : > { %v7165_v5 = vpop.f32.mrb[217].mxu0 }
0x11f7   : > { %11248 = vmatprep.mubr.msk.f32.mxu1 %vm2485_vm8, %v7165_v5 }
0x11f8   : > { %11249 = vmatmul.mubr.msk.f32.vlgmr.msra.gmra.mrb[144].mxu1 %vm2485_vm8, %v11218_v25 }
0x11f9   : > { %v11221_v50 = vpop.f32.mrb[218].mxu0  ;;  %11771 = vmatpush3.bf16.msra.mxu1 %v11768_v13 }
0x11fa   : > { %v7175_v27 = vpop.f32.mrb[219].mxu0  ;;  %11773 = vmatprep.subr.bf16.mxu1 %v11772_v2 }
0x11fb   : > { %11251 = vmatprep.mubr.msk.f32.mxu1 %vm2485_vm8, %v7175_v27 }
0x11fc   : > { %11252 = vmatmul.mubr.msk.f32.gmra.mrb[146].mxu1 %vm2485_vm8, %v11221_v50 }
0x11fd   : > { %v11224_v57 = vpop.f32.mrb[220].mxu0  ;;  %11775 = vmatpush3.bf16.msra.mxu1 %v11772_v2  ;;  %v16397_v2 = vld [vmem:[#allocation24_spill] sm:$0xff] }
0x11fe   : > { %v7185_v43 = vpop.f32.mrb[221].mxu0 }
0x11ff   : > { %11254 = vmatprep.mubr.msk.f32.mxu1 %vm2485_vm8, %v7185_v43 }
0x1200   : > { %11255 = vmatmul.mubr.msk.f32.gmra.mrb[148].mxu1 %vm2485_vm8, %v11224_v57  ;;  %v16398_v57 = vld [vmem:[#allocation22_spill] sm:$0xff] }
0x1201   : > { %v11227_v12 = vpop.f32.mrb[222].mxu0 }
0x1202   : > { %v7195_v45 = vpop.f32.mrb[223].mxu0 }
0x1203   : > { %11257 = vmatprep.mubr.msk.f32.mxu1 %vm2485_vm8, %v7195_v45 }
0x1204   : > { %11258 = vmatmul.mubr.msk.f32.gmra.mrb[150].mxu1 %vm2485_vm8, %v11227_v12 }
0x1205   : > { %v11230_v59 = vpop.f32.mrb[224].mxu0 }
0x1206   : > { %v7205_v10 = vpop.f32.mrb[225].mxu0 }
0x1207   : > { %11260 = vmatprep.mubr.msk.f32.mxu1 %vm2485_vm8, %v7205_v10 }
0x1208   : > { %11261 = vmatmul.mubr.msk.f32.gmra.mrb[152].mxu1 %vm2485_vm8, %v11230_v59 }
0x1209   : > { %v11233_v23 = vpop.f32.mrb[226].mxu0 }
0x120a   : > { %v7215_v18 = vpop.f32.mrb[227].mxu0 }
0x120b   : > { %11263 = vmatprep.mubr.msk.f32.mxu1 %vm2485_vm8, %v7215_v18 }
0x120c   : > { %11264 = vmatmul.mubr.msk.f32.gmra.mrb[154].mxu1 %vm2485_vm8, %v11233_v23 }
0x120d   : > { %v11236_v40 = vpop.f32.mrb[228].mxu0 }
0x120e   : > { %v7225_v56 = vpop.f32.mrb[229].mxu0 }
0x120f   : > { %11266 = vmatprep.mubr.msk.f32.mxu1 %vm2485_vm8, %v7225_v56  ;;  %v16399_v56 = vld [vmem:[#allocation28_spill] sm:$0xff] }
0x1210   : > { %11267 = vmatmul.mubr.msk.f32.gmra.mrb[156].mxu1 %vm2485_vm8, %v11236_v40 }
0x1211   : > { %v11239_v13 = vpop.f32.mrb[230].mxu0 }
0x1212   : > { %v7235_v38 = vpop.f32.mrb[231].mxu0 }
0x1213   : > { %11269 = vmatprep.mubr.msk.f32.mxu1 %vm2485_vm8, %v7235_v38 }
0x1214   : > { %11270 = vmatmul.mubr.msk.f32.gmra.mrb[158].mxu1 %vm2485_vm8, %v11239_v13 }
0x1215   : > { %11280 = vmatprep.mubr.msk.f32.mxu1 %vm2485_vm8, %v7085_v0  ;;  %v7793_v0 = vld [vmem:[%s16042_s5 + $0x2a8] sm:$0xff] }
0x1218   : > { %11281 = vmatmul.mubr.msk.f32.vlgmr.msra.gmra.mrb[144].mxu1 %vm2485_vm8, %v11194_v32  ;;  %v7792_v32 = vld [vmem:[%s16042_s5 + $0x2a0] sm:$0xff] }
0x1219   : > { %11283 = vmatprep.mubr.msk.f32.mxu1 %vm2485_vm8, %v7095_v48  ;;  %v7794_v48 = vld [vmem:[%s16042_s5 + $0x2b0] sm:$0xff] }
0x121c   : > { %11284 = vmatmul.mubr.msk.f32.gmra.mrb[146].mxu1 %vm2485_vm8, %v11197_v51  ;;  %v11776_v51 = vpack.c.bf16 %v7793_v0, %v7792_v32  ;;  %v16400_v0 = vld [vmem:[#allocation26_spill] sm:$0xff] }
0x121d   : > { %11286 = vmatprep.mubr.msk.f32.mxu1 %vm2485_vm8, %v7105_v60 }
0x121e   : > { %11777 = vmatprep.subr.bf16.mxu0 %v11776_v51 }
0x121f   : > { %11779 = vmatpush3.bf16.msra.mxu0 %v11776_v51 }
0x1220   : > { %11287 = vmatmul.mubr.msk.f32.gmra.mrb[148].mxu1 %vm2485_vm8, %v11200_v17  ;;  %v7795_v17 = vld [vmem:[%s16042_s5 + $0x2b8] sm:$0xff] }
0x1221   : > { %11289 = vmatprep.mubr.msk.f32.mxu1 %vm2485_vm8, %v7115_v41  ;;  %v11780_v60 = vpack.c.bf16 %v7795_v17, %v7794_v48  ;;  %v8415_v41 = vld [vmem:[%s16043_s6 + $0x40] sm:$0xff] }
0x1223   : > { %11781 = vmatprep.subr.bf16.mxu0 %v11780_v60 }
0x1224   : > { %11290 = vmatmul.mubr.msk.f32.gmra.mrb[150].mxu1 %vm2485_vm8, %v11203_v53  ;;  %11783 = vmatpush3.bf16.msra.mxu0 %v11780_v60  ;;  %v8414_v53 = vld [vmem:[%s16043_s6 + $0x38] sm:$0xff] }
0x1225   : > { %11292 = vmatprep.mubr.msk.f32.mxu1 %vm2485_vm8, %v7125_v3  ;;  %v15525_v3 = vld [vmem:[%s16046_s9 + $0x15] ss:$0 sm:$0xff] }
0x1226   : > { %v7646_v50 = vadd.f32 %v15525_v3, %v16397_v2  ;;  %v7645_v43 = vadd.f32 %v15525_v3, %v16398_v57  ;;  %v7648_v13 = vadd.f32 %v15525_v3, %v16399_v56  ;;  %v7647_v51 = vadd.f32 %v15525_v3, %v16400_v0  ;;  %v16404_v0 = vld [vmem:[#allocation34_spill] sm:$0xff] }
0x1228   : > { %11293 = vmatmul.mubr.msk.f32.gmra.mrb[152].mxu1 %vm2485_vm8, %v11206_v49  ;;  %v15519_v49 = vpack.c.bf16 %v8415_v41, %v8414_v53 }
0x1229   : > { %11295 = vmatprep.mubr.msk.f32.mxu1 %vm2485_vm8, %v7135_v58 }
0x122a   : > { %11793 = vmatprep.subr.bf16.mxu0 %v15519_v49 }
0x122c   : > { %11296 = vmatmul.mubr.msk.f32.gmra.mrb[154].mxu1 %vm2485_vm8, %v11209_v42  ;;  %v16395_v42 = vld [vmem:[#allocation20_spill] sm:$0xff] }
0x122d   : > { %11298 = vmatprep.mubr.msk.f32.mxu1 %vm2485_vm8, %v7145_v34  ;;  %v7644_v58 = vadd.f32 %v15525_v3, %v16395_v42 }
0x1230   : > { %11299 = vmatmul.mubr.msk.f32.gmra.mrb[156].mxu1 %vm2485_vm8, %v11212_v63  ;;  %v16396_v63 = vld [vmem:[#allocation18_spill] sm:$0xff] }
0x1231   : > { %11301 = vmatprep.mubr.msk.f32.mxu1 %vm2485_vm8, %v7155_v33  ;;  %v7643_v34 = vadd.f32 %v15525_v3, %v16396_v63  ;;  %v15534_v33 = vld [vmem:[%s16046_s9 + $0x11] ss:$0 sm:$0xff] }
0x1234   : > { %11302 = vmatmul.mubr.msk.f32.gmra.mrb[158].mxu1 %vm2485_vm8, %v11215_v47 }
0x12eb   : > { %v11282_v47 = vpop.f32.mrb[144].mxu1 }
0x12ec   : > { %v7660_v55 = vmul.f32 %v11282_v47, %v7644_v58  ;;  %v7559_v25 = vpop.f32.mrb[145].mxu1 }
0x12ed   : > { %v7659_v5 = vmul.f32 %v7643_v34, %v7559_v25  ;;  %v16401_v34 = vld [vmem:[#allocation32_spill] sm:$0xff] }
0x12ee   : > { %v15539_v27 = vadd.f32 %v15534_v33, %v7660_v55  ;;  %v7650_v47 = vadd.f32 %v15525_v3, %v16401_v34 }
0x12ef   : > { %v15544_v12 = vadd.f32 %v15534_v33, %v7659_v5  ;;  %v11285_v45 = vpop.f32.mrb[146].mxu1  ;;  %v16402_v5 = vld [vmem:[#allocation30_spill] sm:$0xff] }
0x12f0   : > { %v7697_v59 = vsub.f32 0.0, %v15539_v27  ;;  %v7662_v10 = vmul.f32 %v11285_v45, %v7646_v50  ;;  %v7569_v23 = vpop.f32.mrb[147].mxu1  ;;  %v7649_v2 = vadd.f32 %v15525_v3, %v16402_v5 }
0x12f1   : > { %v7696_v18 = vsub.f32 0.0, %v15544_v12  ;;  %v7661_v40 = vmul.f32 %v7645_v43, %v7569_v23 }
0x12f2   : > { %v7714_v38 = vmul.f32 1.442695, %v7697_v59  ;;  %v15551_v32 = vadd.f32 %v15534_v33, %v7662_v10 }
0x12f3   : > { %v7712_v48 = vmul.f32 1.442695, %v7696_v18  ;;  %v15556_v17 = vadd.f32 %v15534_v33, %v7661_v40  ;;  %v11288_v60 = vpop.f32.mrb[148].mxu1  ;;  %v16403_v40 = vld [vmem:[#allocation36_spill] sm:$0xff] }
0x12f4   : > { %12437 = vpow2.f32 %v7714_v38  ;;  %v7699_v53 = vsub.f32 0.0, %v15551_v32  ;;  %v7664_v41 = vmul.f32 %v11288_v60, %v7648_v13  ;;  %v7579_v42 = vpop.f32.mrb[149].mxu1  ;;  %v7652_v56 = vadd.f32 %v15525_v3, %v16403_v40 }
0x12f5   : > { %12439 = vpow2.f32 %v7712_v48  ;;  %v7698_v58 = vsub.f32 0.0, %v15556_v17  ;;  %v7663_v63 = vmul.f32 %v7647_v51, %v7579_v42  ;;  %v7651_v51 = vadd.f32 %v15525_v3, %v16404_v0 }
0x12f6   : > { %v7718_v55 = vmul.f32 1.442695, %v7699_v53  ;;  %v15563_v25 = vadd.f32 %v15534_v33, %v7664_v41 }
0x12f7   : > { %v7716_v50 = vmul.f32 1.442695, %v7698_v58  ;;  %v15568_v57 = vadd.f32 %v15534_v33, %v7663_v63  ;;  %v11291_v43 = vpop.f32.mrb[150].mxu1 }
0x12f8   : > { %12441 = vpow2.f32 %v7718_v55  ;;  %v7701_v45 = vsub.f32 0.0, %v15563_v25  ;;  %v7666_v59 = vmul.f32 %v11291_v43, %v7650_v47  ;;  %v7589_v10 = vpop.f32.mrb[151].mxu1  ;;  %v16405_v55 = vld [vmem:[#allocation40_spill] sm:$0xff] }
0x12f9   : > { %12443 = vpow2.f32 %v7716_v50  ;;  %v7700_v23 = vsub.f32 0.0, %v15568_v57  ;;  %v7665_v18 = vmul.f32 %v7649_v2, %v7589_v10  ;;  %v7654_v5 = vadd.f32 %v15525_v3, %v16405_v55 }
0x12fa   : > { %v7722_v13 = vmul.f32 1.442695, %v7701_v45  ;;  %v15575_v38 = vadd.f32 %v15534_v33, %v7666_v59  ;;  %v16406_v45 = vld [vmem:[#allocation38_spill] sm:$0xff] }
0x12fb   : > { %v7720_v48 = vmul.f32 1.442695, %v7700_v23  ;;  %v15580_v60 = vadd.f32 %v15534_v33, %v7665_v18  ;;  %v11294_v53 = vpop.f32.mrb[152].mxu1  ;;  %v7653_v59 = vadd.f32 %v15525_v3, %v16406_v45 }
0x12fc   : > { %12445 = vpow2.f32 %v7722_v13  ;;  %v7703_v41 = vsub.f32 0.0, %v15575_v38  ;;  %v7668_v42 = vmul.f32 %v11294_v53, %v7652_v56  ;;  %v7599_v58 = vpop.f32.mrb[153].mxu1 }
0x12fd   : > { %12447 = vpow2.f32 %v7720_v48  ;;  %v7702_v63 = vsub.f32 0.0, %v15580_v60  ;;  %v7667_v34 = vmul.f32 %v7651_v51, %v7599_v58  ;;  %v16407_v48 = vld [vmem:[#allocation42_spill] sm:$0xff] }
0x12fe   : > { %v12438_v47 = vpop.eup %12437  ;;  %v7726_v2 = vmul.f32 1.442695, %v7703_v41  ;;  %v15587_v50 = vadd.f32 %v15534_v33, %v7668_v42  ;;  %v7655_v53 = vadd.f32 %v15525_v3, %v16407_v48 }
0x12ff   : > { %v12440_v43 = vpop.eup %12439  ;;  %v7745_v10 = vadd.f32 1.0, %v12438_v47  ;;  %v7724_v23 = vmul.f32 1.442695, %v7702_v63  ;;  %v15592_v18 = vadd.f32 %v15534_v33, %v7667_v34  ;;  %v11297_v40 = vpop.f32.mrb[154].mxu1  ;;  %v16408_v47 = vld [vmem:[#allocation44_spill] sm:$0xff] }
0x1300   : > { %v7744_v56 = vadd.f32 1.0, %v12440_v43  ;;  %12449 = vpow2.f32 %v7726_v2  ;;  %v7705_v13 = vsub.f32 0.0, %v15587_v50  ;;  %v7670_v0 = vmul.f32 %v11297_v40, %v7654_v5  ;;  %v7609_v51 = vpop.f32.mrb[155].mxu1 }
0x1301   : > { %12451 = vrcp.f32 %v7745_v10  ;;  %v7704_v41 = vsub.f32 0.0, %v15592_v18  ;;  %v7669_v42 = vmul.f32 %v7653_v59, %v7609_v51  ;;  %v7656_v63 = vadd.f32 %v15525_v3, %v16408_v47  ;;  %v16409_v47 = vld [vmem:[#allocation46_spill] sm:$0xff] }
0x1302   : > { %v12442_v58 = vpop.eup %12441  ;;  %12453 = vrcp.f32 %v7744_v56  ;;  %v7730_v34 = vmul.f32 1.442695, %v7705_v13  ;;  %v15601_v55 = vadd.f32 %v15534_v33, %v7670_v0  ;;  %v7657_v56 = vadd.f32 %v15525_v3, %v16409_v47 }
0x1303   : > { %v12444_v2 = vpop.eup %12443  ;;  %v7747_v43 = vadd.f32 1.0, %v12442_v58  ;;  %12455 = vpow2.f32 %v7724_v23  ;;  %v7728_v5 = vmul.f32 1.442695, %v7704_v41  ;;  %v15604_v45 = vadd.f32 %v15534_v33, %v7669_v42  ;;  %v11300_v10 = vpop.f32.mrb[156].mxu1  ;;  %v16410_v23 = vld [vmem:[#allocation48_spill] sm:$0xff] }
0x1304   : > { %v7746_v40 = vadd.f32 1.0, %v12444_v2  ;;  %12457 = vpow2.f32 %v7730_v34  ;;  %v7707_v59 = vsub.f32 0.0, %v15601_v55  ;;  %v7672_v51 = vmul.f32 %v11300_v10, %v7656_v63  ;;  %v7619_v48 = vpop.f32.mrb[157].mxu1 }
0x1305   : > { %12459 = vrcp.f32 %v7747_v43  ;;  %v7706_v13 = vsub.f32 0.0, %v15604_v45  ;;  %v7671_v0 = vmul.f32 %v7655_v53, %v7619_v48  ;;  %v7658_v41 = vadd.f32 %v15525_v3, %v16410_v23 }
0x1306   : > { %v12446_v58 = vpop.eup %12445  ;;  %12461 = vrcp.f32 %v7746_v40  ;;  %v7734_v42 = vmul.f32 1.442695, %v7707_v59  ;;  %v15613_v2 = vadd.f32 %v15534_v33, %v7672_v51 }
0x1307   : > { %v12448_v34 = vpop.eup %12447  ;;  %v7749_v31 = vadd.f32 1.0, %v12446_v58  ;;  %12463 = vpow2.f32 %v7728_v5  ;;  %v7732_v63 = vmul.f32 1.442695, %v7706_v13  ;;  %v15616_v10 = vadd.f32 %v15534_v33, %v7671_v0  ;;  %v11303_v43 = vpop.f32.mrb[158].mxu1  ;;  %v8416_v13 = vld [vmem:[%s16043_s6 + $0x48] sm:$0xff]  ;;  %v8417_v0 = vld [vmem:[%s16043_s6 + $0x50] sm:$0xff] }
0x1308   : > { %v7748_v47 = vadd.f32 1.0, %v12448_v34  ;;  %12465 = vpow2.f32 %v7734_v42  ;;  %v7709_v53 = vsub.f32 0.0, %v15613_v2  ;;  %v7674_v48 = vmul.f32 %v11303_v43, %v7658_v41  ;;  %v7629_v29 = vpop.f32.mrb[159].mxu1 }
0x1309   : > { %12467 = vrcp.f32 %v7749_v31  ;;  %v7708_v3 = vsub.f32 0.0, %v15616_v10  ;;  %v7673_v40 = vmul.f32 %v7657_v56, %v7629_v29 }
0x130a   : > { %v12450_v59 = vpop.eup %12449  ;;  %12469 = vrcp.f32 %v7748_v47  ;;  %v7738_v51 = vmul.f32 1.442695, %v7709_v53  ;;  %v15621_v5 = vadd.f32 %v15534_v33, %v7674_v48  ;;  %v11796_v47 = vpack.c.bf16 %v8417_v0, %v8416_v13 }
0x130b   : > { %v12452_v58 = vpop.eup %12451  ;;  %v7751_v23 = vadd.f32 1.0, %v12450_v59  ;;  %12471 = vpow2.f32 %v7732_v63  ;;  %v7736_v31 = vmul.f32 1.442695, %v7708_v3  ;;  %v15630_v29 = vadd.f32 %v15534_v33, %v7673_v40 }
0x130c   : > { %v12454_v56 = vpop.eup %12453  ;;  %12473 = vpow2.f32 %v7738_v51  ;;  %v7711_v41 = vsub.f32 0.0, %v15621_v5  ;;  %v7777_v48 = vmul.f32 %v12452_v58, %v15539_v27 }
0x130d   : > { %v12456_v42 = vpop.eup %12455  ;;  %v7776_v34 = vmul.f32 %v12454_v56, %v15544_v12  ;;  %v7710_v43 = vsub.f32 0.0, %v15630_v29  ;;  %12475 = vpow2.f32 %v7736_v31 }
0x130e   : > { %v12458_v53 = vpop.eup %12457  ;;  %v7750_v20 = vadd.f32 1.0, %v12456_v42  ;;  %v7742_v63 = vmul.f32 1.442695, %v7711_v41  ;;  %12477 = vrcp.f32 %v7751_v23 }
0x130f   : > { %v12460_v3 = vpop.eup %12459  ;;  %v7753_v33 = vadd.f32 1.0, %v12458_v53  ;;  %v7740_v40 = vmul.f32 1.442695, %v7710_v43  ;;  %11312 = vmatprep.mubr.msk.f32.mxu0 %vm2485_vm8, %v7776_v34 }
0x1310   : > { %v12462_v59 = vpop.eup %12461  ;;  %12479 = vrcp.f32 %v7750_v20  ;;  %11313 = vmatmul.mubr.msk.f32.vlgmr.msra.gmra.mrb[232].mxu0 %vm2485_vm8, %v7777_v48  ;;  %v7779_v13 = vmul.f32 %v12460_v3, %v15551_v32 }
0x1311   : > { %v12464_v12 = vpop.eup %12463  ;;  %v7778_v51 = vmul.f32 %v12462_v59, %v15556_v17  ;;  %12481 = vrcp.f32 %v7753_v33  ;;  %11795 = vmatpush3.bf16.msra.mxu0 %v15519_v49 }
0x1312   : > { %v12466_v27 = vpop.eup %12465  ;;  %v7752_v0 = vadd.f32 1.0, %v12464_v12  ;;  %12483 = vpow2.f32 %v7742_v63  ;;  %11797 = vmatprep.subr.bf16.mxu0 %v11796_v47 }
0x1313   : > { %v12468_v58 = vpop.eup %12467  ;;  %v7755_v23 = vadd.f32 1.0, %v12466_v27  ;;  %12485 = vpow2.f32 %v7740_v40  ;;  %11315 = vmatprep.mubr.msk.f32.mxu0 %vm2485_vm8, %v7778_v51 }
0x1314   : > { %v12470_v20 = vpop.eup %12469  ;;  %12487 = vrcp.f32 %v7752_v0  ;;  %11316 = vmatmul.mubr.msk.f32.gmra.mrb[234].mxu0 %vm2485_vm8, %v7779_v13  ;;  %v7781_v56 = vmul.f32 %v12468_v58, %v15563_v25 }
0x1315   : > { %v12472_v31 = vpop.eup %12471  ;;  %v7780_v17 = vmul.f32 %v12470_v20, %v15568_v57  ;;  %11799 = vmatpush3.bf16.msra.mxu0 %v11796_v47  ;;  %12489 = vrcp.f32 %v7755_v23 }
0x1316   : > { %v12474_v49 = vpop.eup %12473  ;;  %v7754_v32 = vadd.f32 1.0, %v12472_v31 }
0x1317   : > { %v7757_v41 = vadd.f32 1.0, %v12474_v49  ;;  %11318 = vmatprep.mubr.msk.f32.mxu0 %vm2485_vm8, %v7780_v17  ;;  %v12476_v42 = vpop.eup %12475 }
0x1318   : > { %12491 = vrcp.f32 %v7754_v32  ;;  %11319 = vmatmul.mubr.msk.f32.gmra.mrb[236].mxu0 %vm2485_vm8, %v7781_v56  ;;  %v12478_v34 = vpop.eup %12477  ;;  %v7756_v43 = vadd.f32 1.0, %v12476_v42  ;;  %v16413_v56 = vld [vmem:[#allocation25_spill] sm:$0xff]  ;;  %v16414_v42 = vld [vmem:[#allocation23_spill] sm:$0xff] }
0x1319   : > { %12493 = vrcp.f32 %v7757_v41  ;;  %v7783_v25 = vmul.f32 %v12478_v34, %v15575_v38 }
0x131a   : > { %v12480_v53 = vpop.eup %12479  ;;  %12495 = vrcp.f32 %v7756_v43 }
0x131b   : > { %v12482_v48 = vpop.eup %12481  ;;  %v7782_v57 = vmul.f32 %v12480_v53, %v15580_v60 }
0x131c   : > { %v12484_v47 = vpop.eup %12483  ;;  %v7785_v12 = vmul.f32 %v12482_v48, %v15587_v50 }
0x131d   : > { %v12486_v63 = vpop.eup %12485  ;;  %v7759_v3 = vadd.f32 1.0, %v12484_v47  ;;  %11321 = vmatprep.mubr.msk.f32.mxu0 %vm2485_vm8, %v7782_v57 }
0x131e   : > { %v12488_v33 = vpop.eup %12487  ;;  %v7758_v40 = vadd.f32 1.0, %v12486_v63  ;;  %11322 = vmatmul.mubr.msk.f32.gmra.mrb[238].mxu0 %vm2485_vm8, %v7783_v25 }
0x131f   : > { %v7784_v59 = vmul.f32 %v12488_v33, %v15592_v18  ;;  %12497 = vrcp.f32 %v7759_v3  ;;  %v12490_v51 = vpop.eup %12489  ;;  %v16415_v3 = vld [vmem:[#allocation29_spill] sm:$0xff] }
0x1320   : > { %12499 = vrcp.f32 %v7758_v40  ;;  %v7787_v13 = vmul.f32 %v12490_v51, %v15601_v55 }
0x1321   : > { %11324 = vmatprep.mubr.msk.f32.mxu0 %vm2485_vm8, %v7784_v59 }
0x1322   : > { %v12492_v60 = vpop.eup %12491  ;;  %11325 = vmatmul.mubr.msk.f32.gmra.mrb[240].mxu0 %vm2485_vm8, %v7785_v12  ;;  %v16416_v12 = vld [vmem:[#allocation27_spill] sm:$0xff] }
0x1323   : > { %v7786_v38 = vmul.f32 %v12492_v60, %v15604_v45  ;;  %v12494_v27 = vpop.eup %12493 }
0x1324   : > { %v12496_v0 = vpop.eup %12495  ;;  %v7789_v50 = vmul.f32 %v12494_v27, %v15613_v2  ;;  %v16412_v2 = vld [vmem:[#allocation19_spill] sm:$0xff] }
0x1325   : > { %11327 = vmatprep.mubr.msk.f32.mxu0 %vm2485_vm8, %v7786_v38  ;;  %v7788_v18 = vmul.f32 %v12496_v0, %v15616_v10 }
0x1326   : > { %11328 = vmatmul.mubr.msk.f32.gmra.mrb[242].mxu0 %vm2485_vm8, %v7787_v13 }
0x1327   : > { %11330 = vmatprep.mubr.msk.f32.mxu0 %vm2485_vm8, %v7788_v18 }
0x1329   : > { %v12498_v58 = vpop.eup %12497 }
0x132a   : > { %v12500_v23 = vpop.eup %12499  ;;  %11331 = vmatmul.mubr.msk.f32.gmra.mrb[244].mxu0 %vm2485_vm8, %v7789_v50  ;;  %v7791_v20 = vmul.f32 %v12498_v58, %v15621_v5 }
0x132b   : > { %v7790_v45 = vmul.f32 %v12500_v23, %v15630_v29  ;;  %v15707_v29 = vld [vmem:[%s16046_s9 + $0x12] ss:$0 sm:$0xff] }
0x132d   : > { %11333 = vmatprep.mubr.msk.f32.mxu0 %vm2485_vm8, %v7790_v45 }
0x132e   : > { %11334 = vmatmul.mubr.msk.f32.gmra.mrb[246].mxu0 %vm2485_vm8, %v7791_v20 }
0x132f   : > { %11376 = vmatprep.mubr.msk.f32.mxu0 %vm2485_vm8, %v15355_v36  ;;  %v8160_v36 = vld [vmem:[%s16043_s6 + $0x20] sm:$0xff] }
0x1332   : > { %11377 = vmatmul.mubr.msk.f32.vlgmr.msra.gmra.mrb[248].mxu0 %vm2485_vm8, %v15352_v11  ;;  %v8159_v11 = vld [vmem:[%s16043_s6 + $0x18] sm:$0xff] }
0x1333   : > { %11379 = vmatprep.mubr.msk.f32.mxu0 %vm2485_vm8, %v15363_v44  ;;  %v8161_v44 = vld [vmem:[%s16043_s6 + $0x28] sm:$0xff] }
0x1336   : > { %11380 = vmatmul.mubr.msk.f32.gmra.mrb[250].mxu0 %vm2485_vm8, %v15360_v26  ;;  %v11784_v26 = vpack.c.bf16 %v8160_v36, %v8159_v11  ;;  %v16417_v36 = vld [vmem:[#allocation33_spill] sm:$0xff] }
0x1337   : > { %11382 = vmatprep.mubr.msk.f32.mxu0 %vm2485_vm8, %v15371_v19 }
0x1338   : > { %11785 = vmatprep.subr.bf16.mxu1 %v11784_v26 }
0x1339   : > { %11787 = vmatpush3.bf16.msra.mxu1 %v11784_v26 }
0x133a   : > { %11383 = vmatmul.mubr.msk.f32.gmra.mrb[252].mxu0 %vm2485_vm8, %v15368_v28  ;;  %v8162_v28 = vld [vmem:[%s16043_s6 + $0x30] sm:$0xff] }
0x133b   : > { %11385 = vmatprep.mubr.msk.f32.mxu0 %vm2485_vm8, %v15379_v14  ;;  %v11788_v19 = vpack.c.bf16 %v8162_v28, %v8161_v44  ;;  %v16411_v14 = vld [vmem:[#allocation21_spill] sm:$0xff]  ;;  %v16418_v28 = vld [vmem:[#allocation31_spill] sm:$0xff] }
0x133d   : > { %11789 = vmatprep.subr.bf16.mxu1 %v11788_v19 }
0x133e   : > { %11386 = vmatmul.mubr.msk.f32.gmra.mrb[254].mxu0 %vm2485_vm8, %v15376_v8  ;;  %11791 = vmatpush3.bf16.msra.mxu1 %v11788_v19  ;;  %v15698_v8 = vld [vmem:[%s16046_s9 + $0x16] ss:$0 sm:$0xff] }
0x133f   : > { %v7995_v55 = vadd.f32 %v15698_v8, %v16411_v14  ;;  %v7994_v10 = vadd.f32 %v15698_v8, %v16412_v2  ;;  %v7997_v32 = vadd.f32 %v15698_v8, %v16413_v56  ;;  %v7996_v34 = vadd.f32 %v15698_v8, %v16414_v42  ;;  %v16420_v42 = vld [vmem:[#allocation35_spill] sm:$0xff] }
0x1340   : > { %v7999_v33 = vadd.f32 %v15698_v8, %v16415_v3  ;;  %v7998_v51 = vadd.f32 %v15698_v8, %v16416_v12  ;;  %v8001_v26 = vadd.f32 %v15698_v8, %v16417_v36  ;;  %v8000_v19 = vadd.f32 %v15698_v8, %v16418_v28 }
0x13e3   : > { %v11314_v5 = vpop.f32.mrb[232].mxu0 }
0x13e4   : > { %v8011_v31 = vmul.f32 %v11314_v5, %v7995_v55  ;;  %v7910_v17 = vpop.f32.mrb[233].mxu0 }
0x13e5   : > { %v8010_v49 = vmul.f32 %v7994_v10, %v7910_v17 }
0x13e6   : > { %v15712_v41 = vadd.f32 %v15707_v29, %v8011_v31 }
0x13e7   : > { %v15717_v43 = vadd.f32 %v15707_v29, %v8010_v49  ;;  %v11317_v53 = vpop.f32.mrb[234].mxu0  ;;  %v16419_v49 = vld [vmem:[#allocation37_spill] sm:$0xff] }
0x13e8   : > { %v8048_v48 = vsub.f32 0.0, %v15712_v41  ;;  %v8013_v57 = vmul.f32 %v11317_v53, %v7997_v32  ;;  %v7920_v47 = vpop.f32.mrb[235].mxu0  ;;  %v8003_v56 = vadd.f32 %v15698_v8, %v16419_v49 }
0x13e9   : > { %v8047_v25 = vsub.f32 0.0, %v15717_v43  ;;  %v8012_v63 = vmul.f32 %v7996_v34, %v7920_v47  ;;  %v8002_v34 = vadd.f32 %v15698_v8, %v16420_v42 }
0x13ea   : > { %v8065_v40 = vmul.f32 1.442695, %v8048_v48  ;;  %v15724_v59 = vadd.f32 %v15707_v29, %v8013_v57 }
0x13eb   : > { %v8063_v60 = vmul.f32 1.442695, %v8047_v25  ;;  %v15729_v38 = vadd.f32 %v15707_v29, %v8012_v63  ;;  %v11320_v27 = vpop.f32.mrb[236].mxu0 }
0x13ec   : > { %12501 = vpow2.f32 %v8065_v40  ;;  %v8050_v13 = vsub.f32 0.0, %v15724_v59  ;;  %v8015_v0 = vmul.f32 %v11320_v27, %v7999_v33  ;;  %v7930_v18 = vpop.f32.mrb[237].mxu0 }
0x13ed   : > { %12503 = vpow2.f32 %v8063_v60  ;;  %v8049_v50 = vsub.f32 0.0, %v15729_v38  ;;  %v8014_v58 = vmul.f32 %v7998_v51, %v7930_v18  ;;  %v16421_v51 = vld [vmem:[#allocation41_spill] sm:$0xff]  ;;  %v16422_v18 = vld [vmem:[#allocation39_spill] sm:$0xff] }
0x13ee   : > { %v8069_v23 = vmul.f32 1.442695, %v8050_v13  ;;  %v15734_v45 = vadd.f32 %v15707_v29, %v8015_v0  ;;  %v8005_v60 = vadd.f32 %v15698_v8, %v16421_v51 }
0x13ef   : > { %v8067_v20 = vmul.f32 1.442695, %v8049_v50  ;;  %v15737_v11 = vadd.f32 %v15707_v29, %v8014_v58  ;;  %v8004_v50 = vadd.f32 %v15698_v8, %v16422_v18 }
0x13f0   : > { %12505 = vpow2.f32 %v8069_v23  ;;  %v8052_v44 = vsub.f32 0.0, %v15734_v45 }
0x13f1   : > { %12507 = vpow2.f32 %v8067_v20  ;;  %v8051_v14 = vsub.f32 0.0, %v15737_v11  ;;  %v11323_v55 = vpop.f32.mrb[238].mxu0 }
0x13f2   : > { %v8073_v2 = vmul.f32 1.442695, %v8052_v44  ;;  %v8017_v10 = vmul.f32 %v11323_v55, %v8001_v26  ;;  %v7940_v5 = vpop.f32.mrb[239].mxu0  ;;  %v16423_v26 = vld [vmem:[#allocation45_spill] sm:$0xff] }
0x13f3   : > { %v8071_v31 = vmul.f32 1.442695, %v8051_v14  ;;  %v8016_v17 = vmul.f32 %v8000_v19, %v7940_v5  ;;  %v8007_v44 = vadd.f32 %v15698_v8, %v16423_v26 }
0x13f4   : > { %12509 = vpow2.f32 %v8073_v2  ;;  %v15748_v32 = vadd.f32 %v15707_v29, %v8017_v10 }
0x13f5   : > { %12511 = vpow2.f32 %v8071_v31  ;;  %v15753_v53 = vadd.f32 %v15707_v29, %v8016_v17  ;;  %v11326_v48 = vpop.f32.mrb[240].mxu0 }
0x13f6   : > { %v12502_v57 = vpop.eup %12501  ;;  %v8054_v47 = vsub.f32 0.0, %v15748_v32  ;;  %v8019_v25 = vmul.f32 %v11326_v48, %v8003_v56  ;;  %v7950_v63 = vpop.f32.mrb[241].mxu0  ;;  %v16424_v56 = vld [vmem:[#allocation43_spill] sm:$0xff] }
0x13f7   : > { %v12504_v3 = vpop.eup %12503  ;;  %v8096_v33 = vadd.f32 1.0, %v12502_v57  ;;  %v8053_v40 = vsub.f32 0.0, %v15753_v53  ;;  %v8018_v12 = vmul.f32 %v8002_v34, %v7950_v63  ;;  %v8006_v42 = vadd.f32 %v15698_v8, %v16424_v56 }
0x13f8   : > { %v8095_v27 = vadd.f32 1.0, %v12504_v3  ;;  %v8077_v13 = vmul.f32 1.442695, %v8054_v47  ;;  %v15760_v0 = vadd.f32 %v15707_v29, %v8019_v25  ;;  %v16425_v25 = vld [vmem:[#allocation49_spill] sm:$0xff] }
0x13f9   : > { %12513 = vrcp.f32 %v8096_v33  ;;  %v8075_v58 = vmul.f32 1.442695, %v8053_v40  ;;  %v15765_v23 = vadd.f32 %v15707_v29, %v8018_v12  ;;  %v11329_v20 = vpop.f32.mrb[242].mxu0  ;;  %v8009_v63 = vadd.f32 %v15698_v8, %v16425_v25 }
0x13fa   : > { %v12506_v36 = vpop.eup %12505  ;;  %12515 = vrcp.f32 %v8095_v27  ;;  %v8056_v28 = vsub.f32 0.0, %v15760_v0  ;;  %v8021_v19 = vmul.f32 %v11329_v20, %v8005_v60  ;;  %v7960_v14 = vpop.f32.mrb[243].mxu0 }
0x13fb   : > { %v12508_v55 = vpop.eup %12507  ;;  %v8098_v2 = vadd.f32 1.0, %v12506_v36  ;;  %12517 = vpow2.f32 %v8077_v13  ;;  %v8055_v10 = vsub.f32 0.0, %v15765_v23  ;;  %v8020_v5 = vmul.f32 %v8004_v50, %v7960_v14 }
0x13fc   : > { %v8097_v31 = vadd.f32 1.0, %v12508_v55  ;;  %12519 = vpow2.f32 %v8075_v58  ;;  %v8081_v17 = vmul.f32 1.442695, %v8056_v28  ;;  %v15772_v49 = vadd.f32 %v15707_v29, %v8021_v19  ;;  %v16426_v58 = vld [vmem:[#allocation47_spill] sm:$0xff] }
0x13fd   : > { %12521 = vrcp.f32 %v8098_v2  ;;  %v8079_v34 = vmul.f32 1.442695, %v8055_v10  ;;  %v15777_v48 = vadd.f32 %v15707_v29, %v8020_v5  ;;  %v11332_v57 = vpop.f32.mrb[244].mxu0  ;;  %v8008_v20 = vadd.f32 %v15698_v8, %v16426_v58 }
0x13fe   : > { %v12510_v47 = vpop.eup %12509  ;;  %12523 = vrcp.f32 %v8097_v31  ;;  %v8058_v3 = vsub.f32 0.0, %v15772_v49  ;;  %v8023_v33 = vmul.f32 %v11332_v57, %v8007_v44  ;;  %v7970_v40 = vpop.f32.mrb[245].mxu0 }
0x13ff   : > { %v12512_v12 = vpop.eup %12511  ;;  %v8100_v51 = vadd.f32 1.0, %v12510_v47  ;;  %12525 = vpow2.f32 %v8081_v17  ;;  %v8057_v60 = vsub.f32 0.0, %v15777_v48  ;;  %v8022_v27 = vmul.f32 %v8006_v42, %v7970_v40 }
0x1400   : > { %v8099_v13 = vadd.f32 1.0, %v12512_v12  ;;  %12527 = vpow2.f32 %v8079_v34  ;;  %v8085_v18 = vmul.f32 1.442695, %v8058_v3  ;;  %v15784_v50 = vadd.f32 %v15707_v29, %v8023_v33 }
0x1401   : > { %12529 = vrcp.f32 %v8100_v51  ;;  %v8083_v36 = vmul.f32 1.442695, %v8057_v60  ;;  %v15789_v26 = vadd.f32 %v15707_v29, %v8022_v27  ;;  %v11335_v44 = vpop.f32.mrb[246].mxu0 }
0x1402   : > { %12531 = vrcp.f32 %v8099_v13  ;;  %v8060_v28 = vsub.f32 0.0, %v15784_v50  ;;  %v8025_v19 = vmul.f32 %v11335_v44, %v8009_v63  ;;  %v7980_v14 = vpop.f32.mrb[247].mxu0 }
0x1403   : > { %v12514_v55 = vpop.eup %12513  ;;  %12533 = vpow2.f32 %v8085_v18  ;;  %v8059_v2 = vsub.f32 0.0, %v15789_v26  ;;  %v8024_v10 = vmul.f32 %v8008_v20, %v7980_v14 }
0x1404   : > { %v12516_v5 = vpop.eup %12515  ;;  %v8128_v31 = vmul.f32 %v12514_v55, %v15712_v41  ;;  %12535 = vpow2.f32 %v8083_v36  ;;  %v8089_v8 = vmul.f32 1.442695, %v8060_v28  ;;  %v15795_v17 = vadd.f32 %v15707_v29, %v8025_v19 }
0x1405   : > { %v12518_v56 = vpop.eup %12517  ;;  %v8127_v42 = vmul.f32 %v12516_v5, %v15717_v43  ;;  %v8087_v34 = vmul.f32 1.442695, %v8059_v2  ;;  %v15799_v57 = vadd.f32 %v15707_v29, %v8024_v10  ;;  %v11378_v47 = vpop.f32.mrb[248].mxu0 }
0x1406   : > { %v12520_v25 = vpop.eup %12519  ;;  %v8144_v63 = vadd.f32 %v8128_v31, %v14918_v39  ;;  %v8102_v3 = vadd.f32 1.0, %v12518_v56  ;;  %12537 = vpow2.f32 %v8089_v8  ;;  %v8062_v41 = vsub.f32 0.0, %v15795_v17  ;;  %v8508_v33 = vpop.f32.mrb[249].mxu0 }
0x1407   : > { %v12522_v40 = vpop.eup %12521  ;;  %v8143_v12 = vadd.f32 %v8127_v42, %v14914_v30  ;;  %v8101_v51 = vadd.f32 1.0, %v12520_v25  ;;  %12539 = vpow2.f32 %v8087_v34  ;;  %v8061_v43 = vsub.f32 0.0, %v15799_v57 }
0x1408   : > { %v12524_v60 = vpop.eup %12523  ;;  %v8130_v29 = vmul.f32 %v12522_v40, %v15724_v59  ;;  %12541 = vrcp.f32 %v8102_v3  ;;  %v8093_v27 = vmul.f32 1.442695, %v8062_v41  ;;  %v11800_v13 = vpack.c.bf16 %v11378_v47, %v8508_v33 }
0x1409   : > { %v12526_v18 = vpop.eup %12525  ;;  %v8129_v39 = vmul.f32 %v12524_v60, %v15729_v38  ;;  %12543 = vrcp.f32 %v8101_v51  ;;  %v8091_v58 = vmul.f32 1.442695, %v8061_v43  ;;  %v11381_v20 = vpop.f32.mrb[250].mxu0  ;;  %11344 = vmatprep.mubr.msk.f32.mxu1 %vm2485_vm8, %v8143_v12 }
0x140a   : > { %v12528_v36 = vpop.eup %12527  ;;  %v8104_v30 = vadd.f32 1.0, %v12526_v18  ;;  %12545 = vpow2.f32 %v8093_v27  ;;  %11801 = vmatprep.subr.bf16.mxu1 %v11800_v13  ;;  %v8518_v44 = vpop.f32.mrb[251].mxu0  ;;  %11345 = vmatmul.mubr.msk.f32.vlgmr.msra.gmra.mrb[160].mxu1 %vm2485_vm8, %v8144_v63  ;;  %v8146_v55 = vadd.f32 %v8130_v29, %v14930_v37  ;;  %v16427_v27 = vld [vmem:[#allocation52_spill] sm:$0xff] }
0x140b   : > { %v12530_v28 = vpop.eup %12529  ;;  %v8145_v59 = vadd.f32 %v8129_v39, %v14927_v22  ;;  %v8103_v19 = vadd.f32 1.0, %v12528_v36  ;;  %12547 = vpow2.f32 %v8091_v58  ;;  %v11804_v14 = vpack.c.bf16 %v11381_v20, %v8518_v44  ;;  %11803 = vmatpush3.bf16.msra.mxu1 %v11800_v13  ;;  %v16428_v58 = vld [vmem:[#allocation50_spill] sm:$0xff] }
0x140c   : > { %v12532_v38 = vpop.eup %12531  ;;  %v8132_v2 = vmul.f32 %v12530_v28, %v15734_v45  ;;  %12549 = vrcp.f32 %v8104_v30  ;;  %v16429_v30 = vld [vmem:[#allocation56_spill] sm:$0xff] }
0x140d   : > { %v12534_v10 = vpop.eup %12533  ;;  %v8131_v5 = vmul.f32 %v12532_v38, %v15737_v11  ;;  %12551 = vrcp.f32 %v8103_v19  ;;  %v11384_v31 = vpop.f32.mrb[252].mxu0  ;;  %11805 = vmatprep.subr.bf16.mxu1 %v11804_v14  ;;  %11347 = vmatprep.mubr.msk.f32.mxu1 %vm2485_vm8, %v8145_v59  ;;  %v16430_v59 = vld [vmem:[#allocation54_spill] sm:$0xff] }
0x140e   : > { %v12536_v8 = vpop.eup %12535  ;;  %v8106_v22 = vadd.f32 1.0, %v12534_v10  ;;  %v8528_v56 = vpop.f32.mrb[253].mxu0  ;;  %11348 = vmatmul.mubr.msk.f32.gmra.mrb[162].mxu1 %vm2485_vm8, %v8146_v55  ;;  %v8148_v47 = vadd.f32 %v8132_v2, %v14942_v52  ;;  %v16431_v55 = vld [vmem:[#allocation64_spill] sm:$0xff] }
0x140f   : > { %v8147_v42 = vadd.f32 %v8131_v5, %v14939_v1  ;;  %v8105_v34 = vadd.f32 1.0, %v12536_v8  ;;  %v11808_v37 = vpack.c.bf16 %v11384_v31, %v8528_v56  ;;  %11807 = vmatpush3.bf16.msra.mxu1 %v11804_v14  ;;  %v16432_v10 = vld [vmem:[#allocation60_spill] sm:$0xff] }
0x1410   : > { %v12538_v45 = vpop.eup %12537  ;;  %12553 = vrcp.f32 %v8106_v22 }
0x1411   : > { %v12540_v11 = vpop.eup %12539  ;;  %12555 = vrcp.f32 %v8105_v34  ;;  %v8108_v25 = vadd.f32 1.0, %v12538_v45  ;;  %v11387_v63 = vpop.f32.mrb[254].mxu0  ;;  %11809 = vmatprep.subr.bf16.mxu1 %v11808_v37  ;;  %11350 = vmatprep.mubr.msk.f32.mxu1 %vm2485_vm8, %v8147_v42  ;;  %v16434_v42 = vld [vmem:[#allocation68_spill] sm:$0xff] }
0x1412   : > { %v12542_v3 = vpop.eup %12541  ;;  %v8107_v41 = vadd.f32 1.0, %v12540_v11  ;;  %v8538_v33 = vpop.f32.mrb[255].mxu0  ;;  %11351 = vmatmul.mubr.msk.f32.gmra.mrb[164].mxu1 %vm2485_vm8, %v8148_v47  ;;  %v16435_v47 = vld [vmem:[#allocation80_spill] sm:$0xff] }
0x1413   : > { %v12544_v1 = vpop.eup %12543  ;;  %v8134_v40 = vmul.f32 %v12542_v3, %v15748_v32  ;;  %12557 = vrcp.f32 %v8108_v25  ;;  %v11812_v12 = vpack.c.bf16 %v11387_v63, %v8538_v33  ;;  %11811 = vmatpush3.bf16.msra.mxu1 %v11808_v37  ;;  %v16441_v63 = vld [vmem:[#allocation108_spill] sm:$0xff] }
0x1414   : > { %v12546_v52 = vpop.eup %12545  ;;  %v8133_v51 = vmul.f32 %v12544_v1, %v15753_v53  ;;  %12559 = vrcp.f32 %v8107_v41 }
0x1415   : > { %v12548_v43 = vpop.eup %12547  ;;  %v8110_v60 = vadd.f32 1.0, %v12546_v52  ;;  %11813 = vmatprep.subr.bf16.mxu1 %v11812_v12  ;;  %v8150_v20 = vadd.f32 %v8134_v40, %v16428_v58  ;;  %v16442_v52 = vld [vmem:[#allocation109_spill] sm:$0xff]  ;;  %v16444_v58 = vld [vmem:[#allocation111_spill] sm:$0xff] }
0x1416   : > { %v12550_v29 = vpop.eup %12549  ;;  %v8149_v13 = vadd.f32 %v8133_v51, %v16427_v27  ;;  %v8109_v18 = vadd.f32 1.0, %v12548_v43 }
0x1417   : > { %v12552_v39 = vpop.eup %12551  ;;  %v8136_v36 = vmul.f32 %v12550_v29, %v15760_v0  ;;  %12561 = vrcp.f32 %v8110_v60  ;;  %11815 = vmatpush3.bf16.msra.mxu1 %v11812_v12  ;;  %v16443_v60 = vld [vmem:[#allocation110_spill] sm:$0xff] }
0x1418   : > { %v8135_v32 = vmul.f32 %v12552_v39, %v15765_v23  ;;  %12563 = vrcp.f32 %v8109_v18  ;;  %11353 = vmatprep.mubr.msk.f32.mxu1 %vm2485_vm8, %v8149_v13 }
0x1419   : > { %11354 = vmatmul.mubr.msk.f32.gmra.mrb[166].mxu1 %vm2485_vm8, %v8150_v20  ;;  %v8152_v19 = vadd.f32 %v8136_v36, %v16430_v59  ;;  %v16445_v36 = vld [vmem:[#allocation112_spill] sm:$0xff] }
0x141a   : > { %v12554_v53 = vpop.eup %12553  ;;  %v8151_v44 = vadd.f32 %v8135_v32, %v16429_v30 }
0x141b   : > { %v12556_v28 = vpop.eup %12555  ;;  %v8138_v14 = vmul.f32 %v12554_v53, %v15772_v49  ;;  %v16433_v49 = vld [vmem:[#allocation72_spill] sm:$0xff] }
0x141c   : > { %v8137_v38 = vmul.f32 %v12556_v28, %v15777_v48  ;;  %11356 = vmatprep.mubr.msk.f32.mxu1 %vm2485_vm8, %v8151_v44 }
0x141d   : > { %v12558_v0 = vpop.eup %12557  ;;  %11357 = vmatmul.mubr.msk.f32.gmra.mrb[168].mxu1 %vm2485_vm8, %v8152_v19  ;;  %v8154_v5 = vadd.f32 %v8138_v14, %v16432_v10  ;;  %v16446_v14 = vld [vmem:[#allocation113_spill] sm:$0xff] }
0x141e   : > { %v12560_v23 = vpop.eup %12559  ;;  %v8153_v2 = vadd.f32 %v8137_v38, %v16431_v55  ;;  %v8140_v31 = vmul.f32 %v12558_v0, %v15784_v50 }
0x141f   : > { %v8139_v8 = vmul.f32 %v12560_v23, %v15789_v26  ;;  %v16436_v26 = vld [vmem:[#allocation76_spill] sm:$0xff]  ;;  %v16447_v23 = vld [vmem:[#allocation114_spill] sm:$0xff] }
0x1420   : > { %11359 = vmatprep.mubr.msk.f32.mxu1 %vm2485_vm8, %v8153_v2  ;;  %v8156_v34 = vadd.f32 %v8140_v31, %v16434_v42 }
0x1421   : > { %v12562_v22 = vpop.eup %12561  ;;  %v8155_v56 = vadd.f32 %v8139_v8, %v16433_v49  ;;  %11360 = vmatmul.mubr.msk.f32.gmra.mrb[170].mxu1 %vm2485_vm8, %v8154_v5 }
0x1422   : > { %v12564_v48 = vpop.eup %12563  ;;  %v8142_v37 = vmul.f32 %v12562_v22, %v15795_v17  ;;  %v16448_v22 = vld [vmem:[#allocation115_spill] sm:$0xff] }
0x1423   : > { %v8141_v45 = vmul.f32 %v12564_v48, %v15799_v57  ;;  %11362 = vmatprep.mubr.msk.f32.mxu1 %vm2485_vm8, %v8155_v56  ;;  %v16440_v57 = vld [vmem:[#allocation107_spill] sm:$0xff]  ;;  %v16449_v56 = vld [vmem:[#allocation116_spill] sm:$0xff] }
0x1424   : > { %v8158_v11 = vadd.f32 %v8142_v37, %v16436_v26  ;;  %v16450_v26 = vld [vmem:[#allocation117_spill] sm:$0xff] }
0x1425   : > { %v8157_v50 = vadd.f32 %v8141_v45, %v16435_v47  ;;  %11363 = vmatmul.mubr.msk.f32.gmra.mrb[172].mxu1 %vm2485_vm8, %v8156_v34 }
0x1427   : > { %11365 = vmatprep.mubr.msk.f32.mxu1 %vm2485_vm8, %v8157_v50 }
0x1429   : > { %11366 = vmatmul.mubr.msk.f32.gmra.mrb[174].mxu1 %vm2485_vm8, %v8158_v11 }
0x142a   : > { %11404 = vmatprep.mubr.msk.f32.mxu1 %vm2155_vm4, %v16379_v62  ;;  %v16437_v62 = vld [vmem:[#allocation101_spill] sm:$0xff] }
0x142d   : > { %11405 = vmatmul.mubr.msk.f32.vlgmr.msra.gmra.mrb[176].mxu1 %vm2155_vm4, %v16380_v16  ;;  %v16438_v16 = vld [vmem:[#allocation103_spill] sm:$0xff] }
0x142e   : > { %11407 = vmatprep.mubr.msk.f32.mxu1 %vm2155_vm4, %v16381_v54  ;;  %v16439_v54 = vld [vmem:[#allocation105_spill] sm:$0xff] }
0x1431   : > { %11408 = vmatmul.mubr.msk.f32.gmra.mrb[178].mxu1 %vm2155_vm4, %v16382_v15  ;;  %v15881_v15 = vpop.permute.xlu1 %8699 }
0x1432   : > { %11410 = vmatprep.mubr.msk.f32.mxu1 %vm2155_vm4, %v16383_v35  ;;  %v15883_v35 = vpop.permute.xlu0 %8694 }
0x1435   : > { %11411 = vmatmul.mubr.msk.f32.gmra.mrb[180].mxu1 %vm2155_vm4, %v16384_v21  ;;  %v15885_v21 = vpop.permute.xlu1 %8709 }
0x1436   : > { %11413 = vmatprep.mubr.msk.f32.mxu1 %vm2155_vm4, %v16385_v4  ;;  %v15887_v4 = vpop.permute.xlu0 %8704 }
0x1439   : > { %11414 = vmatmul.mubr.msk.f32.gmra.mrb[182].mxu1 %vm2155_vm4, %v16386_v24  ;;  %v15889_v24 = vpop.permute.xlu1 %8719 }
0x143a   : > { %11416 = vmatprep.mubr.msk.f32.mxu1 %vm2155_vm4, %v16387_v61  ;;  %v15891_v61 = vpop.permute.xlu0 %8714 }
0x143d   : > { %11417 = vmatmul.mubr.msk.f32.gmra.mrb[184].mxu1 %vm2155_vm4, %v16388_v6  ;;  %v15893_v6 = vpop.permute.xlu1 %8729 }
0x143e   : > { %11419 = vmatprep.mubr.msk.f32.mxu1 %vm2155_vm4, %v16389_v46  ;;  %v15895_v46 = vpop.permute.xlu0 %8724 }
0x1441   : > { %11420 = vmatmul.mubr.msk.f32.gmra.mrb[186].mxu1 %vm2155_vm4, %v16390_v9  ;;  %v9592_v9 = vld [vmem:[%s16046_s9 + $0x17] ss:$0 sm:$0xff] }
0x1442   : > { %11422 = vmatprep.mubr.msk.f32.mxu1 %vm2155_vm4, %v16391_v7  ;;  %v15900_v7 = vpop.permute.xlu1 %8739  ;;  %v15902_v17 = vpop.permute.xlu0 %8734  ;;  %v8362_v25 = vadd.f32 %v16440_v57, %v9592_v9  ;;  %v8361_v3 = vadd.f32 %v9592_v9, %v16441_v63  ;;  %v8364_v51 = vadd.f32 %v16442_v52, %v9592_v9  ;;  %v8363_v29 = vadd.f32 %v9592_v9, %v16443_v60  ;;  %v16453_v52 = vld [vmem:[#allocation120_spill] sm:$0xff] }
0x1443   : > { %v8366_v20 = vadd.f32 %v16444_v58, %v9592_v9  ;;  %v8365_v32 = vadd.f32 %v9592_v9, %v16445_v36  ;;  %v8368_v38 = vadd.f32 %v16446_v14, %v9592_v9  ;;  %v8367_v55 = vadd.f32 %v9592_v9, %v16447_v23  ;;  %v15945_v58 = vld [vmem:[%s16046_s9 + $0x18] ss:$0 sm:$0xff] }
0x1444   : > { %v8370_v49 = vadd.f32 %v16448_v22, %v9592_v9  ;;  %v8369_v48 = vadd.f32 %v9592_v9, %v16449_v56  ;;  %v8372_v11 = vadd.f32 %v16450_v26, %v9592_v9  ;;  %v16454_v36 = vld [vmem:[#allocation121_spill] sm:$0xff] }
0x1445   : > { %11423 = vmatmul.mubr.msk.f32.gmra.mrb[188].mxu1 %vm2155_vm4, %v16437_v62  ;;  %v16451_v62 = vld [vmem:[#allocation118_spill] sm:$0xff] }
0x1446   : > { %11425 = vmatprep.mubr.msk.f32.mxu1 %vm2155_vm4, %v16438_v16  ;;  %v15906_v12 = vpop.permute.xlu1 %8749  ;;  %v15909_v43 = vpop.permute.xlu0 %8744  ;;  %v8371_v16 = vadd.f32 %v9592_v9, %v16451_v62 }
0x1449   : > { %11426 = vmatmul.mubr.msk.f32.gmra.mrb[190].mxu1 %vm2155_vm4, %v16439_v54 }
0x144a   : > { %v15914_v30 = vpop.permute.xlu1 %8759  ;;  %v15916_v59 = vpop.permute.xlu0 %8754 }
0x144e   : > { %v15919_v0 = vpop.permute.xlu1 %8769  ;;  %v15922_v10 = vpop.permute.xlu0 %8764 }
0x1452   : > { %v8812_v45 = vpop.permute.xlu1 %8811  ;;  %v8807_v50 = vpop.permute.xlu0 %8806 }
0x14dd   : > { %v11346_v41 = vpop.f32.mrb[160].mxu1 }
0x14de   : > { %v8378_v33 = vmul.f32 %v11346_v41, %v8362_v25  ;;  %v8277_v1 = vpop.f32.mrb[161].mxu1 }
0x14df   : > { %v8377_v40 = vmul.f32 %v8361_v3, %v8277_v1  ;;  %v16452_v3 = vld [vmem:[#allocation119_spill] sm:$0xff]  ;;  %v8822_v1 = vpop.permute.xlu1 %8821 }
0x14e0   : > { %v8374_v41 = vadd.f32 %v16452_v3, %v9592_v9 }
0x14e1   : > { %v11349_v27 = vpop.f32.mrb[162].mxu1 }
0x14e2   : > { %v8380_v13 = vmul.f32 %v11349_v27, %v8364_v51  ;;  %v8287_v18 = vpop.f32.mrb[163].mxu1  ;;  %v8373_v51 = vadd.f32 %v9592_v9, %v16453_v52 }
0x14e3   : > { %v8379_v39 = vmul.f32 %v8363_v29, %v8287_v18  ;;  %v8817_v29 = vpop.permute.xlu0 %8816 }
0x14e5   : > { %v11352_v53 = vpop.f32.mrb[164].mxu1 }
0x14e6   : > { %v8382_v44 = vmul.f32 %v11352_v53, %v8366_v20  ;;  %v8297_v28 = vpop.f32.mrb[165].mxu1  ;;  %v16455_v53 = vld [vmem:[#allocation122_spill] sm:$0xff] }
0x14e7   : > { %v8381_v19 = vmul.f32 %v8365_v32, %v8297_v28  ;;  %v8376_v32 = vadd.f32 %v16454_v36, %v9592_v9  ;;  %v8375_v28 = vadd.f32 %v9592_v9, %v16455_v53  ;;  %v8400_v9 = vadd.f32 %v15945_v58, %v8379_v39 }
0x14e9   : > { %v8402_v39 = vadd.f32 %v15945_v58, %v8381_v19 }
0x14ec   : > { %v11355_v2 = vpop.f32.mrb[166].mxu1 }
0x14ed   : > { %v8384_v5 = vmul.f32 %v11355_v2, %v8368_v38  ;;  %v8307_v31 = vpop.f32.mrb[167].mxu1  ;;  %v8399_v38 = vadd.f32 %v15945_v58, %v8378_v33  ;;  %v8832_v2 = vpop.permute.xlu1 %8831 }
0x14ee   : > { %v15924_v8 = vmul.f32 %v8367_v55, %v8307_v31  ;;  %v8398_v31 = vadd.f32 %v15945_v58, %v8377_v40 }
0x14f0   : > { %v11358_v42 = vpop.f32.mrb[168].mxu1  ;;  %v8884_v40 = vmul.f32 %v8807_v50, %v8398_v31  ;;  %v8886_v50 = vmul.f32 %v8817_v29, %v8400_v9  ;;  %v8404_v19 = vadd.f32 %v15945_v58, %v15924_v8 }
0x14f1   : > { %v15928_v34 = vmul.f32 %v11358_v42, %v8370_v49  ;;  %v8317_v37 = vpop.f32.mrb[169].mxu1  ;;  %v8827_v49 = vpop.permute.xlu0 %8826 }
0x14f2   : > { %v15930_v47 = vmul.f32 %v8369_v48, %v8317_v37  ;;  %v8401_v48 = vadd.f32 %v15945_v58, %v8380_v13  ;;  %v8885_v37 = vmul.f32 %v8812_v45, %v8399_v38  ;;  %v8842_v62 = vpop.permute.xlu1 %8841  ;;  %v8403_v45 = vadd.f32 %v15945_v58, %v8382_v44 }
0x14f3   : > { %v8405_v44 = vadd.f32 %v15945_v58, %v8384_v5  ;;  %v8888_v29 = vmul.f32 %v8827_v49, %v8402_v39 }
0x14f4   : > { %v11361_v54 = vpop.f32.mrb[170].mxu1  ;;  %v8406_v8 = vadd.f32 %v15945_v58, %v15930_v47 }
0x14f5   : > { %v15934_v57 = vmul.f32 %v11361_v54, %v8372_v11  ;;  %v8327_v25 = vpop.f32.mrb[171].mxu1 }
0x14f6   : > { %v15936_v63 = vmul.f32 %v8371_v16, %v8327_v25  ;;  %v8887_v25 = vmul.f32 %v8822_v1, %v8401_v48  ;;  %v8889_v1 = vmul.f32 %v8832_v2, %v8403_v45 }
0x14f8   : > { %v11364_v60 = vpop.f32.mrb[172].mxu1 }
0x14f9   : > { %v15940_v27 = vmul.f32 %v11364_v60, %v8374_v41  ;;  %v8337_v18 = vpop.f32.mrb[173].mxu1 }
0x14fa   : > { %v15947_v20 = vmul.f32 %v8373_v51, %v8337_v18  ;;  %v8852_v18 = vpop.permute.xlu1 %8851 }
0x14fc   : > { %v11367_v14 = vpop.f32.mrb[174].mxu1 }
0x14fd   : > { %v15952_v23 = vmul.f32 %v11367_v14, %v8376_v32  ;;  %v8347_v55 = vpop.f32.mrb[175].mxu1  ;;  %v8891_v14 = vmul.f32 %v8842_v62, %v8405_v44 }
0x14fe   : > { %v15955_v22 = vmul.f32 %v8375_v28, %v8347_v55  ;;  %v8862_v31 = vpop.permute.xlu1 %8861 }
0x1500   : > { %v11406_v56 = vpop.f32.mrb[176].mxu1  ;;  %v8412_v39 = vadd.f32 %v15945_v58, %v15955_v22 }
0x1501   : > { %v8773_v42 = vmul.f32 %v11406_v56, %v15881_v15  ;;  %v8613_v26 = vpop.f32.mrb[177].mxu1  ;;  %v8837_v15 = vpop.permute.xlu0 %8836 }
0x1502   : > { %v8772_v33 = vmul.f32 %v15883_v35, %v8613_v26  ;;  %v8890_v55 = vmul.f32 %v8837_v15, %v8404_v19 }
0x1503   : > { %v8901_v11 = vadd.f32 %v8885_v37, %v8773_v42 }
0x1504   : > { %v8900_v16 = vadd.f32 %v8884_v40, %v8772_v33  ;;  %v11409_v13 = vpop.f32.mrb[178].mxu1 }
0x1505   : > { %8917 = vst.msk [vmem:[%s15963_s24 + $0x8] sm:$0xff] %vm858_vm1, %v8901_v11  ;;  %v8775_v54 = vmul.f32 %v11409_v13, %v15885_v21  ;;  %v8623_v3 = vpop.f32.mrb[179].mxu1  ;;  %v8847_v36 = vpop.permute.xlu0 %8846 }
0x1506   : > { %8916 = vst.msk [vmem:[%s15963_s24] sm:$0xff] %vm858_vm1, %v8900_v16  ;;  %v8774_v35 = vmul.f32 %v15887_v4, %v8623_v3  ;;  %v8892_v26 = vmul.f32 %v8847_v36, %v8406_v8  ;;  %v8410_v16 = vadd.f32 %v15945_v58, %v15947_v20 }
0x1507   : > { %v8903_v41 = vadd.f32 %v8887_v25, %v8775_v54 }
0x1508   : > { %v8902_v52 = vadd.f32 %v8886_v50, %v8774_v35  ;;  %v11412_v51 = vpop.f32.mrb[180].mxu1 }
0x1509   : > { %8919 = vst.msk [vmem:[%s15963_s24 + $0x18] sm:$0xff] %vm858_vm1, %v8903_v41  ;;  %v8777_v21 = vmul.f32 %v11412_v51, %v15889_v24  ;;  %v8633_v60 = vpop.f32.mrb[181].mxu1  ;;  %v8407_v24 = vadd.f32 %v15945_v58, %v15928_v34  ;;  %v8857_v56 = vpop.permute.xlu0 %8856 }
0x150a   : > { %8918 = vst.msk [vmem:[%s15963_s24 + $0x10] sm:$0xff] %vm858_vm1, %v8902_v52  ;;  %v8776_v4 = vmul.f32 %v15891_v61, %v8633_v60 }
0x150b   : > { %v8905_v32 = vadd.f32 %v8889_v1, %v8777_v21  ;;  %v8893_v42 = vmul.f32 %v8852_v18, %v8407_v24 }
0x150c   : > { %v8904_v53 = vadd.f32 %v8888_v29, %v8776_v4  ;;  %v11415_v5 = vpop.f32.mrb[182].mxu1 }
0x150d   : > { %8921 = vst.msk [vmem:[%s15963_s24 + $0x28] sm:$0xff] %vm858_vm1, %v8905_v32  ;;  %v8779_v28 = vmul.f32 %v11415_v5, %v15893_v6  ;;  %v8643_v38 = vpop.f32.mrb[183].mxu1  ;;  %v8409_v6 = vadd.f32 %v15945_v58, %v15934_v57  ;;  %v8411_v57 = vadd.f32 %v15945_v58, %v15940_v27  ;;  %v8867_v15 = vpop.permute.xlu0 %8866 }
0x150e   : > { %8920 = vst.msk [vmem:[%s15963_s24 + $0x20] sm:$0xff] %vm858_vm1, %v8904_v53  ;;  %v8778_v61 = vmul.f32 %v15895_v46, %v8643_v38  ;;  %v8408_v46 = vadd.f32 %v15945_v58, %v15936_v63  ;;  %v8872_v63 = vpop.permute.xlu1 %8871  ;;  %v8896_v35 = vmul.f32 %v8867_v15, %v8410_v16 }
0x150f   : > { %v8907_v2 = vadd.f32 %v8891_v14, %v8779_v28  ;;  %v8895_v11 = vmul.f32 %v8862_v31, %v8409_v6  ;;  %v8897_v3 = vmul.f32 %v8872_v63, %v8411_v57 }
0x1510   : > { %v8906_v49 = vadd.f32 %v8890_v55, %v8778_v61  ;;  %v11418_v34 = vpop.f32.mrb[184].mxu1  ;;  %v8894_v13 = vmul.f32 %v8857_v56, %v8408_v46 }
0x1511   : > { %8923 = vst.msk [vmem:[%s15963_s24 + $0x38] sm:$0xff] %vm858_vm1, %v8907_v2  ;;  %v8781_v48 = vmul.f32 %v11418_v34, %v15900_v7  ;;  %v8653_v47 = vpop.f32.mrb[185].mxu1  ;;  %v8877_v51 = vpop.permute.xlu0 %8876 }
0x1512   : > { %8922 = vst.msk [vmem:[%s15963_s24 + $0x30] sm:$0xff] %vm858_vm1, %v8906_v49  ;;  %v8780_v37 = vmul.f32 %v15902_v17, %v8653_v47  ;;  %v8882_v41 = vpop.permute.xlu1 %8881  ;;  %v8898_v22 = vmul.f32 %v8877_v51, %v8412_v39 }
0x1513   : > { %v8909_v9 = vadd.f32 %v8893_v42, %v8781_v48 }
0x1514   : > { %v8908_v33 = vadd.f32 %v8892_v26, %v8780_v37  ;;  %v11421_v40 = vpop.f32.mrb[186].mxu1 }
0x1515   : > { %8925 = vst.msk [vmem:[%s15963_s24 + $0x48] sm:$0xff] %vm858_vm1, %v8909_v9  ;;  %v8783_v7 = vmul.f32 %v11421_v40, %v15906_v12  ;;  %v8663_v62 = vpop.f32.mrb[187].mxu1  ;;  %v8413_v12 = vadd.f32 %v15945_v58, %v15952_v23 }
0x1516   : > { %8924 = vst.msk [vmem:[%s15963_s24 + $0x40] sm:$0xff] %vm858_vm1, %v8908_v33  ;;  %v8782_v17 = vmul.f32 %v15909_v43, %v8663_v62 }
0x1517   : > { %v8911_v45 = vadd.f32 %v8895_v11, %v8783_v7  ;;  %v8899_v44 = vmul.f32 %v8882_v41, %v8413_v12 }
0x1518   : > { %v8910_v54 = vadd.f32 %v8894_v13, %v8782_v17  ;;  %v11424_v27 = vpop.f32.mrb[188].mxu1 }
0x1519   : > { %8927 = vst.msk [vmem:[%s15963_s24 + $0x58] sm:$0xff] %vm858_vm1, %v8911_v45  ;;  %v8785_v25 = vmul.f32 %v11424_v27, %v15914_v30  ;;  %v8673_v20 = vpop.f32.mrb[189].mxu1 }
0x151a   : > { %8926 = vst.msk [vmem:[%s15963_s24 + $0x50] sm:$0xff] %vm858_vm1, %v8910_v54  ;;  %v8784_v43 = vmul.f32 %v15916_v59, %v8673_v20 }
0x151b   : > { %v8913_v50 = vadd.f32 %v8897_v3, %v8785_v25 }
0x151c   : > { %v8912_v23 = vadd.f32 %v8896_v35, %v8784_v43  ;;  %v11427_v52 = vpop.f32.mrb[190].mxu1 }
0x151d   : > { %8929 = vst.msk [vmem:[%s15963_s24 + $0x68] sm:$0xff] %vm858_vm1, %v8913_v50  ;;  %v8787_v30 = vmul.f32 %v11427_v52, %v15919_v0  ;;  %v8683_v21 = vpop.f32.mrb[191].mxu1 }
0x151e   : > { %8928 = vst.msk [vmem:[%s15963_s24 + $0x60] sm:$0xff] %vm858_vm1, %v8912_v23  ;;  %v8786_v58 = vmul.f32 %v15922_v10, %v8683_v21 }
0x151f   : > { %v8915_v59 = vadd.f32 %v8899_v44, %v8787_v30 }
0x1520   : > { %v8914_v1 = vadd.f32 %v8898_v22, %v8786_v58 }
0x1521   : > { %8931 = vst.msk [vmem:[%s15963_s24 + $0x78] sm:$0xff] %vm858_vm1, %v8915_v59 }
0x1522   : > { %8930 = vst.msk [vmem:[%s15963_s24 + $0x70] sm:$0xff] %vm858_vm1, %v8914_v1 }
0x1523 PF: > { %s20_s13 = sadd.s32 1, %s12571_s13  }
0x1524   : > { %p17_p7 = scmp.ge.s32.totalorder %s20_s13, 6  }
0x1526   :  { %19 = sbr.rel (!%p17_p7) target bundleno = 1 (0x1), region = 102 }

</bundles_post_ra>
